<compile_context>
chip_gen: v5e
topology: v5e:2x2
jax: 0.10.0
libtpu: 0.0.40
codegen_flags: <defaults>
</compile_context>

<pallas_src>
import functools

import jax
import jax.numpy as jnp
from jax.experimental import pallas as pl
from jax.experimental.pallas import tpu as pltpu


def _softmax_out_kernel(xa_ref, xb_ref, w1_ref, b1_ref, w2_ref, b2_ref, o_ref,
                        *, c_out, h, wp, log_output):
    """One (batch, depth-tile) step: conv_1(3x3x3) -> conv_2(1x1x1) -> softmax.

    xa_ref : (1, Cin, TD, Q_in)  main depth window, Q_in = (H+3)*(W+2)
    xb_ref : (1, Cin, 8,  Q_in)  depth halo; only the first 2 rows are used
    w1_ref : (C*Cin*27,) SMEM    conv_1 weight, row-major (c, ci, kd, kh, kw)
    b1_ref : (C,)        SMEM    conv_1 bias
    w2_ref : (C*C,)      SMEM    conv_2 weight, row-major (c2, c1)
    b2_ref : (C,)        SMEM    conv_2 bias
    o_ref  : (1, C, TD, Q_out)   Q_out = H*(W+2); junk columns cropped outside
    """
    _, cin, td, q_in = xa_ref.shape
    q_out = h * wp

    # ---- conv_1: direct VPU convolution, scalar(SMEM) x slab FMAs ----------
    acc = [jnp.full((td, q_out), b1_ref[c], dtype=jnp.float32)
           for c in range(c_out)]
    for ci in range(cin):
        # (TD+2)-deep window for input channel ci; depth lives in sublanes,
        # flattened H*W lives in lanes (lane-dense).
        xwin = jnp.concatenate([xa_ref[0, ci], xb_ref[0, ci, 0:2]], axis=0)
        for kd in range(3):
            xd = xwin[kd:kd + td, :]                       # (TD, Q_in)
            for kh in range(3):
                for kw in range(3):
                    off = kh * wp + kw                     # flat (kh, kw) shift
                    tap = xd[:, off:off + q_out]           # (TD, Q_out)
                    for c in range(c_out):
                        idx = (((c * cin + ci) * 3 + kd) * 3 + kh) * 3 + kw
                        acc[c] = acc[c] + w1_ref[idx] * tap

    # ---- conv_2 (1x1x1): C x C scalar-vector FMAs ---------------------------
    y = []
    for c2 in range(c_out):
        v = jnp.full((td, q_out), b2_ref[c2], dtype=jnp.float32)
        for c1 in range(c_out):
            v = v + w2_ref[c2 * c_out + c1] * acc[c1]
        y.append(v)

    # ---- softmax / log_softmax over the (small) channel axis ---------------
    m = y[0]
    for c in range(1, c_out):
        m = jnp.maximum(m, y[c])
    z = [v - m for v in y]
    e = [jnp.exp(v) for v in z]
    s = e[0]
    for c in range(1, c_out):
        s = s + e[c]
    if log_output:
        log_s = jnp.log(s)
        res = [v - log_s for v in z]
    else:
        inv = 1.0 / s
        res = [v * inv for v in e]

    for c in range(c_out):
        o_ref[0, c] = res[c]


def softmax_out_forward(x, w1, b1, w2, b2, *, criterion="dice", block_depth=8):
    """Forward pass of vnet.softmax_out.

    x  : (N, Cin, D, H, W) float32 (PyTorch NCDHW layout)
    w1 : (C, Cin, 3, 3, 3), b1: (C,)   -- conv_1 (kernel 3, padding 1)
    w2 : (C, C, 1, 1, 1),   b2: (C,)   -- conv_2 (kernel 1)
    Returns (N*D*H*W, C): softmax (criterion='dice') or log_softmax ('nll'),
    matching y_conv.permute(0, 2, 3, 4, 1).view(-1, C) + F.(log_)softmax.
    """
    assert criterion in ("dice", "nll"), \
        "Expect `dice` (dice loss) or `nll` (negative log likelihood loss)."
    n, cin, d, h, w = x.shape
    c = w1.shape[0]
    assert w1.shape == (c, cin, 3, 3, 3) and b1.shape == (c,)
    assert w2.shape == (c, c, 1, 1, 1) and b2.shape == (c,)
    assert block_depth % 8 == 0 and block_depth >= 8

    td = block_depth                          # depth tile (multiple of 8)
    d_pad = -(-d // td) * td                  # D rounded up to a multiple of td
    wp = w + 2                                # padded width  (1 left, 1 right)
    hp = h + 3                                # padded height (1 left, 2 right: slack
                                              # for the flattened-window trick)
    q_in = hp * wp
    q_out = h * wp                            # per-depth extended output length

    # Glue (one fused XLA pad+reshape copy): NCDHW -> (N, Cin, D_pad+8, Hp*Wp).
    # Depth gets 1 leading zero + (d_pad-d+7) trailing zeros so that the 8-deep
    # halo block of the last depth tile stays fully in bounds.
    # TODO(synk): fold this pad into the kernel (masked boundary taps) to save
    #             one HBM round trip of the activation volume.
    x_pad = jnp.pad(x.astype(jnp.float32),
                    ((0, 0), (0, 0), (1, d_pad - d + 7), (1, 2), (1, 1)))
    x_flat = x_pad.reshape(n, cin, d_pad + 8, q_in)

    w1_flat = w1.reshape(-1).astype(jnp.float32)      # (C*Cin*27,)
    b1_flat = b1.reshape(-1).astype(jnp.float32)      # (C,)
    w2_flat = w2.reshape(-1).astype(jnp.float32)      # (C*C,)
    b2_flat = b2.reshape(-1).astype(jnp.float32)      # (C,)

    kernel = functools.partial(_softmax_out_kernel, c_out=c, h=h, wp=wp,
                               log_output=(criterion == "nll"))

    out = pl.pallas_call(
        kernel,
        out_shape=jax.ShapeDtypeStruct((n, c, d_pad, q_out), jnp.float32),
        grid_spec=pltpu.PrefetchScalarGridSpec(
            num_scalar_prefetch=0,
            grid=(n, d_pad // td),
            in_specs=[
                # main depth window: td padded-depth slices starting at db*td
                pl.BlockSpec((1, cin, td, q_in),
                             lambda nb, db: (nb, 0, db, 0)),
                # 8-deep depth halo starting at (db+1)*td (only 2 rows used)
                pl.BlockSpec((1, cin, 8, q_in),
                             lambda nb, db: (nb, 0, (db + 1) * (td // 8), 0)),
                # small weights / biases live in SMEM (scalar-vector FMAs)
                pl.BlockSpec(memory_space=pltpu.MemorySpace.SMEM),
                pl.BlockSpec(memory_space=pltpu.MemorySpace.SMEM),
                pl.BlockSpec(memory_space=pltpu.MemorySpace.SMEM),
                pl.BlockSpec(memory_space=pltpu.MemorySpace.SMEM),
            ],
            out_specs=pl.BlockSpec((1, c, td, q_out),
                                   lambda nb, db: (nb, 0, db, 0)),
        ),
        compiler_params=pltpu.CompilerParams(
            dimension_semantics=("parallel", "parallel")),
    )(x_flat, x_flat, w1_flat, b1_flat, w2_flat, b2_flat)

    # Glue: crop junk depth rows / width columns, then
    # permute(0, 2, 3, 4, 1).view(-1, C).
    out = out[:, :, :d, :].reshape(n, c, d, h, wp)[..., :w]
    out = jnp.transpose(out, (0, 2, 3, 4, 1))
    return out.reshape(-1, c)


if __name__ == "__main__":
    # Small shapes consistent with vnet.softmax_out: out_channels must be 2
    # (the module flattens the channel axis into (-1, 2)).
    N, CIN, C = 2, 4, 2
    D = H = W = 16

    key = jax.random.PRNGKey(0)
    kx, kw1, kb1, kw2, kb2 = jax.random.split(key, 5)

    x = jax.random.normal(kx, (N, CIN, D, H, W), dtype=jnp.float32)

    # nn.Conv3d default init: U(+/- 1/sqrt(fan_in))
    bound1 = 1.0 / (CIN * 27) ** 0.5
    w1 = jax.random.uniform(kw1, (C, CIN, 3, 3, 3), jnp.float32, -bound1, bound1)
    b1 = jax.random.uniform(kb1, (C,), jnp.float32, -bound1, bound1)
    bound2 = 1.0 / C ** 0.5
    w2 = jax.random.uniform(kw2, (C, C, 1, 1, 1), jnp.float32, -bound2, bound2)
    b2 = jax.random.uniform(kb2, (C,), jnp.float32, -bound2, bound2)

    def reference(x_, criterion):
        """Pure-XLA softmax_out forward (HIGHEST-precision f32 convs)."""
        y1 = jax.lax.conv_general_dilated(
            x_, w1, window_strides=(1, 1, 1),
            padding=((1, 1), (1, 1), (1, 1)),
            dimension_numbers=("NCDHW", "OIDHW", "NCDHW"),
            precision=jax.lax.Precision.HIGHEST)
        y1 = y1 + b1[None, :, None, None, None]
        y2 = jax.lax.conv_general_dilated(
            y1, w2, window_strides=(1, 1, 1),
            padding=((0, 0), (0, 0), (0, 0)),
            dimension_numbers=("NCDHW", "OIDHW", "NCDHW"),
            precision=jax.lax.Precision.HIGHEST)
        y2 = y2 + b2[None, :, None, None, None]
        flat = jnp.transpose(y2, (0, 2, 3, 4, 1)).reshape(-1, C)
        if criterion == "nll":
            return jax.nn.log_softmax(flat, axis=-1)
        return jax.nn.softmax(flat, axis=-1)

    for criterion in ("dice", "nll"):
        y = softmax_out_forward(x, w1, b1, w2, b2, criterion=criterion)
        y = jax.block_until_ready(y)
        assert y.shape == (N * D * H * W, C)

        ref = reference(x, criterion)
        err = jnp.max(jnp.abs(y - ref))
        assert jnp.allclose(y, ref, atol=5e-5, rtol=1e-5), \
            f"{criterion}: mismatch vs f32 reference (max abs err {err:.3e})"

    print("KERNEL_OK")
</pallas_src>

<mosaic_0001>
module attributes {stable_mosaic.version = 11 : i64} {
  func.func @_softmax_out_kernel(%arg0: i32, %arg1: i32, %arg2: memref<1x4x8x342xf32, #tpu.memory_space<vmem>>, %arg3: memref<1x4x8x342xf32, #tpu.memory_space<vmem>>, %arg4: memref<216xf32, #tpu.memory_space<smem>>, %arg5: memref<2xf32, #tpu.memory_space<smem>>, %arg6: memref<4xf32, #tpu.memory_space<smem>>, %arg7: memref<2xf32, #tpu.memory_space<smem>>, %arg8: memref<1x2x8x288xf32, #tpu.memory_space<vmem>>) attributes {dimension_semantics = [#tpu.dimension_semantics<parallel>, #tpu.dimension_semantics<parallel>], iteration_bounds = array<i64: 2, 2>, scalar_prefetch = 0 : i64, scratch_operands = 0 : i64, tpu.core_type = #tpu.core_type<tc>, window_params = [{transform_indices = @transform_0, window_bounds = array<i64: 1, 4, 8, 342>}, {transform_indices = @transform_1, window_bounds = array<i64: 1, 4, 8, 342>}, {transform_indices = @transform_2, window_bounds = array<i64: 216>}, {transform_indices = @transform_3, window_bounds = array<i64: 2>}, {transform_indices = @transform_4, window_bounds = array<i64: 4>}, {transform_indices = @transform_5, window_bounds = array<i64: 2>}, {transform_indices = @transform_6, window_bounds = array<i64: 1, 2, 8, 288>}]} {
    %c0 = arith.constant 0 : index
    %0 = memref.load %arg5[%c0] : memref<2xf32, #tpu.memory_space<smem>>
    %1 = vector.broadcast %0 : f32 to vector<8x288xf32>
    %c1 = arith.constant 1 : index
    %2 = memref.load %arg5[%c1] : memref<2xf32, #tpu.memory_space<smem>>
    %3 = vector.broadcast %2 : f32 to vector<8x288xf32>
    %c0_0 = arith.constant 0 : index
    %c0_1 = arith.constant 0 : index
    %c0_2 = arith.constant 0 : index
    %c0_3 = arith.constant 0 : index
    %4 = vector.load %arg2[%c0_0, %c0_1, %c0_2, %c0_3] : memref<1x4x8x342xf32, #tpu.memory_space<vmem>>, vector<1x1x8x342xf32>
    %5 = vector.shape_cast %4 : vector<1x1x8x342xf32> to vector<8x342xf32>
    %c0_4 = arith.constant 0 : index
    %c0_5 = arith.constant 0 : index
    %c0_6 = arith.constant 0 : index
    %c0_7 = arith.constant 0 : index
    %6 = vector.load %arg3[%c0_4, %c0_5, %c0_6, %c0_7] : memref<1x4x8x342xf32, #tpu.memory_space<vmem>>, vector<1x1x2x342xf32>
    %7 = vector.shape_cast %6 : vector<1x1x2x342xf32> to vector<2x342xf32>
    %8 = tpu.concatenate %5, %7 in 0 : vector<8x342xf32>, vector<2x342xf32> -> vector<10x342xf32>
    %9 = vector.extract_strided_slice %8 {offsets = [0, 0], sizes = [8, 342], strides = [1, 1]} : vector<10x342xf32> to vector<8x342xf32>
    %10 = vector.extract_strided_slice %9 {offsets = [0, 0], sizes = [8, 288], strides = [1, 1]} : vector<8x342xf32> to vector<8x288xf32>
    %c0_8 = arith.constant 0 : index
    %11 = memref.load %arg4[%c0_8] : memref<216xf32, #tpu.memory_space<smem>>
    %12 = vector.broadcast %11 : f32 to vector<8x288xf32>
    %13 = arith.mulf %12, %10 : vector<8x288xf32>
    %14 = arith.addf %1, %13 : vector<8x288xf32>
    %c108 = arith.constant 108 : index
    %15 = memref.load %arg4[%c108] : memref<216xf32, #tpu.memory_space<smem>>
    %16 = vector.broadcast %15 : f32 to vector<8x288xf32>
    %17 = arith.mulf %16, %10 : vector<8x288xf32>
    %18 = arith.addf %3, %17 : vector<8x288xf32>
    %19 = vector.extract_strided_slice %9 {offsets = [0, 1], sizes = [8, 288], strides = [1, 1]} : vector<8x342xf32> to vector<8x288xf32>
    %c1_9 = arith.constant 1 : index
    %20 = memref.load %arg4[%c1_9] : memref<216xf32, #tpu.memory_space<smem>>
    %21 = vector.broadcast %20 : f32 to vector<8x288xf32>
    %22 = arith.mulf %21, %19 : vector<8x288xf32>
    %23 = arith.addf %14, %22 : vector<8x288xf32>
    %c109 = arith.constant 109 : index
    %24 = memref.load %arg4[%c109] : memref<216xf32, #tpu.memory_space<smem>>
    %25 = vector.broadcast %24 : f32 to vector<8x288xf32>
    %26 = arith.mulf %25, %19 : vector<8x288xf32>
    %27 = arith.addf %18, %26 : vector<8x288xf32>
    %28 = vector.extract_strided_slice %9 {offsets = [0, 2], sizes = [8, 288], strides = [1, 1]} : vector<8x342xf32> to vector<8x288xf32>
    %c2 = arith.constant 2 : index
    %29 = memref.load %arg4[%c2] : memref<216xf32, #tpu.memory_space<smem>>
    %30 = vector.broadcast %29 : f32 to vector<8x288xf32>
    %31 = arith.mulf %30, %28 : vector<8x288xf32>
    %32 = arith.addf %23, %31 : vector<8x288xf32>
    %c110 = arith.constant 110 : index
    %33 = memref.load %arg4[%c110] : memref<216xf32, #tpu.memory_space<smem>>
    %34 = vector.broadcast %33 : f32 to vector<8x288xf32>
    %35 = arith.mulf %34, %28 : vector<8x288xf32>
    %36 = arith.addf %27, %35 : vector<8x288xf32>
    %37 = vector.extract_strided_slice %9 {offsets = [0, 18], sizes = [8, 288], strides = [1, 1]} : vector<8x342xf32> to vector<8x288xf32>
    %c3 = arith.constant 3 : index
    %38 = memref.load %arg4[%c3] : memref<216xf32, #tpu.memory_space<smem>>
    %39 = vector.broadcast %38 : f32 to vector<8x288xf32>
    %40 = arith.mulf %39, %37 : vector<8x288xf32>
    %41 = arith.addf %32, %40 : vector<8x288xf32>
    %c111 = arith.constant 111 : index
    %42 = memref.load %arg4[%c111] : memref<216xf32, #tpu.memory_space<smem>>
    %43 = vector.broadcast %42 : f32 to vector<8x288xf32>
    %44 = arith.mulf %43, %37 : vector<8x288xf32>
    %45 = arith.addf %36, %44 : vector<8x288xf32>
    %46 = vector.extract_strided_slice %9 {offsets = [0, 19], sizes = [8, 288], strides = [1, 1]} : vector<8x342xf32> to vector<8x288xf32>
    %c4 = arith.constant 4 : index
    %47 = memref.load %arg4[%c4] : memref<216xf32, #tpu.memory_space<smem>>
    %48 = vector.broadcast %47 : f32 to vector<8x288xf32>
    %49 = arith.mulf %48, %46 : vector<8x288xf32>
    %50 = arith.addf %41, %49 : vector<8x288xf32>
    %c112 = arith.constant 112 : index
    %51 = memref.load %arg4[%c112] : memref<216xf32, #tpu.memory_space<smem>>
    %52 = vector.broadcast %51 : f32 to vector<8x288xf32>
    %53 = arith.mulf %52, %46 : vector<8x288xf32>
    %54 = arith.addf %45, %53 : vector<8x288xf32>
    %55 = vector.extract_strided_slice %9 {offsets = [0, 20], sizes = [8, 288], strides = [1, 1]} : vector<8x342xf32> to vector<8x288xf32>
    %c5 = arith.constant 5 : index
    %56 = memref.load %arg4[%c5] : memref<216xf32, #tpu.memory_space<smem>>
    %57 = vector.broadcast %56 : f32 to vector<8x288xf32>
    %58 = arith.mulf %57, %55 : vector<8x288xf32>
    %59 = arith.addf %50, %58 : vector<8x288xf32>
    %c113 = arith.constant 113 : index
    %60 = memref.load %arg4[%c113] : memref<216xf32, #tpu.memory_space<smem>>
    %61 = vector.broadcast %60 : f32 to vector<8x288xf32>
    %62 = arith.mulf %61, %55 : vector<8x288xf32>
    %63 = arith.addf %54, %62 : vector<8x288xf32>
    %64 = vector.extract_strided_slice %9 {offsets = [0, 36], sizes = [8, 288], strides = [1, 1]} : vector<8x342xf32> to vector<8x288xf32>
    %c6 = arith.constant 6 : index
    %65 = memref.load %arg4[%c6] : memref<216xf32, #tpu.memory_space<smem>>
    %66 = vector.broadcast %65 : f32 to vector<8x288xf32>
    %67 = arith.mulf %66, %64 : vector<8x288xf32>
    %68 = arith.addf %59, %67 : vector<8x288xf32>
    %c114 = arith.constant 114 : index
    %69 = memref.load %arg4[%c114] : memref<216xf32, #tpu.memory_space<smem>>
    %70 = vector.broadcast %69 : f32 to vector<8x288xf32>
    %71 = arith.mulf %70, %64 : vector<8x288xf32>
    %72 = arith.addf %63, %71 : vector<8x288xf32>
    %73 = vector.extract_strided_slice %9 {offsets = [0, 37], sizes = [8, 288], strides = [1, 1]} : vector<8x342xf32> to vector<8x288xf32>
    %c7 = arith.constant 7 : index
    %74 = memref.load %arg4[%c7] : memref<216xf32, #tpu.memory_space<smem>>
    %75 = vector.broadcast %74 : f32 to vector<8x288xf32>
    %76 = arith.mulf %75, %73 : vector<8x288xf32>
    %77 = arith.addf %68, %76 : vector<8x288xf32>
    %c115 = arith.constant 115 : index
    %78 = memref.load %arg4[%c115] : memref<216xf32, #tpu.memory_space<smem>>
    %79 = vector.broadcast %78 : f32 to vector<8x288xf32>
    %80 = arith.mulf %79, %73 : vector<8x288xf32>
    %81 = arith.addf %72, %80 : vector<8x288xf32>
    %82 = vector.extract_strided_slice %9 {offsets = [0, 38], sizes = [8, 288], strides = [1, 1]} : vector<8x342xf32> to vector<8x288xf32>
    %c8 = arith.constant 8 : index
    %83 = memref.load %arg4[%c8] : memref<216xf32, #tpu.memory_space<smem>>
    %84 = vector.broadcast %83 : f32 to vector<8x288xf32>
    %85 = arith.mulf %84, %82 : vector<8x288xf32>
    %86 = arith.addf %77, %85 : vector<8x288xf32>
    %c116 = arith.constant 116 : index
    %87 = memref.load %arg4[%c116] : memref<216xf32, #tpu.memory_space<smem>>
    %88 = vector.broadcast %87 : f32 to vector<8x288xf32>
    %89 = arith.mulf %88, %82 : vector<8x288xf32>
    %90 = arith.addf %81, %89 : vector<8x288xf32>
    %91 = vector.extract_strided_slice %8 {offsets = [1, 0], sizes = [8, 342], strides = [1, 1]} : vector<10x342xf32> to vector<8x342xf32>
    %92 = vector.extract_strided_slice %91 {offsets = [0, 0], sizes = [8, 288], strides = [1, 1]} : vector<8x342xf32> to vector<8x288xf32>
    %c9 = arith.constant 9 : index
    %93 = memref.load %arg4[%c9] : memref<216xf32, #tpu.memory_space<smem>>
    %94 = vector.broadcast %93 : f32 to vector<8x288xf32>
    %95 = arith.mulf %94, %92 : vector<8x288xf32>
    %96 = arith.addf %86, %95 : vector<8x288xf32>
    %c117 = arith.constant 117 : index
    %97 = memref.load %arg4[%c117] : memref<216xf32, #tpu.memory_space<smem>>
    %98 = vector.broadcast %97 : f32 to vector<8x288xf32>
    %99 = arith.mulf %98, %92 : vector<8x288xf32>
    %100 = arith.addf %90, %99 : vector<8x288xf32>
    %101 = vector.extract_strided_slice %91 {offsets = [0, 1], sizes = [8, 288], strides = [1, 1]} : vector<8x342xf32> to vector<8x288xf32>
    %c10 = arith.constant 10 : index
    %102 = memref.load %arg4[%c10] : memref<216xf32, #tpu.memory_space<smem>>
    %103 = vector.broadcast %102 : f32 to vector<8x288xf32>
    %104 = arith.mulf %103, %101 : vector<8x288xf32>
    %105 = arith.addf %96, %104 : vector<8x288xf32>
    %c118 = arith.constant 118 : index
    %106 = memref.load %arg4[%c118] : memref<216xf32, #tpu.memory_space<smem>>
    %107 = vector.broadcast %106 : f32 to vector<8x288xf32>
    %108 = arith.mulf %107, %101 : vector<8x288xf32>
    %109 = arith.addf %100, %108 : vector<8x288xf32>
    %110 = vector.extract_strided_slice %91 {offsets = [0, 2], sizes = [8, 288], strides = [1, 1]} : vector<8x342xf32> to vector<8x288xf32>
    %c11 = arith.constant 11 : index
    %111 = memref.load %arg4[%c11] : memref<216xf32, #tpu.memory_space<smem>>
    %112 = vector.broadcast %111 : f32 to vector<8x288xf32>
    %113 = arith.mulf %112, %110 : vector<8x288xf32>
    %114 = arith.addf %105, %113 : vector<8x288xf32>
    %c119 = arith.constant 119 : index
    %115 = memref.load %arg4[%c119] : memref<216xf32, #tpu.memory_space<smem>>
    %116 = vector.broadcast %115 : f32 to vector<8x288xf32>
    %117 = arith.mulf %116, %110 : vector<8x288xf32>
    %118 = arith.addf %109, %117 : vector<8x288xf32>
    %119 = vector.extract_strided_slice %91 {offsets = [0, 18], sizes = [8, 288], strides = [1, 1]} : vector<8x342xf32> to vector<8x288xf32>
    %c12 = arith.constant 12 : index
    %120 = memref.load %arg4[%c12] : memref<216xf32, #tpu.memory_space<smem>>
    %121 = vector.broadcast %120 : f32 to vector<8x288xf32>
    %122 = arith.mulf %121, %119 : vector<8x288xf32>
    %123 = arith.addf %114, %122 : vector<8x288xf32>
    %c120 = arith.constant 120 : index
    %124 = memref.load %arg4[%c120] : memref<216xf32, #tpu.memory_space<smem>>
    %125 = vector.broadcast %124 : f32 to vector<8x288xf32>
    %126 = arith.mulf %125, %119 : vector<8x288xf32>
    %127 = arith.addf %118, %126 : vector<8x288xf32>
    %128 = vector.extract_strided_slice %91 {offsets = [0, 19], sizes = [8, 288], strides = [1, 1]} : vector<8x342xf32> to vector<8x288xf32>
    %c13 = arith.constant 13 : index
    %129 = memref.load %arg4[%c13] : memref<216xf32, #tpu.memory_space<smem>>
    %130 = vector.broadcast %129 : f32 to vector<8x288xf32>
    %131 = arith.mulf %130, %128 : vector<8x288xf32>
    %132 = arith.addf %123, %131 : vector<8x288xf32>
    %c121 = arith.constant 121 : index
    %133 = memref.load %arg4[%c121] : memref<216xf32, #tpu.memory_space<smem>>
    %134 = vector.broadcast %133 : f32 to vector<8x288xf32>
    %135 = arith.mulf %134, %128 : vector<8x288xf32>
    %136 = arith.addf %127, %135 : vector<8x288xf32>
    %137 = vector.extract_strided_slice %91 {offsets = [0, 20], sizes = [8, 288], strides = [1, 1]} : vector<8x342xf32> to vector<8x288xf32>
    %c14 = arith.constant 14 : index
    %138 = memref.load %arg4[%c14] : memref<216xf32, #tpu.memory_space<smem>>
    %139 = vector.broadcast %138 : f32 to vector<8x288xf32>
    %140 = arith.mulf %139, %137 : vector<8x288xf32>
    %141 = arith.addf %132, %140 : vector<8x288xf32>
    %c122 = arith.constant 122 : index
    %142 = memref.load %arg4[%c122] : memref<216xf32, #tpu.memory_space<smem>>
    %143 = vector.broadcast %142 : f32 to vector<8x288xf32>
    %144 = arith.mulf %143, %137 : vector<8x288xf32>
    %145 = arith.addf %136, %144 : vector<8x288xf32>
    %146 = vector.extract_strided_slice %91 {offsets = [0, 36], sizes = [8, 288], strides = [1, 1]} : vector<8x342xf32> to vector<8x288xf32>
    %c15 = arith.constant 15 : index
    %147 = memref.load %arg4[%c15] : memref<216xf32, #tpu.memory_space<smem>>
    %148 = vector.broadcast %147 : f32 to vector<8x288xf32>
    %149 = arith.mulf %148, %146 : vector<8x288xf32>
    %150 = arith.addf %141, %149 : vector<8x288xf32>
    %c123 = arith.constant 123 : index
    %151 = memref.load %arg4[%c123] : memref<216xf32, #tpu.memory_space<smem>>
    %152 = vector.broadcast %151 : f32 to vector<8x288xf32>
    %153 = arith.mulf %152, %146 : vector<8x288xf32>
    %154 = arith.addf %145, %153 : vector<8x288xf32>
    %155 = vector.extract_strided_slice %91 {offsets = [0, 37], sizes = [8, 288], strides = [1, 1]} : vector<8x342xf32> to vector<8x288xf32>
    %c16 = arith.constant 16 : index
    %156 = memref.load %arg4[%c16] : memref<216xf32, #tpu.memory_space<smem>>
    %157 = vector.broadcast %156 : f32 to vector<8x288xf32>
    %158 = arith.mulf %157, %155 : vector<8x288xf32>
    %159 = arith.addf %150, %158 : vector<8x288xf32>
    %c124 = arith.constant 124 : index
    %160 = memref.load %arg4[%c124] : memref<216xf32, #tpu.memory_space<smem>>
    %161 = vector.broadcast %160 : f32 to vector<8x288xf32>
    %162 = arith.mulf %161, %155 : vector<8x288xf32>
    %163 = arith.addf %154, %162 : vector<8x288xf32>
    %164 = vector.extract_strided_slice %91 {offsets = [0, 38], sizes = [8, 288], strides = [1, 1]} : vector<8x342xf32> to vector<8x288xf32>
    %c17 = arith.constant 17 : index
    %165 = memref.load %arg4[%c17] : memref<216xf32, #tpu.memory_space<smem>>
    %166 = vector.broadcast %165 : f32 to vector<8x288xf32>
    %167 = arith.mulf %166, %164 : vector<8x288xf32>
    %168 = arith.addf %159, %167 : vector<8x288xf32>
    %c125 = arith.constant 125 : index
    %169 = memref.load %arg4[%c125] : memref<216xf32, #tpu.memory_space<smem>>
    %170 = vector.broadcast %169 : f32 to vector<8x288xf32>
    %171 = arith.mulf %170, %164 : vector<8x288xf32>
    %172 = arith.addf %163, %171 : vector<8x288xf32>
    %173 = vector.extract_strided_slice %8 {offsets = [2, 0], sizes = [8, 342], strides = [1, 1]} : vector<10x342xf32> to vector<8x342xf32>
    %174 = vector.extract_strided_slice %173 {offsets = [0, 0], sizes = [8, 288], strides = [1, 1]} : vector<8x342xf32> to vector<8x288xf32>
    %c18 = arith.constant 18 : index
    %175 = memref.load %arg4[%c18] : memref<216xf32, #tpu.memory_space<smem>>
    %176 = vector.broadcast %175 : f32 to vector<8x288xf32>
    %177 = arith.mulf %176, %174 : vector<8x288xf32>
    %178 = arith.addf %168, %177 : vector<8x288xf32>
    %c126 = arith.constant 126 : index
    %179 = memref.load %arg4[%c126] : memref<216xf32, #tpu.memory_space<smem>>
    %180 = vector.broadcast %179 : f32 to vector<8x288xf32>
    %181 = arith.mulf %180, %174 : vector<8x288xf32>
    %182 = arith.addf %172, %181 : vector<8x288xf32>
    %183 = vector.extract_strided_slice %173 {offsets = [0, 1], sizes = [8, 288], strides = [1, 1]} : vector<8x342xf32> to vector<8x288xf32>
    %c19 = arith.constant 19 : index
    %184 = memref.load %arg4[%c19] : memref<216xf32, #tpu.memory_space<smem>>
    %185 = vector.broadcast %184 : f32 to vector<8x288xf32>
    %186 = arith.mulf %185, %183 : vector<8x288xf32>
    %187 = arith.addf %178, %186 : vector<8x288xf32>
    %c127 = arith.constant 127 : index
    %188 = memref.load %arg4[%c127] : memref<216xf32, #tpu.memory_space<smem>>
    %189 = vector.broadcast %188 : f32 to vector<8x288xf32>
    %190 = arith.mulf %189, %183 : vector<8x288xf32>
    %191 = arith.addf %182, %190 : vector<8x288xf32>
    %192 = vector.extract_strided_slice %173 {offsets = [0, 2], sizes = [8, 288], strides = [1, 1]} : vector<8x342xf32> to vector<8x288xf32>
    %c20 = arith.constant 20 : index
    %193 = memref.load %arg4[%c20] : memref<216xf32, #tpu.memory_space<smem>>
    %194 = vector.broadcast %193 : f32 to vector<8x288xf32>
    %195 = arith.mulf %194, %192 : vector<8x288xf32>
    %196 = arith.addf %187, %195 : vector<8x288xf32>
    %c128 = arith.constant 128 : index
    %197 = memref.load %arg4[%c128] : memref<216xf32, #tpu.memory_space<smem>>
    %198 = vector.broadcast %197 : f32 to vector<8x288xf32>
    %199 = arith.mulf %198, %192 : vector<8x288xf32>
    %200 = arith.addf %191, %199 : vector<8x288xf32>
    %201 = vector.extract_strided_slice %173 {offsets = [0, 18], sizes = [8, 288], strides = [1, 1]} : vector<8x342xf32> to vector<8x288xf32>
    %c21 = arith.constant 21 : index
    %202 = memref.load %arg4[%c21] : memref<216xf32, #tpu.memory_space<smem>>
    %203 = vector.broadcast %202 : f32 to vector<8x288xf32>
    %204 = arith.mulf %203, %201 : vector<8x288xf32>
    %205 = arith.addf %196, %204 : vector<8x288xf32>
    %c129 = arith.constant 129 : index
    %206 = memref.load %arg4[%c129] : memref<216xf32, #tpu.memory_space<smem>>
    %207 = vector.broadcast %206 : f32 to vector<8x288xf32>
    %208 = arith.mulf %207, %201 : vector<8x288xf32>
    %209 = arith.addf %200, %208 : vector<8x288xf32>
    %210 = vector.extract_strided_slice %173 {offsets = [0, 19], sizes = [8, 288], strides = [1, 1]} : vector<8x342xf32> to vector<8x288xf32>
    %c22 = arith.constant 22 : index
    %211 = memref.load %arg4[%c22] : memref<216xf32, #tpu.memory_space<smem>>
    %212 = vector.broadcast %211 : f32 to vector<8x288xf32>
    %213 = arith.mulf %212, %210 : vector<8x288xf32>
    %214 = arith.addf %205, %213 : vector<8x288xf32>
    %c130 = arith.constant 130 : index
    %215 = memref.load %arg4[%c130] : memref<216xf32, #tpu.memory_space<smem>>
    %216 = vector.broadcast %215 : f32 to vector<8x288xf32>
    %217 = arith.mulf %216, %210 : vector<8x288xf32>
    %218 = arith.addf %209, %217 : vector<8x288xf32>
    %219 = vector.extract_strided_slice %173 {offsets = [0, 20], sizes = [8, 288], strides = [1, 1]} : vector<8x342xf32> to vector<8x288xf32>
    %c23 = arith.constant 23 : index
    %220 = memref.load %arg4[%c23] : memref<216xf32, #tpu.memory_space<smem>>
    %221 = vector.broadcast %220 : f32 to vector<8x288xf32>
    %222 = arith.mulf %221, %219 : vector<8x288xf32>
    %223 = arith.addf %214, %222 : vector<8x288xf32>
    %c131 = arith.constant 131 : index
    %224 = memref.load %arg4[%c131] : memref<216xf32, #tpu.memory_space<smem>>
    %225 = vector.broadcast %224 : f32 to vector<8x288xf32>
    %226 = arith.mulf %225, %219 : vector<8x288xf32>
    %227 = arith.addf %218, %226 : vector<8x288xf32>
    %228 = vector.extract_strided_slice %173 {offsets = [0, 36], sizes = [8, 288], strides = [1, 1]} : vector<8x342xf32> to vector<8x288xf32>
    %c24 = arith.constant 24 : index
    %229 = memref.load %arg4[%c24] : memref<216xf32, #tpu.memory_space<smem>>
    %230 = vector.broadcast %229 : f32 to vector<8x288xf32>
    %231 = arith.mulf %230, %228 : vector<8x288xf32>
    %232 = arith.addf %223, %231 : vector<8x288xf32>
    %c132 = arith.constant 132 : index
    %233 = memref.load %arg4[%c132] : memref<216xf32, #tpu.memory_space<smem>>
    %234 = vector.broadcast %233 : f32 to vector<8x288xf32>
    %235 = arith.mulf %234, %228 : vector<8x288xf32>
    %236 = arith.addf %227, %235 : vector<8x288xf32>
    %237 = vector.extract_strided_slice %173 {offsets = [0, 37], sizes = [8, 288], strides = [1, 1]} : vector<8x342xf32> to vector<8x288xf32>
    %c25 = arith.constant 25 : index
    %238 = memref.load %arg4[%c25] : memref<216xf32, #tpu.memory_space<smem>>
    %239 = vector.broadcast %238 : f32 to vector<8x288xf32>
    %240 = arith.mulf %239, %237 : vector<8x288xf32>
    %241 = arith.addf %232, %240 : vector<8x288xf32>
    %c133 = arith.constant 133 : index
    %242 = memref.load %arg4[%c133] : memref<216xf32, #tpu.memory_space<smem>>
    %243 = vector.broadcast %242 : f32 to vector<8x288xf32>
    %244 = arith.mulf %243, %237 : vector<8x288xf32>
    %245 = arith.addf %236, %244 : vector<8x288xf32>
    %246 = vector.extract_strided_slice %173 {offsets = [0, 38], sizes = [8, 288], strides = [1, 1]} : vector<8x342xf32> to vector<8x288xf32>
    %c26 = arith.constant 26 : index
    %247 = memref.load %arg4[%c26] : memref<216xf32, #tpu.memory_space<smem>>
    %248 = vector.broadcast %247 : f32 to vector<8x288xf32>
    %249 = arith.mulf %248, %246 : vector<8x288xf32>
    %250 = arith.addf %241, %249 : vector<8x288xf32>
    %c134 = arith.constant 134 : index
    %251 = memref.load %arg4[%c134] : memref<216xf32, #tpu.memory_space<smem>>
    %252 = vector.broadcast %251 : f32 to vector<8x288xf32>
    %253 = arith.mulf %252, %246 : vector<8x288xf32>
    %254 = arith.addf %245, %253 : vector<8x288xf32>
    %c0_10 = arith.constant 0 : index
    %c1_11 = arith.constant 1 : index
    %c0_12 = arith.constant 0 : index
    %c0_13 = arith.constant 0 : index
    %255 = vector.load %arg2[%c0_10, %c1_11, %c0_12, %c0_13] : memref<1x4x8x342xf32, #tpu.memory_space<vmem>>, vector<1x1x8x342xf32>
    %256 = vector.shape_cast %255 : vector<1x1x8x342xf32> to vector<8x342xf32>
    %c0_14 = arith.constant 0 : index
    %c1_15 = arith.constant 1 : index
    %c0_16 = arith.constant 0 : index
    %c0_17 = arith.constant 0 : index
    %257 = vector.load %arg3[%c0_14, %c1_15, %c0_16, %c0_17] : memref<1x4x8x342xf32, #tpu.memory_space<vmem>>, vector<1x1x2x342xf32>
    %258 = vector.shape_cast %257 : vector<1x1x2x342xf32> to vector<2x342xf32>
    %259 = tpu.concatenate %256, %258 in 0 : vector<8x342xf32>, vector<2x342xf32> -> vector<10x342xf32>
    %260 = vector.extract_strided_slice %259 {offsets = [0, 0], sizes = [8, 342], strides = [1, 1]} : vector<10x342xf32> to vector<8x342xf32>
    %261 = vector.extract_strided_slice %260 {offsets = [0, 0], sizes = [8, 288], strides = [1, 1]} : vector<8x342xf32> to vector<8x288xf32>
    %c27 = arith.constant 27 : index
    %262 = memref.load %arg4[%c27] : memref<216xf32, #tpu.memory_space<smem>>
    %263 = vector.broadcast %262 : f32 to vector<8x288xf32>
    %264 = arith.mulf %263, %261 : vector<8x288xf32>
    %265 = arith.addf %250, %264 : vector<8x288xf32>
    %c135 = arith.constant 135 : index
    %266 = memref.load %arg4[%c135] : memref<216xf32, #tpu.memory_space<smem>>
    %267 = vector.broadcast %266 : f32 to vector<8x288xf32>
    %268 = arith.mulf %267, %261 : vector<8x288xf32>
    %269 = arith.addf %254, %268 : vector<8x288xf32>
    %270 = vector.extract_strided_slice %260 {offsets = [0, 1], sizes = [8, 288], strides = [1, 1]} : vector<8x342xf32> to vector<8x288xf32>
    %c28 = arith.constant 28 : index
    %271 = memref.load %arg4[%c28] : memref<216xf32, #tpu.memory_space<smem>>
    %272 = vector.broadcast %271 : f32 to vector<8x288xf32>
    %273 = arith.mulf %272, %270 : vector<8x288xf32>
    %274 = arith.addf %265, %273 : vector<8x288xf32>
    %c136 = arith.constant 136 : index
    %275 = memref.load %arg4[%c136] : memref<216xf32, #tpu.memory_space<smem>>
    %276 = vector.broadcast %275 : f32 to vector<8x288xf32>
    %277 = arith.mulf %276, %270 : vector<8x288xf32>
    %278 = arith.addf %269, %277 : vector<8x288xf32>
    %279 = vector.extract_strided_slice %260 {offsets = [0, 2], sizes = [8, 288], strides = [1, 1]} : vector<8x342xf32> to vector<8x288xf32>
    %c29 = arith.constant 29 : index
    %280 = memref.load %arg4[%c29] : memref<216xf32, #tpu.memory_space<smem>>
    %281 = vector.broadcast %280 : f32 to vector<8x288xf32>
    %282 = arith.mulf %281, %279 : vector<8x288xf32>
    %283 = arith.addf %274, %282 : vector<8x288xf32>
    %c137 = arith.constant 137 : index
    %284 = memref.load %arg4[%c137] : memref<216xf32, #tpu.memory_space<smem>>
    %285 = vector.broadcast %284 : f32 to vector<8x288xf32>
    %286 = arith.mulf %285, %279 : vector<8x288xf32>
    %287 = arith.addf %278, %286 : vector<8x288xf32>
    %288 = vector.extract_strided_slice %260 {offsets = [0, 18], sizes = [8, 288], strides = [1, 1]} : vector<8x342xf32> to vector<8x288xf32>
    %c30 = arith.constant 30 : index
    %289 = memref.load %arg4[%c30] : memref<216xf32, #tpu.memory_space<smem>>
    %290 = vector.broadcast %289 : f32 to vector<8x288xf32>
    %291 = arith.mulf %290, %288 : vector<8x288xf32>
    %292 = arith.addf %283, %291 : vector<8x288xf32>
    %c138 = arith.constant 138 : index
    %293 = memref.load %arg4[%c138] : memref<216xf32, #tpu.memory_space<smem>>
    %294 = vector.broadcast %293 : f32 to vector<8x288xf32>
    %295 = arith.mulf %294, %288 : vector<8x288xf32>
    %296 = arith.addf %287, %295 : vector<8x288xf32>
    %297 = vector.extract_strided_slice %260 {offsets = [0, 19], sizes = [8, 288], strides = [1, 1]} : vector<8x342xf32> to vector<8x288xf32>
    %c31 = arith.constant 31 : index
    %298 = memref.load %arg4[%c31] : memref<216xf32, #tpu.memory_space<smem>>
    %299 = vector.broadcast %298 : f32 to vector<8x288xf32>
    %300 = arith.mulf %299, %297 : vector<8x288xf32>
    %301 = arith.addf %292, %300 : vector<8x288xf32>
    %c139 = arith.constant 139 : index
    %302 = memref.load %arg4[%c139] : memref<216xf32, #tpu.memory_space<smem>>
    %303 = vector.broadcast %302 : f32 to vector<8x288xf32>
    %304 = arith.mulf %303, %297 : vector<8x288xf32>
    %305 = arith.addf %296, %304 : vector<8x288xf32>
    %306 = vector.extract_strided_slice %260 {offsets = [0, 20], sizes = [8, 288], strides = [1, 1]} : vector<8x342xf32> to vector<8x288xf32>
    %c32 = arith.constant 32 : index
    %307 = memref.load %arg4[%c32] : memref<216xf32, #tpu.memory_space<smem>>
    %308 = vector.broadcast %307 : f32 to vector<8x288xf32>
    %309 = arith.mulf %308, %306 : vector<8x288xf32>
    %310 = arith.addf %301, %309 : vector<8x288xf32>
    %c140 = arith.constant 140 : index
    %311 = memref.load %arg4[%c140] : memref<216xf32, #tpu.memory_space<smem>>
    %312 = vector.broadcast %311 : f32 to vector<8x288xf32>
    %313 = arith.mulf %312, %306 : vector<8x288xf32>
    %314 = arith.addf %305, %313 : vector<8x288xf32>
    %315 = vector.extract_strided_slice %260 {offsets = [0, 36], sizes = [8, 288], strides = [1, 1]} : vector<8x342xf32> to vector<8x288xf32>
    %c33 = arith.constant 33 : index
    %316 = memref.load %arg4[%c33] : memref<216xf32, #tpu.memory_space<smem>>
    %317 = vector.broadcast %316 : f32 to vector<8x288xf32>
    %318 = arith.mulf %317, %315 : vector<8x288xf32>
    %319 = arith.addf %310, %318 : vector<8x288xf32>
    %c141 = arith.constant 141 : index
    %320 = memref.load %arg4[%c141] : memref<216xf32, #tpu.memory_space<smem>>
    %321 = vector.broadcast %320 : f32 to vector<8x288xf32>
    %322 = arith.mulf %321, %315 : vector<8x288xf32>
    %323 = arith.addf %314, %322 : vector<8x288xf32>
    %324 = vector.extract_strided_slice %260 {offsets = [0, 37], sizes = [8, 288], strides = [1, 1]} : vector<8x342xf32> to vector<8x288xf32>
    %c34 = arith.constant 34 : index
    %325 = memref.load %arg4[%c34] : memref<216xf32, #tpu.memory_space<smem>>
    %326 = vector.broadcast %325 : f32 to vector<8x288xf32>
    %327 = arith.mulf %326, %324 : vector<8x288xf32>
    %328 = arith.addf %319, %327 : vector<8x288xf32>
    %c142 = arith.constant 142 : index
    %329 = memref.load %arg4[%c142] : memref<216xf32, #tpu.memory_space<smem>>
    %330 = vector.broadcast %329 : f32 to vector<8x288xf32>
    %331 = arith.mulf %330, %324 : vector<8x288xf32>
    %332 = arith.addf %323, %331 : vector<8x288xf32>
    %333 = vector.extract_strided_slice %260 {offsets = [0, 38], sizes = [8, 288], strides = [1, 1]} : vector<8x342xf32> to vector<8x288xf32>
    %c35 = arith.constant 35 : index
    %334 = memref.load %arg4[%c35] : memref<216xf32, #tpu.memory_space<smem>>
    %335 = vector.broadcast %334 : f32 to vector<8x288xf32>
    %336 = arith.mulf %335, %333 : vector<8x288xf32>
    %337 = arith.addf %328, %336 : vector<8x288xf32>
    %c143 = arith.constant 143 : index
    %338 = memref.load %arg4[%c143] : memref<216xf32, #tpu.memory_space<smem>>
    %339 = vector.broadcast %338 : f32 to vector<8x288xf32>
    %340 = arith.mulf %339, %333 : vector<8x288xf32>
    %341 = arith.addf %332, %340 : vector<8x288xf32>
    %342 = vector.extract_strided_slice %259 {offsets = [1, 0], sizes = [8, 342], strides = [1, 1]} : vector<10x342xf32> to vector<8x342xf32>
    %343 = vector.extract_strided_slice %342 {offsets = [0, 0], sizes = [8, 288], strides = [1, 1]} : vector<8x342xf32> to vector<8x288xf32>
    %c36 = arith.constant 36 : index
    %344 = memref.load %arg4[%c36] : memref<216xf32, #tpu.memory_space<smem>>
    %345 = vector.broadcast %344 : f32 to vector<8x288xf32>
    %346 = arith.mulf %345, %343 : vector<8x288xf32>
    %347 = arith.addf %337, %346 : vector<8x288xf32>
    %c144 = arith.constant 144 : index
    %348 = memref.load %arg4[%c144] : memref<216xf32, #tpu.memory_space<smem>>
    %349 = vector.broadcast %348 : f32 to vector<8x288xf32>
    %350 = arith.mulf %349, %343 : vector<8x288xf32>
    %351 = arith.addf %341, %350 : vector<8x288xf32>
    %352 = vector.extract_strided_slice %342 {offsets = [0, 1], sizes = [8, 288], strides = [1, 1]} : vector<8x342xf32> to vector<8x288xf32>
    %c37 = arith.constant 37 : index
    %353 = memref.load %arg4[%c37] : memref<216xf32, #tpu.memory_space<smem>>
    %354 = vector.broadcast %353 : f32 to vector<8x288xf32>
    %355 = arith.mulf %354, %352 : vector<8x288xf32>
    %356 = arith.addf %347, %355 : vector<8x288xf32>
    %c145 = arith.constant 145 : index
    %357 = memref.load %arg4[%c145] : memref<216xf32, #tpu.memory_space<smem>>
    %358 = vector.broadcast %357 : f32 to vector<8x288xf32>
    %359 = arith.mulf %358, %352 : vector<8x288xf32>
    %360 = arith.addf %351, %359 : vector<8x288xf32>
    %361 = vector.extract_strided_slice %342 {offsets = [0, 2], sizes = [8, 288], strides = [1, 1]} : vector<8x342xf32> to vector<8x288xf32>
    %c38 = arith.constant 38 : index
    %362 = memref.load %arg4[%c38] : memref<216xf32, #tpu.memory_space<smem>>
    %363 = vector.broadcast %362 : f32 to vector<8x288xf32>
    %364 = arith.mulf %363, %361 : vector<8x288xf32>
    %365 = arith.addf %356, %364 : vector<8x288xf32>
    %c146 = arith.constant 146 : index
    %366 = memref.load %arg4[%c146] : memref<216xf32, #tpu.memory_space<smem>>
    %367 = vector.broadcast %366 : f32 to vector<8x288xf32>
    %368 = arith.mulf %367, %361 : vector<8x288xf32>
    %369 = arith.addf %360, %368 : vector<8x288xf32>
    %370 = vector.extract_strided_slice %342 {offsets = [0, 18], sizes = [8, 288], strides = [1, 1]} : vector<8x342xf32> to vector<8x288xf32>
    %c39 = arith.constant 39 : index
    %371 = memref.load %arg4[%c39] : memref<216xf32, #tpu.memory_space<smem>>
    %372 = vector.broadcast %371 : f32 to vector<8x288xf32>
    %373 = arith.mulf %372, %370 : vector<8x288xf32>
    %374 = arith.addf %365, %373 : vector<8x288xf32>
    %c147 = arith.constant 147 : index
    %375 = memref.load %arg4[%c147] : memref<216xf32, #tpu.memory_space<smem>>
    %376 = vector.broadcast %375 : f32 to vector<8x288xf32>
    %377 = arith.mulf %376, %370 : vector<8x288xf32>
    %378 = arith.addf %369, %377 : vector<8x288xf32>
    %379 = vector.extract_strided_slice %342 {offsets = [0, 19], sizes = [8, 288], strides = [1, 1]} : vector<8x342xf32> to vector<8x288xf32>
    %c40 = arith.constant 40 : index
    %380 = memref.load %arg4[%c40] : memref<216xf32, #tpu.memory_space<smem>>
    %381 = vector.broadcast %380 : f32 to vector<8x288xf32>
    %382 = arith.mulf %381, %379 : vector<8x288xf32>
    %383 = arith.addf %374, %382 : vector<8x288xf32>
    %c148 = arith.constant 148 : index
    %384 = memref.load %arg4[%c148] : memref<216xf32, #tpu.memory_space<smem>>
    %385 = vector.broadcast %384 : f32 to vector<8x288xf32>
    %386 = arith.mulf %385, %379 : vector<8x288xf32>
    %387 = arith.addf %378, %386 : vector<8x288xf32>
    %388 = vector.extract_strided_slice %342 {offsets = [0, 20], sizes = [8, 288], strides = [1, 1]} : vector<8x342xf32> to vector<8x288xf32>
    %c41 = arith.constant 41 : index
    %389 = memref.load %arg4[%c41] : memref<216xf32, #tpu.memory_space<smem>>
    %390 = vector.broadcast %389 : f32 to vector<8x288xf32>
    %391 = arith.mulf %390, %388 : vector<8x288xf32>
    %392 = arith.addf %383, %391 : vector<8x288xf32>
    %c149 = arith.constant 149 : index
    %393 = memref.load %arg4[%c149] : memref<216xf32, #tpu.memory_space<smem>>
    %394 = vector.broadcast %393 : f32 to vector<8x288xf32>
    %395 = arith.mulf %394, %388 : vector<8x288xf32>
    %396 = arith.addf %387, %395 : vector<8x288xf32>
    %397 = vector.extract_strided_slice %342 {offsets = [0, 36], sizes = [8, 288], strides = [1, 1]} : vector<8x342xf32> to vector<8x288xf32>
    %c42 = arith.constant 42 : index
    %398 = memref.load %arg4[%c42] : memref<216xf32, #tpu.memory_space<smem>>
    %399 = vector.broadcast %398 : f32 to vector<8x288xf32>
    %400 = arith.mulf %399, %397 : vector<8x288xf32>
    %401 = arith.addf %392, %400 : vector<8x288xf32>
    %c150 = arith.constant 150 : index
    %402 = memref.load %arg4[%c150] : memref<216xf32, #tpu.memory_space<smem>>
    %403 = vector.broadcast %402 : f32 to vector<8x288xf32>
    %404 = arith.mulf %403, %397 : vector<8x288xf32>
    %405 = arith.addf %396, %404 : vector<8x288xf32>
    %406 = vector.extract_strided_slice %342 {offsets = [0, 37], sizes = [8, 288], strides = [1, 1]} : vector<8x342xf32> to vector<8x288xf32>
    %c43 = arith.constant 43 : index
    %407 = memref.load %arg4[%c43] : memref<216xf32, #tpu.memory_space<smem>>
    %408 = vector.broadcast %407 : f32 to vector<8x288xf32>
    %409 = arith.mulf %408, %406 : vector<8x288xf32>
    %410 = arith.addf %401, %409 : vector<8x288xf32>
    %c151 = arith.constant 151 : index
    %411 = memref.load %arg4[%c151] : memref<216xf32, #tpu.memory_space<smem>>
    %412 = vector.broadcast %411 : f32 to vector<8x288xf32>
    %413 = arith.mulf %412, %406 : vector<8x288xf32>
    %414 = arith.addf %405, %413 : vector<8x288xf32>
    %415 = vector.extract_strided_slice %342 {offsets = [0, 38], sizes = [8, 288], strides = [1, 1]} : vector<8x342xf32> to vector<8x288xf32>
    %c44 = arith.constant 44 : index
    %416 = memref.load %arg4[%c44] : memref<216xf32, #tpu.memory_space<smem>>
    %417 = vector.broadcast %416 : f32 to vector<8x288xf32>
    %418 = arith.mulf %417, %415 : vector<8x288xf32>
    %419 = arith.addf %410, %418 : vector<8x288xf32>
    %c152 = arith.constant 152 : index
    %420 = memref.load %arg4[%c152] : memref<216xf32, #tpu.memory_space<smem>>
    %421 = vector.broadcast %420 : f32 to vector<8x288xf32>
    %422 = arith.mulf %421, %415 : vector<8x288xf32>
    %423 = arith.addf %414, %422 : vector<8x288xf32>
    %424 = vector.extract_strided_slice %259 {offsets = [2, 0], sizes = [8, 342], strides = [1, 1]} : vector<10x342xf32> to vector<8x342xf32>
    %425 = vector.extract_strided_slice %424 {offsets = [0, 0], sizes = [8, 288], strides = [1, 1]} : vector<8x342xf32> to vector<8x288xf32>
    %c45 = arith.constant 45 : index
    %426 = memref.load %arg4[%c45] : memref<216xf32, #tpu.memory_space<smem>>
    %427 = vector.broadcast %426 : f32 to vector<8x288xf32>
    %428 = arith.mulf %427, %425 : vector<8x288xf32>
    %429 = arith.addf %419, %428 : vector<8x288xf32>
    %c153 = arith.constant 153 : index
    %430 = memref.load %arg4[%c153] : memref<216xf32, #tpu.memory_space<smem>>
    %431 = vector.broadcast %430 : f32 to vector<8x288xf32>
    %432 = arith.mulf %431, %425 : vector<8x288xf32>
    %433 = arith.addf %423, %432 : vector<8x288xf32>
    %434 = vector.extract_strided_slice %424 {offsets = [0, 1], sizes = [8, 288], strides = [1, 1]} : vector<8x342xf32> to vector<8x288xf32>
    %c46 = arith.constant 46 : index
    %435 = memref.load %arg4[%c46] : memref<216xf32, #tpu.memory_space<smem>>
    %436 = vector.broadcast %435 : f32 to vector<8x288xf32>
    %437 = arith.mulf %436, %434 : vector<8x288xf32>
    %438 = arith.addf %429, %437 : vector<8x288xf32>
    %c154 = arith.constant 154 : index
    %439 = memref.load %arg4[%c154] : memref<216xf32, #tpu.memory_space<smem>>
    %440 = vector.broadcast %439 : f32 to vector<8x288xf32>
    %441 = arith.mulf %440, %434 : vector<8x288xf32>
    %442 = arith.addf %433, %441 : vector<8x288xf32>
    %443 = vector.extract_strided_slice %424 {offsets = [0, 2], sizes = [8, 288], strides = [1, 1]} : vector<8x342xf32> to vector<8x288xf32>
    %c47 = arith.constant 47 : index
    %444 = memref.load %arg4[%c47] : memref<216xf32, #tpu.memory_space<smem>>
    %445 = vector.broadcast %444 : f32 to vector<8x288xf32>
    %446 = arith.mulf %445, %443 : vector<8x288xf32>
    %447 = arith.addf %438, %446 : vector<8x288xf32>
    %c155 = arith.constant 155 : index
    %448 = memref.load %arg4[%c155] : memref<216xf32, #tpu.memory_space<smem>>
    %449 = vector.broadcast %448 : f32 to vector<8x288xf32>
    %450 = arith.mulf %449, %443 : vector<8x288xf32>
    %451 = arith.addf %442, %450 : vector<8x288xf32>
    %452 = vector.extract_strided_slice %424 {offsets = [0, 18], sizes = [8, 288], strides = [1, 1]} : vector<8x342xf32> to vector<8x288xf32>
    %c48 = arith.constant 48 : index
    %453 = memref.load %arg4[%c48] : memref<216xf32, #tpu.memory_space<smem>>
    %454 = vector.broadcast %453 : f32 to vector<8x288xf32>
    %455 = arith.mulf %454, %452 : vector<8x288xf32>
    %456 = arith.addf %447, %455 : vector<8x288xf32>
    %c156 = arith.constant 156 : index
    %457 = memref.load %arg4[%c156] : memref<216xf32, #tpu.memory_space<smem>>
    %458 = vector.broadcast %457 : f32 to vector<8x288xf32>
    %459 = arith.mulf %458, %452 : vector<8x288xf32>
    %460 = arith.addf %451, %459 : vector<8x288xf32>
    %461 = vector.extract_strided_slice %424 {offsets = [0, 19], sizes = [8, 288], strides = [1, 1]} : vector<8x342xf32> to vector<8x288xf32>
    %c49 = arith.constant 49 : index
    %462 = memref.load %arg4[%c49] : memref<216xf32, #tpu.memory_space<smem>>
    %463 = vector.broadcast %462 : f32 to vector<8x288xf32>
    %464 = arith.mulf %463, %461 : vector<8x288xf32>
    %465 = arith.addf %456, %464 : vector<8x288xf32>
    %c157 = arith.constant 157 : index
    %466 = memref.load %arg4[%c157] : memref<216xf32, #tpu.memory_space<smem>>
    %467 = vector.broadcast %466 : f32 to vector<8x288xf32>
    %468 = arith.mulf %467, %461 : vector<8x288xf32>
    %469 = arith.addf %460, %468 : vector<8x288xf32>
    %470 = vector.extract_strided_slice %424 {offsets = [0, 20], sizes = [8, 288], strides = [1, 1]} : vector<8x342xf32> to vector<8x288xf32>
    %c50 = arith.constant 50 : index
    %471 = memref.load %arg4[%c50] : memref<216xf32, #tpu.memory_space<smem>>
    %472 = vector.broadcast %471 : f32 to vector<8x288xf32>
    %473 = arith.mulf %472, %470 : vector<8x288xf32>
    %474 = arith.addf %465, %473 : vector<8x288xf32>
    %c158 = arith.constant 158 : index
    %475 = memref.load %arg4[%c158] : memref<216xf32, #tpu.memory_space<smem>>
    %476 = vector.broadcast %475 : f32 to vector<8x288xf32>
    %477 = arith.mulf %476, %470 : vector<8x288xf32>
    %478 = arith.addf %469, %477 : vector<8x288xf32>
    %479 = vector.extract_strided_slice %424 {offsets = [0, 36], sizes = [8, 288], strides = [1, 1]} : vector<8x342xf32> to vector<8x288xf32>
    %c51 = arith.constant 51 : index
    %480 = memref.load %arg4[%c51] : memref<216xf32, #tpu.memory_space<smem>>
    %481 = vector.broadcast %480 : f32 to vector<8x288xf32>
    %482 = arith.mulf %481, %479 : vector<8x288xf32>
    %483 = arith.addf %474, %482 : vector<8x288xf32>
    %c159 = arith.constant 159 : index
    %484 = memref.load %arg4[%c159] : memref<216xf32, #tpu.memory_space<smem>>
    %485 = vector.broadcast %484 : f32 to vector<8x288xf32>
    %486 = arith.mulf %485, %479 : vector<8x288xf32>
    %487 = arith.addf %478, %486 : vector<8x288xf32>
    %488 = vector.extract_strided_slice %424 {offsets = [0, 37], sizes = [8, 288], strides = [1, 1]} : vector<8x342xf32> to vector<8x288xf32>
    %c52 = arith.constant 52 : index
    %489 = memref.load %arg4[%c52] : memref<216xf32, #tpu.memory_space<smem>>
    %490 = vector.broadcast %489 : f32 to vector<8x288xf32>
    %491 = arith.mulf %490, %488 : vector<8x288xf32>
    %492 = arith.addf %483, %491 : vector<8x288xf32>
    %c160 = arith.constant 160 : index
    %493 = memref.load %arg4[%c160] : memref<216xf32, #tpu.memory_space<smem>>
    %494 = vector.broadcast %493 : f32 to vector<8x288xf32>
    %495 = arith.mulf %494, %488 : vector<8x288xf32>
    %496 = arith.addf %487, %495 : vector<8x288xf32>
    %497 = vector.extract_strided_slice %424 {offsets = [0, 38], sizes = [8, 288], strides = [1, 1]} : vector<8x342xf32> to vector<8x288xf32>
    %c53 = arith.constant 53 : index
    %498 = memref.load %arg4[%c53] : memref<216xf32, #tpu.memory_space<smem>>
    %499 = vector.broadcast %498 : f32 to vector<8x288xf32>
    %500 = arith.mulf %499, %497 : vector<8x288xf32>
    %501 = arith.addf %492, %500 : vector<8x288xf32>
    %c161 = arith.constant 161 : index
    %502 = memref.load %arg4[%c161] : memref<216xf32, #tpu.memory_space<smem>>
    %503 = vector.broadcast %502 : f32 to vector<8x288xf32>
    %504 = arith.mulf %503, %497 : vector<8x288xf32>
    %505 = arith.addf %496, %504 : vector<8x288xf32>
    %c0_18 = arith.constant 0 : index
    %c2_19 = arith.constant 2 : index
    %c0_20 = arith.constant 0 : index
    %c0_21 = arith.constant 0 : index
    %506 = vector.load %arg2[%c0_18, %c2_19, %c0_20, %c0_21] : memref<1x4x8x342xf32, #tpu.memory_space<vmem>>, vector<1x1x8x342xf32>
    %507 = vector.shape_cast %506 : vector<1x1x8x342xf32> to vector<8x342xf32>
    %c0_22 = arith.constant 0 : index
    %c2_23 = arith.constant 2 : index
    %c0_24 = arith.constant 0 : index
    %c0_25 = arith.constant 0 : index
    %508 = vector.load %arg3[%c0_22, %c2_23, %c0_24, %c0_25] : memref<1x4x8x342xf32, #tpu.memory_space<vmem>>, vector<1x1x2x342xf32>
    %509 = vector.shape_cast %508 : vector<1x1x2x342xf32> to vector<2x342xf32>
    %510 = tpu.concatenate %507, %509 in 0 : vector<8x342xf32>, vector<2x342xf32> -> vector<10x342xf32>
    %511 = vector.extract_strided_slice %510 {offsets = [0, 0], sizes = [8, 342], strides = [1, 1]} : vector<10x342xf32> to vector<8x342xf32>
    %512 = vector.extract_strided_slice %511 {offsets = [0, 0], sizes = [8, 288], strides = [1, 1]} : vector<8x342xf32> to vector<8x288xf32>
    %c54 = arith.constant 54 : index
    %513 = memref.load %arg4[%c54] : memref<216xf32, #tpu.memory_space<smem>>
    %514 = vector.broadcast %513 : f32 to vector<8x288xf32>
    %515 = arith.mulf %514, %512 : vector<8x288xf32>
    %516 = arith.addf %501, %515 : vector<8x288xf32>
    %c162 = arith.constant 162 : index
    %517 = memref.load %arg4[%c162] : memref<216xf32, #tpu.memory_space<smem>>
    %518 = vector.broadcast %517 : f32 to vector<8x288xf32>
    %519 = arith.mulf %518, %512 : vector<8x288xf32>
    %520 = arith.addf %505, %519 : vector<8x288xf32>
    %521 = vector.extract_strided_slice %511 {offsets = [0, 1], sizes = [8, 288], strides = [1, 1]} : vector<8x342xf32> to vector<8x288xf32>
    %c55 = arith.constant 55 : index
    %522 = memref.load %arg4[%c55] : memref<216xf32, #tpu.memory_space<smem>>
    %523 = vector.broadcast %522 : f32 to vector<8x288xf32>
    %524 = arith.mulf %523, %521 : vector<8x288xf32>
    %525 = arith.addf %516, %524 : vector<8x288xf32>
    %c163 = arith.constant 163 : index
    %526 = memref.load %arg4[%c163] : memref<216xf32, #tpu.memory_space<smem>>
    %527 = vector.broadcast %526 : f32 to vector<8x288xf32>
    %528 = arith.mulf %527, %521 : vector<8x288xf32>
    %529 = arith.addf %520, %528 : vector<8x288xf32>
    %530 = vector.extract_strided_slice %511 {offsets = [0, 2], sizes = [8, 288], strides = [1, 1]} : vector<8x342xf32> to vector<8x288xf32>
    %c56 = arith.constant 56 : index
    %531 = memref.load %arg4[%c56] : memref<216xf32, #tpu.memory_space<smem>>
    %532 = vector.broadcast %531 : f32 to vector<8x288xf32>
    %533 = arith.mulf %532, %530 : vector<8x288xf32>
    %534 = arith.addf %525, %533 : vector<8x288xf32>
    %c164 = arith.constant 164 : index
    %535 = memref.load %arg4[%c164] : memref<216xf32, #tpu.memory_space<smem>>
    %536 = vector.broadcast %535 : f32 to vector<8x288xf32>
    %537 = arith.mulf %536, %530 : vector<8x288xf32>
    %538 = arith.addf %529, %537 : vector<8x288xf32>
    %539 = vector.extract_strided_slice %511 {offsets = [0, 18], sizes = [8, 288], strides = [1, 1]} : vector<8x342xf32> to vector<8x288xf32>
    %c57 = arith.constant 57 : index
    %540 = memref.load %arg4[%c57] : memref<216xf32, #tpu.memory_space<smem>>
    %541 = vector.broadcast %540 : f32 to vector<8x288xf32>
    %542 = arith.mulf %541, %539 : vector<8x288xf32>
    %543 = arith.addf %534, %542 : vector<8x288xf32>
    %c165 = arith.constant 165 : index
    %544 = memref.load %arg4[%c165] : memref<216xf32, #tpu.memory_space<smem>>
    %545 = vector.broadcast %544 : f32 to vector<8x288xf32>
    %546 = arith.mulf %545, %539 : vector<8x288xf32>
    %547 = arith.addf %538, %546 : vector<8x288xf32>
    %548 = vector.extract_strided_slice %511 {offsets = [0, 19], sizes = [8, 288], strides = [1, 1]} : vector<8x342xf32> to vector<8x288xf32>
    %c58 = arith.constant 58 : index
    %549 = memref.load %arg4[%c58] : memref<216xf32, #tpu.memory_space<smem>>
    %550 = vector.broadcast %549 : f32 to vector<8x288xf32>
    %551 = arith.mulf %550, %548 : vector<8x288xf32>
    %552 = arith.addf %543, %551 : vector<8x288xf32>
    %c166 = arith.constant 166 : index
    %553 = memref.load %arg4[%c166] : memref<216xf32, #tpu.memory_space<smem>>
    %554 = vector.broadcast %553 : f32 to vector<8x288xf32>
    %555 = arith.mulf %554, %548 : vector<8x288xf32>
    %556 = arith.addf %547, %555 : vector<8x288xf32>
    %557 = vector.extract_strided_slice %511 {offsets = [0, 20], sizes = [8, 288], strides = [1, 1]} : vector<8x342xf32> to vector<8x288xf32>
    %c59 = arith.constant 59 : index
    %558 = memref.load %arg4[%c59] : memref<216xf32, #tpu.memory_space<smem>>
    %559 = vector.broadcast %558 : f32 to vector<8x288xf32>
    %560 = arith.mulf %559, %557 : vector<8x288xf32>
    %561 = arith.addf %552, %560 : vector<8x288xf32>
    %c167 = arith.constant 167 : index
    %562 = memref.load %arg4[%c167] : memref<216xf32, #tpu.memory_space<smem>>
    %563 = vector.broadcast %562 : f32 to vector<8x288xf32>
    %564 = arith.mulf %563, %557 : vector<8x288xf32>
    %565 = arith.addf %556, %564 : vector<8x288xf32>
    %566 = vector.extract_strided_slice %511 {offsets = [0, 36], sizes = [8, 288], strides = [1, 1]} : vector<8x342xf32> to vector<8x288xf32>
    %c60 = arith.constant 60 : index
    %567 = memref.load %arg4[%c60] : memref<216xf32, #tpu.memory_space<smem>>
    %568 = vector.broadcast %567 : f32 to vector<8x288xf32>
    %569 = arith.mulf %568, %566 : vector<8x288xf32>
    %570 = arith.addf %561, %569 : vector<8x288xf32>
    %c168 = arith.constant 168 : index
    %571 = memref.load %arg4[%c168] : memref<216xf32, #tpu.memory_space<smem>>
    %572 = vector.broadcast %571 : f32 to vector<8x288xf32>
    %573 = arith.mulf %572, %566 : vector<8x288xf32>
    %574 = arith.addf %565, %573 : vector<8x288xf32>
    %575 = vector.extract_strided_slice %511 {offsets = [0, 37], sizes = [8, 288], strides = [1, 1]} : vector<8x342xf32> to vector<8x288xf32>
    %c61 = arith.constant 61 : index
    %576 = memref.load %arg4[%c61] : memref<216xf32, #tpu.memory_space<smem>>
    %577 = vector.broadcast %576 : f32 to vector<8x288xf32>
    %578 = arith.mulf %577, %575 : vector<8x288xf32>
    %579 = arith.addf %570, %578 : vector<8x288xf32>
    %c169 = arith.constant 169 : index
    %580 = memref.load %arg4[%c169] : memref<216xf32, #tpu.memory_space<smem>>
    %581 = vector.broadcast %580 : f32 to vector<8x288xf32>
    %582 = arith.mulf %581, %575 : vector<8x288xf32>
    %583 = arith.addf %574, %582 : vector<8x288xf32>
    %584 = vector.extract_strided_slice %511 {offsets = [0, 38], sizes = [8, 288], strides = [1, 1]} : vector<8x342xf32> to vector<8x288xf32>
    %c62 = arith.constant 62 : index
    %585 = memref.load %arg4[%c62] : memref<216xf32, #tpu.memory_space<smem>>
    %586 = vector.broadcast %585 : f32 to vector<8x288xf32>
    %587 = arith.mulf %586, %584 : vector<8x288xf32>
    %588 = arith.addf %579, %587 : vector<8x288xf32>
    %c170 = arith.constant 170 : index
    %589 = memref.load %arg4[%c170] : memref<216xf32, #tpu.memory_space<smem>>
    %590 = vector.broadcast %589 : f32 to vector<8x288xf32>
    %591 = arith.mulf %590, %584 : vector<8x288xf32>
    %592 = arith.addf %583, %591 : vector<8x288xf32>
    %593 = vector.extract_strided_slice %510 {offsets = [1, 0], sizes = [8, 342], strides = [1, 1]} : vector<10x342xf32> to vector<8x342xf32>
    %594 = vector.extract_strided_slice %593 {offsets = [0, 0], sizes = [8, 288], strides = [1, 1]} : vector<8x342xf32> to vector<8x288xf32>
    %c63 = arith.constant 63 : index
    %595 = memref.load %arg4[%c63] : memref<216xf32, #tpu.memory_space<smem>>
    %596 = vector.broadcast %595 : f32 to vector<8x288xf32>
    %597 = arith.mulf %596, %594 : vector<8x288xf32>
    %598 = arith.addf %588, %597 : vector<8x288xf32>
    %c171 = arith.constant 171 : index
    %599 = memref.load %arg4[%c171] : memref<216xf32, #tpu.memory_space<smem>>
    %600 = vector.broadcast %599 : f32 to vector<8x288xf32>
    %601 = arith.mulf %600, %594 : vector<8x288xf32>
    %602 = arith.addf %592, %601 : vector<8x288xf32>
    %603 = vector.extract_strided_slice %593 {offsets = [0, 1], sizes = [8, 288], strides = [1, 1]} : vector<8x342xf32> to vector<8x288xf32>
    %c64 = arith.constant 64 : index
    %604 = memref.load %arg4[%c64] : memref<216xf32, #tpu.memory_space<smem>>
    %605 = vector.broadcast %604 : f32 to vector<8x288xf32>
    %606 = arith.mulf %605, %603 : vector<8x288xf32>
    %607 = arith.addf %598, %606 : vector<8x288xf32>
    %c172 = arith.constant 172 : index
    %608 = memref.load %arg4[%c172] : memref<216xf32, #tpu.memory_space<smem>>
    %609 = vector.broadcast %608 : f32 to vector<8x288xf32>
    %610 = arith.mulf %609, %603 : vector<8x288xf32>
    %611 = arith.addf %602, %610 : vector<8x288xf32>
    %612 = vector.extract_strided_slice %593 {offsets = [0, 2], sizes = [8, 288], strides = [1, 1]} : vector<8x342xf32> to vector<8x288xf32>
    %c65 = arith.constant 65 : index
    %613 = memref.load %arg4[%c65] : memref<216xf32, #tpu.memory_space<smem>>
    %614 = vector.broadcast %613 : f32 to vector<8x288xf32>
    %615 = arith.mulf %614, %612 : vector<8x288xf32>
    %616 = arith.addf %607, %615 : vector<8x288xf32>
    %c173 = arith.constant 173 : index
    %617 = memref.load %arg4[%c173] : memref<216xf32, #tpu.memory_space<smem>>
    %618 = vector.broadcast %617 : f32 to vector<8x288xf32>
    %619 = arith.mulf %618, %612 : vector<8x288xf32>
    %620 = arith.addf %611, %619 : vector<8x288xf32>
    %621 = vector.extract_strided_slice %593 {offsets = [0, 18], sizes = [8, 288], strides = [1, 1]} : vector<8x342xf32> to vector<8x288xf32>
    %c66 = arith.constant 66 : index
    %622 = memref.load %arg4[%c66] : memref<216xf32, #tpu.memory_space<smem>>
    %623 = vector.broadcast %622 : f32 to vector<8x288xf32>
    %624 = arith.mulf %623, %621 : vector<8x288xf32>
    %625 = arith.addf %616, %624 : vector<8x288xf32>
    %c174 = arith.constant 174 : index
    %626 = memref.load %arg4[%c174] : memref<216xf32, #tpu.memory_space<smem>>
    %627 = vector.broadcast %626 : f32 to vector<8x288xf32>
    %628 = arith.mulf %627, %621 : vector<8x288xf32>
    %629 = arith.addf %620, %628 : vector<8x288xf32>
    %630 = vector.extract_strided_slice %593 {offsets = [0, 19], sizes = [8, 288], strides = [1, 1]} : vector<8x342xf32> to vector<8x288xf32>
    %c67 = arith.constant 67 : index
    %631 = memref.load %arg4[%c67] : memref<216xf32, #tpu.memory_space<smem>>
    %632 = vector.broadcast %631 : f32 to vector<8x288xf32>
    %633 = arith.mulf %632, %630 : vector<8x288xf32>
    %634 = arith.addf %625, %633 : vector<8x288xf32>
    %c175 = arith.constant 175 : index
    %635 = memref.load %arg4[%c175] : memref<216xf32, #tpu.memory_space<smem>>
    %636 = vector.broadcast %635 : f32 to vector<8x288xf32>
    %637 = arith.mulf %636, %630 : vector<8x288xf32>
    %638 = arith.addf %629, %637 : vector<8x288xf32>
    %639 = vector.extract_strided_slice %593 {offsets = [0, 20], sizes = [8, 288], strides = [1, 1]} : vector<8x342xf32> to vector<8x288xf32>
    %c68 = arith.constant 68 : index
    %640 = memref.load %arg4[%c68] : memref<216xf32, #tpu.memory_space<smem>>
    %641 = vector.broadcast %640 : f32 to vector<8x288xf32>
    %642 = arith.mulf %641, %639 : vector<8x288xf32>
    %643 = arith.addf %634, %642 : vector<8x288xf32>
    %c176 = arith.constant 176 : index
    %644 = memref.load %arg4[%c176] : memref<216xf32, #tpu.memory_space<smem>>
    %645 = vector.broadcast %644 : f32 to vector<8x288xf32>
    %646 = arith.mulf %645, %639 : vector<8x288xf32>
    %647 = arith.addf %638, %646 : vector<8x288xf32>
    %648 = vector.extract_strided_slice %593 {offsets = [0, 36], sizes = [8, 288], strides = [1, 1]} : vector<8x342xf32> to vector<8x288xf32>
    %c69 = arith.constant 69 : index
    %649 = memref.load %arg4[%c69] : memref<216xf32, #tpu.memory_space<smem>>
    %650 = vector.broadcast %649 : f32 to vector<8x288xf32>
    %651 = arith.mulf %650, %648 : vector<8x288xf32>
    %652 = arith.addf %643, %651 : vector<8x288xf32>
    %c177 = arith.constant 177 : index
    %653 = memref.load %arg4[%c177] : memref<216xf32, #tpu.memory_space<smem>>
    %654 = vector.broadcast %653 : f32 to vector<8x288xf32>
    %655 = arith.mulf %654, %648 : vector<8x288xf32>
    %656 = arith.addf %647, %655 : vector<8x288xf32>
    %657 = vector.extract_strided_slice %593 {offsets = [0, 37], sizes = [8, 288], strides = [1, 1]} : vector<8x342xf32> to vector<8x288xf32>
    %c70 = arith.constant 70 : index
    %658 = memref.load %arg4[%c70] : memref<216xf32, #tpu.memory_space<smem>>
    %659 = vector.broadcast %658 : f32 to vector<8x288xf32>
    %660 = arith.mulf %659, %657 : vector<8x288xf32>
    %661 = arith.addf %652, %660 : vector<8x288xf32>
    %c178 = arith.constant 178 : index
    %662 = memref.load %arg4[%c178] : memref<216xf32, #tpu.memory_space<smem>>
    %663 = vector.broadcast %662 : f32 to vector<8x288xf32>
    %664 = arith.mulf %663, %657 : vector<8x288xf32>
    %665 = arith.addf %656, %664 : vector<8x288xf32>
    %666 = vector.extract_strided_slice %593 {offsets = [0, 38], sizes = [8, 288], strides = [1, 1]} : vector<8x342xf32> to vector<8x288xf32>
    %c71 = arith.constant 71 : index
    %667 = memref.load %arg4[%c71] : memref<216xf32, #tpu.memory_space<smem>>
    %668 = vector.broadcast %667 : f32 to vector<8x288xf32>
    %669 = arith.mulf %668, %666 : vector<8x288xf32>
    %670 = arith.addf %661, %669 : vector<8x288xf32>
    %c179 = arith.constant 179 : index
    %671 = memref.load %arg4[%c179] : memref<216xf32, #tpu.memory_space<smem>>
    %672 = vector.broadcast %671 : f32 to vector<8x288xf32>
    %673 = arith.mulf %672, %666 : vector<8x288xf32>
    %674 = arith.addf %665, %673 : vector<8x288xf32>
    %675 = vector.extract_strided_slice %510 {offsets = [2, 0], sizes = [8, 342], strides = [1, 1]} : vector<10x342xf32> to vector<8x342xf32>
    %676 = vector.extract_strided_slice %675 {offsets = [0, 0], sizes = [8, 288], strides = [1, 1]} : vector<8x342xf32> to vector<8x288xf32>
    %c72 = arith.constant 72 : index
    %677 = memref.load %arg4[%c72] : memref<216xf32, #tpu.memory_space<smem>>
    %678 = vector.broadcast %677 : f32 to vector<8x288xf32>
    %679 = arith.mulf %678, %676 : vector<8x288xf32>
    %680 = arith.addf %670, %679 : vector<8x288xf32>
    %c180 = arith.constant 180 : index
    %681 = memref.load %arg4[%c180] : memref<216xf32, #tpu.memory_space<smem>>
    %682 = vector.broadcast %681 : f32 to vector<8x288xf32>
    %683 = arith.mulf %682, %676 : vector<8x288xf32>
    %684 = arith.addf %674, %683 : vector<8x288xf32>
    %685 = vector.extract_strided_slice %675 {offsets = [0, 1], sizes = [8, 288], strides = [1, 1]} : vector<8x342xf32> to vector<8x288xf32>
    %c73 = arith.constant 73 : index
    %686 = memref.load %arg4[%c73] : memref<216xf32, #tpu.memory_space<smem>>
    %687 = vector.broadcast %686 : f32 to vector<8x288xf32>
    %688 = arith.mulf %687, %685 : vector<8x288xf32>
    %689 = arith.addf %680, %688 : vector<8x288xf32>
    %c181 = arith.constant 181 : index
    %690 = memref.load %arg4[%c181] : memref<216xf32, #tpu.memory_space<smem>>
    %691 = vector.broadcast %690 : f32 to vector<8x288xf32>
    %692 = arith.mulf %691, %685 : vector<8x288xf32>
    %693 = arith.addf %684, %692 : vector<8x288xf32>
    %694 = vector.extract_strided_slice %675 {offsets = [0, 2], sizes = [8, 288], strides = [1, 1]} : vector<8x342xf32> to vector<8x288xf32>
    %c74 = arith.constant 74 : index
    %695 = memref.load %arg4[%c74] : memref<216xf32, #tpu.memory_space<smem>>
    %696 = vector.broadcast %695 : f32 to vector<8x288xf32>
    %697 = arith.mulf %696, %694 : vector<8x288xf32>
    %698 = arith.addf %689, %697 : vector<8x288xf32>
    %c182 = arith.constant 182 : index
    %699 = memref.load %arg4[%c182] : memref<216xf32, #tpu.memory_space<smem>>
    %700 = vector.broadcast %699 : f32 to vector<8x288xf32>
    %701 = arith.mulf %700, %694 : vector<8x288xf32>
    %702 = arith.addf %693, %701 : vector<8x288xf32>
    %703 = vector.extract_strided_slice %675 {offsets = [0, 18], sizes = [8, 288], strides = [1, 1]} : vector<8x342xf32> to vector<8x288xf32>
    %c75 = arith.constant 75 : index
    %704 = memref.load %arg4[%c75] : memref<216xf32, #tpu.memory_space<smem>>
    %705 = vector.broadcast %704 : f32 to vector<8x288xf32>
    %706 = arith.mulf %705, %703 : vector<8x288xf32>
    %707 = arith.addf %698, %706 : vector<8x288xf32>
    %c183 = arith.constant 183 : index
    %708 = memref.load %arg4[%c183] : memref<216xf32, #tpu.memory_space<smem>>
    %709 = vector.broadcast %708 : f32 to vector<8x288xf32>
    %710 = arith.mulf %709, %703 : vector<8x288xf32>
    %711 = arith.addf %702, %710 : vector<8x288xf32>
    %712 = vector.extract_strided_slice %675 {offsets = [0, 19], sizes = [8, 288], strides = [1, 1]} : vector<8x342xf32> to vector<8x288xf32>
    %c76 = arith.constant 76 : index
    %713 = memref.load %arg4[%c76] : memref<216xf32, #tpu.memory_space<smem>>
    %714 = vector.broadcast %713 : f32 to vector<8x288xf32>
    %715 = arith.mulf %714, %712 : vector<8x288xf32>
    %716 = arith.addf %707, %715 : vector<8x288xf32>
    %c184 = arith.constant 184 : index
    %717 = memref.load %arg4[%c184] : memref<216xf32, #tpu.memory_space<smem>>
    %718 = vector.broadcast %717 : f32 to vector<8x288xf32>
    %719 = arith.mulf %718, %712 : vector<8x288xf32>
    %720 = arith.addf %711, %719 : vector<8x288xf32>
    %721 = vector.extract_strided_slice %675 {offsets = [0, 20], sizes = [8, 288], strides = [1, 1]} : vector<8x342xf32> to vector<8x288xf32>
    %c77 = arith.constant 77 : index
    %722 = memref.load %arg4[%c77] : memref<216xf32, #tpu.memory_space<smem>>
    %723 = vector.broadcast %722 : f32 to vector<8x288xf32>
    %724 = arith.mulf %723, %721 : vector<8x288xf32>
    %725 = arith.addf %716, %724 : vector<8x288xf32>
    %c185 = arith.constant 185 : index
    %726 = memref.load %arg4[%c185] : memref<216xf32, #tpu.memory_space<smem>>
    %727 = vector.broadcast %726 : f32 to vector<8x288xf32>
    %728 = arith.mulf %727, %721 : vector<8x288xf32>
    %729 = arith.addf %720, %728 : vector<8x288xf32>
    %730 = vector.extract_strided_slice %675 {offsets = [0, 36], sizes = [8, 288], strides = [1, 1]} : vector<8x342xf32> to vector<8x288xf32>
    %c78 = arith.constant 78 : index
    %731 = memref.load %arg4[%c78] : memref<216xf32, #tpu.memory_space<smem>>
    %732 = vector.broadcast %731 : f32 to vector<8x288xf32>
    %733 = arith.mulf %732, %730 : vector<8x288xf32>
    %734 = arith.addf %725, %733 : vector<8x288xf32>
    %c186 = arith.constant 186 : index
    %735 = memref.load %arg4[%c186] : memref<216xf32, #tpu.memory_space<smem>>
    %736 = vector.broadcast %735 : f32 to vector<8x288xf32>
    %737 = arith.mulf %736, %730 : vector<8x288xf32>
    %738 = arith.addf %729, %737 : vector<8x288xf32>
    %739 = vector.extract_strided_slice %675 {offsets = [0, 37], sizes = [8, 288], strides = [1, 1]} : vector<8x342xf32> to vector<8x288xf32>
    %c79 = arith.constant 79 : index
    %740 = memref.load %arg4[%c79] : memref<216xf32, #tpu.memory_space<smem>>
    %741 = vector.broadcast %740 : f32 to vector<8x288xf32>
    %742 = arith.mulf %741, %739 : vector<8x288xf32>
    %743 = arith.addf %734, %742 : vector<8x288xf32>
    %c187 = arith.constant 187 : index
    %744 = memref.load %arg4[%c187] : memref<216xf32, #tpu.memory_space<smem>>
    %745 = vector.broadcast %744 : f32 to vector<8x288xf32>
    %746 = arith.mulf %745, %739 : vector<8x288xf32>
    %747 = arith.addf %738, %746 : vector<8x288xf32>
    %748 = vector.extract_strided_slice %675 {offsets = [0, 38], sizes = [8, 288], strides = [1, 1]} : vector<8x342xf32> to vector<8x288xf32>
    %c80 = arith.constant 80 : index
    %749 = memref.load %arg4[%c80] : memref<216xf32, #tpu.memory_space<smem>>
    %750 = vector.broadcast %749 : f32 to vector<8x288xf32>
    %751 = arith.mulf %750, %748 : vector<8x288xf32>
    %752 = arith.addf %743, %751 : vector<8x288xf32>
    %c188 = arith.constant 188 : index
    %753 = memref.load %arg4[%c188] : memref<216xf32, #tpu.memory_space<smem>>
    %754 = vector.broadcast %753 : f32 to vector<8x288xf32>
    %755 = arith.mulf %754, %748 : vector<8x288xf32>
    %756 = arith.addf %747, %755 : vector<8x288xf32>
    %c0_26 = arith.constant 0 : index
    %c3_27 = arith.constant 3 : index
    %c0_28 = arith.constant 0 : index
    %c0_29 = arith.constant 0 : index
    %757 = vector.load %arg2[%c0_26, %c3_27, %c0_28, %c0_29] : memref<1x4x8x342xf32, #tpu.memory_space<vmem>>, vector<1x1x8x342xf32>
    %758 = vector.shape_cast %757 : vector<1x1x8x342xf32> to vector<8x342xf32>
    %c0_30 = arith.constant 0 : index
    %c3_31 = arith.constant 3 : index
    %c0_32 = arith.constant 0 : index
    %c0_33 = arith.constant 0 : index
    %759 = vector.load %arg3[%c0_30, %c3_31, %c0_32, %c0_33] : memref<1x4x8x342xf32, #tpu.memory_space<vmem>>, vector<1x1x2x342xf32>
    %760 = vector.shape_cast %759 : vector<1x1x2x342xf32> to vector<2x342xf32>
    %761 = tpu.concatenate %758, %760 in 0 : vector<8x342xf32>, vector<2x342xf32> -> vector<10x342xf32>
    %762 = vector.extract_strided_slice %761 {offsets = [0, 0], sizes = [8, 342], strides = [1, 1]} : vector<10x342xf32> to vector<8x342xf32>
    %763 = vector.extract_strided_slice %762 {offsets = [0, 0], sizes = [8, 288], strides = [1, 1]} : vector<8x342xf32> to vector<8x288xf32>
    %c81 = arith.constant 81 : index
    %764 = memref.load %arg4[%c81] : memref<216xf32, #tpu.memory_space<smem>>
    %765 = vector.broadcast %764 : f32 to vector<8x288xf32>
    %766 = arith.mulf %765, %763 : vector<8x288xf32>
    %767 = arith.addf %752, %766 : vector<8x288xf32>
    %c189 = arith.constant 189 : index
    %768 = memref.load %arg4[%c189] : memref<216xf32, #tpu.memory_space<smem>>
    %769 = vector.broadcast %768 : f32 to vector<8x288xf32>
    %770 = arith.mulf %769, %763 : vector<8x288xf32>
    %771 = arith.addf %756, %770 : vector<8x288xf32>
    %772 = vector.extract_strided_slice %762 {offsets = [0, 1], sizes = [8, 288], strides = [1, 1]} : vector<8x342xf32> to vector<8x288xf32>
    %c82 = arith.constant 82 : index
    %773 = memref.load %arg4[%c82] : memref<216xf32, #tpu.memory_space<smem>>
    %774 = vector.broadcast %773 : f32 to vector<8x288xf32>
    %775 = arith.mulf %774, %772 : vector<8x288xf32>
    %776 = arith.addf %767, %775 : vector<8x288xf32>
    %c190 = arith.constant 190 : index
    %777 = memref.load %arg4[%c190] : memref<216xf32, #tpu.memory_space<smem>>
    %778 = vector.broadcast %777 : f32 to vector<8x288xf32>
    %779 = arith.mulf %778, %772 : vector<8x288xf32>
    %780 = arith.addf %771, %779 : vector<8x288xf32>
    %781 = vector.extract_strided_slice %762 {offsets = [0, 2], sizes = [8, 288], strides = [1, 1]} : vector<8x342xf32> to vector<8x288xf32>
    %c83 = arith.constant 83 : index
    %782 = memref.load %arg4[%c83] : memref<216xf32, #tpu.memory_space<smem>>
    %783 = vector.broadcast %782 : f32 to vector<8x288xf32>
    %784 = arith.mulf %783, %781 : vector<8x288xf32>
    %785 = arith.addf %776, %784 : vector<8x288xf32>
    %c191 = arith.constant 191 : index
    %786 = memref.load %arg4[%c191] : memref<216xf32, #tpu.memory_space<smem>>
    %787 = vector.broadcast %786 : f32 to vector<8x288xf32>
    %788 = arith.mulf %787, %781 : vector<8x288xf32>
    %789 = arith.addf %780, %788 : vector<8x288xf32>
    %790 = vector.extract_strided_slice %762 {offsets = [0, 18], sizes = [8, 288], strides = [1, 1]} : vector<8x342xf32> to vector<8x288xf32>
    %c84 = arith.constant 84 : index
    %791 = memref.load %arg4[%c84] : memref<216xf32, #tpu.memory_space<smem>>
    %792 = vector.broadcast %791 : f32 to vector<8x288xf32>
    %793 = arith.mulf %792, %790 : vector<8x288xf32>
    %794 = arith.addf %785, %793 : vector<8x288xf32>
    %c192 = arith.constant 192 : index
    %795 = memref.load %arg4[%c192] : memref<216xf32, #tpu.memory_space<smem>>
    %796 = vector.broadcast %795 : f32 to vector<8x288xf32>
    %797 = arith.mulf %796, %790 : vector<8x288xf32>
    %798 = arith.addf %789, %797 : vector<8x288xf32>
    %799 = vector.extract_strided_slice %762 {offsets = [0, 19], sizes = [8, 288], strides = [1, 1]} : vector<8x342xf32> to vector<8x288xf32>
    %c85 = arith.constant 85 : index
    %800 = memref.load %arg4[%c85] : memref<216xf32, #tpu.memory_space<smem>>
    %801 = vector.broadcast %800 : f32 to vector<8x288xf32>
    %802 = arith.mulf %801, %799 : vector<8x288xf32>
    %803 = arith.addf %794, %802 : vector<8x288xf32>
    %c193 = arith.constant 193 : index
    %804 = memref.load %arg4[%c193] : memref<216xf32, #tpu.memory_space<smem>>
    %805 = vector.broadcast %804 : f32 to vector<8x288xf32>
    %806 = arith.mulf %805, %799 : vector<8x288xf32>
    %807 = arith.addf %798, %806 : vector<8x288xf32>
    %808 = vector.extract_strided_slice %762 {offsets = [0, 20], sizes = [8, 288], strides = [1, 1]} : vector<8x342xf32> to vector<8x288xf32>
    %c86 = arith.constant 86 : index
    %809 = memref.load %arg4[%c86] : memref<216xf32, #tpu.memory_space<smem>>
    %810 = vector.broadcast %809 : f32 to vector<8x288xf32>
    %811 = arith.mulf %810, %808 : vector<8x288xf32>
    %812 = arith.addf %803, %811 : vector<8x288xf32>
    %c194 = arith.constant 194 : index
    %813 = memref.load %arg4[%c194] : memref<216xf32, #tpu.memory_space<smem>>
    %814 = vector.broadcast %813 : f32 to vector<8x288xf32>
    %815 = arith.mulf %814, %808 : vector<8x288xf32>
    %816 = arith.addf %807, %815 : vector<8x288xf32>
    %817 = vector.extract_strided_slice %762 {offsets = [0, 36], sizes = [8, 288], strides = [1, 1]} : vector<8x342xf32> to vector<8x288xf32>
    %c87 = arith.constant 87 : index
    %818 = memref.load %arg4[%c87] : memref<216xf32, #tpu.memory_space<smem>>
    %819 = vector.broadcast %818 : f32 to vector<8x288xf32>
    %820 = arith.mulf %819, %817 : vector<8x288xf32>
    %821 = arith.addf %812, %820 : vector<8x288xf32>
    %c195 = arith.constant 195 : index
    %822 = memref.load %arg4[%c195] : memref<216xf32, #tpu.memory_space<smem>>
    %823 = vector.broadcast %822 : f32 to vector<8x288xf32>
    %824 = arith.mulf %823, %817 : vector<8x288xf32>
    %825 = arith.addf %816, %824 : vector<8x288xf32>
    %826 = vector.extract_strided_slice %762 {offsets = [0, 37], sizes = [8, 288], strides = [1, 1]} : vector<8x342xf32> to vector<8x288xf32>
    %c88 = arith.constant 88 : index
    %827 = memref.load %arg4[%c88] : memref<216xf32, #tpu.memory_space<smem>>
    %828 = vector.broadcast %827 : f32 to vector<8x288xf32>
    %829 = arith.mulf %828, %826 : vector<8x288xf32>
    %830 = arith.addf %821, %829 : vector<8x288xf32>
    %c196 = arith.constant 196 : index
    %831 = memref.load %arg4[%c196] : memref<216xf32, #tpu.memory_space<smem>>
    %832 = vector.broadcast %831 : f32 to vector<8x288xf32>
    %833 = arith.mulf %832, %826 : vector<8x288xf32>
    %834 = arith.addf %825, %833 : vector<8x288xf32>
    %835 = vector.extract_strided_slice %762 {offsets = [0, 38], sizes = [8, 288], strides = [1, 1]} : vector<8x342xf32> to vector<8x288xf32>
    %c89 = arith.constant 89 : index
    %836 = memref.load %arg4[%c89] : memref<216xf32, #tpu.memory_space<smem>>
    %837 = vector.broadcast %836 : f32 to vector<8x288xf32>
    %838 = arith.mulf %837, %835 : vector<8x288xf32>
    %839 = arith.addf %830, %838 : vector<8x288xf32>
    %c197 = arith.constant 197 : index
    %840 = memref.load %arg4[%c197] : memref<216xf32, #tpu.memory_space<smem>>
    %841 = vector.broadcast %840 : f32 to vector<8x288xf32>
    %842 = arith.mulf %841, %835 : vector<8x288xf32>
    %843 = arith.addf %834, %842 : vector<8x288xf32>
    %844 = vector.extract_strided_slice %761 {offsets = [1, 0], sizes = [8, 342], strides = [1, 1]} : vector<10x342xf32> to vector<8x342xf32>
    %845 = vector.extract_strided_slice %844 {offsets = [0, 0], sizes = [8, 288], strides = [1, 1]} : vector<8x342xf32> to vector<8x288xf32>
    %c90 = arith.constant 90 : index
    %846 = memref.load %arg4[%c90] : memref<216xf32, #tpu.memory_space<smem>>
    %847 = vector.broadcast %846 : f32 to vector<8x288xf32>
    %848 = arith.mulf %847, %845 : vector<8x288xf32>
    %849 = arith.addf %839, %848 : vector<8x288xf32>
    %c198 = arith.constant 198 : index
    %850 = memref.load %arg4[%c198] : memref<216xf32, #tpu.memory_space<smem>>
    %851 = vector.broadcast %850 : f32 to vector<8x288xf32>
    %852 = arith.mulf %851, %845 : vector<8x288xf32>
    %853 = arith.addf %843, %852 : vector<8x288xf32>
    %854 = vector.extract_strided_slice %844 {offsets = [0, 1], sizes = [8, 288], strides = [1, 1]} : vector<8x342xf32> to vector<8x288xf32>
    %c91 = arith.constant 91 : index
    %855 = memref.load %arg4[%c91] : memref<216xf32, #tpu.memory_space<smem>>
    %856 = vector.broadcast %855 : f32 to vector<8x288xf32>
    %857 = arith.mulf %856, %854 : vector<8x288xf32>
    %858 = arith.addf %849, %857 : vector<8x288xf32>
    %c199 = arith.constant 199 : index
    %859 = memref.load %arg4[%c199] : memref<216xf32, #tpu.memory_space<smem>>
    %860 = vector.broadcast %859 : f32 to vector<8x288xf32>
    %861 = arith.mulf %860, %854 : vector<8x288xf32>
    %862 = arith.addf %853, %861 : vector<8x288xf32>
    %863 = vector.extract_strided_slice %844 {offsets = [0, 2], sizes = [8, 288], strides = [1, 1]} : vector<8x342xf32> to vector<8x288xf32>
    %c92 = arith.constant 92 : index
    %864 = memref.load %arg4[%c92] : memref<216xf32, #tpu.memory_space<smem>>
    %865 = vector.broadcast %864 : f32 to vector<8x288xf32>
    %866 = arith.mulf %865, %863 : vector<8x288xf32>
    %867 = arith.addf %858, %866 : vector<8x288xf32>
    %c200 = arith.constant 200 : index
    %868 = memref.load %arg4[%c200] : memref<216xf32, #tpu.memory_space<smem>>
    %869 = vector.broadcast %868 : f32 to vector<8x288xf32>
    %870 = arith.mulf %869, %863 : vector<8x288xf32>
    %871 = arith.addf %862, %870 : vector<8x288xf32>
    %872 = vector.extract_strided_slice %844 {offsets = [0, 18], sizes = [8, 288], strides = [1, 1]} : vector<8x342xf32> to vector<8x288xf32>
    %c93 = arith.constant 93 : index
    %873 = memref.load %arg4[%c93] : memref<216xf32, #tpu.memory_space<smem>>
    %874 = vector.broadcast %873 : f32 to vector<8x288xf32>
    %875 = arith.mulf %874, %872 : vector<8x288xf32>
    %876 = arith.addf %867, %875 : vector<8x288xf32>
    %c201 = arith.constant 201 : index
    %877 = memref.load %arg4[%c201] : memref<216xf32, #tpu.memory_space<smem>>
    %878 = vector.broadcast %877 : f32 to vector<8x288xf32>
    %879 = arith.mulf %878, %872 : vector<8x288xf32>
    %880 = arith.addf %871, %879 : vector<8x288xf32>
    %881 = vector.extract_strided_slice %844 {offsets = [0, 19], sizes = [8, 288], strides = [1, 1]} : vector<8x342xf32> to vector<8x288xf32>
    %c94 = arith.constant 94 : index
    %882 = memref.load %arg4[%c94] : memref<216xf32, #tpu.memory_space<smem>>
    %883 = vector.broadcast %882 : f32 to vector<8x288xf32>
    %884 = arith.mulf %883, %881 : vector<8x288xf32>
    %885 = arith.addf %876, %884 : vector<8x288xf32>
    %c202 = arith.constant 202 : index
    %886 = memref.load %arg4[%c202] : memref<216xf32, #tpu.memory_space<smem>>
    %887 = vector.broadcast %886 : f32 to vector<8x288xf32>
    %888 = arith.mulf %887, %881 : vector<8x288xf32>
    %889 = arith.addf %880, %888 : vector<8x288xf32>
    %890 = vector.extract_strided_slice %844 {offsets = [0, 20], sizes = [8, 288], strides = [1, 1]} : vector<8x342xf32> to vector<8x288xf32>
    %c95 = arith.constant 95 : index
    %891 = memref.load %arg4[%c95] : memref<216xf32, #tpu.memory_space<smem>>
    %892 = vector.broadcast %891 : f32 to vector<8x288xf32>
    %893 = arith.mulf %892, %890 : vector<8x288xf32>
    %894 = arith.addf %885, %893 : vector<8x288xf32>
    %c203 = arith.constant 203 : index
    %895 = memref.load %arg4[%c203] : memref<216xf32, #tpu.memory_space<smem>>
    %896 = vector.broadcast %895 : f32 to vector<8x288xf32>
    %897 = arith.mulf %896, %890 : vector<8x288xf32>
    %898 = arith.addf %889, %897 : vector<8x288xf32>
    %899 = vector.extract_strided_slice %844 {offsets = [0, 36], sizes = [8, 288], strides = [1, 1]} : vector<8x342xf32> to vector<8x288xf32>
    %c96 = arith.constant 96 : index
    %900 = memref.load %arg4[%c96] : memref<216xf32, #tpu.memory_space<smem>>
    %901 = vector.broadcast %900 : f32 to vector<8x288xf32>
    %902 = arith.mulf %901, %899 : vector<8x288xf32>
    %903 = arith.addf %894, %902 : vector<8x288xf32>
    %c204 = arith.constant 204 : index
    %904 = memref.load %arg4[%c204] : memref<216xf32, #tpu.memory_space<smem>>
    %905 = vector.broadcast %904 : f32 to vector<8x288xf32>
    %906 = arith.mulf %905, %899 : vector<8x288xf32>
    %907 = arith.addf %898, %906 : vector<8x288xf32>
    %908 = vector.extract_strided_slice %844 {offsets = [0, 37], sizes = [8, 288], strides = [1, 1]} : vector<8x342xf32> to vector<8x288xf32>
    %c97 = arith.constant 97 : index
    %909 = memref.load %arg4[%c97] : memref<216xf32, #tpu.memory_space<smem>>
    %910 = vector.broadcast %909 : f32 to vector<8x288xf32>
    %911 = arith.mulf %910, %908 : vector<8x288xf32>
    %912 = arith.addf %903, %911 : vector<8x288xf32>
    %c205 = arith.constant 205 : index
    %913 = memref.load %arg4[%c205] : memref<216xf32, #tpu.memory_space<smem>>
    %914 = vector.broadcast %913 : f32 to vector<8x288xf32>
    %915 = arith.mulf %914, %908 : vector<8x288xf32>
    %916 = arith.addf %907, %915 : vector<8x288xf32>
    %917 = vector.extract_strided_slice %844 {offsets = [0, 38], sizes = [8, 288], strides = [1, 1]} : vector<8x342xf32> to vector<8x288xf32>
    %c98 = arith.constant 98 : index
    %918 = memref.load %arg4[%c98] : memref<216xf32, #tpu.memory_space<smem>>
    %919 = vector.broadcast %918 : f32 to vector<8x288xf32>
    %920 = arith.mulf %919, %917 : vector<8x288xf32>
    %921 = arith.addf %912, %920 : vector<8x288xf32>
    %c206 = arith.constant 206 : index
    %922 = memref.load %arg4[%c206] : memref<216xf32, #tpu.memory_space<smem>>
    %923 = vector.broadcast %922 : f32 to vector<8x288xf32>
    %924 = arith.mulf %923, %917 : vector<8x288xf32>
    %925 = arith.addf %916, %924 : vector<8x288xf32>
    %926 = vector.extract_strided_slice %761 {offsets = [2, 0], sizes = [8, 342], strides = [1, 1]} : vector<10x342xf32> to vector<8x342xf32>
    %927 = vector.extract_strided_slice %926 {offsets = [0, 0], sizes = [8, 288], strides = [1, 1]} : vector<8x342xf32> to vector<8x288xf32>
    %c99 = arith.constant 99 : index
    %928 = memref.load %arg4[%c99] : memref<216xf32, #tpu.memory_space<smem>>
    %929 = vector.broadcast %928 : f32 to vector<8x288xf32>
    %930 = arith.mulf %929, %927 : vector<8x288xf32>
    %931 = arith.addf %921, %930 : vector<8x288xf32>
    %c207 = arith.constant 207 : index
    %932 = memref.load %arg4[%c207] : memref<216xf32, #tpu.memory_space<smem>>
    %933 = vector.broadcast %932 : f32 to vector<8x288xf32>
    %934 = arith.mulf %933, %927 : vector<8x288xf32>
    %935 = arith.addf %925, %934 : vector<8x288xf32>
    %936 = vector.extract_strided_slice %926 {offsets = [0, 1], sizes = [8, 288], strides = [1, 1]} : vector<8x342xf32> to vector<8x288xf32>
    %c100 = arith.constant 100 : index
    %937 = memref.load %arg4[%c100] : memref<216xf32, #tpu.memory_space<smem>>
    %938 = vector.broadcast %937 : f32 to vector<8x288xf32>
    %939 = arith.mulf %938, %936 : vector<8x288xf32>
    %940 = arith.addf %931, %939 : vector<8x288xf32>
    %c208 = arith.constant 208 : index
    %941 = memref.load %arg4[%c208] : memref<216xf32, #tpu.memory_space<smem>>
    %942 = vector.broadcast %941 : f32 to vector<8x288xf32>
    %943 = arith.mulf %942, %936 : vector<8x288xf32>
    %944 = arith.addf %935, %943 : vector<8x288xf32>
    %945 = vector.extract_strided_slice %926 {offsets = [0, 2], sizes = [8, 288], strides = [1, 1]} : vector<8x342xf32> to vector<8x288xf32>
    %c101 = arith.constant 101 : index
    %946 = memref.load %arg4[%c101] : memref<216xf32, #tpu.memory_space<smem>>
    %947 = vector.broadcast %946 : f32 to vector<8x288xf32>
    %948 = arith.mulf %947, %945 : vector<8x288xf32>
    %949 = arith.addf %940, %948 : vector<8x288xf32>
    %c209 = arith.constant 209 : index
    %950 = memref.load %arg4[%c209] : memref<216xf32, #tpu.memory_space<smem>>
    %951 = vector.broadcast %950 : f32 to vector<8x288xf32>
    %952 = arith.mulf %951, %945 : vector<8x288xf32>
    %953 = arith.addf %944, %952 : vector<8x288xf32>
    %954 = vector.extract_strided_slice %926 {offsets = [0, 18], sizes = [8, 288], strides = [1, 1]} : vector<8x342xf32> to vector<8x288xf32>
    %c102 = arith.constant 102 : index
    %955 = memref.load %arg4[%c102] : memref<216xf32, #tpu.memory_space<smem>>
    %956 = vector.broadcast %955 : f32 to vector<8x288xf32>
    %957 = arith.mulf %956, %954 : vector<8x288xf32>
    %958 = arith.addf %949, %957 : vector<8x288xf32>
    %c210 = arith.constant 210 : index
    %959 = memref.load %arg4[%c210] : memref<216xf32, #tpu.memory_space<smem>>
    %960 = vector.broadcast %959 : f32 to vector<8x288xf32>
    %961 = arith.mulf %960, %954 : vector<8x288xf32>
    %962 = arith.addf %953, %961 : vector<8x288xf32>
    %963 = vector.extract_strided_slice %926 {offsets = [0, 19], sizes = [8, 288], strides = [1, 1]} : vector<8x342xf32> to vector<8x288xf32>
    %c103 = arith.constant 103 : index
    %964 = memref.load %arg4[%c103] : memref<216xf32, #tpu.memory_space<smem>>
    %965 = vector.broadcast %964 : f32 to vector<8x288xf32>
    %966 = arith.mulf %965, %963 : vector<8x288xf32>
    %967 = arith.addf %958, %966 : vector<8x288xf32>
    %c211 = arith.constant 211 : index
    %968 = memref.load %arg4[%c211] : memref<216xf32, #tpu.memory_space<smem>>
    %969 = vector.broadcast %968 : f32 to vector<8x288xf32>
    %970 = arith.mulf %969, %963 : vector<8x288xf32>
    %971 = arith.addf %962, %970 : vector<8x288xf32>
    %972 = vector.extract_strided_slice %926 {offsets = [0, 20], sizes = [8, 288], strides = [1, 1]} : vector<8x342xf32> to vector<8x288xf32>
    %c104 = arith.constant 104 : index
    %973 = memref.load %arg4[%c104] : memref<216xf32, #tpu.memory_space<smem>>
    %974 = vector.broadcast %973 : f32 to vector<8x288xf32>
    %975 = arith.mulf %974, %972 : vector<8x288xf32>
    %976 = arith.addf %967, %975 : vector<8x288xf32>
    %c212 = arith.constant 212 : index
    %977 = memref.load %arg4[%c212] : memref<216xf32, #tpu.memory_space<smem>>
    %978 = vector.broadcast %977 : f32 to vector<8x288xf32>
    %979 = arith.mulf %978, %972 : vector<8x288xf32>
    %980 = arith.addf %971, %979 : vector<8x288xf32>
    %981 = vector.extract_strided_slice %926 {offsets = [0, 36], sizes = [8, 288], strides = [1, 1]} : vector<8x342xf32> to vector<8x288xf32>
    %c105 = arith.constant 105 : index
    %982 = memref.load %arg4[%c105] : memref<216xf32, #tpu.memory_space<smem>>
    %983 = vector.broadcast %982 : f32 to vector<8x288xf32>
    %984 = arith.mulf %983, %981 : vector<8x288xf32>
    %985 = arith.addf %976, %984 : vector<8x288xf32>
    %c213 = arith.constant 213 : index
    %986 = memref.load %arg4[%c213] : memref<216xf32, #tpu.memory_space<smem>>
    %987 = vector.broadcast %986 : f32 to vector<8x288xf32>
    %988 = arith.mulf %987, %981 : vector<8x288xf32>
    %989 = arith.addf %980, %988 : vector<8x288xf32>
    %990 = vector.extract_strided_slice %926 {offsets = [0, 37], sizes = [8, 288], strides = [1, 1]} : vector<8x342xf32> to vector<8x288xf32>
    %c106 = arith.constant 106 : index
    %991 = memref.load %arg4[%c106] : memref<216xf32, #tpu.memory_space<smem>>
    %992 = vector.broadcast %991 : f32 to vector<8x288xf32>
    %993 = arith.mulf %992, %990 : vector<8x288xf32>
    %994 = arith.addf %985, %993 : vector<8x288xf32>
    %c214 = arith.constant 214 : index
    %995 = memref.load %arg4[%c214] : memref<216xf32, #tpu.memory_space<smem>>
    %996 = vector.broadcast %995 : f32 to vector<8x288xf32>
    %997 = arith.mulf %996, %990 : vector<8x288xf32>
    %998 = arith.addf %989, %997 : vector<8x288xf32>
    %999 = vector.extract_strided_slice %926 {offsets = [0, 38], sizes = [8, 288], strides = [1, 1]} : vector<8x342xf32> to vector<8x288xf32>
    %c107 = arith.constant 107 : index
    %1000 = memref.load %arg4[%c107] : memref<216xf32, #tpu.memory_space<smem>>
    %1001 = vector.broadcast %1000 : f32 to vector<8x288xf32>
    %1002 = arith.mulf %1001, %999 : vector<8x288xf32>
    %1003 = arith.addf %994, %1002 : vector<8x288xf32>
    %c215 = arith.constant 215 : index
    %1004 = memref.load %arg4[%c215] : memref<216xf32, #tpu.memory_space<smem>>
    %1005 = vector.broadcast %1004 : f32 to vector<8x288xf32>
    %1006 = arith.mulf %1005, %999 : vector<8x288xf32>
    %1007 = arith.addf %998, %1006 : vector<8x288xf32>
    %c0_34 = arith.constant 0 : index
    %1008 = memref.load %arg7[%c0_34] : memref<2xf32, #tpu.memory_space<smem>>
    %1009 = vector.broadcast %1008 : f32 to vector<8x288xf32>
    %c0_35 = arith.constant 0 : index
    %1010 = memref.load %arg6[%c0_35] : memref<4xf32, #tpu.memory_space<smem>>
    %1011 = vector.broadcast %1010 : f32 to vector<8x288xf32>
    %1012 = arith.mulf %1011, %1003 : vector<8x288xf32>
    %1013 = arith.addf %1009, %1012 : vector<8x288xf32>
    %c1_36 = arith.constant 1 : index
    %1014 = memref.load %arg6[%c1_36] : memref<4xf32, #tpu.memory_space<smem>>
    %1015 = vector.broadcast %1014 : f32 to vector<8x288xf32>
    %1016 = arith.mulf %1015, %1007 : vector<8x288xf32>
    %1017 = arith.addf %1013, %1016 : vector<8x288xf32>
    %c1_37 = arith.constant 1 : index
    %1018 = memref.load %arg7[%c1_37] : memref<2xf32, #tpu.memory_space<smem>>
    %1019 = vector.broadcast %1018 : f32 to vector<8x288xf32>
    %c2_38 = arith.constant 2 : index
    %1020 = memref.load %arg6[%c2_38] : memref<4xf32, #tpu.memory_space<smem>>
    %1021 = vector.broadcast %1020 : f32 to vector<8x288xf32>
    %1022 = arith.mulf %1021, %1003 : vector<8x288xf32>
    %1023 = arith.addf %1019, %1022 : vector<8x288xf32>
    %c3_39 = arith.constant 3 : index
    %1024 = memref.load %arg6[%c3_39] : memref<4xf32, #tpu.memory_space<smem>>
    %1025 = vector.broadcast %1024 : f32 to vector<8x288xf32>
    %1026 = arith.mulf %1025, %1007 : vector<8x288xf32>
    %1027 = arith.addf %1023, %1026 : vector<8x288xf32>
    %1028 = arith.maximumf %1017, %1027 : vector<8x288xf32>
    %1029 = arith.subf %1017, %1028 : vector<8x288xf32>
    %1030 = arith.subf %1027, %1028 : vector<8x288xf32>
    %1031 = math.exp %1029 : vector<8x288xf32>
    %1032 = math.exp %1030 : vector<8x288xf32>
    %1033 = arith.addf %1031, %1032 : vector<8x288xf32>
    %cst = arith.constant 1.000000e+00 : f32
    %1034 = vector.broadcast %cst : f32 to vector<8x288xf32>
    %1035 = arith.divf %1034, %1033 : vector<8x288xf32>
    %1036 = arith.mulf %1031, %1035 : vector<8x288xf32>
    %1037 = arith.mulf %1032, %1035 : vector<8x288xf32>
    %c0_40 = arith.constant 0 : index
    %c0_41 = arith.constant 0 : index
    %c0_42 = arith.constant 0 : index
    %c0_43 = arith.constant 0 : index
    %1038 = vector.load %arg8[%c0_40, %c0_41, %c0_42, %c0_43] : memref<1x2x8x288xf32, #tpu.memory_space<vmem>>, vector<1x1x8x288xf32>
    %1039 = vector.shape_cast %1038 : vector<1x1x8x288xf32> to vector<8x288xf32>
    %1040 = vector.shape_cast %1036 : vector<8x288xf32> to vector<1x1x8x288xf32>
    tpu.vector_store %arg8[%c0_40, %c0_41, %c0_42, %c0_43], %1040 {strides = array<i32>} : memref<1x2x8x288xf32, #tpu.memory_space<vmem>>, vector<1x1x8x288xf32>,
    %c0_44 = arith.constant 0 : index
    %c1_45 = arith.constant 1 : index
    %c0_46 = arith.constant 0 : index
    %c0_47 = arith.constant 0 : index
    %1041 = vector.load %arg8[%c0_44, %c1_45, %c0_46, %c0_47] : memref<1x2x8x288xf32, #tpu.memory_space<vmem>>, vector<1x1x8x288xf32>
    %1042 = vector.shape_cast %1041 : vector<1x1x8x288xf32> to vector<8x288xf32>
    %1043 = vector.shape_cast %1037 : vector<8x288xf32> to vector<1x1x8x288xf32>
    tpu.vector_store %arg8[%c0_44, %c1_45, %c0_46, %c0_47], %1043 {strides = array<i32>} : memref<1x2x8x288xf32, #tpu.memory_space<vmem>>, vector<1x1x8x288xf32>,
    return
  }
  func.func @transform_0(%arg0: i32, %arg1: i32) -> (i32, i32, i32, i32) {
    %c0_i32 = arith.constant 0 : i32
    %c0_i32_0 = arith.constant 0 : i32
    %c0_i32_1 = arith.constant 0 : i32
    return %arg0, %c0_i32, %arg1, %c0_i32_0 : i32, i32, i32, i32
  }
  func.func @transform_1(%arg0: i32, %arg1: i32) -> (i32, i32, i32, i32) {
    %c1_i32 = arith.constant 1 : i32
    %0 = arith.addi %arg1, %c1_i32 : i32
    %c1_i32_0 = arith.constant 1 : i32
    %1 = arith.muli %0, %c1_i32_0 : i32
    %c0_i32 = arith.constant 0 : i32
    %c0_i32_1 = arith.constant 0 : i32
    %c0_i32_2 = arith.constant 0 : i32
    return %arg0, %c0_i32, %1, %c0_i32_1 : i32, i32, i32, i32
  }
  func.func @transform_2(%arg0: i32, %arg1: i32) -> i32 {
    %c0_i32 = arith.constant 0 : i32
    %c0_i32_0 = arith.constant 0 : i32
    return %c0_i32 : i32
  }
  func.func @transform_3(%arg0: i32, %arg1: i32) -> i32 {
    %c0_i32 = arith.constant 0 : i32
    %c0_i32_0 = arith.constant 0 : i32
    return %c0_i32 : i32
  }
  func.func @transform_4(%arg0: i32, %arg1: i32) -> i32 {
    %c0_i32 = arith.constant 0 : i32
    %c0_i32_0 = arith.constant 0 : i32
    return %c0_i32 : i32
  }
  func.func @transform_5(%arg0: i32, %arg1: i32) -> i32 {
    %c0_i32 = arith.constant 0 : i32
    %c0_i32_0 = arith.constant 0 : i32
    return %c0_i32 : i32
  }
  func.func @transform_6(%arg0: i32, %arg1: i32) -> (i32, i32, i32, i32) {
    %c0_i32 = arith.constant 0 : i32
    %c0_i32_0 = arith.constant 0 : i32
    %c0_i32_1 = arith.constant 0 : i32
    return %arg0, %c0_i32, %arg1, %c0_i32_0 : i32, i32, i32, i32
  }
}

</mosaic_0001>

<bundles_post_ra>
// kernel: tpu_custom_call.1
= control target key start
LH: loop header
LB: loop body
LE: loop exit
PB: predicated region body
PF: predicated region fallthrough
CT: control target
= control target key end

     0   :  { %s13572_s0 = inlined_call_operand.hbm [shape: f32[2,4,24,342], index: 0, kind: input, shape index: {}]   ;;  %s13573_s1 = inlined_call_operand.hbm [shape: f32[2,4,24,342], index: 1, kind: input, shape index: {}]   ;;  %s13574_s2 = inlined_call_operand.hbm [shape: f32[216], index: 2, kind: input, shape index: {}]   ;;  %s13575_s3 = inlined_call_operand.vmem [shape: f32[2], index: 3, kind: input, shape index: {}]   ;;  %s13576_s4 = inlined_call_operand.vmem [shape: f32[4], index: 4, kind: input, shape index: {}]   ;;  %s13577_s5 = inlined_call_operand.vmem [shape: f32[2], index: 5, kind: input, shape index: {}]   ;;  %s13578_s6 = inlined_call_operand.hbm [shape: f32[2,2,16,288], index: 6, kind: output, shape index: {}]  }
   0x1   :  { %13817 = sst [smem:[#allocation279_spill]] %s13572_s0 }
   0x2   :  { %13818 = sst [smem:[#allocation280_spill]] %s13574_s2 }
   0x3   :  { %13819 = sst [smem:[#allocation281_spill]] %s13575_s3 }
   0x4   :  { %13820 = sst [smem:[#allocation282_spill]] %s13576_s4 }
   0x5   :  { %13821 = sst [smem:[#allocation283_spill]] %s13577_s5 }
   0x6   :  { %11 = vsyncpa [#allocation3], 0 }
   0x7   :  { %13 = vsyncpa [#allocation3 + $0x1], 0 }
   0x8   :  { %14 = vsyncpa [#allocation8], 0 }
   0x9   :  { %16 = vsyncpa [#allocation8 + $0x1], 0 }
   0xa   :  { %17 = vsyncpa [#allocation5], 0 }
   0xb   :  { %18 = vsyncpa [#allocation6], 0 }
   0xc   :  { %19 = vsyncpa [#allocation12], 0 }
   0xd   :  { %20 = vsyncpa [#allocation4], 0 }
   0xe   :  { %22 = vsyncpa [#allocation4 + $0x1], 0  ;;  %s8220_s21 = smov 0   ;;  %s8222_s22 = smov 0  }
   0xf   :  { %s8224_s23 = smov 0   ;;  %s8226_s24 = smov 0  }
  0x10   :  { %s8228_s25 = smov 0   ;;  %s8230_s26 = smov 0  }
  0x11   :  { %s8232_s27 = smov 0   ;;  %s8234_s28 = smov 0  }
  0x12   :  { %s8236_s29 = smov 0   ;;  %s8238_s30 = smov 0  }
  0x13   :  { %s8240_s7 = smov 0  }
  0x14 LB: > { %13822 = sst [smem:[#allocation21_spill]] %s8137_s24  ;;  %s7405_s8 = sadd.s32 4294967295, %s8165_s7   ;;  %s8165_s7 = sphi %s8240_s7, %s28_s7   ;;  %s8161_s30 = sphi %s8238_s30, %s14549_s30   ;;  %s8157_s29 = sphi %s8236_s29, %s14548_s29   ;;  %s8153_s28 = sphi %s8234_s28, %s14547_s28   ;;  %s8149_s27 = sphi %s8232_s27, %s14546_s27   ;;  %s8145_s26 = sphi %s8230_s26, %s14545_s26   ;;  %s8141_s25 = sphi %s8228_s25, %s14554_s25   ;;  %s8137_s24 = sphi %s8226_s24, %s14553_s24   ;;  %s8133_s23 = sphi %s8224_s23, %s14552_s23   ;;  %s8129_s22 = sphi %s8222_s22, %s14551_s22   ;;  %s8125_s21 = sphi %s8220_s21, %s14550_s21  }
  0x15   : > { %13823 = sst [smem:[#allocation22_spill]] %s8145_s26  ;;  %s7406_s9 = sadd.s32 4294967294, %s8165_s7  }
  0x16   : > { %13824 = sst [smem:[#allocation23_spill]] %s8157_s29  ;;  %p62_p0 = scmp.ne.s32.totalorder %s8141_s25, %s8137_s24 }
  0x17   : > { %13825 = sst [smem:[#allocation24_spill]] %s8161_s30  ;;  %p8277_p1 = scmp.eq.s32.totalorder %s7405_s8, 0 }
  0x18   : > { %p92_p2 = scmp.ne.s32.totalorder %s8129_s22, %s8125_s21  ;;  %p8282_p3 = scmp.eq.s32.totalorder %s7405_s8, 3 }
  0x19   : > { %p8288_p4 = por %p8277_p1, %p62_p0  ;;  %p208_p5 = scmp.eq.s32.totalorder %s7406_s9, 3 }
  0x1a   : > { %p8294_p6 = por %p92_p2, %p8277_p1  ;;  %p7407_p7 = scmp.ge.s32.totalorder %s8165_s7, 1 }
  0x1b   : > { %p8299_p8 = por %p208_p5, %p62_p0  ;;  %p215_p9 = scmp.lt.s32.totalorder %s8165_s7, 5 }
  0x1c   : > { %s13832_s4 = sld [smem:[#allocation282_spill]]  ;;  %s8167_s9 = smov [#allocation11]  }
  0x1d   : > { %s13830_s14 = scalar_select %p8299_p8, 1, 0 }
  0x1e   : > { %p8307_p10 = pnand %p7407_p7, %p215_p9  ;;  %s13835_s2 = sld [smem:[#allocation280_spill]] }
  0x1f   : > { %13831 = sst [smem:[#allocation25_spill]] %s13830_s14  ;;  %s8168_s15 = smov [#allocation9]  }
  0x20   : > { %p7695_p11 = pneg %p8307_p10  ;;  %s13836_s3 = sld [smem:[#allocation281_spill]] }
  0x21   : > { %s13837_s5 = sld [smem:[#allocation283_spill]]  ;;  %s8169_s24 = smov [#allocation10]  }
  0x22   : > { %s247_s17 = sshll.u32 %s13832_s4, 4  ;;  %p8315_p12 = pnand %p7695_p11, %p8277_p1  ;;  %s248_s17 = int_to_ptr.vmem [resolvable:$true] %s247_s17 }
  0x23   : > { %s40_s4 = sadd.s32 1, %s8161_s30  ;;  %p56_p0 = scmp.ne.s32.totalorder %s8145_s26, %s8141_s25 }
  0x24   : > { %s227_s8 = sshll.u32 %s13835_s2, 4  ;;  %p57_p2 = scmp.eq.s32.totalorder %s8165_s7, 0  ;;  %s228_s8 = int_to_ptr.hbm [resolvable:$true] %s227_s8 }
  0x25   : > { %7704 = dma.vmem_to_smem (!%p8315_p12), %s248_s17, 16, %s8167_s9, [#allocation12]  }
  0x26   : > { %7698 = dma.hbm_to_smem (!%p8315_p12), %s228_s8, 32, %s8168_s15, [#allocation5]  }
  0x27   : > { %s237_s20 = sshll.u32 %s13836_s3, 4  ;;  %s257_s14 = sshll.u32 %s13837_s5, 4  ;;  %s238_s20 = int_to_ptr.vmem [resolvable:$true] %s237_s20  ;;  %s258_s14 = int_to_ptr.vmem [resolvable:$true] %s257_s14 }
  0x28   : > { %7701 = dma.vmem_to_smem (!%p8315_p12), %s238_s20, 16, %s8169_s24, [#allocation6]  }
  0x29   : > { %s8170_s17 = smov [#allocation13]   ;;  %s37_s8 = sadd.s32 1, %s8157_s29 }
  0x2a   : > { %7707 = dma.vmem_to_smem (!%p8315_p12), %s258_s14, 16, %s8170_s17, [#allocation12]  }
  0x2b   : > { %p38_p13 = scmp.ge.s32.totalorder %s37_s8, 2  ;;  %s49_s9 = sadd.s32 1, %s8145_s26 }
  0x2c   : > { %p8349_p5 = por %p57_p2, %p56_p0  ;;  %p8356_p9 = por %p8282_p3, %p56_p0 }
  0x2d   : > { %s8342_s2 = scalar_select %p38_p13, 0, %s37_s8  }
  0x2e   : > { %s14556_s4 = smov (!%p38_p13, %s40_s4), %s8161_s30  ;;  %p7723_p11 = scmp.lt.s32.totalorder %s8165_s7, 4 }
  0x2f   : > { %13838 = sst [smem:[#allocation26_spill]] %s8342_s2  ;;  %s45_s24 = ssub.s32 %s8157_s29, %s8342_s2 }
  0x30   : > { %p42_p7 = scmp.ge.s32.totalorder %s14556_s4, 2  ;;  %s73_s19 = sadd.s32 1, %s8342_s2 }
  0x31   : > { %s75_s15 = ssub.s32 %s37_s8, %s73_s19  ;;  %s268_s20 = sand.u32 1, %s8145_s26  }
  0x32   : > { %s13840_s16 = scalar_select %p8356_p9, 1, 0 }
  0x33   : > { %s14558_s4 = smov (%p42_p7, %s14556_s4), 0  ;;  %s7664_s2 = smul.u32 96, %s268_s20 }
  0x34   : > { %13841 = sst [smem:[#allocation27_spill]] %s13840_s16  ;;  %s44_s21 = ssub.s32 %s8161_s30, %s14558_s4 }
  0x35   : > { %13842 = sst [smem:[#allocation28_spill]] %s14558_s4  ;;  %s46_s17 = sor.u32 %s45_s24, %s44_s21 }
  0x36   : > { %s76_s3 = sor.u32 %s75_s15, %s44_s21  ;;  %p47_p12 = scmp.eq.s32.totalorder %s46_s17, 0 }
  0x37   : > { %p8366_p13 = scmp.eq.s32.totalorder %s76_s3, 0  ;;  %p8374_p3 = pnand %p7723_p11, %p8349_p5 }
  0x38   : > { %s8379_s8 = scalar_select %p47_p12, %s8145_s26, %s49_s9  }
  0x39   : > { %s7665_s19 = smul.u32 3, %s8157_s29  ;;  %s272_s3 = scalar_lea.vmem [#allocation2], %s7664_s2 }
  0x3a   : > { %13845 = sst [smem:[#allocation29_spill]] %s8379_s8  ;;  %s7666_s24 = smul.u32 36, %s8161_s30 }
  0x3b   : > { %s282_s15 = sshll.u32 %s272_s3, 4  ;;  %s13846_s0 = sld [smem:[#allocation279_spill]]  ;;  %s283_s15 = int_to_ptr.vmem [resolvable:$true] %s282_s15 }
  0x3c   : > { %s277_s14 = sadd.s32 %s7666_s24, %s7665_s19  ;;  %s269_s29 = scalar_lea.sflag [#allocation3], %s268_s20 }
  0x3d   : > { %s7413_s21 = sshll.u32 %s277_s14, 3  ;;  %s8171_s26 = smov 1152  }
  0x3e   : > { %s8172_s16 = smov 384   ;;  %s8173_s30 = smov 24  }
  0x3f   : > { %s79_s2 = sadd.s32 1, %s8133_s23  ;;  %p86_p0 = scmp.ne.s32.totalorder %s8133_s23, %s8129_s22 }
  0x40   : > { %s8394_s3 = scalar_select %p8366_p13, %s8133_s23, %s79_s2  }
  0x41   : > { %s279_s9 = scalar_lea.hbm %s13846_s0, %s7413_s21  ;;  %p88_p5 = por %p86_p0, %p57_p2 }
  0x42   : > { %s280_s8 = sshll.u32 %s279_s9, 4  ;;  %s292_s19 = sand.u32 1, %s8133_s23   ;;  %s281_s8 = int_to_ptr.hbm [resolvable:$true] %s280_s8 }
  0x43   : > { %7711 = dma.hbm_to_vmem [thread:$0]  (!%p8374_p3), %s281_s8, 1536, %s283_s15, %s269_s29, %s8171_s26, %s8172_s16, %s8173_s30  }
  0x44   : > { %s7667_s24 = smul.u32 96, %s292_s19  ;;  %s7297_s17 = scalar_lea.hbm %s13573_s1, %s7413_s21 }
  0x45   : > { %p7712_p7 = pnand %p7723_p11, %p88_p5  ;;  %s7298_s20 = scalar_lea.hbm %s7297_s17, 24 }
  0x46   : > { %s305_s9 = sshll.u32 %s7298_s20, 4  ;;  %s296_s0 = scalar_lea.vmem [#allocation7], %s7667_s24  ;;  %s306_s9 = int_to_ptr.hbm [resolvable:$true] %s305_s9 }
  0x47   : > { %s307_s11 = sshll.u32 %s296_s0, 4  ;;  %s293_s29 = scalar_lea.sflag [#allocation8], %s292_s19  ;;  %s308_s11 = int_to_ptr.vmem [resolvable:$true] %s307_s11 }
  0x48   : > { %7714 = dma.hbm_to_vmem [thread:$0]  (!%p7712_p7), %s306_s9, 1536, %s308_s11, %s293_s29, %s8171_s26, %s8172_s16, %s8173_s30  }
  0x49   : > { %319 = sbr.rel (%p8307_p10) target bundleno = 1798 (0x706), region = 44 }
  0x4e   : > { %s8407_s5 = sand.u32 1, %s8141_s25  }
  0x4f   : > { %s7668_s8 = smul.u32 96, %s8407_s5  ;;  %s322_s15 = scalar_lea.sflag [#allocation3], %s8407_s5 }
  0x51   : > { %s8411_s21 = scalar_lea.vmem [#allocation2], %s7668_s8 }
  0x52   : > { %8100 = dma.done.wait (%p8288_p4), %s322_s15, 1536  }
  0x53   : > { %8102 = vsyncadd (%p8288_p4), %s322_s15, 4294965760  ;;  %s331_s0 = sand.u32 1, %s8129_s22  }
  0x54   : > { %s7669_s26 = smul.u32 96, %s331_s0  ;;  %s332_s30 = scalar_lea.sflag [#allocation8], %s331_s0 }
  0x56   : > { %s8418_s18 = scalar_lea.vmem [#allocation7], %s7669_s26 }
  0x57   : > { %8104 = dma.done.wait (%p8294_p6), %s332_s30, 1536  }
  0x58   : > { %8106 = vsyncadd (%p8294_p6), %s332_s30, 4294965760 }
  0x59   : > { %8108 = dma.done.wait (%p8277_p1), [#allocation5], 32  }
  0x5a   : > { %8110 = vsyncadd (%p8277_p1), [#allocation5], 4294967264 }
  0x5b   : > { %8112 = dma.done.wait (%p8277_p1), [#allocation6], 16  }
  0x5c   : > { %8114 = vsyncadd (%p8277_p1), [#allocation6], 4294967280 }
  0x5d   : > { %8116 = dma.done.wait (%p8277_p1), [#allocation12], 32  }
  0x5e   : > { %8118 = vsyncadd (%p8277_p1), [#allocation12], 4294967264 }
  0x5f   : > { %361 = sfence }
  0x60   : > { %s7422_s12 = sld [smem:[#allocation9 + $0x1]]  ;;  %v8437_v0 = vld [vmem:[%s8411_s21 + $0x10] sm:$0xff]  ;;  %v8440_v1 = vld [vmem:[%s8411_s21] sm:$0xff]  ;;  %v8443_v2 = vld [vmem:[%s8411_s21 + $0x8] sm:$0xff]  ;;  %s8174_s10 = smov 127   ;;  %vm792_vm0 = vcmask 1046528  }
  0x61   : > { %s7423_s13 = sld [smem:[#allocation9 + $0x6d]]  ;;  %s8175_s19 = smov 126   ;;  %vm1443_vm1 = vcmask 1045504   ;;  %vm432_vm2 = vcmask 1039360   ;;  %vm477_vm3 = vcmask 1031168   ;;  %vm522_vm4 = vcmask 900096  }
  0x62   : > { %s7424_s16 = sld [smem:[#allocation9 + $0x2]]  ;;  %s8176_s14 = smov 110   ;;  %vm567_vm5 = vcmask 891904   ;;  %vm612_vm6 = vcmask 883712   ;;  %vm657_vm7 = vcmask 752640   ;;  %vm702_vm8 = vcmask 744448  }
  0x63   : > { %s7425_s2 = sld [smem:[#allocation9 + $0x6e]]  ;;  %s8177_s9 = smov 109   ;;  %vm747_vm9 = vcmask 736256   ;;  %vm7221_vm14 = vcmask 261120  }
  0x64   : > { %s7426_s24 = sld [smem:[#allocation9 + $0x3]]  ;;  %s8178_s8 = smov 108  }
  0x65   : > { %s7427_s4 = sld [smem:[#allocation9 + $0x6f]]  ;;  %s8179_s26 = smov 92  }
  0x66   : > { %v419_v3 = vstv %s7422_s12  ;;  %s7428_s17 = sld [smem:[#allocation9 + $0x4]] }
  0x67   : > { %v422_v4 = vmul.f32 %v419_v3, %v8437_v0  ;;  %v442_v5 = vstv %s7423_s13  ;;  %v420_v6 = vmul.f32 %v419_v3, %v8440_v1  ;;  %v421_v9 = vmul.f32 %v419_v3, %v8443_v2  ;;  %s7429_s20 = sld [smem:[#allocation9 + $0x70]]  ;;  %s8180_s13 = smov 91  }
  0x68   : > { %v444_v7 = vmul.f32 %v442_v5, %v8443_v2  ;;  %v443_v8 = vmul.f32 %v442_v5, %v8440_v1  ;;  %v445_v10 = vmul.f32 %v442_v5, %v8437_v0  ;;  %v464_v11 = vstv %s7424_s16  ;;  %s7430_s11 = sld [smem:[#allocation9 + $0x5]] }
  0x69   : > { %430 = vrot.lane.b32.xlu1 %v422_v4, %s8174_s10  ;;  %426 = vrot.lane.b32.xlu0 %v420_v6, %s8174_s10  ;;  %v466_v12 = vmul.f32 %v464_v11, %v8443_v2  ;;  %v465_v13 = vmul.f32 %v464_v11, %v8440_v1  ;;  %v467_v14 = vmul.f32 %v464_v11, %v8437_v0  ;;  %v487_v15 = vstv %s7425_s2  ;;  %s7431_s29 = sld [smem:[#allocation9 + $0x71]] }
  0x6a   : > { %451 = vrot.lane.b32.xlu2 %v444_v7, %s8174_s10  ;;  %v489_v16 = vmul.f32 %v487_v15, %v8443_v2  ;;  %v488_v17 = vmul.f32 %v487_v15, %v8440_v1  ;;  %v490_v18 = vmul.f32 %v487_v15, %v8437_v0  ;;  %v509_v19 = vstv %s7426_s24  ;;  %s7432_s15 = sld [smem:[#allocation9 + $0x6]]  ;;  %v8542_v7 = vld [vmem:[%s8418_s18 + $0x8] sm:$0x3] }
  0x6b   : > { %v511_v20 = vmul.f32 %v509_v19, %v8443_v2  ;;  %v510_v21 = vmul.f32 %v509_v19, %v8440_v1  ;;  %v512_v22 = vmul.f32 %v509_v19, %v8437_v0  ;;  %v532_v23 = vstv %s7427_s4  ;;  %s7433_s0 = sld [smem:[#allocation9 + $0x72]]  ;;  %s8181_s4 = smov 90  }
  0x6c   : > { %v534_v24 = vmul.f32 %v532_v23, %v8443_v2  ;;  %v533_v25 = vmul.f32 %v532_v23, %v8440_v1  ;;  %v535_v26 = vmul.f32 %v532_v23, %v8437_v0  ;;  %v554_v27 = vstv %s7428_s17  ;;  %s7434_s30 = sld [smem:[#allocation9 + $0x7]] }
  0x6d   : > { %v556_v28 = vmul.f32 %v554_v27, %v8443_v2  ;;  %v555_v29 = vmul.f32 %v554_v27, %v8440_v1  ;;  %v557_v30 = vmul.f32 %v554_v27, %v8437_v0  ;;  %v577_v31 = vstv %s7429_s20  ;;  %s7435_s12 = sld [smem:[#allocation9 + $0x73]] }
  0x6e   : > { %v579_v32 = vmul.f32 %v577_v31, %v8443_v2  ;;  %v578_v33 = vmul.f32 %v577_v31, %v8440_v1  ;;  %v580_v34 = vmul.f32 %v577_v31, %v8437_v0  ;;  %v599_v35 = vstv %s7430_s11  ;;  %s7436_s16 = sld [smem:[#allocation9 + $0x8]] }
  0x6f   : > { %v601_v36 = vmul.f32 %v599_v35, %v8443_v2  ;;  %v600_v37 = vmul.f32 %v599_v35, %v8440_v1  ;;  %v602_v38 = vmul.f32 %v599_v35, %v8437_v0  ;;  %v622_v39 = vstv %s7431_s29  ;;  %s7437_s2 = sld [smem:[#allocation9 + $0x74]] }
  0x70   : > { %v624_v40 = vmul.f32 %v622_v39, %v8443_v2  ;;  %v623_v41 = vmul.f32 %v622_v39, %v8440_v1  ;;  %v625_v42 = vmul.f32 %v622_v39, %v8437_v0  ;;  %v644_v43 = vstv %s7432_s15  ;;  %s7440_s24 = sld [smem:[#allocation9 + $0xa]] }
  0x71   : > { %449 = vrot.lane.b32.xlu1 %v443_v8, %s8174_s10  ;;  %428 = vrot.lane.b32.xlu0 %v421_v9, %s8174_s10  ;;  %v646_v44 = vmul.f32 %v644_v43, %v8443_v2  ;;  %v645_v45 = vmul.f32 %v644_v43, %v8440_v1  ;;  %v647_v46 = vmul.f32 %v644_v43, %v8437_v0  ;;  %v667_v47 = vstv %s7433_s0  ;;  %s7441_s17 = sld [smem:[#allocation9 + $0x76]] }
  0x72   : > { %453 = vrot.lane.b32.xlu2 %v445_v10, %s8174_s10  ;;  %v669_v48 = vmul.f32 %v667_v47, %v8443_v2  ;;  %v668_v49 = vmul.f32 %v667_v47, %v8440_v1  ;;  %v670_v50 = vmul.f32 %v667_v47, %v8437_v0  ;;  %v689_v51 = vstv %s7434_s30  ;;  %v8549_v10 = vld [vmem:[%s8418_s18] sm:$0x3]  ;;  %s7442_s20 = sld [smem:[#allocation9 + $0xb]] }
  0x73   : > { %v691_v53 = vmul.f32 %v689_v51, %v8443_v2  ;;  %v690_v54 = vmul.f32 %v689_v51, %v8440_v1  ;;  %v692_v55 = vmul.f32 %v689_v51, %v8437_v0  ;;  %v712_v56 = vstv %s7435_s12  ;;  %s7443_s11 = sld [smem:[#allocation9 + $0x77]] }
  0x74   : > { %v714_v58 = vmul.f32 %v712_v56, %v8443_v2  ;;  %v713_v59 = vmul.f32 %v712_v56, %v8440_v1  ;;  %v715_v60 = vmul.f32 %v712_v56, %v8437_v0  ;;  %v734_v61 = vstv %s7436_s16  ;;  %s7444_s29 = sld [smem:[#allocation9 + $0xc]] }
  0x75   : > { %v736_v63 = vmul.f32 %v734_v61, %v8443_v2  ;;  %v735_v3 = vmul.f32 %v734_v61, %v8440_v1  ;;  %v737_v4 = vmul.f32 %v734_v61, %v8437_v0  ;;  %v757_v5 = vstv %s7437_s2  ;;  %s7445_s15 = sld [smem:[#allocation9 + $0x78]] }
  0x76   : > { %v838_v6 = vstv %s7440_s24  ;;  %s7446_s0 = sld [smem:[#allocation9 + $0xd]] }
  0x77   : > { %v840_v15 = vmul.f32 %v838_v6, %v8443_v2  ;;  %v842_v19 = vmul.f32 %v838_v6, %v8549_v10  ;;  %s7447_s30 = sld [smem:[#allocation9 + $0x79]] }
  0x78   : > { %s7448_s12 = sld [smem:[#allocation9 + $0xe]] }
  0x79   : > { %473 = vrot.lane.b32.xlu1 %v466_v12, %s8175_s19  ;;  %471 = vrot.lane.b32.xlu0 %v465_v13, %s8175_s19  ;;  %v8554_v12 = vld [vmem:[%s8418_s18 + $0x10] sm:$0x3]  ;;  %v759_v13 = vmul.f32 %v757_v5, %v8443_v2  ;;  %s7449_s16 = sld [smem:[#allocation9 + $0x7a]] }
  0x7a   : > { %475 = vrot.lane.b32.xlu2 %v467_v14, %s8175_s19  ;;  %v758_v14 = vmul.f32 %v757_v5, %v8440_v1  ;;  %s7450_s2 = sld [smem:[#allocation9 + $0xf]] }
  0x7b   : > { %s7451_s24 = sld [smem:[#allocation9 + $0x7b]] }
  0x81   : > { %496 = vrot.lane.b32.xlu1 %v489_v16, %s8175_s19  ;;  %494 = vrot.lane.b32.xlu0 %v488_v17, %s8175_s19  ;;  %v843_v16 = vmul.f32 %v838_v6, %v8542_v7  ;;  %v760_v17 = vmul.f32 %v757_v5, %v8437_v0 }
  0x82   : > { %498 = vrot.lane.b32.xlu2 %v490_v18, %s8175_s19  ;;  %v839_v18 = vmul.f32 %v838_v6, %v8440_v1 }
  0x83   : > { %v855_v23 = vrot.slane %v843_v16, 1 }
  0x89   : > { %518 = vrot.lane.b32.xlu1 %v511_v20, %s8176_s14  ;;  %516 = vrot.lane.b32.xlu0 %v510_v21, %s8176_s14  ;;  %v841_v20 = vmul.f32 %v838_v6, %v8437_v0  ;;  %v844_v21 = vmul.f32 %v838_v6, %v8554_v12  ;;  %v949_v6 = vstv %s7443_s11  ;;  %s7454_s11 = sld [smem:[#allocation9 + $0x11]] }
  0x8a   : > { %520 = vrot.lane.b32.xlu2 %v512_v22, %s8176_s14  ;;  %v854_v22 = vrot.slane %v840_v15, 1 }
  0x91   : > { %541 = vrot.lane.b32.xlu1 %v534_v24, %s8176_s14  ;;  %539 = vrot.lane.b32.xlu0 %v533_v25, %s8176_s14  ;;  %v851_v24 = vrot.slane %v839_v18, 1  ;;  %v852_v25 = vrot.slane %v842_v19, 1  ;;  %v951_v19 = vmul.f32 %v949_v6, %v8443_v2 }
  0x92   : > { %543 = vrot.lane.b32.xlu2 %v535_v26, %s8176_s14  ;;  %v875_v26 = vstv %s7441_s17  ;;  %s7452_s17 = sld [smem:[#allocation9 + $0x10]] }
  0x93   : > { %v880_v35 = vmul.f32 %v875_v26, %v8542_v7  ;;  %v878_v39 = vmul.f32 %v875_v26, %v8437_v0 }
  0x99   : > { %563 = vrot.lane.b32.xlu1 %v556_v28, %s8177_s9  ;;  %561 = vrot.lane.b32.xlu0 %v555_v29, %s8177_s9  ;;  %v857_v29 = vrot.slane %v841_v20, 1 }
  0x9a   : > { %565 = vrot.lane.b32.xlu2 %v557_v30, %s8177_s9  ;;  %v858_v30 = vrot.slane %v844_v21, 1  ;;  %v954_v21 = vmul.f32 %v949_v6, %v8542_v7 }
  0xa1   : > { %586 = vrot.lane.b32.xlu1 %v579_v32, %s8177_s9  ;;  %584 = vrot.lane.b32.xlu0 %v578_v33, %s8177_s9  ;;  %v856_v32 = vsel %vm792_vm0, %v854_v22, %v855_v23  ;;  %v877_v33 = vmul.f32 %v875_v26, %v8443_v2  ;;  %v950_v22 = vmul.f32 %v949_v6, %v8440_v1 }
  0xa2   : > { %588 = vrot.lane.b32.xlu2 %v580_v34, %s8177_s9  ;;  %v853_v34 = vsel %vm792_vm0, %v851_v24, %v852_v25  ;;  %v953_v23 = vmul.f32 %v949_v6, %v8549_v10  ;;  %v952_v25 = vmul.f32 %v949_v6, %v8437_v0 }
  0xa9   : > { %608 = vrot.lane.b32.xlu1 %v601_v36, %s8178_s8  ;;  %606 = vrot.lane.b32.xlu0 %v600_v37, %s8178_s8  ;;  %v876_v36 = vmul.f32 %v875_v26, %v8440_v1  ;;  %v879_v37 = vmul.f32 %v875_v26, %v8549_v10 }
  0xaa   : > { %610 = vrot.lane.b32.xlu2 %v602_v38, %s8178_s8  ;;  %v859_v38 = vsel %vm792_vm0, %v857_v29, %v858_v30  ;;  %v965_v29 = vrot.slane %v951_v19, 1  ;;  %v966_v30 = vrot.slane %v954_v21, 1 }
  0xab   : > { %v888_v43 = vrot.slane %v876_v36, 1 }
  0xb1   : > { %631 = vrot.lane.b32.xlu1 %v624_v40, %s8178_s8  ;;  %629 = vrot.lane.b32.xlu0 %v623_v41, %s8178_s8  ;;  %v881_v40 = vmul.f32 %v875_v26, %v8554_v12  ;;  %v891_v41 = vrot.slane %v877_v33, 1  ;;  %v955_v26 = vmul.f32 %v949_v6, %v8554_v12  ;;  %v963_v33 = vrot.slane %v953_v23, 1 }
  0xb2   : > { %633 = vrot.lane.b32.xlu2 %v625_v42, %s8178_s8  ;;  %v892_v42 = vrot.slane %v880_v35, 1 }
  0xb9   : > { %653 = vrot.lane.b32.xlu1 %v646_v44, %s8179_s26  ;;  %651 = vrot.lane.b32.xlu0 %v645_v45, %s8179_s26  ;;  %v889_v44 = vrot.slane %v879_v37, 1  ;;  %v912_v45 = vstv %s7442_s20  ;;  %v968_v37 = vrot.slane %v952_v25, 1  ;;  %s7453_s20 = sld [smem:[#allocation9 + $0x7c]] }
  0xba   : > { %655 = vrot.lane.b32.xlu2 %v647_v46, %s8179_s26  ;;  %v914_v51 = vmul.f32 %v912_v45, %v8443_v2  ;;  %v913_v56 = vmul.f32 %v912_v45, %v8440_v1  ;;  %v918_v61 = vmul.f32 %v912_v45, %v8554_v12 }
  0xbc   : > { %v932_v16 = vrot.slane %v918_v61, 1 }
  0xc1   : > { %676 = vrot.lane.b32.xlu1 %v669_v48, %s8179_s26  ;;  %674 = vrot.lane.b32.xlu0 %v668_v49, %s8179_s26  ;;  %v894_v48 = vrot.slane %v878_v39, 1  ;;  %v895_v49 = vrot.slane %v881_v40, 1 }
  0xc2   : > { %678 = vrot.lane.b32.xlu2 %v670_v50, %s8179_s26 }
  0xc4   : > { %v8517_v52 = vpop.permute.xlu2 %451 }
  0xc9   : > { %698 = vrot.lane.b32.xlu1 %v691_v53, %s8180_s13  ;;  %696 = vrot.lane.b32.xlu0 %v690_v54, %s8180_s13  ;;  %v917_v53 = vmul.f32 %v912_v45, %v8542_v7  ;;  %v893_v54 = vsel %vm792_vm0, %v891_v41, %v892_v42  ;;  %v967_v42 = vsel %vm792_vm0, %v965_v29, %v966_v30 }
  0xca   : > { %700 = vrot.lane.b32.xlu2 %v692_v55, %s8180_s13  ;;  %v890_v55 = vsel %vm792_vm0, %v888_v43, %v889_v44 }
  0xcc   : > { %v8525_v57 = vpop.permute.xlu2 %453 }
  0xd1   : > { %721 = vrot.lane.b32.xlu1 %v714_v58, %s8180_s13  ;;  %719 = vrot.lane.b32.xlu0 %v713_v59, %s8180_s13  ;;  %v916_v58 = vmul.f32 %v912_v45, %v8549_v10  ;;  %v896_v59 = vsel %vm792_vm0, %v894_v48, %v895_v49 }
  0xd2   : > { %723 = vrot.lane.b32.xlu2 %v715_v60, %s8180_s13  ;;  %v915_v60 = vmul.f32 %v912_v45, %v8437_v0 }
  0xd3   : > { %v926_v5 = vrot.slane %v916_v58, 1  ;;  %v1023_v58 = vstv %s7445_s15  ;;  %s7458_s15 = sld [smem:[#allocation9 + $0x13]] }
  0xd4   : > { %v8533_v62 = vpop.permute.xlu2 %475  ;;  %v931_v15 = vrot.slane %v915_v60, 1  ;;  %v1029_v21 = vmul.f32 %v1023_v58, %v8554_v12 }
  0xd6   : > { %v933_v24 = vsel %vm792_vm0, %v931_v15, %v932_v16  ;;  %v1028_v15 = vmul.f32 %v1023_v58, %v8542_v7  ;;  %v1024_v16 = vmul.f32 %v1023_v58, %v8440_v1 }
  0xd8   : > { %v1040_v23 = vrot.slane %v1028_v15, 1 }
  0xd9   : > { %743 = vrot.lane.b32.xlu1 %v736_v63, %s8181_s4  ;;  %741 = vrot.lane.b32.xlu0 %v735_v3, %s8181_s4  ;;  %v928_v63 = vrot.slane %v914_v51, 1  ;;  %v929_v3 = vrot.slane %v917_v53, 1 }
  0xda   : > { %745 = vrot.lane.b32.xlu2 %v737_v4, %s8181_s4  ;;  %v925_v4 = vrot.slane %v913_v56, 1 }
  0xdb   : > { %v8544_v8 = vpop.permute.xlu1 %430  ;;  %v8546_v9 = vpop.permute.xlu0 %426  ;;  %v930_v18 = vsel %vm792_vm0, %v928_v63, %v929_v3 }
  0xdc   : > { %v8551_v11 = vpop.permute.xlu2 %498  ;;  %v927_v20 = vsel %vm792_vm0, %v925_v4, %v926_v5  ;;  %v1025_v5 = vmul.f32 %v1023_v58, %v8443_v2 }
  0xe1   : > { %766 = vrot.lane.b32.xlu1 %v759_v13, %s8181_s4  ;;  %764 = vrot.lane.b32.xlu0 %v758_v14, %s8181_s4 }
  0xe2   : > { %768 = vrot.lane.b32.xlu2 %v760_v17, %s8181_s4 }
  0xe3   : > { %v8568_v27 = vpop.permute.xlu1 %449  ;;  %v8570_v28 = vpop.permute.xlu0 %428 }
  0xe4   : > { %v8572_v31 = vpop.permute.xlu2 %520 }
  0xe9   : > { %862 = vrot.lane.b32.xlu1 %v856_v32, %s8174_s10  ;;  %860 = vrot.lane.b32.xlu0 %v853_v34, %s8174_s10  ;;  %v962_v32 = vrot.slane %v950_v22, 1  ;;  %v986_v34 = vstv %s7444_s29  ;;  %v1039_v22 = vrot.slane %v1025_v5, 1  ;;  %s7455_s29 = sld [smem:[#allocation9 + $0x7d]] }
  0xea   : > { %864 = vrot.lane.b32.xlu2 %v859_v38, %s8174_s10  ;;  %v969_v38 = vrot.slane %v955_v26, 1  ;;  %v988_v40 = vmul.f32 %v986_v34, %v8443_v2  ;;  %v991_v41 = vmul.f32 %v986_v34, %v8542_v7  ;;  %v987_v44 = vmul.f32 %v986_v34, %v8440_v1 }
  0xeb   : > { %v8586_v46 = vpop.permute.xlu1 %473  ;;  %v8588_v47 = vpop.permute.xlu0 %471  ;;  %v964_v43 = vsel %vm792_vm0, %v962_v32, %v963_v33  ;;  %v990_v45 = vmul.f32 %v986_v34, %v8549_v10  ;;  %v989_v49 = vmul.f32 %v986_v34, %v8437_v0  ;;  %v992_v51 = vmul.f32 %v986_v34, %v8554_v12 }
  0xec   : > { %v8590_v50 = vpop.permute.xlu2 %543  ;;  %v970_v48 = vsel %vm792_vm0, %v968_v37, %v969_v38  ;;  %v1002_v53 = vrot.slane %v988_v40, 1  ;;  %v1060_v26 = vstv %s7446_s0  ;;  %v1043_v33 = vrot.slane %v1029_v21, 1  ;;  %s7459_s0 = sld [smem:[#allocation9 + $0x7f]] }
  0xed   : > { %v1000_v56 = vrot.slane %v990_v45, 1  ;;  %v1005_v61 = vrot.slane %v989_v49, 1  ;;  %v1006_v63 = vrot.slane %v992_v51, 1  ;;  %v1062_v37 = vmul.f32 %v1060_v26, %v8443_v2 }
  0xee   : > { %v1065_v38 = vmul.f32 %v1060_v26, %v8542_v7  ;;  %v1041_v40 = vsel %vm792_vm0, %v1039_v22, %v1040_v23  ;;  %v1063_v45 = vmul.f32 %v1060_v26, %v8437_v0 }
  0xef   : > { %v1007_v19 = vsel %vm792_vm0, %v1005_v61, %v1006_v63  ;;  %v1076_v49 = vrot.slane %v1062_v37, 1 }
  0xf0   : > { %v1077_v51 = vrot.slane %v1065_v38, 1  ;;  %v1079_v61 = vrot.slane %v1063_v45, 1 }
  0xf1   : > { %899 = vrot.lane.b32.xlu1 %v893_v54, %s8174_s10  ;;  %897 = vrot.lane.b32.xlu0 %v890_v55, %s8174_s10  ;;  %v1003_v54 = vrot.slane %v991_v41, 1  ;;  %v999_v55 = vrot.slane %v987_v44, 1 }
  0xf2   : > { %901 = vrot.lane.b32.xlu2 %v896_v59, %s8174_s10  ;;  %v1078_v5 = vsel %vm792_vm0, %v1076_v49, %v1077_v51 }
  0xf3   : > { %v8604_v13 = vpop.permute.xlu1 %496  ;;  %v8606_v14 = vpop.permute.xlu0 %494  ;;  %v1004_v4 = vsel %vm792_vm0, %v1002_v53, %v1003_v54  ;;  %v1001_v6 = vsel %vm792_vm0, %v999_v55, %v1000_v56  ;;  %v1097_v55 = vstv %s7447_s30  ;;  %s7460_s30 = sld [smem:[#allocation9 + $0x14]] }
  0xf4   : > { %v8608_v17 = vpop.permute.xlu2 %565  ;;  %v1100_v21 = vmul.f32 %v1097_v55, %v8437_v0  ;;  %v1103_v22 = vmul.f32 %v1097_v55, %v8554_v12 }
  0xf6   : > { %v1116_v38 = vrot.slane %v1100_v21, 1 }
  0xf9   : > { %936 = vrot.lane.b32.xlu1 %v930_v18, %s8175_s19  ;;  %934 = vrot.lane.b32.xlu0 %v927_v20, %s8175_s19  ;;  %v1027_v18 = vmul.f32 %v1023_v58, %v8549_v10  ;;  %v1026_v20 = vmul.f32 %v1023_v58, %v8437_v0 }
  0xfa   : > { %938 = vrot.lane.b32.xlu2 %v933_v24, %s8175_s19  ;;  %v1036_v24 = vrot.slane %v1024_v16, 1  ;;  %v1102_v16 = vmul.f32 %v1097_v55, %v8542_v7 }
  0xfb   : > { %v8622_v35 = vpop.permute.xlu1 %518  ;;  %v8624_v36 = vpop.permute.xlu0 %516  ;;  %v1037_v25 = vrot.slane %v1027_v18, 1  ;;  %v1042_v32 = vrot.slane %v1026_v20, 1  ;;  %v1098_v18 = vmul.f32 %v1097_v55, %v8440_v1 }
  0xfc   : > { %v8626_v39 = vpop.permute.xlu2 %588 }
  0xfd   : > { %v1038_v41 = vsel %vm792_vm0, %v1036_v24, %v1037_v25  ;;  %v1044_v44 = vsel %vm792_vm0, %v1042_v32, %v1043_v33  ;;  %v1114_v24 = vrot.slane %v1102_v16, 1  ;;  %v1110_v25 = vrot.slane %v1098_v18, 1 }
  0xfe   : > { %v1134_v32 = vstv %s7448_s12  ;;  %s7461_s12 = sld [smem:[#allocation9 + $0x80]] }
  0xff   : > { %v1138_v49 = vmul.f32 %v1134_v32, %v8549_v10 }
 0x101   : > { %973 = vrot.lane.b32.xlu1 %v967_v42, %s8175_s19  ;;  %971 = vrot.lane.b32.xlu0 %v964_v43, %s8175_s19  ;;  %v1061_v42 = vmul.f32 %v1060_v26, %v8440_v1  ;;  %v1064_v43 = vmul.f32 %v1060_v26, %v8549_v10 }
 0x102   : > { %975 = vrot.lane.b32.xlu2 %v970_v48, %s8175_s19  ;;  %v1066_v48 = vmul.f32 %v1060_v26, %v8554_v12 }
 0x103   : > { %v8640_v59 = vpop.permute.xlu1 %541  ;;  %v8642_v60 = vpop.permute.xlu0 %539  ;;  %v1073_v53 = vrot.slane %v1061_v42, 1  ;;  %v1074_v54 = vrot.slane %v1064_v43, 1  ;;  %v1136_v42 = vmul.f32 %v1134_v32, %v8443_v2  ;;  %v1139_v43 = vmul.f32 %v1134_v32, %v8542_v7 }
 0x104   : > { %v8644_v3 = vpop.permute.xlu2 %610  ;;  %v1080_v63 = vrot.slane %v1066_v48, 1  ;;  %v1135_v48 = vmul.f32 %v1134_v32, %v8440_v1 }
 0x105   : > { %v1075_v15 = vsel %vm792_vm0, %v1073_v53, %v1074_v54  ;;  %v1137_v53 = vmul.f32 %v1134_v32, %v8437_v0  ;;  %v1140_v54 = vmul.f32 %v1134_v32, %v8554_v12 }
 0x106   : > { %v1081_v20 = vsel %vm792_vm0, %v1079_v61, %v1080_v63  ;;  %v1151_v61 = vrot.slane %v1139_v43, 1  ;;  %v1147_v63 = vrot.slane %v1135_v48, 1  ;;  %v1208_v48 = vstv %s7450_s2  ;;  %s7463_s2 = sld [smem:[#allocation9 + $0x81]] }
 0x107   : > { %v1153_v18 = vrot.slane %v1137_v53, 1 }
 0x109   : > { %1010 = vrot.lane.b32.xlu1 %v1004_v4, %s8176_s14  ;;  %1008 = vrot.lane.b32.xlu0 %v1001_v6, %s8176_s14  ;;  %v1099_v6 = vmul.f32 %v1097_v55, %v8443_v2 }
 0x10a   : > { %1012 = vrot.lane.b32.xlu2 %v1007_v19, %s8176_s14  ;;  %v1101_v19 = vmul.f32 %v1097_v55, %v8549_v10  ;;  %v1150_v55 = vrot.slane %v1136_v42, 1 }
 0x10b   : > { %v8658_v29 = vpop.permute.xlu1 %563  ;;  %v8660_v30 = vpop.permute.xlu0 %561  ;;  %v1113_v23 = vrot.slane %v1099_v6, 1  ;;  %v1171_v6 = vstv %s7449_s16  ;;  %s7462_s16 = sld [smem:[#allocation9 + $0x15]] }
 0x10c   : > { %v8662_v34 = vpop.permute.xlu2 %633  ;;  %v1111_v26 = vrot.slane %v1101_v19, 1  ;;  %v1154_v19 = vrot.slane %v1140_v54, 1  ;;  %v1152_v21 = vsel %vm792_vm0, %v1150_v55, %v1151_v61  ;;  %v1210_v61 = vmul.f32 %v1208_v48, %v8443_v2 }
 0x10e   : > { %v1112_v45 = vsel %vm792_vm0, %v1110_v25, %v1111_v26  ;;  %v1172_v25 = vmul.f32 %v1171_v6, %v8440_v1  ;;  %v1175_v26 = vmul.f32 %v1171_v6, %v8549_v10  ;;  %v1155_v32 = vsel %vm792_vm0, %v1153_v18, %v1154_v19 }
 0x10f   : > { %v1209_v18 = vmul.f32 %v1208_v48, %v8440_v1  ;;  %v1212_v19 = vmul.f32 %v1208_v48, %v8549_v10 }
 0x111   : > { %1047 = vrot.lane.b32.xlu1 %v1041_v40, %s8176_s14  ;;  %1045 = vrot.lane.b32.xlu0 %v1038_v41, %s8176_s14  ;;  %v1117_v40 = vrot.slane %v1103_v22, 1  ;;  %v1173_v22 = vmul.f32 %v1171_v6, %v8443_v2 }
 0x112   : > { %1049 = vrot.lane.b32.xlu2 %v1044_v44, %s8176_s14  ;;  %v1115_v44 = vsel %vm792_vm0, %v1113_v23, %v1114_v24  ;;  %v1176_v24 = vmul.f32 %v1171_v6, %v8542_v7 }
 0x113   : > { %v8676_v56 = vpop.permute.xlu1 %586  ;;  %v8678_v58 = vpop.permute.xlu0 %584  ;;  %v1118_v51 = vsel %vm792_vm0, %v1116_v38, %v1117_v40  ;;  %v1174_v38 = vmul.f32 %v1171_v6, %v8437_v0  ;;  %v1177_v40 = vmul.f32 %v1171_v6, %v8554_v12  ;;  %v1187_v42 = vrot.slane %v1173_v22, 1 }
 0x114   : > { %v8680_v4 = vpop.permute.xlu2 %655  ;;  %v1188_v43 = vrot.slane %v1176_v24, 1  ;;  %v1211_v22 = vmul.f32 %v1208_v48, %v8437_v0  ;;  %v1224_v24 = vrot.slane %v1210_v61, 1 }
 0x115   : > { %v1190_v53 = vrot.slane %v1174_v38, 1  ;;  %v1191_v54 = vrot.slane %v1177_v40, 1  ;;  %v1245_v38 = vstv %s7451_s24  ;;  %s7464_s24 = sld [smem:[#allocation9 + $0x16]] }
 0x116   : > { %v1250_v61 = vmul.f32 %v1245_v38, %v8542_v7 }
 0x119   : > { %1084 = vrot.lane.b32.xlu1 %v1078_v5, %s8177_s9  ;;  %1082 = vrot.lane.b32.xlu0 %v1075_v15, %s8177_s9  ;;  %v1148_v5 = vrot.slane %v1138_v49, 1 }
 0x11a   : > { %1086 = vrot.lane.b32.xlu2 %v1081_v20, %s8177_s9 }
 0x11b   : > { %v8694_v33 = vpop.permute.xlu1 %608  ;;  %v8696_v37 = vpop.permute.xlu0 %606  ;;  %v1149_v23 = vsel %vm792_vm0, %v1147_v63, %v1148_v5  ;;  %v1213_v63 = vmul.f32 %v1208_v48, %v8542_v7  ;;  %v1189_v5 = vsel %vm792_vm0, %v1187_v42, %v1188_v43  ;;  %v1227_v43 = vrot.slane %v1211_v22, 1 }
 0x11c   : > { %v8698_v41 = vpop.permute.xlu2 %678  ;;  %v1262_v22 = vrot.slane %v1250_v61, 1 }
 0x121   : > { %1121 = vrot.lane.b32.xlu1 %v1115_v44, %s8177_s9  ;;  %1119 = vrot.lane.b32.xlu0 %v1112_v45, %s8177_s9  ;;  %v1184_v44 = vrot.slane %v1172_v25, 1  ;;  %v1185_v45 = vrot.slane %v1175_v26, 1  ;;  %v1225_v25 = vrot.slane %v1213_v63, 1  ;;  %v1221_v26 = vrot.slane %v1209_v18, 1 }
 0x122   : > { %1123 = vrot.lane.b32.xlu2 %v1118_v51, %s8177_s9  ;;  %v1246_v63 = vmul.f32 %v1245_v38, %v8440_v1  ;;  %v1248_v18 = vmul.f32 %v1245_v38, %v8437_v0 }
 0x123   : > { %v8712_v15 = vpop.permute.xlu1 %631  ;;  %v8714_v16 = vpop.permute.xlu0 %629  ;;  %v1186_v6 = vsel %vm792_vm0, %v1184_v44, %v1185_v45 }
 0x124   : > { %v8716_v20 = vpop.permute.xlu2 %700 }
 0x129   : > { %1158 = vrot.lane.b32.xlu1 %v1152_v21, %s8178_s8  ;;  %1156 = vrot.lane.b32.xlu0 %v1149_v23, %s8178_s8  ;;  %v1192_v21 = vsel %vm792_vm0, %v1190_v53, %v1191_v54  ;;  %v1214_v23 = vmul.f32 %v1208_v48, %v8554_v12  ;;  %v1226_v48 = vsel %vm792_vm0, %v1224_v24, %v1225_v25  ;;  %v1282_v25 = vstv %s7452_s17  ;;  %s7465_s17 = sld [smem:[#allocation9 + $0x82]] }
 0x12a   : > { %1160 = vrot.lane.b32.xlu2 %v1155_v32, %s8178_s8  ;;  %v1222_v32 = vrot.slane %v1212_v19, 1  ;;  %v1247_v53 = vmul.f32 %v1245_v38, %v8443_v2  ;;  %v1251_v19 = vmul.f32 %v1245_v38, %v8554_v12  ;;  %v1283_v61 = vmul.f32 %v1282_v25, %v8440_v1 }
 0x12b   : > { %v8730_v49 = vpop.permute.xlu1 %653  ;;  %v8732_v51 = vpop.permute.xlu0 %651  ;;  %v1228_v44 = vrot.slane %v1214_v23, 1  ;;  %v1258_v23 = vrot.slane %v1246_v63, 1  ;;  %v1286_v63 = vmul.f32 %v1282_v25, %v8549_v10 }
 0x12c   : > { %v8734_v55 = vpop.permute.xlu2 %723  ;;  %v1223_v54 = vsel %vm792_vm0, %v1221_v26, %v1222_v32 }
 0x131   : > { %1195 = vrot.lane.b32.xlu1 %v1189_v5, %s8178_s8  ;;  %1193 = vrot.lane.b32.xlu0 %v1186_v6, %s8178_s8  ;;  %v1249_v5 = vmul.f32 %v1245_v38, %v8549_v10  ;;  %v1229_v6 = vsel %vm792_vm0, %v1227_v43, %v1228_v44  ;;  %v1264_v43 = vrot.slane %v1248_v18, 1  ;;  %v1265_v44 = vrot.slane %v1251_v19, 1 }
 0x132   : > { %1197 = vrot.lane.b32.xlu2 %v1192_v21, %s8178_s8  ;;  %v1261_v21 = vrot.slane %v1247_v53, 1  ;;  %v1284_v38 = vmul.f32 %v1282_v25, %v8443_v2  ;;  %v1288_v18 = vmul.f32 %v1282_v25, %v8554_v12 }
 0x133   : > { %v8748_v40 = vpop.permute.xlu1 %676  ;;  %v8750_v42 = vpop.permute.xlu0 %674  ;;  %v1259_v24 = vrot.slane %v1249_v5, 1  ;;  %v1266_v5 = vsel %vm792_vm0, %v1264_v43, %v1265_v44 }
 0x134   : > { %13847 = vst [vmem:[#allocation30_spill] sm:$0xff] %v8748_v40  ;;  %v8752_v45 = vpop.permute.xlu2 %745  ;;  %v1263_v53 = vsel %vm792_vm0, %v1261_v21, %v1262_v22  ;;  %v1298_v19 = vrot.slane %v1284_v38, 1  ;;  %v1295_v21 = vrot.slane %v1283_v61, 1  ;;  %v1296_v22 = vrot.slane %v1286_v63, 1 }
 0x135   : > { %13848 = vst [vmem:[#allocation31_spill] sm:$0xff] %v8750_v42  ;;  %v1302_v44 = vrot.slane %v1288_v18, 1 }
 0x136   : > { %v1297_v38 = vsel %vm792_vm0, %v1295_v21, %v1296_v22  ;;  %v1356_v22 = vstv %s7454_s11  ;;  %s7467_s11 = sld [smem:[#allocation9 + $0x83]] }
 0x139   : > { %1232 = vrot.lane.b32.xlu1 %v1226_v48, %s8179_s26  ;;  %1230 = vrot.lane.b32.xlu0 %v1223_v54, %s8179_s26  ;;  %v1287_v48 = vmul.f32 %v1282_v25, %v8542_v7  ;;  %v1260_v54 = vsel %vm792_vm0, %v1258_v23, %v1259_v24  ;;  %v1319_v23 = vstv %s7453_s20  ;;  %s7466_s20 = sld [smem:[#allocation9 + $0x17]] }
 0x13a   : > { %1234 = vrot.lane.b32.xlu2 %v1229_v6, %s8179_s26  ;;  %v1285_v6 = vmul.f32 %v1282_v25, %v8437_v0  ;;  %v1323_v61 = vmul.f32 %v1319_v23, %v8549_v10 }
 0x13b   : > { %v8766_v26 = vpop.permute.xlu1 %698  ;;  %v8768_v32 = vpop.permute.xlu0 %696 }
 0x13c   : > { %13849 = vst [vmem:[#allocation32_spill] sm:$0xff] %v8766_v26  ;;  %v8770_v42 = vpop.permute.xlu2 %768  ;;  %v1301_v43 = vrot.slane %v1285_v6, 1  ;;  %v1325_v6 = vmul.f32 %v1319_v23, %v8554_v12  ;;  %v1333_v21 = vrot.slane %v1323_v61, 1 }
 0x13d   : > { %13850 = vst [vmem:[#allocation33_spill] sm:$0xff] %v8768_v32 }
 0x13e   : > { %13851 = vst [vmem:[#allocation34_spill] sm:$0xff] %v8770_v42  ;;  %v1299_v42 = vrot.slane %v1287_v48, 1  ;;  %v1324_v48 = vmul.f32 %v1319_v23, %v8542_v7  ;;  %v1303_v63 = vsel %vm792_vm0, %v1301_v43, %v1302_v44  ;;  %v1339_v44 = vrot.slane %v1325_v6, 1 }
 0x140   : > { %v1300_v25 = vsel %vm792_vm0, %v1298_v19, %v1299_v42  ;;  %v1336_v18 = vrot.slane %v1324_v48, 1  ;;  %v1357_v48 = vmul.f32 %v1356_v22, %v8440_v1 }
 0x141   : > { %1269 = vrot.lane.b32.xlu1 %v1263_v53, %s8179_s26  ;;  %1267 = vrot.lane.b32.xlu0 %v1260_v54, %s8179_s26  ;;  %v1321_v53 = vmul.f32 %v1319_v23, %v8443_v2  ;;  %v1320_v54 = vmul.f32 %v1319_v23, %v8440_v1 }
 0x142   : > { %1271 = vrot.lane.b32.xlu2 %v1266_v5, %s8179_s26  ;;  %v1322_v5 = vmul.f32 %v1319_v23, %v8437_v0  ;;  %v1358_v23 = vmul.f32 %v1356_v22, %v8443_v2 }
 0x143   : > { %v8784_v24 = vpop.permute.xlu1 %721  ;;  %v8786_v32 = vpop.permute.xlu0 %719  ;;  %v1335_v42 = vrot.slane %v1321_v53, 1  ;;  %v1332_v19 = vrot.slane %v1320_v54, 1  ;;  %v1360_v54 = vmul.f32 %v1356_v22, %v8549_v10 }
 0x144   : > { %13852 = vst [vmem:[#allocation35_spill] sm:$0xff] %v8784_v24  ;;  %v8788_v26 = vpop.permute.xlu2 %864  ;;  %v1338_v43 = vrot.slane %v1322_v5, 1  ;;  %v1362_v5 = vmul.f32 %v1356_v22, %v8554_v12  ;;  %v1372_v6 = vrot.slane %v1358_v23, 1 }
 0x145   : > { %13853 = vst [vmem:[#allocation36_spill] sm:$0xff] %v8786_v32  ;;  %v1337_v53 = vsel %vm792_vm0, %v1335_v42, %v1336_v18  ;;  %v1369_v42 = vrot.slane %v1357_v48, 1  ;;  %v1370_v18 = vrot.slane %v1360_v54, 1 }
 0x146   : > { %13854 = vst [vmem:[#allocation37_spill] sm:$0xff] %v8788_v26  ;;  %v1340_v61 = vsel %vm792_vm0, %v1338_v43, %v1339_v44  ;;  %v1376_v44 = vrot.slane %v1362_v5, 1 }
 0x147   : > { %v1371_v23 = vsel %vm792_vm0, %v1369_v42, %v1370_v18 }
 0x149   : > { %1306 = vrot.lane.b32.xlu1 %v1300_v25, %s8180_s13  ;;  %1304 = vrot.lane.b32.xlu0 %v1297_v38, %s8180_s13  ;;  %v1361_v25 = vmul.f32 %v1356_v22, %v8542_v7  ;;  %v1334_v38 = vsel %vm792_vm0, %v1332_v19, %v1333_v21  ;;  %v1393_v19 = vstv %s7455_s29  ;;  %s7468_s29 = sld [smem:[#allocation9 + $0x18]] }
 0x14a   : > { %1308 = vrot.lane.b32.xlu2 %v1303_v63, %s8180_s13  ;;  %v1359_v63 = vmul.f32 %v1356_v22, %v8437_v0  ;;  %v1397_v48 = vmul.f32 %v1393_v19, %v8549_v10 }
 0x14b   : > { %v8802_v26 = vpop.permute.xlu1 %743  ;;  %v8804_v32 = vpop.permute.xlu0 %741 }
 0x14c   : > { %13855 = vst [vmem:[#allocation38_spill] sm:$0xff] %v8802_v26  ;;  %v8806_v24 = vpop.permute.xlu2 %901  ;;  %v1375_v43 = vrot.slane %v1359_v63, 1  ;;  %v1399_v63 = vmul.f32 %v1393_v19, %v8554_v12  ;;  %v1407_v42 = vrot.slane %v1397_v48, 1 }
 0x14d   : > { %13856 = vst [vmem:[#allocation39_spill] sm:$0xff] %v8804_v32 }
 0x14e   : > { %13857 = vst [vmem:[#allocation40_spill] sm:$0xff] %v8806_v24  ;;  %v1373_v24 = vrot.slane %v1361_v25, 1  ;;  %v1398_v25 = vmul.f32 %v1393_v19, %v8542_v7  ;;  %v1377_v54 = vsel %vm792_vm0, %v1375_v43, %v1376_v44 }
 0x150   : > { %v1374_v22 = vsel %vm792_vm0, %v1372_v6, %v1373_v24  ;;  %v1410_v5 = vrot.slane %v1398_v25, 1 }
 0x151   : > { %1343 = vrot.lane.b32.xlu1 %v1337_v53, %s8180_s13  ;;  %1341 = vrot.lane.b32.xlu0 %v1334_v38, %s8180_s13  ;;  %v1395_v53 = vmul.f32 %v1393_v19, %v8443_v2  ;;  %v1394_v38 = vmul.f32 %v1393_v19, %v8440_v1  ;;  %v1489_v1 = vstv %s7458_s15  ;;  %s7469_s15 = sld [smem:[#allocation9 + $0x84]] }
 0x152   : > { %1345 = vrot.lane.b32.xlu2 %v1340_v61, %s8180_s13  ;;  %v1396_v61 = vmul.f32 %v1393_v19, %v8437_v0  ;;  %v1413_v19 = vrot.slane %v1399_v63, 1 }
 0x153   : > { %v8820_v21 = vpop.permute.xlu1 %766  ;;  %v8822_v32 = vpop.permute.xlu0 %764  ;;  %v1409_v24 = vrot.slane %v1395_v53, 1  ;;  %v1406_v6 = vrot.slane %v1394_v38, 1  ;;  %v1494_v53 = vmul.f32 %v1489_v1, %v8542_v7  ;;  %v8849_v38 = vld [vmem:[%s8411_s21] sm:$0xff] }
 0x154   : > { %13858 = vst [vmem:[#allocation41_spill] sm:$0xff] %v8820_v21  ;;  %v8824_v26 = vpop.permute.xlu2 %938  ;;  %v1412_v0 = vrot.slane %v1396_v61, 1  ;;  %v1490_v48 = vmul.f32 %v8849_v38, %v1489_v1  ;;  %v8855_v61 = vld [vmem:[%s8411_s21 + $0x10] sm:$0xff] }
 0x155   : > { %13859 = vst [vmem:[#allocation42_spill] sm:$0xff] %v8822_v32  ;;  %v1408_v25 = vsel %vm792_vm0, %v1406_v6, %v1407_v42  ;;  %v1492_v63 = vmul.f32 %v8855_v61, %v1489_v1 }
 0x156   : > { %13860 = vst [vmem:[#allocation43_spill] sm:$0xff] %v8824_v26  ;;  %v1502_v6 = vrot.slane %v1490_v48, 2 }
 0x159   : > { %1380 = vrot.lane.b32.xlu1 %v1374_v22, %s8181_s4  ;;  %1378 = vrot.lane.b32.xlu0 %v1371_v23, %s8181_s4  ;;  %v1491_v22 = vmul.f32 %v1489_v1, %v8443_v2  ;;  %v1411_v23 = vsel %vm792_vm0, %v1409_v24, %v1410_v5  ;;  %v1495_v2 = vmul.f32 %v1489_v1, %v8554_v12  ;;  %v1506_v5 = vrot.slane %v1494_v53, 2 }
 0x15a   : > { %1382 = vrot.lane.b32.xlu2 %v1377_v54, %s8181_s4  ;;  %v1493_v54 = vmul.f32 %v1489_v1, %v8549_v10 }
 0x15b   : > { %v8838_v18 = vpop.permute.xlu1 %862  ;;  %v8840_v43 = vpop.permute.xlu0 %860  ;;  %v1505_v24 = vrot.slane %v1491_v22, 2  ;;  %v1509_v1 = vrot.slane %v1495_v2, 2 }
 0x15c   : > { %13861 = vst [vmem:[#allocation44_spill] sm:$0xff] %v8838_v18  ;;  %v8842_v44 = vpop.permute.xlu2 %975  ;;  %v1503_v42 = vrot.slane %v1493_v54, 2  ;;  %v1508_v18 = vrot.slane %v1492_v63, 2 }
 0x15d   : > { %13862 = vst [vmem:[#allocation45_spill] sm:$0xff] %v8840_v43  ;;  %v1414_v43 = vsel %vm792_vm0, %v1412_v0, %v1413_v19 }
 0x15e   : > { %13863 = vst [vmem:[#allocation46_spill] sm:$0xff] %v8842_v44  ;;  %v1526_v44 = vstv %s7459_s0  ;;  %s7470_s0 = sld [smem:[#allocation9 + $0x19]] }
 0x15f   : > { %v1531_v53 = vmul.f32 %v1526_v44, %v8542_v7  ;;  %v1527_v48 = vmul.f32 %v8849_v38, %v1526_v44  ;;  %v1530_v54 = vmul.f32 %v1526_v44, %v8549_v10  ;;  %v1529_v63 = vmul.f32 %v8855_v61, %v1526_v44 }
 0x160   : > { %v1532_v2 = vmul.f32 %v1526_v44, %v8554_v12 }
 0x161   : > { %1417 = vrot.lane.b32.xlu1 %v1411_v23, %s8181_s4  ;;  %1415 = vrot.lane.b32.xlu0 %v1408_v25, %s8181_s4  ;;  %v1507_v23 = vsel %vm1443_vm1, %v1505_v24, %v1506_v5  ;;  %v8870_v25 = vld [vmem:[%s8411_s21 + $0x8] sm:$0xff]  ;;  %v1543_v5 = vrot.slane %v1531_v53, 2 }
 0x162   : > { %1419 = vrot.lane.b32.xlu2 %v1414_v43, %s8181_s4  ;;  %v1528_v22 = vmul.f32 %v8870_v25, %v1526_v44  ;;  %v1504_v43 = vsel %vm1443_vm1, %v1502_v6, %v1503_v42  ;;  %v1539_v6 = vrot.slane %v1527_v48, 2  ;;  %v1540_v42 = vrot.slane %v1530_v54, 2 }
 0x163   : > { %v8862_v0 = vpop.permute.xlu1 %899  ;;  %v8864_v19 = vpop.permute.xlu0 %897 }
 0x164   : > { %13864 = vst [vmem:[#allocation47_spill] sm:$0xff] %v8862_v0  ;;  %v8866_v26 = vpop.permute.xlu2 %1012  ;;  %v1542_v24 = vrot.slane %v1528_v22, 2 }
 0x165   : > { %13865 = vst [vmem:[#allocation48_spill] sm:$0xff] %v8864_v19  ;;  %v1510_v19 = vsel %vm1443_vm1, %v1508_v18, %v1509_v1  ;;  %v1545_v18 = vrot.slane %v1529_v63, 2  ;;  %v1546_v1 = vrot.slane %v1532_v2, 2 }
 0x166   : > { %13866 = vst [vmem:[#allocation49_spill] sm:$0xff] %v8866_v26  ;;  %v1563_v26 = vstv %s7460_s30  ;;  %v1544_v22 = vsel %vm1443_vm1, %v1542_v24, %v1543_v5  ;;  %s7471_s30 = sld [smem:[#allocation9 + $0x85]] }
 0x167   : > { %v1565_v44 = vmul.f32 %v8870_v25, %v1563_v26  ;;  %v1567_v53 = vmul.f32 %v1563_v26, %v8549_v10  ;;  %v1547_v48 = vsel %vm1443_vm1, %v1545_v18, %v1546_v1  ;;  %v1566_v54 = vmul.f32 %v8855_v61, %v1563_v26 }
 0x168   : > { %v1569_v63 = vmul.f32 %v1563_v26, %v8554_v12 }
 0x169   : > { %1513 = vrot.lane.b32.xlu1 %v1507_v23, %s8174_s10  ;;  %1511 = vrot.lane.b32.xlu0 %v1504_v43, %s8174_s10  ;;  %v1568_v23 = vmul.f32 %v1563_v26, %v8542_v7  ;;  %v1564_v43 = vmul.f32 %v8849_v38, %v1563_v26  ;;  %v1579_v2 = vrot.slane %v1565_v44, 2  ;;  %v1577_v5 = vrot.slane %v1567_v53, 2 }
 0x16a   : > { %1515 = vrot.lane.b32.xlu2 %v1510_v19, %s8174_s10  ;;  %v1541_v19 = vsel %vm1443_vm1, %v1539_v6, %v1540_v42  ;;  %v1600_v6 = vstv %s7461_s12  ;;  %v1582_v18 = vrot.slane %v1566_v54, 2  ;;  %v1583_v1 = vrot.slane %v1569_v63, 2  ;;  %s7472_s12 = sld [smem:[#allocation9 + $0x1a]] }
 0x16b   : > { %v8883_v0 = vpop.permute.xlu1 %936  ;;  %v8885_v32 = vpop.permute.xlu0 %934  ;;  %v1576_v24 = vrot.slane %v1564_v43, 2  ;;  %v1604_v43 = vmul.f32 %v1600_v6, %v8549_v10  ;;  %v1606_v54 = vmul.f32 %v1600_v6, %v8554_v12 }
 0x16c   : > { %13867 = vst [vmem:[#allocation50_spill] sm:$0xff] %v8883_v0  ;;  %v8887_v21 = vpop.permute.xlu2 %1049  ;;  %v1584_v53 = vsel %vm1443_vm1, %v1582_v18, %v1583_v1 }
 0x16d   : > { %13868 = vst [vmem:[#allocation51_spill] sm:$0xff] %v8885_v32  ;;  %v1578_v44 = vsel %vm1443_vm1, %v1576_v24, %v1577_v5  ;;  %v1614_v24 = vrot.slane %v1604_v43, 2  ;;  %v1637_v5 = vstv %s7462_s16  ;;  %v1620_v1 = vrot.slane %v1606_v54, 2  ;;  %s7473_s16 = sld [smem:[#allocation9 + $0x86]] }
 0x16e   : > { %13869 = vst [vmem:[#allocation52_spill] sm:$0xff] %v8887_v21  ;;  %v1580_v21 = vrot.slane %v1568_v23, 2  ;;  %v1605_v23 = vmul.f32 %v1600_v6, %v8542_v7 }
 0x170   : > { %v1581_v26 = vsel %vm1443_vm1, %v1579_v2, %v1580_v21  ;;  %v1617_v63 = vrot.slane %v1605_v23, 2  ;;  %v1638_v23 = vmul.f32 %v8849_v38, %v1637_v5 }
 0x171   : > { %1550 = vrot.lane.b32.xlu1 %v1544_v22, %s8174_s10  ;;  %1548 = vrot.lane.b32.xlu0 %v1541_v19, %s8174_s10  ;;  %v1602_v22 = vmul.f32 %v8870_v25, %v1600_v6  ;;  %v1601_v19 = vmul.f32 %v8849_v38, %v1600_v6 }
 0x172   : > { %1552 = vrot.lane.b32.xlu2 %v1547_v48, %s8174_s10  ;;  %v1603_v48 = vmul.f32 %v8855_v61, %v1600_v6  ;;  %v1639_v6 = vmul.f32 %v8870_v25, %v1637_v5 }
 0x173   : > { %v8901_v42 = vpop.permute.xlu1 %973  ;;  %v8903_v32 = vpop.permute.xlu0 %971  ;;  %v1616_v21 = vrot.slane %v1602_v22, 2  ;;  %v1613_v2 = vrot.slane %v1601_v19, 2  ;;  %v1641_v19 = vmul.f32 %v1637_v5, %v8549_v10 }
 0x174   : > { %13870 = vst [vmem:[#allocation53_spill] sm:$0xff] %v8901_v42  ;;  %v8905_v0 = vpop.permute.xlu2 %1086  ;;  %v1619_v18 = vrot.slane %v1603_v48, 2  ;;  %v1643_v48 = vmul.f32 %v1637_v5, %v8554_v12  ;;  %v1653_v54 = vrot.slane %v1639_v6, 2 }
 0x175   : > { %13871 = vst [vmem:[#allocation54_spill] sm:$0xff] %v8903_v32  ;;  %v1618_v22 = vsel %vm1443_vm1, %v1616_v21, %v1617_v63  ;;  %v1650_v21 = vrot.slane %v1638_v23, 2  ;;  %v1651_v63 = vrot.slane %v1641_v19, 2 }
 0x176   : > { %13872 = vst [vmem:[#allocation55_spill] sm:$0xff] %v8905_v0  ;;  %v1621_v43 = vsel %vm1443_vm1, %v1619_v18, %v1620_v1  ;;  %v1657_v1 = vrot.slane %v1643_v48, 2 }
 0x177   : > { %v1652_v6 = vsel %vm1443_vm1, %v1650_v21, %v1651_v63  ;;  %v1711_v21 = vstv %s7464_s24  ;;  %s7483_s24 = sld [smem:[#allocation9 + $0x88]] }
 0x179   : > { %1587 = vrot.lane.b32.xlu1 %v1581_v26, %s8175_s19  ;;  %1585 = vrot.lane.b32.xlu0 %v1578_v44, %s8175_s19  ;;  %v1642_v26 = vmul.f32 %v1637_v5, %v8542_v7  ;;  %v1615_v44 = vsel %vm1443_vm1, %v1613_v2, %v1614_v24  ;;  %v1674_v2 = vstv %s7463_s2  ;;  %s7482_s2 = sld [smem:[#allocation9 + $0x1c]] }
 0x17a   : > { %1589 = vrot.lane.b32.xlu2 %v1584_v53, %s8175_s19  ;;  %v1640_v53 = vmul.f32 %v8855_v61, %v1637_v5  ;;  %v1678_v23 = vmul.f32 %v1674_v2, %v8549_v10 }
 0x17b   : > { %v8919_v32 = vpop.permute.xlu1 %1010  ;;  %v8921_v0 = vpop.permute.xlu0 %1008 }
 0x17c   : > { %13873 = vst [vmem:[#allocation56_spill] sm:$0xff] %v8919_v32  ;;  %v8923_v42 = vpop.permute.xlu2 %1123  ;;  %v1656_v18 = vrot.slane %v1640_v53, 2  ;;  %v1680_v53 = vmul.f32 %v1674_v2, %v8554_v12 }
 0x17d   : > { %13874 = vst [vmem:[#allocation57_spill] sm:$0xff] %v8921_v0 }
 0x17e   : > { %13875 = vst [vmem:[#allocation58_spill] sm:$0xff] %v8923_v42  ;;  %v1654_v42 = vrot.slane %v1642_v26, 2  ;;  %v1679_v26 = vmul.f32 %v1674_v2, %v8542_v7  ;;  %v1658_v19 = vsel %vm1443_vm1, %v1656_v18, %v1657_v1  ;;  %v1713_v1 = vmul.f32 %v8870_v25, %v1711_v21 }
 0x180   : > { %v1655_v5 = vsel %vm1443_vm1, %v1653_v54, %v1654_v42  ;;  %v1691_v48 = vrot.slane %v1679_v26, 2  ;;  %v1688_v54 = vrot.slane %v1678_v23, 2  ;;  %v8970_v23 = vld [vmem:[%s8418_s18] sm:$0x3] }
 0x181   : > { %1624 = vrot.lane.b32.xlu1 %v1618_v22, %s8175_s19  ;;  %1622 = vrot.lane.b32.xlu0 %v1615_v44, %s8175_s19  ;;  %v1676_v22 = vmul.f32 %v8870_v25, %v1674_v2  ;;  %v1675_v44 = vmul.f32 %v8849_v38, %v1674_v2 }
 0x182   : > { %1626 = vrot.lane.b32.xlu2 %v1621_v43, %s8175_s19  ;;  %v1677_v43 = vmul.f32 %v8855_v61, %v1674_v2  ;;  %v1694_v2 = vrot.slane %v1680_v53, 2  ;;  %v1714_v53 = vmul.f32 %v8855_v61, %v1711_v21 }
 0x183   : > { %v8937_v24 = vpop.permute.xlu1 %1047  ;;  %v8939_v0 = vpop.permute.xlu0 %1045  ;;  %v1690_v42 = vrot.slane %v1676_v22, 2  ;;  %v1687_v7 = vrot.slane %v1675_v44, 2  ;;  %v1712_v44 = vmul.f32 %v8849_v38, %v1711_v21 }
 0x184   : > { %13876 = vst [vmem:[#allocation59_spill] sm:$0xff] %v8937_v24  ;;  %v8941_v32 = vpop.permute.xlu2 %1160  ;;  %v1693_v12 = vrot.slane %v1677_v43, 2 }
 0x185   : > { %13877 = vst [vmem:[#allocation60_spill] sm:$0xff] %v8939_v0  ;;  %v1689_v26 = vsel %vm1443_vm1, %v1687_v7, %v1688_v54  ;;  %v1724_v7 = vrot.slane %v1712_v44, 2 }
 0x186   : > { %13878 = vst [vmem:[#allocation61_spill] sm:$0xff] %v8941_v32  ;;  %v1695_v43 = vsel %vm1443_vm1, %v1693_v12, %v1694_v2  ;;  %v1730_v2 = vrot.slane %v1714_v53, 2 }
 0x189   : > { %1661 = vrot.lane.b32.xlu1 %v1655_v5, %s8176_s14  ;;  %1659 = vrot.lane.b32.xlu0 %v1652_v6, %s8176_s14  ;;  %v8963_v5 = vld [vmem:[%s8418_s18 + $0x8] sm:$0x3]  ;;  %v1692_v6 = vsel %vm1443_vm1, %v1690_v42, %v1691_v48  ;;  %v1727_v42 = vrot.slane %v1713_v1, 2 }
 0x18a   : > { %1663 = vrot.lane.b32.xlu2 %v1658_v19, %s8176_s14  ;;  %v1716_v22 = vmul.f32 %v8963_v5, %v1711_v21  ;;  %v1715_v19 = vmul.f32 %v8970_v23, %v1711_v21 }
 0x18b   : > { %v8955_v10 = vpop.permute.xlu1 %1084  ;;  %v8957_v63 = vpop.permute.xlu0 %1082 }
 0x18c   : > { %13879 = vst [vmem:[#allocation62_spill] sm:$0xff] %v8955_v10  ;;  %v8959_v18 = vpop.permute.xlu2 %1197  ;;  %v1728_v48 = vrot.slane %v1716_v22, 2  ;;  %v1725_v54 = vrot.slane %v1715_v19, 2  ;;  %v1748_v10 = vstv %s7465_s17  ;;  %s7484_s17 = sld [smem:[#allocation9 + $0x1d]] }
 0x18d   : > { %13880 = vst [vmem:[#allocation63_spill] sm:$0xff] %v8957_v63  ;;  %v8976_v63 = vld [vmem:[%s8418_s18 + $0x10] sm:$0x3]  ;;  %v1753_v22 = vmul.f32 %v8963_v5, %v1748_v10  ;;  %v1752_v44 = vmul.f32 %v8970_v23, %v1748_v10 }
 0x18e   : > { %13881 = vst [vmem:[#allocation64_spill] sm:$0xff] %v8959_v18  ;;  %v1717_v18 = vmul.f32 %v8976_v63, %v1711_v21  ;;  %v1729_v21 = vsel %vm1443_vm1, %v1727_v42, %v1728_v48  ;;  %v1726_v1 = vsel %vm1443_vm1, %v1724_v7, %v1725_v54  ;;  %v1785_v54 = vstv %s7466_s20  ;;  %s7485_s20 = sld [smem:[#allocation9 + $0x89]] }
 0x18f   : > { %v1765_v42 = vrot.slane %v1753_v22, 2  ;;  %v1762_v7 = vrot.slane %v1752_v44, 2  ;;  %v1786_v22 = vmul.f32 %v8849_v38, %v1785_v54 }
 0x190   : > { %v1731_v32 = vrot.slane %v1717_v18, 2  ;;  %v1754_v18 = vmul.f32 %v8976_v63, %v1748_v10 }
 0x191   : > { %1698 = vrot.lane.b32.xlu1 %v1692_v6, %s8176_s14  ;;  %1696 = vrot.lane.b32.xlu0 %v1689_v26, %s8176_s14  ;;  %v1750_v6 = vmul.f32 %v8870_v25, %v1748_v10  ;;  %v1749_v26 = vmul.f32 %v8849_v38, %v1748_v10 }
 0x192   : > { %1700 = vrot.lane.b32.xlu2 %v1695_v43, %s8176_s14  ;;  %v1732_v19 = vsel %vm1443_vm1, %v1730_v2, %v1731_v32  ;;  %v1751_v43 = vmul.f32 %v8855_v61, %v1748_v10  ;;  %v1768_v2 = vrot.slane %v1754_v18, 2  ;;  %v1787_v10 = vmul.f32 %v8870_v25, %v1785_v54 }
 0x193   : > { %v8982_v0 = vpop.permute.xlu1 %1121  ;;  %v8984_v12 = vpop.permute.xlu0 %1119  ;;  %v1764_v53 = vrot.slane %v1750_v6, 2  ;;  %v1761_v48 = vrot.slane %v1749_v26, 2  ;;  %v1789_v26 = vmul.f32 %v8970_v23, %v1785_v54 }
 0x194   : > { %13882 = vst [vmem:[#allocation65_spill] sm:$0xff] %v8982_v0  ;;  %v8986_v24 = vpop.permute.xlu2 %1234  ;;  %v1767_v32 = vrot.slane %v1751_v43, 2  ;;  %v1791_v43 = vmul.f32 %v8976_v63, %v1785_v54  ;;  %v1801_v18 = vrot.slane %v1787_v10, 2 }
 0x195   : > { %13883 = vst [vmem:[#allocation66_spill] sm:$0xff] %v8984_v12  ;;  %v1766_v6 = vsel %vm1443_vm1, %v1764_v53, %v1765_v42  ;;  %v1798_v53 = vrot.slane %v1786_v22, 2  ;;  %v1799_v42 = vrot.slane %v1789_v26, 2 }
 0x196   : > { %13884 = vst [vmem:[#allocation67_spill] sm:$0xff] %v8986_v24  ;;  %v1769_v44 = vsel %vm1443_vm1, %v1767_v32, %v1768_v2  ;;  %v1805_v2 = vrot.slane %v1791_v43, 2 }
 0x197   : > { %v1800_v10 = vsel %vm1443_vm1, %v1798_v53, %v1799_v42  ;;  %v1859_v42 = vstv %s7468_s29  ;;  %s7487_s29 = sld [smem:[#allocation9 + $0x8a]] }
 0x199   : > { %1735 = vrot.lane.b32.xlu1 %v1729_v21, %s8177_s9  ;;  %1733 = vrot.lane.b32.xlu0 %v1726_v1, %s8177_s9  ;;  %v1790_v21 = vmul.f32 %v8963_v5, %v1785_v54  ;;  %v1763_v1 = vsel %vm1443_vm1, %v1761_v48, %v1762_v7  ;;  %v1822_v48 = vstv %s7467_s11  ;;  %s7486_s11 = sld [smem:[#allocation9 + $0x1e]] }
 0x19a   : > { %1737 = vrot.lane.b32.xlu2 %v1732_v19, %s8177_s9  ;;  %v1788_v19 = vmul.f32 %v8855_v61, %v1785_v54  ;;  %v1826_v22 = vmul.f32 %v8970_v23, %v1822_v48 }
 0x19b   : > { %v9000_v24 = vpop.permute.xlu1 %1158  ;;  %v9002_v12 = vpop.permute.xlu0 %1156 }
 0x19c   : > { %13885 = vst [vmem:[#allocation68_spill] sm:$0xff] %v9000_v24  ;;  %v9004_v0 = vpop.permute.xlu2 %1271  ;;  %v1804_v32 = vrot.slane %v1788_v19, 2  ;;  %v1828_v19 = vmul.f32 %v8976_v63, %v1822_v48  ;;  %v1836_v53 = vrot.slane %v1826_v22, 2 }
 0x19d   : > { %13886 = vst [vmem:[#allocation69_spill] sm:$0xff] %v9002_v12 }
 0x19e   : > { %13887 = vst [vmem:[#allocation70_spill] sm:$0xff] %v9004_v0  ;;  %v1802_v0 = vrot.slane %v1790_v21, 2  ;;  %v1827_v21 = vmul.f32 %v8963_v5, %v1822_v48  ;;  %v1806_v26 = vsel %vm1443_vm1, %v1804_v32, %v1805_v2  ;;  %v1842_v2 = vrot.slane %v1828_v19, 2 }
 0x1a0   : > { %v1803_v54 = vsel %vm1443_vm1, %v1801_v18, %v1802_v0  ;;  %v1839_v43 = vrot.slane %v1827_v21, 2  ;;  %v1860_v21 = vmul.f32 %v8849_v38, %v1859_v42 }
 0x1a1   : > { %1772 = vrot.lane.b32.xlu1 %v1766_v6, %s8177_s9  ;;  %1770 = vrot.lane.b32.xlu0 %v1763_v1, %s8177_s9  ;;  %v1824_v6 = vmul.f32 %v8870_v25, %v1822_v48  ;;  %v1823_v1 = vmul.f32 %v8849_v38, %v1822_v48 }
 0x1a2   : > { %1774 = vrot.lane.b32.xlu2 %v1769_v44, %s8177_s9  ;;  %v1825_v44 = vmul.f32 %v8855_v61, %v1822_v48  ;;  %v1861_v48 = vmul.f32 %v8870_v25, %v1859_v42 }
 0x1a3   : > { %v9018_v7 = vpop.permute.xlu1 %1195  ;;  %v9020_v12 = vpop.permute.xlu0 %1193  ;;  %v1838_v0 = vrot.slane %v1824_v6, 2  ;;  %v1835_v18 = vrot.slane %v1823_v1, 2  ;;  %v1863_v1 = vmul.f32 %v8970_v23, %v1859_v42 }
 0x1a4   : > { %13888 = vst [vmem:[#allocation71_spill] sm:$0xff] %v9018_v7  ;;  %v9022_v24 = vpop.permute.xlu2 %1308  ;;  %v1841_v32 = vrot.slane %v1825_v44, 2  ;;  %v1865_v44 = vmul.f32 %v8976_v63, %v1859_v42  ;;  %v1875_v19 = vrot.slane %v1861_v48, 2 }
 0x1a5   : > { %13889 = vst [vmem:[#allocation72_spill] sm:$0xff] %v9020_v12  ;;  %v1840_v6 = vsel %vm1443_vm1, %v1838_v0, %v1839_v43  ;;  %v1872_v0 = vrot.slane %v1860_v21, 2  ;;  %v1873_v43 = vrot.slane %v1863_v1, 2 }
 0x1a6   : > { %13890 = vst [vmem:[#allocation73_spill] sm:$0xff] %v9022_v24  ;;  %v1843_v22 = vsel %vm1443_vm1, %v1841_v32, %v1842_v2  ;;  %v1879_v2 = vrot.slane %v1865_v44, 2 }
 0x1a7   : > { %v1874_v48 = vsel %vm1443_vm1, %v1872_v0, %v1873_v43  ;;  %v1933_v43 = vstv %s7470_s0  ;;  %s7489_s0 = sld [smem:[#allocation9 + $0x8b]] }
 0x1a9   : > { %1809 = vrot.lane.b32.xlu1 %v1803_v54, %s8178_s8  ;;  %1807 = vrot.lane.b32.xlu0 %v1800_v10, %s8178_s8  ;;  %v1864_v54 = vmul.f32 %v8963_v5, %v1859_v42  ;;  %v1837_v10 = vsel %vm1443_vm1, %v1835_v18, %v1836_v53  ;;  %v1896_v18 = vstv %s7469_s15  ;;  %s7488_s15 = sld [smem:[#allocation9 + $0x1f]] }
 0x1aa   : > { %1811 = vrot.lane.b32.xlu2 %v1806_v26, %s8178_s8  ;;  %v1862_v26 = vmul.f32 %v8855_v61, %v1859_v42  ;;  %v1900_v21 = vmul.f32 %v8970_v23, %v1896_v18 }
 0x1ab   : > { %v9036_v12 = vpop.permute.xlu1 %1232  ;;  %v9038_v7 = vpop.permute.xlu0 %1230 }
 0x1ac   : > { %13891 = vst [vmem:[#allocation74_spill] sm:$0xff] %v9036_v12  ;;  %v9040_v24 = vpop.permute.xlu2 %1345  ;;  %v1878_v32 = vrot.slane %v1862_v26, 2  ;;  %v1902_v26 = vmul.f32 %v8976_v63, %v1896_v18  ;;  %v1910_v0 = vrot.slane %v1900_v21, 2 }
 0x1ad   : > { %13892 = vst [vmem:[#allocation75_spill] sm:$0xff] %v9038_v7  ;;  %v1876_v7 = vrot.slane %v1864_v54, 2  ;;  %v1901_v54 = vmul.f32 %v8963_v5, %v1896_v18 }
 0x1ae   : > { %13893 = vst [vmem:[#allocation76_spill] sm:$0xff] %v9040_v24  ;;  %v1880_v1 = vsel %vm1443_vm1, %v1878_v32, %v1879_v2  ;;  %v1916_v2 = vrot.slane %v1902_v26, 2 }
 0x1af   : > { %v1877_v42 = vsel %vm1443_vm1, %v1875_v19, %v1876_v7  ;;  %v1913_v44 = vrot.slane %v1901_v54, 2  ;;  %v1934_v54 = vmul.f32 %v8849_v38, %v1933_v43 }
 0x1b1   : > { %1846 = vrot.lane.b32.xlu1 %v1840_v6, %s8178_s8  ;;  %1844 = vrot.lane.b32.xlu0 %v1837_v10, %s8178_s8  ;;  %v1898_v6 = vmul.f32 %v8870_v25, %v1896_v18  ;;  %v1897_v10 = vmul.f32 %v8849_v38, %v1896_v18 }
 0x1b2   : > { %1848 = vrot.lane.b32.xlu2 %v1843_v22, %s8178_s8  ;;  %v1899_v22 = vmul.f32 %v8855_v61, %v1896_v18  ;;  %v1935_v18 = vmul.f32 %v8870_v25, %v1933_v43 }
 0x1b3   : > { %v9054_v53 = vpop.permute.xlu1 %1269  ;;  %v9056_v24 = vpop.permute.xlu0 %1267  ;;  %v1912_v7 = vrot.slane %v1898_v6, 2  ;;  %v1909_v19 = vrot.slane %v1897_v10, 2  ;;  %v1937_v10 = vmul.f32 %v8970_v23, %v1933_v43 }
 0x1b4   : > { %13894 = vst [vmem:[#allocation77_spill] sm:$0xff] %v9054_v53  ;;  %v9058_v12 = vpop.permute.xlu2 %1382  ;;  %v1915_v32 = vrot.slane %v1899_v22, 2  ;;  %v1939_v22 = vmul.f32 %v8976_v63, %v1933_v43  ;;  %v1949_v26 = vrot.slane %v1935_v18, 2 }
 0x1b5   : > { %13895 = vst [vmem:[#allocation78_spill] sm:$0xff] %v9056_v24  ;;  %v1914_v6 = vsel %vm1443_vm1, %v1912_v7, %v1913_v44  ;;  %v1946_v7 = vrot.slane %v1934_v54, 2  ;;  %v1947_v44 = vrot.slane %v1937_v10, 2 }
 0x1b6   : > { %13896 = vst [vmem:[#allocation79_spill] sm:$0xff] %v9058_v12  ;;  %v1917_v21 = vsel %vm1443_vm1, %v1915_v32, %v1916_v2  ;;  %v1953_v2 = vrot.slane %v1939_v22, 2 }
 0x1b7   : > { %v1948_v18 = vsel %vm1443_vm1, %v1946_v7, %v1947_v44  ;;  %v2007_v44 = vstv %s7472_s12  ;;  %s7491_s12 = sld [smem:[#allocation9 + $0x8c]] }
 0x1b9   : > { %1883 = vrot.lane.b32.xlu1 %v1877_v42, %s8179_s26  ;;  %1881 = vrot.lane.b32.xlu0 %v1874_v48, %s8179_s26  ;;  %v1938_v42 = vmul.f32 %v8963_v5, %v1933_v43  ;;  %v1911_v48 = vsel %vm1443_vm1, %v1909_v19, %v1910_v0  ;;  %v1970_v19 = vstv %s7471_s30  ;;  %s7490_s30 = sld [smem:[#allocation9 + $0x20]] }
 0x1ba   : > { %1885 = vrot.lane.b32.xlu2 %v1880_v1, %s8179_s26  ;;  %v1936_v1 = vmul.f32 %v8855_v61, %v1933_v43  ;;  %v1974_v54 = vmul.f32 %v8970_v23, %v1970_v19 }
 0x1bb   : > { %v9072_v12 = vpop.permute.xlu1 %1306  ;;  %v9074_v24 = vpop.permute.xlu0 %1304 }
 0x1bc   : > { %13897 = vst [vmem:[#allocation80_spill] sm:$0xff] %v9072_v12  ;;  %v9076_v53 = vpop.permute.xlu2 %1419  ;;  %v1952_v32 = vrot.slane %v1936_v1, 2  ;;  %v1976_v1 = vmul.f32 %v8976_v63, %v1970_v19  ;;  %v1984_v7 = vrot.slane %v1974_v54, 2 }
 0x1bd   : > { %13898 = vst [vmem:[#allocation81_spill] sm:$0xff] %v9074_v24 }
 0x1be   : > { %13899 = vst [vmem:[#allocation82_spill] sm:$0xff] %v9076_v53  ;;  %v1950_v53 = vrot.slane %v1938_v42, 2  ;;  %v1975_v42 = vmul.f32 %v8963_v5, %v1970_v19  ;;  %v1954_v10 = vsel %vm1443_vm1, %v1952_v32, %v1953_v2  ;;  %v1990_v2 = vrot.slane %v1976_v1, 2 }
 0x1c0   : > { %v1951_v43 = vsel %vm1443_vm1, %v1949_v26, %v1950_v53  ;;  %v1987_v22 = vrot.slane %v1975_v42, 2 }
 0x1c1   : > { %1920 = vrot.lane.b32.xlu1 %v1914_v6, %s8179_s26  ;;  %1918 = vrot.lane.b32.xlu0 %v1911_v48, %s8179_s26  ;;  %v1972_v6 = vmul.f32 %v8870_v25, %v1970_v19  ;;  %v1971_v48 = vmul.f32 %v8849_v38, %v1970_v19 }
 0x1c2   : > { %1922 = vrot.lane.b32.xlu2 %v1917_v21, %s8179_s26  ;;  %v1973_v21 = vmul.f32 %v8855_v61, %v1970_v19  ;;  %v2009_v19 = vmul.f32 %v8870_v25, %v2007_v44 }
 0x1c3   : > { %v9090_v0 = vpop.permute.xlu1 %1343  ;;  %v9092_v24 = vpop.permute.xlu0 %1341  ;;  %v1986_v53 = vrot.slane %v1972_v6, 2  ;;  %v1983_v26 = vrot.slane %v1971_v48, 2  ;;  %v2008_v6 = vmul.f32 %v8849_v38, %v2007_v44 }
 0x1c4   : > { %13900 = vst [vmem:[#allocation83_spill] sm:$0xff] %v9090_v0  ;;  %v9094_v12 = vpop.permute.xlu2 %1515  ;;  %v1989_v32 = vrot.slane %v1973_v21, 2  ;;  %v2013_v21 = vmul.f32 %v8976_v63, %v2007_v44  ;;  %v2023_v1 = vrot.slane %v2009_v19, 2 }
 0x1c5   : > { %13901 = vst [vmem:[#allocation84_spill] sm:$0xff] %v9092_v24  ;;  %v1988_v42 = vsel %vm1443_vm1, %v1986_v53, %v1987_v22  ;;  %v1985_v48 = vsel %vm1443_vm1, %v1983_v26, %v1984_v7  ;;  %v2044_v7 = vstv %s7473_s16  ;;  %s7492_s16 = sld [smem:[#allocation9 + $0x21]] }
 0x1c6   : > { %13902 = vst [vmem:[#allocation85_spill] sm:$0xff] %v9094_v12  ;;  %v1991_v54 = vsel %vm1443_vm1, %v1989_v32, %v1990_v2  ;;  %v2027_v26 = vrot.slane %v2013_v21, 2  ;;  %v2046_v19 = vmul.f32 %v8870_v25, %v2044_v7 }
 0x1c9   : > { %1957 = vrot.lane.b32.xlu1 %v1951_v43, %s8180_s13  ;;  %1955 = vrot.lane.b32.xlu0 %v1948_v18, %s8180_s13  ;;  %v2012_v43 = vmul.f32 %v8963_v5, %v2007_v44  ;;  %v2011_v18 = vmul.f32 %v8970_v23, %v2007_v44 }
 0x1ca   : > { %1959 = vrot.lane.b32.xlu2 %v1954_v10, %s8180_s13  ;;  %v2010_v10 = vmul.f32 %v8855_v61, %v2007_v44 }
 0x1cb   : > { %v9108_v12 = vpop.permute.xlu1 %1380  ;;  %v9110_v24 = vpop.permute.xlu0 %1378 }
 0x1cc   : > { %13903 = vst [vmem:[#allocation86_spill] sm:$0xff] %v9108_v12  ;;  %v9112_v0 = vpop.permute.xlu2 %1552  ;;  %v2021_v12 = vrot.slane %v2011_v18, 2  ;;  %v2026_v22 = vrot.slane %v2010_v10, 2  ;;  %v2048_v18 = vmul.f32 %v8970_v23, %v2044_v7 }
 0x1cd   : > { %13904 = vst [vmem:[#allocation87_spill] sm:$0xff] %v9110_v24  ;;  %v2020_v24 = vrot.slane %v2008_v6, 2  ;;  %v2045_v6 = vmul.f32 %v8849_v38, %v2044_v7 }
 0x1ce   : > { %13905 = vst [vmem:[#allocation88_spill] sm:$0xff] %v9112_v0  ;;  %v2024_v0 = vrot.slane %v2012_v43, 2  ;;  %v2049_v43 = vmul.f32 %v8963_v5, %v2044_v7  ;;  %v2058_v38 = vrot.slane %v2048_v18, 2 }
 0x1cf   : > { %v2022_v2 = vsel %vm1443_vm1, %v2020_v24, %v2021_v12  ;;  %v2060_v24 = vrot.slane %v2046_v19, 2  ;;  %v2057_v5 = vrot.slane %v2045_v6, 2  ;;  %v9167_v19 = vld [vmem:[%s8411_s21 + $0x28] sm:$0xff] }
 0x1d0   : > { %v2025_v44 = vsel %vm1443_vm1, %v2023_v1, %v2024_v0  ;;  %v2061_v25 = vrot.slane %v2049_v43, 2 }
 0x1d1   : > { %1994 = vrot.lane.b32.xlu1 %v1988_v42, %s8180_s13  ;;  %1992 = vrot.lane.b32.xlu0 %v1985_v48, %s8180_s13  ;;  %v2028_v42 = vsel %vm1443_vm1, %v2026_v22, %v2027_v26  ;;  %v2047_v48 = vmul.f32 %v8855_v61, %v2044_v7  ;;  %v2059_v21 = vsel %vm1443_vm1, %v2057_v5, %v2058_v38  ;;  %v2105_v22 = vstv %s7482_s2  ;;  %v9157_v26 = vld [vmem:[%s8411_s21 + $0x20] sm:$0xff]  ;;  %s7493_s2 = sld [smem:[#allocation9 + $0x8d]] }
 0x1d2   : > { %1996 = vrot.lane.b32.xlu2 %v1991_v54, %s8180_s13  ;;  %v2050_v54 = vmul.f32 %v8976_v63, %v2044_v7  ;;  %v2062_v10 = vsel %vm1443_vm1, %v2060_v24, %v2061_v25  ;;  %v9160_v7 = vld [vmem:[%s8411_s21 + $0x18] sm:$0xff]  ;;  %v2107_v6 = vmul.f32 %v9157_v26, %v2105_v22 }
 0x1d3   : > { %v9126_v40 = vpop.permute.xlu1 %1417  ;;  %v9128_v53 = vpop.permute.xlu0 %1415  ;;  %v2063_v61 = vrot.slane %v2047_v48, 2  ;;  %v2106_v18 = vmul.f32 %v9160_v7, %v2105_v22  ;;  %v2127_v48 = vstv %s7483_s24  ;;  %s7494_s24 = sld [smem:[#allocation9 + $0x22]] }
 0x1d4   : > { %13906 = vst [vmem:[#allocation89_spill] sm:$0xff] %v9126_v40  ;;  %v9130_v32 = vpop.permute.xlu2 %1589  ;;  %v2064_v63 = vrot.slane %v2050_v54, 2  ;;  %v2129_v5 = vmul.f32 %v9157_v26, %v2127_v48  ;;  %v2128_v38 = vmul.f32 %v9160_v7, %v2127_v48 }
 0x1d5   : > { %13907 = vst [vmem:[#allocation90_spill] sm:$0xff] %v9128_v53 }
 0x1d6   : > { %13908 = vst [vmem:[#allocation91_spill] sm:$0xff] %v9130_v32  ;;  %v2065_v1 = vsel %vm1443_vm1, %v2063_v61, %v2064_v63  ;;  %v2130_v61 = vmul.f32 %v9167_v19, %v2127_v48  ;;  %v2149_v63 = vstv %s7484_s17  ;;  %s7495_s17 = sld [smem:[#allocation9 + $0x8e]] }
 0x1d9   : > { %2031 = vrot.lane.b32.xlu1 %v2025_v44, %s8181_s4  ;;  %2029 = vrot.lane.b32.xlu0 %v2022_v2, %s8181_s4 }
 0x1da   : > { %2033 = vrot.lane.b32.xlu2 %v2028_v42, %s8181_s4  ;;  %v2108_v42 = vmul.f32 %v9167_v19, %v2105_v22  ;;  %v2151_v22 = vmul.f32 %v9157_v26, %v2149_v63 }
 0x1db   : > { %v9144_v23 = vpop.permute.xlu1 %1513  ;;  %v9146_v12 = vpop.permute.xlu0 %1511 }
 0x1dc   : > { %13909 = vst [vmem:[#allocation92_spill] sm:$0xff] %v9144_v23  ;;  %v9148_v0 = vpop.permute.xlu2 %1626 }
 0x1dd   : > { %13910 = vst [vmem:[#allocation93_spill] sm:$0xff] %v9146_v12 }
 0x1de   : > { %13911 = vst [vmem:[#allocation94_spill] sm:$0xff] %v9148_v0 }
 0x1e1   : > { %2068 = vrot.lane.b32.xlu1 %v2062_v10, %s8181_s4  ;;  %2066 = vrot.lane.b32.xlu0 %v2059_v21, %s8181_s4 }
 0x1e2   : > { %2070 = vrot.lane.b32.xlu2 %v2065_v1, %s8181_s4 }
 0x1e3   : > { %v9162_v44 = vpop.permute.xlu1 %1550  ;;  %v9164_v2 = vpop.permute.xlu0 %1548 }
 0x1e4   : > { %13912 = vst [vmem:[#allocation95_spill] sm:$0xff] %v9162_v44  ;;  %v9169_v43 = vpop.permute.xlu2 %1663 }
 0x1e5   : > { %13913 = vst [vmem:[#allocation96_spill] sm:$0xff] %v9164_v2 }
 0x1e6   : > { %13914 = vst [vmem:[#allocation97_spill] sm:$0xff] %v9169_v43 }
 0x1e9   : > { %2114 = vrot.lane.b32.xlu1 %v2107_v6, %s8174_s10  ;;  %2112 = vrot.lane.b32.xlu0 %v2106_v18, %s8174_s10  ;;  %v2150_v6 = vmul.f32 %v9160_v7, %v2149_v63  ;;  %v2152_v18 = vmul.f32 %v9167_v19, %v2149_v63 }
 0x1ea   : > { %2116 = vrot.lane.b32.xlu2 %v2108_v42, %s8174_s10  ;;  %v2171_v42 = vstv %s7485_s20  ;;  %s7496_s20 = sld [smem:[#allocation9 + $0x23]] }
 0x1eb   : > { %v9177_v54 = vpop.permute.xlu1 %1587  ;;  %v9179_v24 = vpop.permute.xlu0 %1585  ;;  %v2174_v63 = vmul.f32 %v9167_v19, %v2171_v42 }
 0x1ec   : > { %13915 = vst [vmem:[#allocation98_spill] sm:$0xff] %v9177_v54  ;;  %v9181_v25 = vpop.permute.xlu2 %1700 }
 0x1ed   : > { %13916 = vst [vmem:[#allocation99_spill] sm:$0xff] %v9179_v24 }
 0x1ee   : > { %13917 = vst [vmem:[#allocation100_spill] sm:$0xff] %v9181_v25 }
 0x1f1   : > { %2136 = vrot.lane.b32.xlu1 %v2129_v5, %s8174_s10  ;;  %2134 = vrot.lane.b32.xlu0 %v2128_v38, %s8174_s10 }
 0x1f2   : > { %2138 = vrot.lane.b32.xlu2 %v2130_v61, %s8174_s10  ;;  %v2173_v61 = vmul.f32 %v9157_v26, %v2171_v42 }
 0x1f3   : > { %v9189_v10 = vpop.permute.xlu1 %1624  ;;  %v9191_v21 = vpop.permute.xlu0 %1622 }
 0x1f4   : > { %13918 = vst [vmem:[#allocation101_spill] sm:$0xff] %v9189_v10  ;;  %v9193_v1 = vpop.permute.xlu2 %1737 }
 0x1f5   : > { %13919 = vst [vmem:[#allocation102_spill] sm:$0xff] %v9191_v21 }
 0x1f6   : > { %13920 = vst [vmem:[#allocation103_spill] sm:$0xff] %v9193_v1  ;;  %v2172_v1 = vmul.f32 %v9160_v7, %v2171_v42 }
 0x1f9   : > { %2158 = vrot.lane.b32.xlu1 %v2151_v22, %s8175_s19  ;;  %2156 = vrot.lane.b32.xlu0 %v2150_v6, %s8175_s19  ;;  %v2193_v22 = vstv %s7486_s11  ;;  %s7497_s11 = sld [smem:[#allocation9 + $0x8f]] }
 0x1fa   : > { %2160 = vrot.lane.b32.xlu2 %v2152_v18, %s8175_s19  ;;  %v2196_v42 = vmul.f32 %v9167_v19, %v2193_v22 }
 0x1fb   : > { %v9201_v48 = vpop.permute.xlu1 %1661  ;;  %v9203_v5 = vpop.permute.xlu0 %1659 }
 0x1fc   : > { %13921 = vst [vmem:[#allocation104_spill] sm:$0xff] %v9201_v48  ;;  %v9205_v38 = vpop.permute.xlu2 %1774  ;;  %v2194_v48 = vmul.f32 %v9160_v7, %v2193_v22 }
 0x1fd   : > { %13922 = vst [vmem:[#allocation105_spill] sm:$0xff] %v9203_v5 }
 0x1fe   : > { %13923 = vst [vmem:[#allocation106_spill] sm:$0xff] %v9205_v38  ;;  %v2195_v38 = vmul.f32 %v9157_v26, %v2193_v22 }
 0x201   : > { %2180 = vrot.lane.b32.xlu1 %v2173_v61, %s8175_s19  ;;  %2178 = vrot.lane.b32.xlu0 %v2172_v1, %s8175_s19  ;;  %v2215_v1 = vstv %s7487_s29  ;;  %s7500_s29 = sld [smem:[#allocation9 + $0x25]] }
 0x202   : > { %2182 = vrot.lane.b32.xlu2 %v2174_v63, %s8175_s19  ;;  %v2218_v22 = vmul.f32 %v9167_v19, %v2215_v1 }
 0x203   : > { %v9213_v6 = vpop.permute.xlu1 %1698  ;;  %v9215_v18 = vpop.permute.xlu0 %1696 }
 0x204   : > { %13924 = vst [vmem:[#allocation107_spill] sm:$0xff] %v9213_v6  ;;  %v9217_v5 = vpop.permute.xlu2 %1811  ;;  %v2216_v6 = vmul.f32 %v9160_v7, %v2215_v1 }
 0x205   : > { %13925 = vst [vmem:[#allocation108_spill] sm:$0xff] %v9215_v18 }
 0x206   : > { %13926 = vst [vmem:[#allocation109_spill] sm:$0xff] %v9217_v5  ;;  %v2217_v5 = vmul.f32 %v9157_v26, %v2215_v1 }
 0x209   : > { %2202 = vrot.lane.b32.xlu1 %v2195_v38, %s8176_s14  ;;  %2200 = vrot.lane.b32.xlu0 %v2194_v48, %s8176_s14  ;;  %v2237_v48 = vstv %s7488_s15  ;;  %s7501_s15 = sld [smem:[#allocation9 + $0x91]] }
 0x20a   : > { %2204 = vrot.lane.b32.xlu2 %v2196_v42, %s8176_s14  ;;  %v2240_v1 = vmul.f32 %v9167_v19, %v2237_v48 }
 0x20b   : > { %v9225_v61 = vpop.permute.xlu1 %1735  ;;  %v9227_v63 = vpop.permute.xlu0 %1733 }
 0x20c   : > { %13927 = vst [vmem:[#allocation110_spill] sm:$0xff] %v9225_v61  ;;  %v9229_v18 = vpop.permute.xlu2 %1848  ;;  %v2238_v61 = vmul.f32 %v9160_v7, %v2237_v48 }
 0x20d   : > { %13928 = vst [vmem:[#allocation111_spill] sm:$0xff] %v9227_v63 }
 0x20e   : > { %13929 = vst [vmem:[#allocation112_spill] sm:$0xff] %v9229_v18  ;;  %v2239_v18 = vmul.f32 %v9157_v26, %v2237_v48 }
 0x20f   : > { %v2552_v0 = vstv %s7501_s15  ;;  %s7512_s15 = sld [smem:[#allocation9 + $0x2b]] }
 0x211   : > { %2224 = vrot.lane.b32.xlu1 %v2217_v5, %s8176_s14  ;;  %2222 = vrot.lane.b32.xlu0 %v2216_v6, %s8176_s14  ;;  %v2259_v5 = vstv %s7489_s0  ;;  %s7502_s0 = sld [smem:[#allocation9 + $0x26]] }
 0x212   : > { %2226 = vrot.lane.b32.xlu2 %v2218_v22, %s8176_s14  ;;  %v2262_v48 = vmul.f32 %v9167_v19, %v2259_v5 }
 0x213   : > { %v9237_v38 = vpop.permute.xlu1 %1772  ;;  %v9239_v42 = vpop.permute.xlu0 %1770 }
 0x214   : > { %13930 = vst [vmem:[#allocation113_spill] sm:$0xff] %v9237_v38  ;;  %v9241_v63 = vpop.permute.xlu2 %1885  ;;  %v2260_v38 = vmul.f32 %v9160_v7, %v2259_v5 }
 0x215   : > { %13931 = vst [vmem:[#allocation114_spill] sm:$0xff] %v9239_v42 }
 0x216   : > { %13932 = vst [vmem:[#allocation115_spill] sm:$0xff] %v9241_v63  ;;  %v2261_v63 = vmul.f32 %v9157_v26, %v2259_v5 }
 0x219   : > { %2246 = vrot.lane.b32.xlu1 %v2239_v18, %s8177_s9  ;;  %2244 = vrot.lane.b32.xlu0 %v2238_v61, %s8177_s9  ;;  %v2281_v18 = vstv %s7490_s30  ;;  %s7503_s30 = sld [smem:[#allocation9 + $0x92]] }
 0x21a   : > { %2248 = vrot.lane.b32.xlu2 %v2240_v1, %s8177_s9  ;;  %v2284_v5 = vmul.f32 %v9167_v19, %v2281_v18 }
 0x21b   : > { %v9249_v6 = vpop.permute.xlu1 %1809  ;;  %v9251_v22 = vpop.permute.xlu0 %1807 }
 0x21c   : > { %13933 = vst [vmem:[#allocation116_spill] sm:$0xff] %v9249_v6  ;;  %v9253_v42 = vpop.permute.xlu2 %1922  ;;  %v2282_v6 = vmul.f32 %v9160_v7, %v2281_v18 }
 0x21d   : > { %13934 = vst [vmem:[#allocation117_spill] sm:$0xff] %v9251_v22 }
 0x21e   : > { %13935 = vst [vmem:[#allocation118_spill] sm:$0xff] %v9253_v42  ;;  %v2283_v42 = vmul.f32 %v9157_v26, %v2281_v18 }
 0x221   : > { %2268 = vrot.lane.b32.xlu1 %v2261_v63, %s8177_s9  ;;  %2266 = vrot.lane.b32.xlu0 %v2260_v38, %s8177_s9  ;;  %v2303_v63 = vstv %s7491_s12  ;;  %s7504_s12 = sld [smem:[#allocation9 + $0x27]] }
 0x222   : > { %2270 = vrot.lane.b32.xlu2 %v2262_v48, %s8177_s9  ;;  %v2306_v18 = vmul.f32 %v9167_v19, %v2303_v63 }
 0x223   : > { %v9261_v61 = vpop.permute.xlu1 %1846  ;;  %v9263_v1 = vpop.permute.xlu0 %1844 }
 0x224   : > { %13936 = vst [vmem:[#allocation119_spill] sm:$0xff] %v9261_v61  ;;  %v9265_v22 = vpop.permute.xlu2 %1959  ;;  %v2304_v61 = vmul.f32 %v9160_v7, %v2303_v63 }
 0x225   : > { %13937 = vst [vmem:[#allocation120_spill] sm:$0xff] %v9263_v1 }
 0x226   : > { %13938 = vst [vmem:[#allocation121_spill] sm:$0xff] %v9265_v22  ;;  %v2305_v22 = vmul.f32 %v9157_v26, %v2303_v63 }
 0x229   : > { %2290 = vrot.lane.b32.xlu1 %v2283_v42, %s8178_s8  ;;  %2288 = vrot.lane.b32.xlu0 %v2282_v6, %s8178_s8  ;;  %v2325_v42 = vstv %s7492_s16  ;;  %s7505_s16 = sld [smem:[#allocation9 + $0x93]] }
 0x22a   : > { %2292 = vrot.lane.b32.xlu2 %v2284_v5, %s8178_s8  ;;  %v2328_v63 = vmul.f32 %v9167_v19, %v2325_v42 }
 0x22b   : > { %v9273_v38 = vpop.permute.xlu1 %1883  ;;  %v9275_v48 = vpop.permute.xlu0 %1881 }
 0x22c   : > { %13939 = vst [vmem:[#allocation122_spill] sm:$0xff] %v9273_v38  ;;  %v9277_v1 = vpop.permute.xlu2 %1996  ;;  %v2326_v38 = vmul.f32 %v9160_v7, %v2325_v42 }
 0x22d   : > { %13940 = vst [vmem:[#allocation123_spill] sm:$0xff] %v9275_v48 }
 0x22e   : > { %13941 = vst [vmem:[#allocation124_spill] sm:$0xff] %v9277_v1  ;;  %v2327_v1 = vmul.f32 %v9157_v26, %v2325_v42 }
 0x231   : > { %2312 = vrot.lane.b32.xlu1 %v2305_v22, %s8178_s8  ;;  %2310 = vrot.lane.b32.xlu0 %v2304_v61, %s8178_s8  ;;  %v2347_v22 = vstv %s7493_s2  ;;  %s7506_s2 = sld [smem:[#allocation9 + $0x28]] }
 0x232   : > { %2314 = vrot.lane.b32.xlu2 %v2306_v18, %s8178_s8  ;;  %v2350_v42 = vmul.f32 %v9167_v19, %v2347_v22 }
 0x233   : > { %v9285_v6 = vpop.permute.xlu1 %1920  ;;  %v9287_v5 = vpop.permute.xlu0 %1918 }
 0x234   : > { %13942 = vst [vmem:[#allocation125_spill] sm:$0xff] %v9285_v6  ;;  %v9289_v48 = vpop.permute.xlu2 %2033  ;;  %v2349_v6 = vmul.f32 %v9157_v26, %v2347_v22 }
 0x235   : > { %13943 = vst [vmem:[#allocation126_spill] sm:$0xff] %v9287_v5 }
 0x236   : > { %13944 = vst [vmem:[#allocation127_spill] sm:$0xff] %v9289_v48  ;;  %v2348_v48 = vmul.f32 %v9160_v7, %v2347_v22 }
 0x239   : > { %2334 = vrot.lane.b32.xlu1 %v2327_v1, %s8179_s26  ;;  %2332 = vrot.lane.b32.xlu0 %v2326_v38, %s8179_s26  ;;  %v2369_v1 = vstv %s7494_s24  ;;  %s7507_s24 = sld [smem:[#allocation9 + $0x94]] }
 0x23a   : > { %2336 = vrot.lane.b32.xlu2 %v2328_v63, %s8179_s26  ;;  %v2372_v22 = vmul.f32 %v9167_v19, %v2369_v1 }
 0x23b   : > { %v9297_v61 = vpop.permute.xlu1 %1957  ;;  %v9299_v18 = vpop.permute.xlu0 %1955 }
 0x23c   : > { %13945 = vst [vmem:[#allocation128_spill] sm:$0xff] %v9297_v61  ;;  %v9301_v5 = vpop.permute.xlu2 %2070  ;;  %v2370_v61 = vmul.f32 %v9160_v7, %v2369_v1 }
 0x23d   : > { %13946 = vst [vmem:[#allocation129_spill] sm:$0xff] %v9299_v18 }
 0x23e   : > { %13947 = vst [vmem:[#allocation130_spill] sm:$0xff] %v9301_v5  ;;  %v2371_v5 = vmul.f32 %v9157_v26, %v2369_v1 }
 0x241   : > { %2356 = vrot.lane.b32.xlu1 %v2349_v6, %s8179_s26  ;;  %2354 = vrot.lane.b32.xlu0 %v2348_v48, %s8179_s26  ;;  %v2391_v48 = vstv %s7495_s17  ;;  %s7508_s17 = sld [smem:[#allocation9 + $0x29]] }
 0x242   : > { %2358 = vrot.lane.b32.xlu2 %v2350_v42, %s8179_s26  ;;  %v2394_v1 = vmul.f32 %v9167_v19, %v2391_v48 }
 0x243   : > { %v9309_v38 = vpop.permute.xlu1 %1994  ;;  %v9311_v63 = vpop.permute.xlu0 %1992 }
 0x244   : > { %13948 = vst [vmem:[#allocation131_spill] sm:$0xff] %v9309_v38  ;;  %v9313_v18 = vpop.permute.xlu2 %2116  ;;  %v2392_v38 = vmul.f32 %v9160_v7, %v2391_v48 }
 0x245   : > { %13949 = vst [vmem:[#allocation132_spill] sm:$0xff] %v9311_v63 }
 0x246   : > { %13950 = vst [vmem:[#allocation133_spill] sm:$0xff] %v9313_v18  ;;  %v2393_v18 = vmul.f32 %v9157_v26, %v2391_v48 }
 0x249   : > { %2378 = vrot.lane.b32.xlu1 %v2371_v5, %s8180_s13  ;;  %2376 = vrot.lane.b32.xlu0 %v2370_v61, %s8180_s13  ;;  %v2413_v5 = vstv %s7496_s20  ;;  %s7509_s20 = sld [smem:[#allocation9 + $0x95]] }
 0x24a   : > { %2380 = vrot.lane.b32.xlu2 %v2372_v22, %s8180_s13  ;;  %v2415_v48 = vmul.f32 %v9157_v26, %v2413_v5 }
 0x24b   : > { %v9321_v6 = vpop.permute.xlu1 %2031  ;;  %v9323_v42 = vpop.permute.xlu0 %2029 }
 0x24c   : > { %13951 = vst [vmem:[#allocation134_spill] sm:$0xff] %v9321_v6  ;;  %v9325_v63 = vpop.permute.xlu2 %2138  ;;  %v9353_v6 = vld [vmem:[%s8418_s18 + $0x18] sm:$0x3] }
 0x24d   : > { %13952 = vst [vmem:[#allocation135_spill] sm:$0xff] %v9323_v42  ;;  %v2515_v42 = vstv %s7500_s29  ;;  %s7511_s29 = sld [smem:[#allocation9 + $0x96]] }
 0x24e   : > { %13953 = vst [vmem:[#allocation136_spill] sm:$0xff] %v9325_v63  ;;  %v2518_v25 = vmul.f32 %v9167_v19, %v2515_v42 }
 0x250   : > { %v2534_v23 = vrot.slane %v2518_v25, 1 }
 0x251   : > { %2400 = vrot.lane.b32.xlu1 %v2393_v18, %s8180_s13  ;;  %2398 = vrot.lane.b32.xlu0 %v2392_v38, %s8180_s13  ;;  %v2414_v18 = vmul.f32 %v9160_v7, %v2413_v5  ;;  %v2416_v38 = vmul.f32 %v9167_v19, %v2413_v5  ;;  %v9358_v5 = vld [vmem:[%s8418_s18 + $0x28] sm:$0x3] }
 0x252   : > { %2402 = vrot.lane.b32.xlu2 %v2394_v1, %s8180_s13  ;;  %v2435_v1 = vstv %s7497_s11  ;;  %v2558_v25 = vmul.f32 %v9358_v5, %v2552_v0  ;;  %s7510_s11 = sld [smem:[#allocation9 + $0x2a]] }
 0x253   : > { %v9333_v61 = vpop.permute.xlu1 %2068  ;;  %v9335_v22 = vpop.permute.xlu0 %2066  ;;  %v2438_v24 = vmul.f32 %v9167_v19, %v2435_v1 }
 0x254   : > { %13954 = vst [vmem:[#allocation137_spill] sm:$0xff] %v9333_v61  ;;  %v9337_v63 = vpop.permute.xlu2 %2160  ;;  %v9346_v61 = vld [vmem:[%s8418_s18 + $0x20] sm:$0x3] }
 0x255   : > { %13955 = vst [vmem:[#allocation138_spill] sm:$0xff] %v9335_v22  ;;  %v2520_v10 = vmul.f32 %v9346_v61, %v2515_v42 }
 0x256   : > { %13956 = vst [vmem:[#allocation139_spill] sm:$0xff] %v9337_v63 }
 0x257   : > { %v2532_v2 = vrot.slane %v2520_v10, 1 }
 0x259   : > { %2422 = vrot.lane.b32.xlu1 %v2415_v48, %s8181_s4  ;;  %2420 = vrot.lane.b32.xlu0 %v2414_v18, %s8181_s4  ;;  %v2437_v48 = vmul.f32 %v9157_v26, %v2435_v1  ;;  %v2436_v18 = vmul.f32 %v9160_v7, %v2435_v1 }
 0x25a   : > { %2424 = vrot.lane.b32.xlu2 %v2416_v38, %s8181_s4  ;;  %v2517_v38 = vmul.f32 %v9157_v26, %v2515_v42 }
 0x25b   : > { %v9348_v22 = vpop.permute.xlu1 %2114  ;;  %v9350_v63 = vpop.permute.xlu0 %2112 }
 0x25c   : > { %13957 = vst [vmem:[#allocation140_spill] sm:$0xff] %v9348_v22  ;;  %v9355_v21 = vpop.permute.xlu2 %2182  ;;  %v2516_v22 = vmul.f32 %v9160_v7, %v2515_v42  ;;  %v2531_v54 = vrot.slane %v2517_v38, 1  ;;  %v2555_v38 = vmul.f32 %v9167_v19, %v2552_v0 }
 0x25d   : > { %13958 = vst [vmem:[#allocation141_spill] sm:$0xff] %v9350_v63  ;;  %v2519_v63 = vmul.f32 %v9353_v6, %v2515_v42 }
 0x25e   : > { %13959 = vst [vmem:[#allocation142_spill] sm:$0xff] %v9355_v21  ;;  %v2521_v21 = vmul.f32 %v9358_v5, %v2515_v42  ;;  %v2528_v43 = vrot.slane %v2516_v22, 1  ;;  %v2533_v42 = vsel %vm792_vm0, %v2531_v54, %v2532_v2  ;;  %v2556_v22 = vmul.f32 %v9353_v6, %v2552_v0 }
 0x25f   : > { %v2529_v44 = vrot.slane %v2519_v63, 1  ;;  %v2553_v63 = vmul.f32 %v9160_v7, %v2552_v0 }
 0x260   : > { %v2535_v32 = vrot.slane %v2521_v21, 1  ;;  %v2566_v54 = vrot.slane %v2556_v22, 1  ;;  %v2589_v21 = vstv %s7502_s0  ;;  %s7513_s0 = sld [smem:[#allocation9 + $0x97]] }
 0x261   : > { %2444 = vrot.lane.b32.xlu1 %v2437_v48, %s8181_s4  ;;  %2442 = vrot.lane.b32.xlu0 %v2436_v18, %s8181_s4  ;;  %v2554_v48 = vmul.f32 %v9157_v26, %v2552_v0  ;;  %v2530_v10 = vsel %vm792_vm0, %v2528_v43, %v2529_v44  ;;  %v2565_v43 = vrot.slane %v2553_v63, 1  ;;  %v2593_v63 = vmul.f32 %v9353_v6, %v2589_v21 }
 0x262   : > { %2446 = vrot.lane.b32.xlu2 %v2438_v24, %s8181_s4  ;;  %v2557_v24 = vmul.f32 %v9346_v61, %v2552_v0  ;;  %v2536_v18 = vsel %vm792_vm0, %v2534_v23, %v2535_v32  ;;  %v2571_v32 = vrot.slane %v2555_v38, 1  ;;  %v2572_v23 = vrot.slane %v2558_v25, 1 }
 0x263   : > { %v9372_v1 = vpop.permute.xlu1 %2136  ;;  %v9374_v12 = vpop.permute.xlu0 %2134  ;;  %v2568_v2 = vrot.slane %v2554_v48, 1  ;;  %v2591_v0 = vmul.f32 %v9157_v26, %v2589_v21  ;;  %v2595_v38 = vmul.f32 %v9358_v5, %v2589_v21 }
 0x264   : > { %13960 = vst [vmem:[#allocation143_spill] sm:$0xff] %v9372_v1  ;;  %v9376_v53 = vpop.permute.xlu2 %2204  ;;  %v2569_v44 = vrot.slane %v2557_v24, 1  ;;  %v2590_v24 = vmul.f32 %v9160_v7, %v2589_v21  ;;  %v2573_v22 = vsel %vm792_vm0, %v2571_v32, %v2572_v23 }
 0x265   : > { %13961 = vst [vmem:[#allocation144_spill] sm:$0xff] %v9374_v12  ;;  %v2605_v25 = vrot.slane %v2591_v0, 1  ;;  %v2609_v23 = vrot.slane %v2595_v38, 1 }
 0x266   : > { %13962 = vst [vmem:[#allocation145_spill] sm:$0xff] %v9376_v53  ;;  %v2570_v48 = vsel %vm792_vm0, %v2568_v2, %v2569_v44  ;;  %v2602_v2 = vrot.slane %v2590_v24, 1  ;;  %v2603_v44 = vrot.slane %v2593_v63, 1 }
 0x268   : > { %v2604_v0 = vsel %vm792_vm0, %v2602_v2, %v2603_v44  ;;  %v2663_v44 = vstv %s7504_s12  ;;  %s7515_s12 = sld [smem:[#allocation9 + $0x98]] }
 0x269   : > { %2539 = vrot.lane.b32.xlu1 %v2533_v42, %s8174_s10  ;;  %2537 = vrot.lane.b32.xlu0 %v2530_v10, %s8174_s10  ;;  %v2594_v42 = vmul.f32 %v9346_v61, %v2589_v21  ;;  %v2567_v10 = vsel %vm792_vm0, %v2565_v43, %v2566_v54  ;;  %v2626_v43 = vstv %s7503_s30  ;;  %s7514_s30 = sld [smem:[#allocation9 + $0x2c]] }
 0x26a   : > { %2541 = vrot.lane.b32.xlu2 %v2536_v18, %s8174_s10  ;;  %v2592_v18 = vmul.f32 %v9167_v19, %v2589_v21  ;;  %v2630_v24 = vmul.f32 %v9353_v6, %v2626_v43 }
 0x26b   : > { %v9390_v12 = vpop.permute.xlu1 %2158  ;;  %v9392_v53 = vpop.permute.xlu0 %2156 }
 0x26c   : > { %13963 = vst [vmem:[#allocation146_spill] sm:$0xff] %v9390_v12  ;;  %v9394_v1 = vpop.permute.xlu2 %2226  ;;  %v2608_v32 = vrot.slane %v2592_v18, 1  ;;  %v2632_v18 = vmul.f32 %v9358_v5, %v2626_v43  ;;  %v2640_v2 = vrot.slane %v2630_v24, 1 }
 0x26d   : > { %13964 = vst [vmem:[#allocation147_spill] sm:$0xff] %v9392_v53 }
 0x26e   : > { %13965 = vst [vmem:[#allocation148_spill] sm:$0xff] %v9394_v1  ;;  %v2606_v1 = vrot.slane %v2594_v42, 1  ;;  %v2631_v42 = vmul.f32 %v9346_v61, %v2626_v43  ;;  %v2610_v63 = vsel %vm792_vm0, %v2608_v32, %v2609_v23  ;;  %v2646_v23 = vrot.slane %v2632_v18, 1 }
 0x270   : > { %v2607_v21 = vsel %vm792_vm0, %v2605_v25, %v2606_v1  ;;  %v2643_v38 = vrot.slane %v2631_v42, 1  ;;  %v2664_v42 = vmul.f32 %v9160_v7, %v2663_v44 }
 0x271   : > { %2576 = vrot.lane.b32.xlu1 %v2570_v48, %s8174_s10  ;;  %2574 = vrot.lane.b32.xlu0 %v2567_v10, %s8174_s10  ;;  %v2628_v48 = vmul.f32 %v9157_v26, %v2626_v43  ;;  %v2627_v10 = vmul.f32 %v9160_v7, %v2626_v43 }
 0x272   : > { %2578 = vrot.lane.b32.xlu2 %v2573_v22, %s8174_s10  ;;  %v2629_v22 = vmul.f32 %v9167_v19, %v2626_v43  ;;  %v2665_v43 = vmul.f32 %v9157_v26, %v2663_v44 }
 0x273   : > { %v9408_v54 = vpop.permute.xlu1 %2180  ;;  %v9410_v53 = vpop.permute.xlu0 %2178  ;;  %v2642_v1 = vrot.slane %v2628_v48, 1  ;;  %v2639_v25 = vrot.slane %v2627_v10, 1  ;;  %v2667_v10 = vmul.f32 %v9353_v6, %v2663_v44 }
 0x274   : > { %13966 = vst [vmem:[#allocation149_spill] sm:$0xff] %v9408_v54  ;;  %v9412_v12 = vpop.permute.xlu2 %2248  ;;  %v2645_v32 = vrot.slane %v2629_v22, 1  ;;  %v2669_v22 = vmul.f32 %v9358_v5, %v2663_v44  ;;  %v2679_v18 = vrot.slane %v2665_v43, 1 }
 0x275   : > { %13967 = vst [vmem:[#allocation150_spill] sm:$0xff] %v9410_v53  ;;  %v2644_v48 = vsel %vm792_vm0, %v2642_v1, %v2643_v38  ;;  %v2676_v1 = vrot.slane %v2664_v42, 1  ;;  %v2677_v38 = vrot.slane %v2667_v10, 1 }
 0x276   : > { %13968 = vst [vmem:[#allocation151_spill] sm:$0xff] %v9412_v12  ;;  %v2647_v24 = vsel %vm792_vm0, %v2645_v32, %v2646_v23  ;;  %v2683_v23 = vrot.slane %v2669_v22, 1 }
 0x277   : > { %v2678_v43 = vsel %vm792_vm0, %v2676_v1, %v2677_v38  ;;  %v2737_v38 = vstv %s7506_s2  ;;  %s7519_s2 = sld [smem:[#allocation9 + $0x9a]] }
 0x279   : > { %2613 = vrot.lane.b32.xlu1 %v2607_v21, %s8175_s19  ;;  %2611 = vrot.lane.b32.xlu0 %v2604_v0, %s8175_s19  ;;  %v2668_v21 = vmul.f32 %v9346_v61, %v2663_v44  ;;  %v2641_v0 = vsel %vm792_vm0, %v2639_v25, %v2640_v2  ;;  %v2700_v25 = vstv %s7505_s16  ;;  %s7518_s16 = sld [smem:[#allocation9 + $0x2e]] }
 0x27a   : > { %2615 = vrot.lane.b32.xlu2 %v2610_v63, %s8175_s19  ;;  %v2666_v63 = vmul.f32 %v9167_v19, %v2663_v44  ;;  %v2704_v42 = vmul.f32 %v9353_v6, %v2700_v25 }
 0x27b   : > { %v9426_v12 = vpop.permute.xlu1 %2202  ;;  %v9428_v53 = vpop.permute.xlu0 %2200 }
 0x27c   : > { %13969 = vst [vmem:[#allocation152_spill] sm:$0xff] %v9426_v12  ;;  %v9430_v54 = vpop.permute.xlu2 %2270  ;;  %v2682_v32 = vrot.slane %v2666_v63, 1  ;;  %v2706_v63 = vmul.f32 %v9358_v5, %v2700_v25  ;;  %v2714_v1 = vrot.slane %v2704_v42, 1 }
 0x27d   : > { %13970 = vst [vmem:[#allocation153_spill] sm:$0xff] %v9428_v53  ;;  %v2680_v53 = vrot.slane %v2668_v21, 1  ;;  %v2705_v21 = vmul.f32 %v9346_v61, %v2700_v25 }
 0x27e   : > { %13971 = vst [vmem:[#allocation154_spill] sm:$0xff] %v9430_v54  ;;  %v2684_v10 = vsel %vm792_vm0, %v2682_v32, %v2683_v23  ;;  %v2720_v23 = vrot.slane %v2706_v63, 1 }
 0x27f   : > { %v2681_v44 = vsel %vm792_vm0, %v2679_v18, %v2680_v53  ;;  %v2717_v22 = vrot.slane %v2705_v21, 1  ;;  %v2738_v21 = vmul.f32 %v9160_v7, %v2737_v38 }
 0x281   : > { %2650 = vrot.lane.b32.xlu1 %v2644_v48, %s8175_s19  ;;  %2648 = vrot.lane.b32.xlu0 %v2641_v0, %s8175_s19  ;;  %v2702_v48 = vmul.f32 %v9157_v26, %v2700_v25  ;;  %v2701_v0 = vmul.f32 %v9160_v7, %v2700_v25 }
 0x282   : > { %2652 = vrot.lane.b32.xlu2 %v2647_v24, %s8175_s19  ;;  %v2703_v24 = vmul.f32 %v9167_v19, %v2700_v25  ;;  %v2739_v25 = vmul.f32 %v9157_v26, %v2737_v38 }
 0x283   : > { %v9444_v2 = vpop.permute.xlu1 %2224  ;;  %v9446_v54 = vpop.permute.xlu0 %2222  ;;  %v2716_v53 = vrot.slane %v2702_v48, 1  ;;  %v2713_v18 = vrot.slane %v2701_v0, 1  ;;  %v2741_v0 = vmul.f32 %v9353_v6, %v2737_v38 }
 0x284   : > { %13972 = vst [vmem:[#allocation155_spill] sm:$0xff] %v9444_v2  ;;  %v9448_v12 = vpop.permute.xlu2 %2292  ;;  %v2719_v32 = vrot.slane %v2703_v24, 1  ;;  %v2743_v24 = vmul.f32 %v9358_v5, %v2737_v38  ;;  %v2753_v63 = vrot.slane %v2739_v25, 1 }
 0x285   : > { %13973 = vst [vmem:[#allocation156_spill] sm:$0xff] %v9446_v54  ;;  %v2718_v48 = vsel %vm792_vm0, %v2716_v53, %v2717_v22  ;;  %v2750_v53 = vrot.slane %v2738_v21, 1  ;;  %v2751_v22 = vrot.slane %v2741_v0, 1 }
 0x286   : > { %13974 = vst [vmem:[#allocation157_spill] sm:$0xff] %v9448_v12  ;;  %v2721_v42 = vsel %vm792_vm0, %v2719_v32, %v2720_v23  ;;  %v2757_v23 = vrot.slane %v2743_v24, 1 }
 0x287   : > { %v2752_v25 = vsel %vm792_vm0, %v2750_v53, %v2751_v22  ;;  %v2811_v22 = vstv %s7508_s17  ;;  %s7521_s17 = sld [smem:[#allocation9 + $0x9b]] }
 0x289   : > { %2687 = vrot.lane.b32.xlu1 %v2681_v44, %s8176_s14  ;;  %2685 = vrot.lane.b32.xlu0 %v2678_v43, %s8176_s14  ;;  %v2742_v44 = vmul.f32 %v9346_v61, %v2737_v38  ;;  %v2715_v43 = vsel %vm792_vm0, %v2713_v18, %v2714_v1  ;;  %v2774_v18 = vstv %s7507_s24  ;;  %s7520_s24 = sld [smem:[#allocation9 + $0x2f]] }
 0x28a   : > { %2689 = vrot.lane.b32.xlu2 %v2684_v10, %s8176_s14  ;;  %v2740_v10 = vmul.f32 %v9167_v19, %v2737_v38  ;;  %v2778_v21 = vmul.f32 %v9353_v6, %v2774_v18 }
 0x28b   : > { %v9462_v12 = vpop.permute.xlu1 %2246  ;;  %v9464_v54 = vpop.permute.xlu0 %2244 }
 0x28c   : > { %13975 = vst [vmem:[#allocation158_spill] sm:$0xff] %v9462_v12  ;;  %v9466_v2 = vpop.permute.xlu2 %2314  ;;  %v2756_v32 = vrot.slane %v2740_v10, 1  ;;  %v2780_v10 = vmul.f32 %v9358_v5, %v2774_v18  ;;  %v2788_v53 = vrot.slane %v2778_v21, 1 }
 0x28d   : > { %13976 = vst [vmem:[#allocation159_spill] sm:$0xff] %v9464_v54 }
 0x28e   : > { %13977 = vst [vmem:[#allocation160_spill] sm:$0xff] %v9466_v2  ;;  %v2754_v2 = vrot.slane %v2742_v44, 1  ;;  %v2779_v44 = vmul.f32 %v9346_v61, %v2774_v18  ;;  %v2758_v0 = vsel %vm792_vm0, %v2756_v32, %v2757_v23  ;;  %v2794_v23 = vrot.slane %v2780_v10, 1 }
 0x290   : > { %v2755_v38 = vsel %vm792_vm0, %v2753_v63, %v2754_v2  ;;  %v2791_v24 = vrot.slane %v2779_v44, 1  ;;  %v2812_v44 = vmul.f32 %v9160_v7, %v2811_v22 }
 0x291   : > { %2724 = vrot.lane.b32.xlu1 %v2718_v48, %s8176_s14  ;;  %2722 = vrot.lane.b32.xlu0 %v2715_v43, %s8176_s14  ;;  %v2776_v48 = vmul.f32 %v9157_v26, %v2774_v18  ;;  %v2775_v43 = vmul.f32 %v9160_v7, %v2774_v18 }
 0x292   : > { %2726 = vrot.lane.b32.xlu2 %v2721_v42, %s8176_s14  ;;  %v2777_v42 = vmul.f32 %v9167_v19, %v2774_v18  ;;  %v2813_v18 = vmul.f32 %v9157_v26, %v2811_v22 }
 0x293   : > { %v9480_v1 = vpop.permute.xlu1 %2268  ;;  %v9482_v54 = vpop.permute.xlu0 %2266  ;;  %v2790_v2 = vrot.slane %v2776_v48, 1  ;;  %v2787_v63 = vrot.slane %v2775_v43, 1  ;;  %v2815_v43 = vmul.f32 %v9353_v6, %v2811_v22 }
 0x294   : > { %13978 = vst [vmem:[#allocation161_spill] sm:$0xff] %v9480_v1  ;;  %v9484_v12 = vpop.permute.xlu2 %2336  ;;  %v2793_v32 = vrot.slane %v2777_v42, 1  ;;  %v2817_v42 = vmul.f32 %v9358_v5, %v2811_v22  ;;  %v2827_v10 = vrot.slane %v2813_v18, 1 }
 0x295   : > { %13979 = vst [vmem:[#allocation162_spill] sm:$0xff] %v9482_v54  ;;  %v2792_v48 = vsel %vm792_vm0, %v2790_v2, %v2791_v24  ;;  %v2824_v2 = vrot.slane %v2812_v44, 1  ;;  %v2825_v24 = vrot.slane %v2815_v43, 1 }
 0x296   : > { %13980 = vst [vmem:[#allocation163_spill] sm:$0xff] %v9484_v12  ;;  %v2795_v21 = vsel %vm792_vm0, %v2793_v32, %v2794_v23  ;;  %v2831_v23 = vrot.slane %v2817_v42, 1 }
 0x297   : > { %v2826_v18 = vsel %vm792_vm0, %v2824_v2, %v2825_v24  ;;  %v2885_v24 = vstv %s7510_s11  ;;  %s7523_s11 = sld [smem:[#allocation9 + $0x9c]] }
 0x299   : > { %2761 = vrot.lane.b32.xlu1 %v2755_v38, %s8177_s9  ;;  %2759 = vrot.lane.b32.xlu0 %v2752_v25, %s8177_s9  ;;  %v2816_v38 = vmul.f32 %v9346_v61, %v2811_v22  ;;  %v2789_v25 = vsel %vm792_vm0, %v2787_v63, %v2788_v53  ;;  %v2848_v63 = vstv %s7509_s20  ;;  %s7522_s20 = sld [smem:[#allocation9 + $0x30]] }
 0x29a   : > { %2763 = vrot.lane.b32.xlu2 %v2758_v0, %s8177_s9  ;;  %v2814_v0 = vmul.f32 %v9167_v19, %v2811_v22  ;;  %v2852_v44 = vmul.f32 %v9353_v6, %v2848_v63 }
 0x29b   : > { %v9498_v12 = vpop.permute.xlu1 %2290  ;;  %v9500_v54 = vpop.permute.xlu0 %2288 }
 0x29c   : > { %13981 = vst [vmem:[#allocation164_spill] sm:$0xff] %v9498_v12  ;;  %v9502_v1 = vpop.permute.xlu2 %2358  ;;  %v2830_v32 = vrot.slane %v2814_v0, 1  ;;  %v2854_v0 = vmul.f32 %v9358_v5, %v2848_v63  ;;  %v2862_v2 = vrot.slane %v2852_v44, 1 }
 0x29d   : > { %13982 = vst [vmem:[#allocation165_spill] sm:$0xff] %v9500_v54 }
 0x29e   : > { %13983 = vst [vmem:[#allocation166_spill] sm:$0xff] %v9502_v1  ;;  %v2828_v1 = vrot.slane %v2816_v38, 1  ;;  %v2853_v38 = vmul.f32 %v9346_v61, %v2848_v63  ;;  %v2832_v43 = vsel %vm792_vm0, %v2830_v32, %v2831_v23  ;;  %v2868_v23 = vrot.slane %v2854_v0, 1 }
 0x2a0   : > { %v2829_v22 = vsel %vm792_vm0, %v2827_v10, %v2828_v1  ;;  %v2865_v42 = vrot.slane %v2853_v38, 1  ;;  %v2886_v38 = vmul.f32 %v9160_v7, %v2885_v24 }
 0x2a1   : > { %2798 = vrot.lane.b32.xlu1 %v2792_v48, %s8177_s9  ;;  %2796 = vrot.lane.b32.xlu0 %v2789_v25, %s8177_s9  ;;  %v2850_v48 = vmul.f32 %v9157_v26, %v2848_v63  ;;  %v2849_v25 = vmul.f32 %v9160_v7, %v2848_v63 }
 0x2a2   : > { %2800 = vrot.lane.b32.xlu2 %v2795_v21, %s8177_s9  ;;  %v2851_v21 = vmul.f32 %v9167_v19, %v2848_v63  ;;  %v2887_v63 = vmul.f32 %v9157_v26, %v2885_v24 }
 0x2a3   : > { %v9516_v53 = vpop.permute.xlu1 %2312  ;;  %v9518_v54 = vpop.permute.xlu0 %2310  ;;  %v2864_v1 = vrot.slane %v2850_v48, 1  ;;  %v2861_v10 = vrot.slane %v2849_v25, 1  ;;  %v2889_v25 = vmul.f32 %v9353_v6, %v2885_v24 }
 0x2a4   : > { %13984 = vst [vmem:[#allocation167_spill] sm:$0xff] %v9516_v53  ;;  %v9520_v12 = vpop.permute.xlu2 %2380  ;;  %v2867_v32 = vrot.slane %v2851_v21, 1  ;;  %v2891_v21 = vmul.f32 %v9358_v5, %v2885_v24  ;;  %v2901_v0 = vrot.slane %v2887_v63, 1 }
 0x2a5   : > { %13985 = vst [vmem:[#allocation168_spill] sm:$0xff] %v9518_v54  ;;  %v2866_v48 = vsel %vm792_vm0, %v2864_v1, %v2865_v42  ;;  %v2898_v1 = vrot.slane %v2886_v38, 1  ;;  %v2899_v42 = vrot.slane %v2889_v25, 1 }
 0x2a6   : > { %13986 = vst [vmem:[#allocation169_spill] sm:$0xff] %v9520_v12  ;;  %v2869_v44 = vsel %vm792_vm0, %v2867_v32, %v2868_v23  ;;  %v2905_v23 = vrot.slane %v2891_v21, 1 }
 0x2a7   : > { %v2900_v63 = vsel %vm792_vm0, %v2898_v1, %v2899_v42  ;;  %v2959_v42 = vstv %s7512_s15  ;;  %s7525_s15 = sld [smem:[#allocation9 + $0x9d]] }
 0x2a9   : > { %2835 = vrot.lane.b32.xlu1 %v2829_v22, %s8178_s8  ;;  %2833 = vrot.lane.b32.xlu0 %v2826_v18, %s8178_s8  ;;  %v2890_v22 = vmul.f32 %v9346_v61, %v2885_v24  ;;  %v2863_v18 = vsel %vm792_vm0, %v2861_v10, %v2862_v2  ;;  %v2922_v10 = vstv %s7511_s29  ;;  %s7524_s29 = sld [smem:[#allocation9 + $0x31]] }
 0x2aa   : > { %2837 = vrot.lane.b32.xlu2 %v2832_v43, %s8178_s8  ;;  %v2888_v43 = vmul.f32 %v9167_v19, %v2885_v24  ;;  %v2926_v38 = vmul.f32 %v9353_v6, %v2922_v10 }
 0x2ab   : > { %v9534_v12 = vpop.permute.xlu1 %2334  ;;  %v9536_v54 = vpop.permute.xlu0 %2332 }
 0x2ac   : > { %13987 = vst [vmem:[#allocation170_spill] sm:$0xff] %v9534_v12  ;;  %v9538_v53 = vpop.permute.xlu2 %2402  ;;  %v2904_v32 = vrot.slane %v2888_v43, 1  ;;  %v2928_v43 = vmul.f32 %v9358_v5, %v2922_v10  ;;  %v2936_v1 = vrot.slane %v2926_v38, 1 }
 0x2ad   : > { %13988 = vst [vmem:[#allocation171_spill] sm:$0xff] %v9536_v54 }
 0x2ae   : > { %13989 = vst [vmem:[#allocation172_spill] sm:$0xff] %v9538_v53  ;;  %v2902_v53 = vrot.slane %v2890_v22, 1  ;;  %v2927_v22 = vmul.f32 %v9346_v61, %v2922_v10  ;;  %v2906_v25 = vsel %vm792_vm0, %v2904_v32, %v2905_v23  ;;  %v2942_v23 = vrot.slane %v2928_v43, 1 }
 0x2b0   : > { %v2903_v24 = vsel %vm792_vm0, %v2901_v0, %v2902_v53  ;;  %v2939_v21 = vrot.slane %v2927_v22, 1  ;;  %v2960_v22 = vmul.f32 %v9160_v7, %v2959_v42 }
 0x2b1   : > { %2872 = vrot.lane.b32.xlu1 %v2866_v48, %s8178_s8  ;;  %2870 = vrot.lane.b32.xlu0 %v2863_v18, %s8178_s8  ;;  %v2924_v48 = vmul.f32 %v9157_v26, %v2922_v10  ;;  %v2923_v18 = vmul.f32 %v9160_v7, %v2922_v10 }
 0x2b2   : > { %2874 = vrot.lane.b32.xlu2 %v2869_v44, %s8178_s8  ;;  %v2925_v44 = vmul.f32 %v9167_v19, %v2922_v10  ;;  %v2961_v10 = vmul.f32 %v9157_v26, %v2959_v42 }
 0x2b3   : > { %v9552_v2 = vpop.permute.xlu1 %2356  ;;  %v9554_v54 = vpop.permute.xlu0 %2354  ;;  %v2938_v53 = vrot.slane %v2924_v48, 1  ;;  %v2935_v0 = vrot.slane %v2923_v18, 1  ;;  %v2963_v18 = vmul.f32 %v9353_v6, %v2959_v42 }
 0x2b4   : > { %13990 = vst [vmem:[#allocation173_spill] sm:$0xff] %v9552_v2  ;;  %v9556_v12 = vpop.permute.xlu2 %2424  ;;  %v2941_v32 = vrot.slane %v2925_v44, 1  ;;  %v2965_v44 = vmul.f32 %v9358_v5, %v2959_v42  ;;  %v2975_v43 = vrot.slane %v2961_v10, 1 }
 0x2b5   : > { %13991 = vst [vmem:[#allocation174_spill] sm:$0xff] %v9554_v54  ;;  %v2940_v48 = vsel %vm792_vm0, %v2938_v53, %v2939_v21  ;;  %v2972_v53 = vrot.slane %v2960_v22, 1  ;;  %v2973_v21 = vrot.slane %v2963_v18, 1 }
 0x2b6   : > { %13992 = vst [vmem:[#allocation175_spill] sm:$0xff] %v9556_v12  ;;  %v2943_v38 = vsel %vm792_vm0, %v2941_v32, %v2942_v23  ;;  %v2979_v23 = vrot.slane %v2965_v44, 1 }
 0x2b7   : > { %v2974_v10 = vsel %vm792_vm0, %v2972_v53, %v2973_v21  ;;  %v3033_v21 = vstv %s7514_s30  ;;  %s7527_s30 = sld [smem:[#allocation9 + $0x9e]] }
 0x2b9   : > { %2909 = vrot.lane.b32.xlu1 %v2903_v24, %s8179_s26  ;;  %2907 = vrot.lane.b32.xlu0 %v2900_v63, %s8179_s26  ;;  %v2964_v24 = vmul.f32 %v9346_v61, %v2959_v42  ;;  %v2937_v63 = vsel %vm792_vm0, %v2935_v0, %v2936_v1  ;;  %v2996_v0 = vstv %s7513_s0  ;;  %s7526_s0 = sld [smem:[#allocation9 + $0x32]] }
 0x2ba   : > { %2911 = vrot.lane.b32.xlu2 %v2906_v25, %s8179_s26  ;;  %v2962_v25 = vmul.f32 %v9167_v19, %v2959_v42  ;;  %v3000_v22 = vmul.f32 %v9353_v6, %v2996_v0 }
 0x2bb   : > { %v9570_v12 = vpop.permute.xlu1 %2378  ;;  %v9572_v54 = vpop.permute.xlu0 %2376 }
 0x2bc   : > { %13993 = vst [vmem:[#allocation176_spill] sm:$0xff] %v9570_v12  ;;  %v9574_v2 = vpop.permute.xlu2 %2446  ;;  %v2978_v32 = vrot.slane %v2962_v25, 1  ;;  %v3002_v25 = vmul.f32 %v9358_v5, %v2996_v0  ;;  %v3010_v53 = vrot.slane %v3000_v22, 1 }
 0x2bd   : > { %13994 = vst [vmem:[#allocation177_spill] sm:$0xff] %v9572_v54  ;;  %v2976_v54 = vrot.slane %v2964_v24, 1  ;;  %v3001_v24 = vmul.f32 %v9346_v61, %v2996_v0 }
 0x2be   : > { %13995 = vst [vmem:[#allocation178_spill] sm:$0xff] %v9574_v2  ;;  %v2980_v18 = vsel %vm792_vm0, %v2978_v32, %v2979_v23  ;;  %v3016_v23 = vrot.slane %v3002_v25, 1 }
 0x2bf   : > { %v2977_v42 = vsel %vm792_vm0, %v2975_v43, %v2976_v54  ;;  %v3013_v44 = vrot.slane %v3001_v24, 1  ;;  %v3034_v24 = vmul.f32 %v9160_v7, %v3033_v21 }
 0x2c1   : > { %2946 = vrot.lane.b32.xlu1 %v2940_v48, %s8179_s26  ;;  %2944 = vrot.lane.b32.xlu0 %v2937_v63, %s8179_s26  ;;  %v2998_v48 = vmul.f32 %v9157_v26, %v2996_v0  ;;  %v2997_v63 = vmul.f32 %v9160_v7, %v2996_v0 }
 0x2c2   : > { %2948 = vrot.lane.b32.xlu2 %v2943_v38, %s8179_s26  ;;  %v2999_v38 = vmul.f32 %v9167_v19, %v2996_v0  ;;  %v3035_v0 = vmul.f32 %v9157_v26, %v3033_v21 }
 0x2c3   : > { %v9588_v1 = vpop.permute.xlu1 %2400  ;;  %v9590_v2 = vpop.permute.xlu0 %2398  ;;  %v3012_v54 = vrot.slane %v2998_v48, 1  ;;  %v3009_v43 = vrot.slane %v2997_v63, 1  ;;  %v3037_v63 = vmul.f32 %v9353_v6, %v3033_v21 }
 0x2c4   : > { %13996 = vst [vmem:[#allocation179_spill] sm:$0xff] %v9588_v1  ;;  %v9592_v12 = vpop.permute.xlu2 %2541  ;;  %v3015_v32 = vrot.slane %v2999_v38, 1  ;;  %v3039_v38 = vmul.f32 %v9358_v5, %v3033_v21  ;;  %v3049_v26 = vrot.slane %v3035_v0, 1  ;;  %v9632_v0 = vld [vmem:[%s8411_s21 + $0x20] sm:$0xff] }
 0x2c5   : > { %13997 = vst [vmem:[#allocation180_spill] sm:$0xff] %v9590_v2  ;;  %v3014_v48 = vsel %vm792_vm0, %v3012_v54, %v3013_v44  ;;  %v3046_v54 = vrot.slane %v3034_v24, 1  ;;  %v3047_v7 = vrot.slane %v3037_v63, 1  ;;  %v3070_v44 = vstv %s7515_s12  ;;  %v9638_v24 = vld [vmem:[%s8411_s21 + $0x18] sm:$0xff]  ;;  %s7528_s12 = sld [smem:[#allocation9 + $0x33]] }
 0x2c6   : > { %13998 = vst [vmem:[#allocation181_spill] sm:$0xff] %v9592_v12  ;;  %v3017_v22 = vsel %vm792_vm0, %v3015_v32, %v3016_v23  ;;  %v3071_v63 = vmul.f32 %v9638_v24, %v3070_v44 }
 0x2c9   : > { %2983 = vrot.lane.b32.xlu1 %v2977_v42, %s8180_s13  ;;  %2981 = vrot.lane.b32.xlu0 %v2974_v10, %s8180_s13  ;;  %v3038_v42 = vmul.f32 %v9346_v61, %v3033_v21  ;;  %v3011_v10 = vsel %vm792_vm0, %v3009_v43, %v3010_v53 }
 0x2ca   : > { %2985 = vrot.lane.b32.xlu2 %v2980_v18, %s8180_s13  ;;  %v3036_v18 = vmul.f32 %v9167_v19, %v3033_v21  ;;  %v3053_v21 = vrot.slane %v3039_v38, 1  ;;  %v9644_v38 = vld [vmem:[%s8411_s21 + $0x28] sm:$0xff] }
 0x2cb   : > { %v9606_v12 = vpop.permute.xlu1 %2422  ;;  %v9608_v2 = vpop.permute.xlu0 %2420  ;;  %v3050_v25 = vrot.slane %v3038_v42, 1  ;;  %v3072_v42 = vmul.f32 %v9632_v0, %v3070_v44 }
 0x2cc   : > { %13999 = vst [vmem:[#allocation182_spill] sm:$0xff] %v9606_v12  ;;  %v9610_v1 = vpop.permute.xlu2 %2578  ;;  %v3052_v53 = vrot.slane %v3036_v18, 1 }
 0x2cd   : > { %14000 = vst [vmem:[#allocation183_spill] sm:$0xff] %v9608_v2  ;;  %v3051_v23 = vsel %vm792_vm0, %v3049_v26, %v3050_v25  ;;  %v3073_v26 = vmul.f32 %v9644_v38, %v3070_v44  ;;  %v3076_v25 = vmul.f32 %v9358_v5, %v3070_v44 }
 0x2ce   : > { %14001 = vst [vmem:[#allocation184_spill] sm:$0xff] %v9610_v1  ;;  %v3054_v18 = vsel %vm792_vm0, %v3052_v53, %v3053_v21 }
 0x2cf   : > { %v3089_v21 = vrot.slane %v3073_v26, 1  ;;  %v3090_v2 = vrot.slane %v3076_v25, 1 }
 0x2d1   : > { %3020 = vrot.lane.b32.xlu1 %v3014_v48, %s8180_s13  ;;  %3018 = vrot.lane.b32.xlu0 %v3011_v10, %s8180_s13  ;;  %v3048_v48 = vsel %vm792_vm0, %v3046_v54, %v3047_v7  ;;  %v3075_v10 = vmul.f32 %v9346_v61, %v3070_v44  ;;  %v3086_v54 = vrot.slane %v3072_v42, 1 }
 0x2d2   : > { %3022 = vrot.lane.b32.xlu2 %v3017_v22, %s8180_s13  ;;  %v3074_v22 = vmul.f32 %v9353_v6, %v3070_v44 }
 0x2d3   : > { %v9624_v43 = vpop.permute.xlu1 %2444  ;;  %v9626_v19 = vpop.permute.xlu0 %2442  ;;  %v3087_v7 = vrot.slane %v3075_v10, 1 }
 0x2d4   : > { %14002 = vst [vmem:[#allocation185_spill] sm:$0xff] %v9624_v43  ;;  %v9628_v32 = vpop.permute.xlu2 %2615  ;;  %v3084_v1 = vrot.slane %v3074_v22, 1  ;;  %v3091_v22 = vsel %vm792_vm0, %v3089_v21, %v3090_v2 }
 0x2d5   : > { %14003 = vst [vmem:[#allocation186_spill] sm:$0xff] %v9626_v19  ;;  %v3165_v19 = vstv %s7518_s16  ;;  %v3088_v42 = vsel %vm792_vm0, %v3086_v54, %v3087_v7  ;;  %s7529_s16 = sld [smem:[#allocation9 + $0x9f]] }
 0x2d6   : > { %14004 = vst [vmem:[#allocation187_spill] sm:$0xff] %v9628_v32  ;;  %v3083_v32 = vrot.slane %v3071_v63, 1  ;;  %v3167_v44 = vmul.f32 %v9632_v0, %v3165_v19  ;;  %v3166_v10 = vmul.f32 %v9638_v24, %v3165_v19  ;;  %v3169_v63 = vmul.f32 %v9353_v6, %v3165_v19 }
 0x2d7   : > { %v3171_v26 = vmul.f32 %v9358_v5, %v3165_v19 }
 0x2d8   : > { %v3181_v25 = vrot.slane %v3167_v44, 2  ;;  %v3178_v54 = vrot.slane %v3166_v10, 2 }
 0x2d9   : > { %3057 = vrot.lane.b32.xlu1 %v3051_v23, %s8181_s4  ;;  %3055 = vrot.lane.b32.xlu0 %v3048_v48, %s8181_s4  ;;  %v3170_v23 = vmul.f32 %v9346_v61, %v3165_v19  ;;  %v3085_v48 = vsel %vm792_vm0, %v3083_v32, %v3084_v1  ;;  %v3179_v1 = vrot.slane %v3169_v63, 2  ;;  %v3202_v32 = vstv %s7519_s2  ;;  %s7530_s2 = sld [smem:[#allocation9 + $0x34]] }
 0x2da   : > { %3059 = vrot.lane.b32.xlu2 %v3054_v18, %s8181_s4  ;;  %v3168_v18 = vmul.f32 %v9644_v38, %v3165_v19  ;;  %v3185_v21 = vrot.slane %v3171_v26, 2  ;;  %v3206_v10 = vmul.f32 %v9353_v6, %v3202_v32 }
 0x2db   : > { %v9651_v43 = vpop.permute.xlu1 %2539  ;;  %v9653_v53 = vpop.permute.xlu0 %2537  ;;  %v3180_v44 = vsel %vm1443_vm1, %v3178_v54, %v3179_v1  ;;  %v3239_v1 = vstv %s7520_s24  ;;  %s7531_s24 = sld [smem:[#allocation9 + $0xa0]] }
 0x2dc   : > { %14005 = vst [vmem:[#allocation188_spill] sm:$0xff] %v9651_v43  ;;  %v9655_v12 = vpop.permute.xlu2 %2652  ;;  %v3184_v2 = vrot.slane %v3168_v18, 2  ;;  %v3208_v18 = vmul.f32 %v9358_v5, %v3202_v32  ;;  %v3216_v54 = vrot.slane %v3206_v10, 2 }
 0x2dd   : > { %14006 = vst [vmem:[#allocation189_spill] sm:$0xff] %v9653_v53 }
 0x2de   : > { %14007 = vst [vmem:[#allocation190_spill] sm:$0xff] %v9655_v12  ;;  %v3182_v12 = vrot.slane %v3170_v23, 2  ;;  %v3207_v23 = vmul.f32 %v9346_v61, %v3202_v32  ;;  %v3186_v63 = vsel %vm1443_vm1, %v3184_v2, %v3185_v21  ;;  %v3222_v21 = vrot.slane %v3208_v18, 2 }
 0x2e0   : > { %v3183_v19 = vsel %vm1443_vm1, %v3181_v25, %v3182_v12  ;;  %v3219_v26 = vrot.slane %v3207_v23, 2  ;;  %v3240_v23 = vmul.f32 %v9638_v24, %v3239_v1 }
 0x2e1   : > { %3094 = vrot.lane.b32.xlu1 %v3088_v42, %s8181_s4  ;;  %3092 = vrot.lane.b32.xlu0 %v3085_v48, %s8181_s4  ;;  %v3204_v42 = vmul.f32 %v9632_v0, %v3202_v32  ;;  %v3203_v48 = vmul.f32 %v9638_v24, %v3202_v32 }
 0x2e2   : > { %3096 = vrot.lane.b32.xlu2 %v3091_v22, %s8181_s4  ;;  %v3205_v22 = vmul.f32 %v9644_v38, %v3202_v32  ;;  %v3241_v32 = vmul.f32 %v9632_v0, %v3239_v1 }
 0x2e3   : > { %v9669_v7 = vpop.permute.xlu1 %2576  ;;  %v9671_v53 = vpop.permute.xlu0 %2574  ;;  %v3218_v12 = vrot.slane %v3204_v42, 2  ;;  %v3215_v25 = vrot.slane %v3203_v48, 2  ;;  %v3243_v48 = vmul.f32 %v9353_v6, %v3239_v1 }
 0x2e4   : > { %14008 = vst [vmem:[#allocation191_spill] sm:$0xff] %v9669_v7  ;;  %v9673_v43 = vpop.permute.xlu2 %2689  ;;  %v3221_v2 = vrot.slane %v3205_v22, 2  ;;  %v3245_v22 = vmul.f32 %v9358_v5, %v3239_v1  ;;  %v3255_v18 = vrot.slane %v3241_v32, 2 }
 0x2e5   : > { %14009 = vst [vmem:[#allocation192_spill] sm:$0xff] %v9671_v53  ;;  %v3220_v42 = vsel %vm1443_vm1, %v3218_v12, %v3219_v26  ;;  %v3252_v12 = vrot.slane %v3240_v23, 2  ;;  %v3253_v26 = vrot.slane %v3243_v48, 2 }
 0x2e6   : > { %14010 = vst [vmem:[#allocation193_spill] sm:$0xff] %v9673_v43  ;;  %v3223_v10 = vsel %vm1443_vm1, %v3221_v2, %v3222_v21  ;;  %v3259_v21 = vrot.slane %v3245_v22, 2 }
 0x2e7   : > { %v3254_v32 = vsel %vm1443_vm1, %v3252_v12, %v3253_v26  ;;  %v3313_v26 = vstv %s7522_s20  ;;  %s7533_s20 = sld [smem:[#allocation9 + $0xa1]] }
 0x2e9   : > { %3189 = vrot.lane.b32.xlu1 %v3183_v19, %s8174_s10  ;;  %3187 = vrot.lane.b32.xlu0 %v3180_v44, %s8174_s10  ;;  %v3244_v19 = vmul.f32 %v9346_v61, %v3239_v1  ;;  %v3217_v44 = vsel %vm1443_vm1, %v3215_v25, %v3216_v54  ;;  %v3276_v25 = vstv %s7521_s17  ;;  %s7532_s17 = sld [smem:[#allocation9 + $0x35]] }
 0x2ea   : > { %3191 = vrot.lane.b32.xlu2 %v3186_v63, %s8174_s10  ;;  %v3242_v63 = vmul.f32 %v9644_v38, %v3239_v1  ;;  %v3280_v23 = vmul.f32 %v9353_v6, %v3276_v25 }
 0x2eb   : > { %v9687_v43 = vpop.permute.xlu1 %2613  ;;  %v9689_v53 = vpop.permute.xlu0 %2611 }
 0x2ec   : > { %14011 = vst [vmem:[#allocation194_spill] sm:$0xff] %v9687_v43  ;;  %v9691_v7 = vpop.permute.xlu2 %2726  ;;  %v3258_v2 = vrot.slane %v3242_v63, 2  ;;  %v3282_v63 = vmul.f32 %v9358_v5, %v3276_v25  ;;  %v3290_v12 = vrot.slane %v3280_v23, 2 }
 0x2ed   : > { %14012 = vst [vmem:[#allocation195_spill] sm:$0xff] %v9689_v53 }
 0x2ee   : > { %14013 = vst [vmem:[#allocation196_spill] sm:$0xff] %v9691_v7  ;;  %v3256_v7 = vrot.slane %v3244_v19, 2  ;;  %v3281_v19 = vmul.f32 %v9346_v61, %v3276_v25  ;;  %v3260_v48 = vsel %vm1443_vm1, %v3258_v2, %v3259_v21  ;;  %v3296_v21 = vrot.slane %v3282_v63, 2 }
 0x2f0   : > { %v3257_v1 = vsel %vm1443_vm1, %v3255_v18, %v3256_v7  ;;  %v3293_v22 = vrot.slane %v3281_v19, 2  ;;  %v3314_v19 = vmul.f32 %v9638_v24, %v3313_v26 }
 0x2f1   : > { %3226 = vrot.lane.b32.xlu1 %v3220_v42, %s8174_s10  ;;  %3224 = vrot.lane.b32.xlu0 %v3217_v44, %s8174_s10  ;;  %v3278_v42 = vmul.f32 %v9632_v0, %v3276_v25  ;;  %v3277_v44 = vmul.f32 %v9638_v24, %v3276_v25 }
 0x2f2   : > { %3228 = vrot.lane.b32.xlu2 %v3223_v10, %s8174_s10  ;;  %v3279_v10 = vmul.f32 %v9644_v38, %v3276_v25  ;;  %v3315_v25 = vmul.f32 %v9632_v0, %v3313_v26 }
 0x2f3   : > { %v9705_v54 = vpop.permute.xlu1 %2650  ;;  %v9707_v53 = vpop.permute.xlu0 %2648  ;;  %v3292_v7 = vrot.slane %v3278_v42, 2  ;;  %v3289_v18 = vrot.slane %v3277_v44, 2  ;;  %v3317_v44 = vmul.f32 %v9353_v6, %v3313_v26 }
 0x2f4   : > { %14014 = vst [vmem:[#allocation197_spill] sm:$0xff] %v9705_v54  ;;  %v9709_v43 = vpop.permute.xlu2 %2763  ;;  %v3295_v2 = vrot.slane %v3279_v10, 2  ;;  %v3319_v10 = vmul.f32 %v9358_v5, %v3313_v26  ;;  %v3329_v63 = vrot.slane %v3315_v25, 2 }
 0x2f5   : > { %14015 = vst [vmem:[#allocation198_spill] sm:$0xff] %v9707_v53  ;;  %v3294_v42 = vsel %vm1443_vm1, %v3292_v7, %v3293_v22  ;;  %v3326_v7 = vrot.slane %v3314_v19, 2  ;;  %v3327_v22 = vrot.slane %v3317_v44, 2 }
 0x2f6   : > { %14016 = vst [vmem:[#allocation199_spill] sm:$0xff] %v9709_v43  ;;  %v3297_v23 = vsel %vm1443_vm1, %v3295_v2, %v3296_v21  ;;  %v3333_v21 = vrot.slane %v3319_v10, 2 }
 0x2f7   : > { %v3328_v25 = vsel %vm1443_vm1, %v3326_v7, %v3327_v22  ;;  %v3387_v7 = vstv %s7524_s29  ;;  %s7543_s29 = sld [smem:[#allocation9 + $0xa3]] }
 0x2f9   : > { %3263 = vrot.lane.b32.xlu1 %v3257_v1, %s8175_s19  ;;  %3261 = vrot.lane.b32.xlu0 %v3254_v32, %s8175_s19  ;;  %v3318_v1 = vmul.f32 %v9346_v61, %v3313_v26  ;;  %v3291_v32 = vsel %vm1443_vm1, %v3289_v18, %v3290_v12  ;;  %v3350_v18 = vstv %s7523_s11  ;;  %s7542_s11 = sld [smem:[#allocation9 + $0x37]] }
 0x2fa   : > { %3265 = vrot.lane.b32.xlu2 %v3260_v48, %s8175_s19  ;;  %v3316_v48 = vmul.f32 %v9644_v38, %v3313_v26  ;;  %v3354_v19 = vmul.f32 %v9353_v6, %v3350_v18 }
 0x2fb   : > { %v9723_v53 = vpop.permute.xlu1 %2687  ;;  %v9725_v54 = vpop.permute.xlu0 %2685 }
 0x2fc   : > { %14017 = vst [vmem:[#allocation200_spill] sm:$0xff] %v9723_v53  ;;  %v9727_v43 = vpop.permute.xlu2 %2800  ;;  %v3332_v2 = vrot.slane %v3316_v48, 2  ;;  %v3356_v48 = vmul.f32 %v9358_v5, %v3350_v18 }
 0x2fd   : > { %14018 = vst [vmem:[#allocation201_spill] sm:$0xff] %v9725_v54 }
 0x2fe   : > { %14019 = vst [vmem:[#allocation202_spill] sm:$0xff] %v9727_v43  ;;  %v3330_v43 = vrot.slane %v3318_v1, 2  ;;  %v3355_v1 = vmul.f32 %v9346_v61, %v3350_v18  ;;  %v3334_v44 = vsel %vm1443_vm1, %v3332_v2, %v3333_v21  ;;  %v3389_v21 = vmul.f32 %v9632_v0, %v3387_v7 }
 0x300   : > { %v3331_v26 = vsel %vm1443_vm1, %v3329_v63, %v3330_v43  ;;  %v3367_v10 = vrot.slane %v3355_v1, 2  ;;  %v3364_v63 = vrot.slane %v3354_v19, 2  ;;  %v9774_v19 = vld [vmem:[%s8418_s18 + $0x18] sm:$0x3] }
 0x301   : > { %3300 = vrot.lane.b32.xlu1 %v3294_v42, %s8175_s19  ;;  %3298 = vrot.lane.b32.xlu0 %v3291_v32, %s8175_s19  ;;  %v3352_v42 = vmul.f32 %v9632_v0, %v3350_v18  ;;  %v3351_v32 = vmul.f32 %v9638_v24, %v3350_v18 }
 0x302   : > { %3302 = vrot.lane.b32.xlu2 %v3297_v23, %s8175_s19  ;;  %v3353_v23 = vmul.f32 %v9644_v38, %v3350_v18  ;;  %v3370_v18 = vrot.slane %v3356_v48, 2  ;;  %v3390_v48 = vmul.f32 %v9644_v38, %v3387_v7 }
 0x303   : > { %v9741_v12 = vpop.permute.xlu1 %2724  ;;  %v9743_v54 = vpop.permute.xlu0 %2722  ;;  %v3366_v43 = vrot.slane %v3352_v42, 2  ;;  %v3363_v61 = vrot.slane %v3351_v32, 2  ;;  %v3388_v32 = vmul.f32 %v9638_v24, %v3387_v7 }
 0x304   : > { %14020 = vst [vmem:[#allocation203_spill] sm:$0xff] %v9741_v12  ;;  %v9745_v53 = vpop.permute.xlu2 %2837  ;;  %v3369_v5 = vrot.slane %v3353_v23, 2 }
 0x305   : > { %14021 = vst [vmem:[#allocation204_spill] sm:$0xff] %v9743_v54  ;;  %v3365_v1 = vsel %vm1443_vm1, %v3363_v61, %v3364_v63  ;;  %v3400_v61 = vrot.slane %v3388_v32, 2 }
 0x306   : > { %14022 = vst [vmem:[#allocation205_spill] sm:$0xff] %v9745_v53  ;;  %v3371_v23 = vsel %vm1443_vm1, %v3369_v5, %v3370_v18  ;;  %v3406_v18 = vrot.slane %v3390_v48, 2 }
 0x309   : > { %3337 = vrot.lane.b32.xlu1 %v3331_v26, %s8176_s14  ;;  %3335 = vrot.lane.b32.xlu0 %v3328_v25, %s8176_s14  ;;  %v9767_v26 = vld [vmem:[%s8418_s18 + $0x20] sm:$0x3]  ;;  %v3368_v25 = vsel %vm1443_vm1, %v3366_v43, %v3367_v10  ;;  %v3403_v43 = vrot.slane %v3389_v21, 2 }
 0x30a   : > { %3339 = vrot.lane.b32.xlu2 %v3334_v44, %s8176_s14  ;;  %v3392_v42 = vmul.f32 %v9767_v26, %v3387_v7  ;;  %v3391_v44 = vmul.f32 %v9774_v19, %v3387_v7 }
 0x30b   : > { %v9759_v6 = vpop.permute.xlu1 %2761  ;;  %v9761_v22 = vpop.permute.xlu0 %2759 }
 0x30c   : > { %14023 = vst [vmem:[#allocation206_spill] sm:$0xff] %v9759_v6  ;;  %v9763_v2 = vpop.permute.xlu2 %2874  ;;  %v3404_v10 = vrot.slane %v3392_v42, 2  ;;  %v3401_v63 = vrot.slane %v3391_v44, 2 }
 0x30d   : > { %14024 = vst [vmem:[#allocation207_spill] sm:$0xff] %v9761_v22  ;;  %v9780_v22 = vld [vmem:[%s8418_s18 + $0x28] sm:$0x3] }
 0x30e   : > { %14025 = vst [vmem:[#allocation208_spill] sm:$0xff] %v9763_v2  ;;  %v3393_v6 = vmul.f32 %v9780_v22, %v3387_v7  ;;  %v3424_v2 = vstv %s7525_s15  ;;  %v3405_v7 = vsel %vm1443_vm1, %v3403_v43, %v3404_v10  ;;  %v3402_v21 = vsel %vm1443_vm1, %v3400_v61, %v3401_v63  ;;  %s7544_s15 = sld [smem:[#allocation9 + $0x38]] }
 0x30f   : > { %v3429_v42 = vmul.f32 %v9767_v26, %v3424_v2  ;;  %v3428_v32 = vmul.f32 %v9774_v19, %v3424_v2  ;;  %v3461_v63 = vstv %s7526_s0  ;;  %s7545_s0 = sld [smem:[#allocation9 + $0xa4]] }
 0x310   : > { %v3407_v54 = vrot.slane %v3393_v6, 2  ;;  %v3430_v6 = vmul.f32 %v9780_v22, %v3424_v2 }
 0x311   : > { %3374 = vrot.lane.b32.xlu1 %v3368_v25, %s8176_s14  ;;  %3372 = vrot.lane.b32.xlu0 %v3365_v1, %s8176_s14  ;;  %v3426_v25 = vmul.f32 %v9632_v0, %v3424_v2  ;;  %v3425_v1 = vmul.f32 %v9638_v24, %v3424_v2  ;;  %v3441_v43 = vrot.slane %v3429_v42, 2  ;;  %v3438_v61 = vrot.slane %v3428_v32, 2 }
 0x312   : > { %3376 = vrot.lane.b32.xlu2 %v3371_v23, %s8176_s14  ;;  %v3408_v44 = vsel %vm1443_vm1, %v3406_v18, %v3407_v54  ;;  %v3427_v23 = vmul.f32 %v9644_v38, %v3424_v2  ;;  %v3444_v18 = vrot.slane %v3430_v6, 2  ;;  %v3463_v2 = vmul.f32 %v9632_v0, %v3461_v63 }
 0x313   : > { %v9786_v53 = vpop.permute.xlu1 %2798  ;;  %v9788_v5 = vpop.permute.xlu0 %2796  ;;  %v3440_v48 = vrot.slane %v3426_v25, 2  ;;  %v3437_v10 = vrot.slane %v3425_v1, 2  ;;  %v3462_v42 = vmul.f32 %v9638_v24, %v3461_v63  ;;  %v3465_v1 = vmul.f32 %v9774_v19, %v3461_v63 }
 0x314   : > { %14026 = vst [vmem:[#allocation209_spill] sm:$0xff] %v9786_v53  ;;  %v9790_v12 = vpop.permute.xlu2 %2911  ;;  %v3443_v54 = vrot.slane %v3427_v23, 2  ;;  %v3467_v23 = vmul.f32 %v9780_v22, %v3461_v63  ;;  %v3477_v6 = vrot.slane %v3463_v2, 2 }
 0x315   : > { %14027 = vst [vmem:[#allocation210_spill] sm:$0xff] %v9788_v5  ;;  %v3442_v25 = vsel %vm1443_vm1, %v3440_v48, %v3441_v43  ;;  %v3474_v48 = vrot.slane %v3462_v42, 2  ;;  %v3475_v43 = vrot.slane %v3465_v1, 2 }
 0x316   : > { %14028 = vst [vmem:[#allocation211_spill] sm:$0xff] %v9790_v12  ;;  %v3445_v32 = vsel %vm1443_vm1, %v3443_v54, %v3444_v18  ;;  %v3481_v18 = vrot.slane %v3467_v23, 2 }
 0x317   : > { %v3476_v2 = vsel %vm1443_vm1, %v3474_v48, %v3475_v43  ;;  %v3535_v43 = vstv %s7528_s12  ;;  %s7547_s12 = sld [smem:[#allocation9 + $0xa5]] }
 0x319   : > { %3411 = vrot.lane.b32.xlu1 %v3405_v7, %s8177_s9  ;;  %3409 = vrot.lane.b32.xlu0 %v3402_v21, %s8177_s9  ;;  %v3466_v7 = vmul.f32 %v9767_v26, %v3461_v63  ;;  %v3439_v21 = vsel %vm1443_vm1, %v3437_v10, %v3438_v61  ;;  %v3498_v10 = vstv %s7527_s30  ;;  %s7546_s30 = sld [smem:[#allocation9 + $0x39]] }
 0x31a   : > { %3413 = vrot.lane.b32.xlu2 %v3408_v44, %s8177_s9  ;;  %v3464_v44 = vmul.f32 %v9644_v38, %v3461_v63  ;;  %v3502_v42 = vmul.f32 %v9774_v19, %v3498_v10 }
 0x31b   : > { %v9804_v12 = vpop.permute.xlu1 %2835  ;;  %v9806_v5 = vpop.permute.xlu0 %2833 }
 0x31c   : > { %14029 = vst [vmem:[#allocation212_spill] sm:$0xff] %v9804_v12  ;;  %v9808_v53 = vpop.permute.xlu2 %2948  ;;  %v3480_v54 = vrot.slane %v3464_v44, 2  ;;  %v3504_v44 = vmul.f32 %v9780_v22, %v3498_v10  ;;  %v3512_v48 = vrot.slane %v3502_v42, 2 }
 0x31d   : > { %14030 = vst [vmem:[#allocation213_spill] sm:$0xff] %v9806_v5 }
 0x31e   : > { %14031 = vst [vmem:[#allocation214_spill] sm:$0xff] %v9808_v53  ;;  %v3478_v53 = vrot.slane %v3466_v7, 2  ;;  %v3503_v7 = vmul.f32 %v9767_v26, %v3498_v10  ;;  %v3482_v1 = vsel %vm1443_vm1, %v3480_v54, %v3481_v18  ;;  %v3518_v18 = vrot.slane %v3504_v44, 2 }
 0x320   : > { %v3479_v63 = vsel %vm1443_vm1, %v3477_v6, %v3478_v53  ;;  %v3515_v23 = vrot.slane %v3503_v7, 2  ;;  %v3536_v7 = vmul.f32 %v9638_v24, %v3535_v43 }
 0x321   : > { %3448 = vrot.lane.b32.xlu1 %v3442_v25, %s8177_s9  ;;  %3446 = vrot.lane.b32.xlu0 %v3439_v21, %s8177_s9  ;;  %v3500_v25 = vmul.f32 %v9632_v0, %v3498_v10  ;;  %v3499_v21 = vmul.f32 %v9638_v24, %v3498_v10 }
 0x322   : > { %3450 = vrot.lane.b32.xlu2 %v3445_v32, %s8177_s9  ;;  %v3501_v32 = vmul.f32 %v9644_v38, %v3498_v10  ;;  %v3537_v10 = vmul.f32 %v9632_v0, %v3535_v43 }
 0x323   : > { %v9822_v61 = vpop.permute.xlu1 %2872  ;;  %v9824_v5 = vpop.permute.xlu0 %2870  ;;  %v3514_v53 = vrot.slane %v3500_v25, 2  ;;  %v3511_v6 = vrot.slane %v3499_v21, 2  ;;  %v3539_v21 = vmul.f32 %v9774_v19, %v3535_v43 }
 0x324   : > { %14032 = vst [vmem:[#allocation215_spill] sm:$0xff] %v9822_v61  ;;  %v9826_v12 = vpop.permute.xlu2 %2985  ;;  %v3517_v54 = vrot.slane %v3501_v32, 2  ;;  %v3541_v32 = vmul.f32 %v9780_v22, %v3535_v43  ;;  %v3551_v44 = vrot.slane %v3537_v10, 2 }
 0x325   : > { %14033 = vst [vmem:[#allocation216_spill] sm:$0xff] %v9824_v5  ;;  %v3516_v25 = vsel %vm1443_vm1, %v3514_v53, %v3515_v23  ;;  %v3548_v53 = vrot.slane %v3536_v7, 2  ;;  %v3549_v23 = vrot.slane %v3539_v21, 2 }
 0x326   : > { %14034 = vst [vmem:[#allocation217_spill] sm:$0xff] %v9826_v12  ;;  %v3519_v42 = vsel %vm1443_vm1, %v3517_v54, %v3518_v18  ;;  %v3555_v18 = vrot.slane %v3541_v32, 2 }
 0x327   : > { %v3550_v10 = vsel %vm1443_vm1, %v3548_v53, %v3549_v23  ;;  %v3609_v23 = vstv %s7530_s2  ;;  %s7549_s2 = sld [smem:[#allocation9 + $0xa6]] }
 0x329   : > { %3485 = vrot.lane.b32.xlu1 %v3479_v63, %s8178_s8  ;;  %3483 = vrot.lane.b32.xlu0 %v3476_v2, %s8178_s8  ;;  %v3540_v63 = vmul.f32 %v9767_v26, %v3535_v43  ;;  %v3513_v2 = vsel %vm1443_vm1, %v3511_v6, %v3512_v48  ;;  %v3572_v6 = vstv %s7529_s16  ;;  %s7548_s16 = sld [smem:[#allocation9 + $0x3a]] }
 0x32a   : > { %3487 = vrot.lane.b32.xlu2 %v3482_v1, %s8178_s8  ;;  %v3538_v1 = vmul.f32 %v9644_v38, %v3535_v43  ;;  %v3576_v7 = vmul.f32 %v9774_v19, %v3572_v6 }
 0x32b   : > { %v9840_v12 = vpop.permute.xlu1 %2909  ;;  %v9842_v5 = vpop.permute.xlu0 %2907 }
 0x32c   : > { %14035 = vst [vmem:[#allocation218_spill] sm:$0xff] %v9840_v12  ;;  %v9844_v61 = vpop.permute.xlu2 %3022  ;;  %v3554_v54 = vrot.slane %v3538_v1, 2  ;;  %v3578_v1 = vmul.f32 %v9780_v22, %v3572_v6  ;;  %v3586_v53 = vrot.slane %v3576_v7, 2 }
 0x32d   : > { %14036 = vst [vmem:[#allocation219_spill] sm:$0xff] %v9842_v5 }
 0x32e   : > { %14037 = vst [vmem:[#allocation220_spill] sm:$0xff] %v9844_v61  ;;  %v3552_v61 = vrot.slane %v3540_v63, 2  ;;  %v3577_v63 = vmul.f32 %v9767_v26, %v3572_v6  ;;  %v3556_v21 = vsel %vm1443_vm1, %v3554_v54, %v3555_v18  ;;  %v3592_v18 = vrot.slane %v3578_v1, 2 }
 0x330   : > { %v3553_v43 = vsel %vm1443_vm1, %v3551_v44, %v3552_v61  ;;  %v3589_v32 = vrot.slane %v3577_v63, 2  ;;  %v3610_v63 = vmul.f32 %v9638_v24, %v3609_v23 }
 0x331   : > { %3522 = vrot.lane.b32.xlu1 %v3516_v25, %s8178_s8  ;;  %3520 = vrot.lane.b32.xlu0 %v3513_v2, %s8178_s8  ;;  %v3574_v25 = vmul.f32 %v9632_v0, %v3572_v6  ;;  %v3573_v2 = vmul.f32 %v9638_v24, %v3572_v6 }
 0x332   : > { %3524 = vrot.lane.b32.xlu2 %v3519_v42, %s8178_s8  ;;  %v3575_v42 = vmul.f32 %v9644_v38, %v3572_v6  ;;  %v3611_v6 = vmul.f32 %v9632_v0, %v3609_v23 }
 0x333   : > { %v9858_v48 = vpop.permute.xlu1 %2946  ;;  %v9860_v5 = vpop.permute.xlu0 %2944  ;;  %v3588_v61 = vrot.slane %v3574_v25, 2  ;;  %v3585_v44 = vrot.slane %v3573_v2, 2  ;;  %v3613_v2 = vmul.f32 %v9774_v19, %v3609_v23 }
 0x334   : > { %14038 = vst [vmem:[#allocation221_spill] sm:$0xff] %v9858_v48  ;;  %v9862_v12 = vpop.permute.xlu2 %3059  ;;  %v3591_v54 = vrot.slane %v3575_v42, 2  ;;  %v3615_v42 = vmul.f32 %v9780_v22, %v3609_v23  ;;  %v3625_v1 = vrot.slane %v3611_v6, 2 }
 0x335   : > { %14039 = vst [vmem:[#allocation222_spill] sm:$0xff] %v9860_v5  ;;  %v3590_v25 = vsel %vm1443_vm1, %v3588_v61, %v3589_v32  ;;  %v3622_v61 = vrot.slane %v3610_v63, 2  ;;  %v3623_v32 = vrot.slane %v3613_v2, 2 }
 0x336   : > { %14040 = vst [vmem:[#allocation223_spill] sm:$0xff] %v9862_v12  ;;  %v3593_v7 = vsel %vm1443_vm1, %v3591_v54, %v3592_v18  ;;  %v3629_v18 = vrot.slane %v3615_v42, 2 }
 0x337   : > { %v3624_v6 = vsel %vm1443_vm1, %v3622_v61, %v3623_v32  ;;  %v3683_v32 = vstv %s7532_s17  ;;  %s7551_s17 = sld [smem:[#allocation9 + $0xa7]] }
 0x339   : > { %3559 = vrot.lane.b32.xlu1 %v3553_v43, %s8179_s26  ;;  %3557 = vrot.lane.b32.xlu0 %v3550_v10, %s8179_s26  ;;  %v3614_v43 = vmul.f32 %v9767_v26, %v3609_v23  ;;  %v3587_v10 = vsel %vm1443_vm1, %v3585_v44, %v3586_v53  ;;  %v3646_v44 = vstv %s7531_s24  ;;  %s7550_s24 = sld [smem:[#allocation9 + $0x3b]] }
 0x33a   : > { %3561 = vrot.lane.b32.xlu2 %v3556_v21, %s8179_s26  ;;  %v3612_v21 = vmul.f32 %v9644_v38, %v3609_v23  ;;  %v3650_v63 = vmul.f32 %v9774_v19, %v3646_v44 }
 0x33b   : > { %v9876_v12 = vpop.permute.xlu1 %2983  ;;  %v9878_v5 = vpop.permute.xlu0 %2981 }
 0x33c   : > { %14041 = vst [vmem:[#allocation224_spill] sm:$0xff] %v9876_v12  ;;  %v9880_v48 = vpop.permute.xlu2 %3096  ;;  %v3628_v54 = vrot.slane %v3612_v21, 2  ;;  %v3652_v21 = vmul.f32 %v9780_v22, %v3646_v44  ;;  %v3660_v61 = vrot.slane %v3650_v63, 2 }
 0x33d   : > { %14042 = vst [vmem:[#allocation225_spill] sm:$0xff] %v9878_v5 }
 0x33e   : > { %14043 = vst [vmem:[#allocation226_spill] sm:$0xff] %v9880_v48  ;;  %v3626_v48 = vrot.slane %v3614_v43, 2  ;;  %v3651_v43 = vmul.f32 %v9767_v26, %v3646_v44  ;;  %v3630_v2 = vsel %vm1443_vm1, %v3628_v54, %v3629_v18  ;;  %v3666_v18 = vrot.slane %v3652_v21, 2 }
 0x340   : > { %v3627_v23 = vsel %vm1443_vm1, %v3625_v1, %v3626_v48  ;;  %v3663_v42 = vrot.slane %v3651_v43, 2 }
 0x341   : > { %3596 = vrot.lane.b32.xlu1 %v3590_v25, %s8179_s26  ;;  %3594 = vrot.lane.b32.xlu0 %v3587_v10, %s8179_s26  ;;  %v3648_v25 = vmul.f32 %v9632_v0, %v3646_v44  ;;  %v3647_v10 = vmul.f32 %v9638_v24, %v3646_v44 }
 0x342   : > { %3598 = vrot.lane.b32.xlu2 %v3593_v7, %s8179_s26  ;;  %v3649_v7 = vmul.f32 %v9644_v38, %v3646_v44  ;;  %v3685_v44 = vmul.f32 %v9632_v0, %v3683_v32 }
 0x343   : > { %v9894_v53 = vpop.permute.xlu1 %3020  ;;  %v9896_v5 = vpop.permute.xlu0 %3018  ;;  %v3662_v48 = vrot.slane %v3648_v25, 2  ;;  %v3659_v1 = vrot.slane %v3647_v10, 2  ;;  %v3684_v25 = vmul.f32 %v9638_v24, %v3683_v32 }
 0x344   : > { %14044 = vst [vmem:[#allocation227_spill] sm:$0xff] %v9894_v53  ;;  %v9898_v12 = vpop.permute.xlu2 %3191  ;;  %v3665_v54 = vrot.slane %v3649_v7, 2  ;;  %v3689_v7 = vmul.f32 %v9780_v22, %v3683_v32  ;;  %v3699_v21 = vrot.slane %v3685_v44, 2 }
 0x345   : > { %14045 = vst [vmem:[#allocation228_spill] sm:$0xff] %v9896_v5  ;;  %v3664_v43 = vsel %vm1443_vm1, %v3662_v48, %v3663_v42  ;;  %v3661_v10 = vsel %vm1443_vm1, %v3659_v1, %v3660_v61  ;;  %v3720_v61 = vstv %s7533_s20  ;;  %s7552_s20 = sld [smem:[#allocation9 + $0x3c]] }
 0x346   : > { %14046 = vst [vmem:[#allocation229_spill] sm:$0xff] %v9898_v12  ;;  %v3667_v63 = vsel %vm1443_vm1, %v3665_v54, %v3666_v18  ;;  %v3703_v1 = vrot.slane %v3689_v7, 2  ;;  %v3722_v44 = vmul.f32 %v9632_v0, %v3720_v61 }
 0x349   : > { %3633 = vrot.lane.b32.xlu1 %v3627_v23, %s8180_s13  ;;  %3631 = vrot.lane.b32.xlu0 %v3624_v6, %s8180_s13  ;;  %v3688_v23 = vmul.f32 %v9767_v26, %v3683_v32  ;;  %v3687_v6 = vmul.f32 %v9774_v19, %v3683_v32 }
 0x34a   : > { %3635 = vrot.lane.b32.xlu2 %v3630_v2, %s8180_s13  ;;  %v3686_v2 = vmul.f32 %v9644_v38, %v3683_v32 }
 0x34b   : > { %v9912_v12 = vpop.permute.xlu1 %3057  ;;  %v9914_v5 = vpop.permute.xlu0 %3055 }
 0x34c   : > { %14047 = vst [vmem:[#allocation230_spill] sm:$0xff] %v9912_v12  ;;  %v9916_v53 = vpop.permute.xlu2 %3228  ;;  %v3697_v12 = vrot.slane %v3687_v6, 2  ;;  %v3702_v42 = vrot.slane %v3686_v2, 2  ;;  %v3724_v6 = vmul.f32 %v9774_v19, %v3720_v61 }
 0x34d   : > { %14048 = vst [vmem:[#allocation231_spill] sm:$0xff] %v9914_v5  ;;  %v3696_v5 = vrot.slane %v3684_v25, 2  ;;  %v3721_v25 = vmul.f32 %v9638_v24, %v3720_v61 }
 0x34e   : > { %14049 = vst [vmem:[#allocation232_spill] sm:$0xff] %v9916_v53  ;;  %v3700_v53 = vrot.slane %v3688_v23, 2  ;;  %v3725_v23 = vmul.f32 %v9767_v26, %v3720_v61  ;;  %v3734_v24 = vrot.slane %v3724_v6, 2 }
 0x34f   : > { %v3698_v18 = vsel %vm1443_vm1, %v3696_v5, %v3697_v12  ;;  %v3736_v12 = vrot.slane %v3722_v44, 2  ;;  %v3733_v26 = vrot.slane %v3721_v25, 2  ;;  %v9971_v44 = vld [vmem:[%s8411_s21 + $0x40] sm:$0xff] }
 0x350   : > { %v3701_v32 = vsel %vm1443_vm1, %v3699_v21, %v3700_v53  ;;  %v3737_v0 = vrot.slane %v3725_v23, 2 }
 0x351   : > { %3670 = vrot.lane.b32.xlu1 %v3664_v43, %s8180_s13  ;;  %3668 = vrot.lane.b32.xlu0 %v3661_v10, %s8180_s13  ;;  %v3704_v43 = vsel %vm1443_vm1, %v3702_v42, %v3703_v1  ;;  %v3723_v10 = vmul.f32 %v9644_v38, %v3720_v61  ;;  %v3735_v7 = vsel %vm1443_vm1, %v3733_v26, %v3734_v24  ;;  %v3781_v42 = vstv %s7542_s11  ;;  %v9961_v1 = vld [vmem:[%s8411_s21 + $0x38] sm:$0xff]  ;;  %s7553_s11 = sld [smem:[#allocation9 + $0xa8]] }
 0x352   : > { %3672 = vrot.lane.b32.xlu2 %v3667_v63, %s8180_s13  ;;  %v3726_v63 = vmul.f32 %v9780_v22, %v3720_v61  ;;  %v3738_v2 = vsel %vm1443_vm1, %v3736_v12, %v3737_v0  ;;  %v9964_v61 = vld [vmem:[%s8411_s21 + $0x30] sm:$0xff]  ;;  %v3783_v25 = vmul.f32 %v9961_v1, %v3781_v42 }
 0x353   : > { %v9930_v40 = vpop.permute.xlu1 %3094  ;;  %v9932_v48 = vpop.permute.xlu0 %3092  ;;  %v3739_v38 = vrot.slane %v3723_v10, 2  ;;  %v3782_v6 = vmul.f32 %v9964_v61, %v3781_v42  ;;  %v3803_v10 = vstv %s7543_s29  ;;  %s402_s29 = sld [smem:[#allocation9]] }
 0x354   : > { %v9934_v54 = vpop.permute.xlu2 %3265  ;;  %v3740_v22 = vrot.slane %v3726_v63, 2  ;;  %v3805_v26 = vmul.f32 %v9961_v1, %v3803_v10  ;;  %v3804_v24 = vmul.f32 %v9964_v61, %v3803_v10 }
 0x355   : > { %14050 = vst [vmem:[#allocation233_spill] sm:$0xff] %v9934_v54 }
 0x356   : > { %v3741_v21 = vsel %vm1443_vm1, %v3739_v38, %v3740_v22  ;;  %v3806_v38 = vmul.f32 %v9971_v44, %v3803_v10  ;;  %v3825_v22 = vstv %s7544_s15  ;;  %s7421_s15 = sld [smem:[#allocation9 + $0x6c]] }
 0x359   : > { %3707 = vrot.lane.b32.xlu1 %v3701_v32, %s8181_s4  ;;  %3705 = vrot.lane.b32.xlu0 %v3698_v18, %s8181_s4 }
 0x35a   : > { %3709 = vrot.lane.b32.xlu2 %v3704_v43, %s8181_s4  ;;  %v3784_v43 = vmul.f32 %v9971_v44, %v3781_v42  ;;  %v3827_v42 = vmul.f32 %v9961_v1, %v3825_v22 }
 0x35b   : > { %v9948_v19 = vpop.permute.xlu1 %3189  ;;  %v9950_v5 = vpop.permute.xlu0 %3187 }
 0x35c   : > { %14051 = vst [vmem:[#allocation234_spill] sm:$0xff] %v9948_v19  ;;  %v9952_v53 = vpop.permute.xlu2 %3302 }
 0x35d   : > { %14052 = vst [vmem:[#allocation235_spill] sm:$0xff] %v9950_v5 }
 0x35e   : > { %14053 = vst [vmem:[#allocation236_spill] sm:$0xff] %v9952_v53 }
 0x361   : > { %3744 = vrot.lane.b32.xlu1 %v3738_v2, %s8181_s4  ;;  %3742 = vrot.lane.b32.xlu0 %v3735_v7, %s8181_s4 }
 0x362   : > { %3746 = vrot.lane.b32.xlu2 %v3741_v21, %s8181_s4 }
 0x363   : > { %v9966_v32 = vpop.permute.xlu1 %3226  ;;  %v9968_v18 = vpop.permute.xlu0 %3224 }
 0x364   : > { %14054 = vst [vmem:[#allocation237_spill] sm:$0xff] %v9966_v32  ;;  %v9973_v23 = vpop.permute.xlu2 %3339  ;;  %v10132_v32 = vld [vmem:[%s8411_s21] sm:$0xff] }
 0x365   : > { %14055 = vst [vmem:[#allocation238_spill] sm:$0xff] %v9968_v18 }
 0x366   : > { %14056 = vst [vmem:[#allocation239_spill] sm:$0xff] %v9973_v23 }
 0x369   : > { %3790 = vrot.lane.b32.xlu1 %v3783_v25, %s8174_s10  ;;  %3788 = vrot.lane.b32.xlu0 %v3782_v6, %s8174_s10  ;;  %v3826_v25 = vmul.f32 %v9964_v61, %v3825_v22  ;;  %v3828_v6 = vmul.f32 %v9971_v44, %v3825_v22 }
 0x36a   : > { %3792 = vrot.lane.b32.xlu2 %v3784_v43, %s8174_s10  ;;  %v3847_v43 = vstv %s7545_s0  ;;  %s7554_s0 = sld [smem:[#allocation9 + $0x3d]] }
 0x36b   : > { %v9981_v63 = vpop.permute.xlu1 %3263  ;;  %v9983_v12 = vpop.permute.xlu0 %3261  ;;  %v3850_v22 = vmul.f32 %v9971_v44, %v3847_v43 }
 0x36c   : > { %14057 = vst [vmem:[#allocation240_spill] sm:$0xff] %v9981_v63  ;;  %v9985_v0 = vpop.permute.xlu2 %3376 }
 0x36d   : > { %14058 = vst [vmem:[#allocation241_spill] sm:$0xff] %v9983_v12  ;;  %v10128_v12 = vld [vmem:[%s8411_s21 + $0x8] sm:$0xff] }
 0x36e   : > { %14059 = vst [vmem:[#allocation242_spill] sm:$0xff] %v9985_v0 }
 0x371   : > { %3812 = vrot.lane.b32.xlu1 %v3805_v26, %s8174_s10  ;;  %3810 = vrot.lane.b32.xlu0 %v3804_v24, %s8174_s10 }
 0x372   : > { %3814 = vrot.lane.b32.xlu2 %v3806_v38, %s8174_s10  ;;  %v3849_v38 = vmul.f32 %v9961_v1, %v3847_v43 }
 0x373   : > { %v9993_v2 = vpop.permute.xlu1 %3300  ;;  %v9995_v7 = vpop.permute.xlu0 %3298 }
 0x374   : > { %14060 = vst [vmem:[#allocation243_spill] sm:$0xff] %v9993_v2  ;;  %v9997_v21 = vpop.permute.xlu2 %3413 }
 0x375   : > { %14061 = vst [vmem:[#allocation244_spill] sm:$0xff] %v9995_v7 }
 0x376   : > { %14062 = vst [vmem:[#allocation245_spill] sm:$0xff] %v9997_v21  ;;  %v3848_v21 = vmul.f32 %v9964_v61, %v3847_v43 }
 0x379   : > { %3834 = vrot.lane.b32.xlu1 %v3827_v42, %s8175_s19  ;;  %3832 = vrot.lane.b32.xlu0 %v3826_v25, %s8175_s19  ;;  %v3869_v42 = vstv %s7546_s30  ;;  %s392_s30 = sld [smem:[#allocation10]] }
 0x37a   : > { %3836 = vrot.lane.b32.xlu2 %v3828_v6, %s8175_s19  ;;  %v3872_v43 = vmul.f32 %v9971_v44, %v3869_v42 }
 0x37b   : > { %v10005_v10 = vpop.permute.xlu1 %3337  ;;  %v10007_v26 = vpop.permute.xlu0 %3335 }
 0x37c   : > { %14063 = vst [vmem:[#allocation246_spill] sm:$0xff] %v10005_v10  ;;  %v10009_v24 = vpop.permute.xlu2 %3450  ;;  %v3870_v10 = vmul.f32 %v9964_v61, %v3869_v42 }
 0x37d   : > { %14064 = vst [vmem:[#allocation247_spill] sm:$0xff] %v10007_v26 }
 0x37e   : > { %14065 = vst [vmem:[#allocation248_spill] sm:$0xff] %v10009_v24  ;;  %v3871_v24 = vmul.f32 %v9961_v1, %v3869_v42 }
 0x381   : > { %3856 = vrot.lane.b32.xlu1 %v3849_v38, %s8175_s19  ;;  %3854 = vrot.lane.b32.xlu0 %v3848_v21, %s8175_s19  ;;  %v3891_v21 = vstv %s7547_s12  ;;  %s7420_s12 = sld [smem:[#allocation10 + $0x1]] }
 0x382   : > { %3858 = vrot.lane.b32.xlu2 %v3850_v22, %s8175_s19  ;;  %v3894_v42 = vmul.f32 %v9971_v44, %v3891_v21 }
 0x383   : > { %v10017_v25 = vpop.permute.xlu1 %3374  ;;  %v10019_v6 = vpop.permute.xlu0 %3372 }
 0x384   : > { %14066 = vst [vmem:[#allocation249_spill] sm:$0xff] %v10017_v25  ;;  %v10021_v26 = vpop.permute.xlu2 %3487  ;;  %v3892_v25 = vmul.f32 %v9964_v61, %v3891_v21 }
 0x385   : > { %14067 = vst [vmem:[#allocation250_spill] sm:$0xff] %v10019_v6 }
 0x386   : > { %14068 = vst [vmem:[#allocation251_spill] sm:$0xff] %v10021_v26  ;;  %v3893_v26 = vmul.f32 %v9961_v1, %v3891_v21 }
 0x387   : > { %v395_v23 = vstv %s7420_s12  ;;  %s10444_s12 = sld [smem:[#allocation9 + $0xae]] }
 0x389   : > { %3878 = vrot.lane.b32.xlu1 %v3871_v24, %s8176_s14  ;;  %3876 = vrot.lane.b32.xlu0 %v3870_v10, %s8176_s14  ;;  %v3913_v10 = vstv %s7548_s16  ;;  %s7555_s16 = sld [smem:[#allocation9 + $0xa9]] }
 0x38a   : > { %3880 = vrot.lane.b32.xlu2 %v3872_v43, %s8176_s14  ;;  %v3916_v21 = vmul.f32 %v9971_v44, %v3913_v10 }
 0x38b   : > { %v10029_v38 = vpop.permute.xlu1 %3411  ;;  %v10031_v22 = vpop.permute.xlu0 %3409 }
 0x38c   : > { %14069 = vst [vmem:[#allocation252_spill] sm:$0xff] %v10029_v38  ;;  %v10033_v6 = vpop.permute.xlu2 %3524  ;;  %v3914_v38 = vmul.f32 %v9964_v61, %v3913_v10 }
 0x38d   : > { %14070 = vst [vmem:[#allocation253_spill] sm:$0xff] %v10031_v22 }
 0x38e   : > { %14071 = vst [vmem:[#allocation254_spill] sm:$0xff] %v10033_v6  ;;  %v3915_v6 = vmul.f32 %v9961_v1, %v3913_v10 }
 0x391   : > { %3900 = vrot.lane.b32.xlu1 %v3893_v26, %s8176_s14  ;;  %3898 = vrot.lane.b32.xlu0 %v3892_v25, %s8176_s14  ;;  %v3935_v26 = vstv %s7549_s2  ;;  %s10140_s2 = sld [smem:[#allocation9 + $0x3e]] }
 0x392   : > { %3902 = vrot.lane.b32.xlu2 %v3894_v42, %s8176_s14  ;;  %v3938_v10 = vmul.f32 %v9971_v44, %v3935_v26 }
 0x393   : > { %v10041_v24 = vpop.permute.xlu1 %3448  ;;  %v10043_v43 = vpop.permute.xlu0 %3446 }
 0x394   : > { %14072 = vst [vmem:[#allocation255_spill] sm:$0xff] %v10041_v24  ;;  %v10045_v22 = vpop.permute.xlu2 %3561  ;;  %v3936_v24 = vmul.f32 %v9964_v61, %v3935_v26 }
 0x395   : > { %14073 = vst [vmem:[#allocation256_spill] sm:$0xff] %v10043_v43 }
 0x396   : > { %14074 = vst [vmem:[#allocation257_spill] sm:$0xff] %v10045_v22  ;;  %v3937_v22 = vmul.f32 %v9961_v1, %v3935_v26 }
 0x399   : > { %3922 = vrot.lane.b32.xlu1 %v3915_v6, %s8177_s9  ;;  %3920 = vrot.lane.b32.xlu0 %v3914_v38, %s8177_s9  ;;  %v3957_v6 = vstv %s7550_s24  ;;  %s10148_s24 = sld [smem:[#allocation9 + $0x9]] }
 0x39a   : > { %3924 = vrot.lane.b32.xlu2 %v3916_v21, %s8177_s9  ;;  %v3960_v26 = vmul.f32 %v9971_v44, %v3957_v6 }
 0x39b   : > { %v10053_v25 = vpop.permute.xlu1 %3485  ;;  %v10055_v42 = vpop.permute.xlu0 %3483 }
 0x39c   : > { %14075 = vst [vmem:[#allocation258_spill] sm:$0xff] %v10053_v25  ;;  %v10057_v43 = vpop.permute.xlu2 %3598  ;;  %v3958_v25 = vmul.f32 %v9964_v61, %v3957_v6 }
 0x39d   : > { %14076 = vst [vmem:[#allocation259_spill] sm:$0xff] %v10055_v42 }
 0x39e   : > { %14077 = vst [vmem:[#allocation260_spill] sm:$0xff] %v10057_v43  ;;  %v3959_v43 = vmul.f32 %v9961_v1, %v3957_v6 }
 0x3a1   : > { %3944 = vrot.lane.b32.xlu1 %v3937_v22, %s8177_s9  ;;  %3942 = vrot.lane.b32.xlu0 %v3936_v24, %s8177_s9  ;;  %v3979_v22 = vstv %s7551_s17  ;;  %s10158_s17 = sld [smem:[#allocation9 + $0x75]] }
 0x3a2   : > { %3946 = vrot.lane.b32.xlu2 %v3938_v10, %s8177_s9  ;;  %v3982_v6 = vmul.f32 %v9971_v44, %v3979_v22 }
 0x3a3   : > { %v10065_v38 = vpop.permute.xlu1 %3522  ;;  %v10067_v21 = vpop.permute.xlu0 %3520 }
 0x3a4   : > { %14078 = vst [vmem:[#allocation261_spill] sm:$0xff] %v10065_v38  ;;  %v10069_v42 = vpop.permute.xlu2 %3635  ;;  %v3980_v38 = vmul.f32 %v9964_v61, %v3979_v22 }
 0x3a5   : > { %14079 = vst [vmem:[#allocation262_spill] sm:$0xff] %v10067_v21 }
 0x3a6   : > { %14080 = vst [vmem:[#allocation263_spill] sm:$0xff] %v10069_v42  ;;  %v3981_v42 = vmul.f32 %v9961_v1, %v3979_v22 }
 0x3a9   : > { %3966 = vrot.lane.b32.xlu1 %v3959_v43, %s8178_s8  ;;  %3964 = vrot.lane.b32.xlu0 %v3958_v25, %s8178_s8  ;;  %v4001_v43 = vstv %s7552_s20  ;;  %s10186_s20 = sld [smem:[#allocation9 + $0xaa]] }
 0x3aa   : > { %3968 = vrot.lane.b32.xlu2 %v3960_v26, %s8178_s8  ;;  %v4004_v22 = vmul.f32 %v9971_v44, %v4001_v43 }
 0x3ab   : > { %v10077_v24 = vpop.permute.xlu1 %3559  ;;  %v10079_v10 = vpop.permute.xlu0 %3557 }
 0x3ac   : > { %14081 = vst [vmem:[#allocation264_spill] sm:$0xff] %v10077_v24  ;;  %v10081_v21 = vpop.permute.xlu2 %3672  ;;  %v4002_v24 = vmul.f32 %v9964_v61, %v4001_v43 }
 0x3ad   : > { %14082 = vst [vmem:[#allocation265_spill] sm:$0xff] %v10079_v10 }
 0x3ae   : > { %14083 = vst [vmem:[#allocation266_spill] sm:$0xff] %v10081_v21  ;;  %v4003_v21 = vmul.f32 %v9961_v1, %v4001_v43 }
 0x3b1   : > { %3988 = vrot.lane.b32.xlu1 %v3981_v42, %s8178_s8  ;;  %3986 = vrot.lane.b32.xlu0 %v3980_v38, %s8178_s8  ;;  %v4023_v42 = vstv %s7553_s11  ;;  %s10191_s11 = sld [smem:[#allocation9 + $0x40]] }
 0x3b2   : > { %3990 = vrot.lane.b32.xlu2 %v3982_v6, %s8178_s8  ;;  %v4025_v43 = vmul.f32 %v9961_v1, %v4023_v42 }
 0x3b3   : > { %v10089_v25 = vpop.permute.xlu1 %3596  ;;  %v10091_v26 = vpop.permute.xlu0 %3594 }
 0x3b4   : > { %14084 = vst [vmem:[#allocation267_spill] sm:$0xff] %v10089_v25  ;;  %v10093_v10 = vpop.permute.xlu2 %3709 }
 0x3b5   : > { %14085 = vst [vmem:[#allocation268_spill] sm:$0xff] %v10091_v26  ;;  %v4024_v26 = vmul.f32 %v9964_v61, %v4023_v42 }
 0x3b6   : > { %14086 = vst [vmem:[#allocation269_spill] sm:$0xff] %v10093_v10 }
 0x3b9   : > { %4010 = vrot.lane.b32.xlu1 %v4003_v21, %s8179_s26  ;;  %4008 = vrot.lane.b32.xlu0 %v4002_v24, %s8179_s26  ;;  %v4026_v21 = vmul.f32 %v9971_v44, %v4023_v42  ;;  %v403_v24 = vstv %s402_s29  ;;  %s10252_s29 = sld [smem:[#allocation9 + $0xac]] }
 0x3ba   : > { %4012 = vrot.lane.b32.xlu2 %v4004_v22, %s8179_s26  ;;  %v411_v22 = vstv %s7421_s15  ;;  %s10304_s15 = sld [smem:[#allocation9 + $0x41]] }
 0x3bb   : > { %v10101_v38 = vpop.permute.xlu1 %3633  ;;  %v10103_v6 = vpop.permute.xlu0 %3631  ;;  %v413_v63 = vmul.f32 %v10128_v12, %v411_v22 }
 0x3bc   : > { %14087 = vst [vmem:[#allocation270_spill] sm:$0xff] %v10101_v38  ;;  %v10105_v10 = vpop.permute.xlu2 %3746 }
 0x3bd   : > { %14088 = vst [vmem:[#allocation271_spill] sm:$0xff] %v10103_v6  ;;  %v4045_v6 = vstv %s7554_s0  ;;  %s10351_s0 = sld [smem:[#allocation9 + $0xad]] }
 0x3be   : > { %14089 = vst [vmem:[#allocation272_spill] sm:$0xff] %v10105_v10  ;;  %v10114_v10 = vld [vmem:[%s8411_s21 + $0x10] sm:$0xff]  ;;  %v4048_v2 = vmul.f32 %v9971_v44, %v4045_v6 }
 0x3bf   : > { %v414_v38 = vmul.f32 %v10114_v10, %v411_v22  ;;  %v406_v25 = vmul.f32 %v10114_v10, %v403_v24 }
 0x3c1   : > { %4032 = vrot.lane.b32.xlu1 %v4025_v43, %s8179_s26  ;;  %4030 = vrot.lane.b32.xlu0 %v4024_v26, %s8179_s26  ;;  %v393_v43 = vstv %s392_s30  ;;  %v4047_v26 = vmul.f32 %v9961_v1, %v4045_v6  ;;  %v417_v18 = vadd.f32 %v414_v38, %v395_v23  ;;  %v416_v38 = vadd.f32 %v413_v63, %v395_v23  ;;  %s10399_s30 = sld [smem:[#allocation9 + $0x42]] }
 0x3c2   : > { %4034 = vrot.lane.b32.xlu2 %v4026_v21, %s8179_s26  ;;  %v4046_v21 = vmul.f32 %v9964_v61, %v4045_v6  ;;  %v409_v53 = vadd.f32 %v406_v25, %v393_v43  ;;  %v4067_v6 = vstv %s7555_s16  ;;  %v433_v63 = vsel %vm432_vm2, %v8546_v9, %v8570_v28  ;;  %s10485_s16 = sld [smem:[#allocation9 + $0x43]] }
 0x3c3   : > { %v10118_v0 = vpop.permute.xlu1 %3670  ;;  %v10120_v42 = vpop.permute.xlu0 %3668  ;;  %v462_v25 = vadd.f32 %v8525_v57, %v417_v18  ;;  %v4069_v18 = vmul.f32 %v9961_v1, %v4067_v6  ;;  %v4070_v9 = vmul.f32 %v9971_v44, %v4067_v6 }
 0x3c4   : > { %14090 = vst [vmem:[#allocation273_spill] sm:$0xff] %v10118_v0  ;;  %v10122_v7 = vpop.permute.xlu2 %3792  ;;  %v405_v0 = vmul.f32 %v10128_v12, %v403_v24  ;;  %v440_v5 = vadd.f32 %v8544_v8, %v409_v53  ;;  %v434_v53 = vsel %vm432_vm2, %v8570_v28, %v8544_v8  ;;  %v479_v28 = vsel %vm477_vm3, %v8586_v46, %v8533_v62 }
 0x3c5   : > { %14091 = vst [vmem:[#allocation274_spill] sm:$0xff] %v10120_v42  ;;  %v412_v42 = vmul.f32 %v10132_v32, %v411_v22  ;;  %v507_v8 = vadd.f32 %v8551_v11, %v462_v25 }
 0x3c6   : > { %14092 = vst [vmem:[#allocation275_spill] sm:$0xff] %v10122_v7  ;;  %v404_v7 = vmul.f32 %v10132_v32, %v403_v24 }
 0x3c7   : > { %v415_v24 = vadd.f32 %v412_v42, %v395_v23  ;;  %v4068_v23 = vmul.f32 %v9964_v61, %v4067_v6  ;;  %v485_v42 = vadd.f32 %v8533_v62, %v440_v5  ;;  %v552_v62 = vadd.f32 %v8590_v50, %v507_v8 }
 0x3c8   : > { %v407_v54 = vadd.f32 %v404_v7, %v393_v43  ;;  %v455_v7 = vsel %vm432_vm2, %v8568_v27, %v8517_v52  ;;  %v500_v27 = vsel %vm477_vm3, %v8606_v14, %v8604_v13 }
 0x3c9   : > { %4054 = vrot.lane.b32.xlu1 %v4047_v26, %s8180_s13  ;;  %4052 = vrot.lane.b32.xlu0 %v4046_v21, %s8180_s13  ;;  %v408_v26 = vadd.f32 %v405_v0, %v393_v43  ;;  %v456_v0 = vsel %vm432_vm2, %v8517_v52, %v8525_v57  ;;  %v478_v43 = vsel %vm477_vm3, %v8588_v47, %v8586_v46  ;;  %v4089_v47 = vstv %s10140_s2  ;;  %s10504_s2 = sld [smem:[#allocation9 + $0x12]] }
 0x3ca   : > { %4056 = vrot.lane.b32.xlu2 %v4048_v2, %s8180_s13  ;;  %v438_v57 = vadd.f32 %v433_v63, %v407_v54  ;;  %v501_v52 = vsel %vm477_vm3, %v8604_v13, %v8551_v11  ;;  %v461_v5 = vadd.f32 %v456_v0, %v416_v38  ;;  %v530_v6 = vadd.f32 %v8572_v31, %v485_v42 }
 0x3cb   : > { %v10144_v22 = vpop.permute.xlu1 %3707  ;;  %v10146_v19 = vpop.permute.xlu0 %3705  ;;  %v439_v21 = vadd.f32 %v434_v53, %v408_v26  ;;  %v460_v25 = vadd.f32 %v455_v7, %v415_v24  ;;  %v524_v38 = vsel %vm522_vm4, %v8622_v35, %v8572_v31  ;;  %v597_v63 = vadd.f32 %v8626_v39, %v552_v62 }
 0x3cc   : > { %v10150_v2 = vpop.permute.xlu2 %3814  ;;  %v483_v11 = vadd.f32 %v478_v43, %v438_v57  ;;  %v575_v13 = vadd.f32 %v8608_v17, %v530_v6  ;;  %v506_v14 = vadd.f32 %v501_v52, %v461_v5  ;;  %v523_v53 = vsel %vm522_vm4, %v8624_v36, %v8622_v35  ;;  %v10231_v57 = vld [vmem:[%s8418_s18 + $0x10] sm:$0x3] }
 0x3cd   : > { %v484_v46 = vadd.f32 %v479_v28, %v439_v21  ;;  %v505_v54 = vadd.f32 %v500_v27, %v460_v25  ;;  %v546_v31 = vsel %vm522_vm4, %v8640_v59, %v8590_v50  ;;  %v10214_v0 = vstv %s10158_s17  ;;  %s10534_s17 = sld [smem:[#allocation9 + $0xaf]] }
 0x3ce   : > { %v4091_v7 = vmul.f32 %v9961_v1, %v4089_v47  ;;  %v545_v35 = vsel %vm522_vm4, %v8642_v60, %v8640_v59  ;;  %v569_v36 = vsel %vm567_vm5, %v8658_v29, %v8608_v17  ;;  %v4092_v8 = vmul.f32 %v9971_v44, %v4089_v47 }
 0x3cf   : > { %v529_v42 = vadd.f32 %v524_v38, %v484_v46  ;;  %v528_v28 = vadd.f32 %v523_v53, %v483_v11  ;;  %v568_v50 = vsel %vm567_vm5, %v8660_v30, %v8658_v29  ;;  %v620_v17 = vadd.f32 %v8644_v3, %v575_v13  ;;  %v10250_v46 = vld [vmem:[%s8418_s18 + $0x38] sm:$0x3]  ;;  %v10263_v38 = vld [vmem:[%s8418_s18 + $0x30] sm:$0x3] }
 0x3d0   : > { %v551_v60 = vadd.f32 %v546_v31, %v506_v14  ;;  %v812_v21 = vmul.f32 %v10114_v10, %v10214_v0  ;;  %v815_v29 = vmul.f32 %v10231_v57, %v10214_v0  ;;  %v550_v30 = vadd.f32 %v545_v35, %v505_v54 }
 0x3d1   : > { %4076 = vrot.lane.b32.xlu1 %v4069_v18, %s8180_s13  ;;  %4074 = vrot.lane.b32.xlu0 %v4068_v23, %s8180_s13  ;;  %v10206_v18 = vstv %s10148_s24  ;;  %v642_v52 = vadd.f32 %v8662_v34, %v597_v63  ;;  %v574_v27 = vadd.f32 %v569_v36, %v529_v42  ;;  %v573_v5 = vadd.f32 %v568_v50, %v528_v28  ;;  %s10528_s24 = sld [smem:[#allocation9 + $0x7e]] }
 0x3d2   : > { %4078 = vrot.lane.b32.xlu2 %v4070_v9, %s8180_s13  ;;  %v4090_v9 = vmul.f32 %v9964_v61, %v4089_v47  ;;  %v782_v43 = vmul.f32 %v10114_v10, %v10206_v18  ;;  %v785_v59 = vmul.f32 %v10231_v57, %v10206_v18  ;;  %v591_v6 = vsel %vm567_vm5, %v8676_v56, %v8626_v39 }
 0x3d3   : > { %v10197_v24 = vpop.permute.xlu1 %3744  ;;  %v10199_v26 = vpop.permute.xlu0 %3742  ;;  %v4111_v25 = vstv %s10186_s20  ;;  %v4191_v62 = vstv %s10191_s11  ;;  %v665_v11 = vadd.f32 %v8680_v4, %v620_v17  ;;  %v590_v47 = vsel %vm567_vm5, %v8678_v58, %v8676_v56  ;;  %v10274_v56 = vld [vmem:[%s8418_s18 + $0x40] sm:$0x3]  ;;  %s10577_s20 = sld [smem:[#allocation9 + $0x44]] }
 0x3d4   : > { %v10208_v23 = vpop.permute.xlu2 %3836  ;;  %v799_v13 = vrot.slane %v782_v43, 1  ;;  %v800_v14 = vrot.slane %v785_v59, 1  ;;  %v614_v63 = vsel %vm612_vm6, %v8694_v33, %v8644_v3  ;;  %v613_v53 = vsel %vm612_vm6, %v8696_v37, %v8694_v33  ;;  %s10628_s11 = sld [smem:[#allocation9 + $0xb0]] }
 0x3d5   : > { %v828_v31 = vrot.slane %v812_v21, 1  ;;  %v4113_v58 = vmul.f32 %v9961_v1, %v4111_v25  ;;  %v4112_v42 = vmul.f32 %v9964_v61, %v4111_v25  ;;  %v4193_v35 = vmul.f32 %v9961_v1, %v4191_v62 }
 0x3d6   : > { %v4196_v36 = vmul.f32 %v10250_v46, %v4191_v62  ;;  %v4114_v3 = vmul.f32 %v9971_v44, %v4111_v25  ;;  %v4192_v28 = vmul.f32 %v9964_v61, %v4191_v62  ;;  %v4195_v33 = vmul.f32 %v10263_v38, %v4191_v62 }
 0x3d7   : > { %v595_v37 = vadd.f32 %v590_v47, %v550_v30  ;;  %v10284_v50 = vsel %vm792_vm0, %v799_v13, %v800_v14  ;;  %v4194_v43 = vmul.f32 %v9971_v44, %v4191_v62  ;;  %v4197_v59 = vmul.f32 %v10274_v56, %v4191_v62  ;;  %v10308_v13 = vld [vmem:[%s8418_s18 + $0x8] sm:$0x3] }
 0x3d8   : > { %v687_v17 = vadd.f32 %v8698_v41, %v642_v52  ;;  %v619_v21 = vadd.f32 %v614_v63, %v574_v27  ;;  %v636_v30 = vsel %vm612_vm6, %v8712_v15, %v8662_v34  ;;  %v4207_v25 = vrot.slane %v4193_v35, 1 }
 0x3d9   : > { %4098 = vrot.lane.b32.xlu1 %v4091_v7, %s8181_s4  ;;  %4096 = vrot.lane.b32.xlu0 %v4090_v9, %s8181_s4  ;;  %v829_v7 = vrot.slane %v815_v29, 1  ;;  %v4208_v62 = vrot.slane %v4196_v36, 1  ;;  %v635_v52 = vsel %vm612_vm6, %v8714_v16, %v8712_v15  ;;  %v4204_v27 = vrot.slane %v4192_v28, 1  ;;  %v10327_v36 = vld [vmem:[%s8418_s18] sm:$0x3] }
 0x3da   : > { %4100 = vrot.lane.b32.xlu2 %v4092_v8, %s8181_s4  ;;  %v596_v8 = vadd.f32 %v591_v6, %v551_v60  ;;  %v618_v60 = vadd.f32 %v613_v53, %v573_v5  ;;  %v781_v6 = vmul.f32 %v10128_v12, %v10206_v18  ;;  %v4205_v5 = vrot.slane %v4195_v33, 1 }
 0x3db   : > { %v10258_v54 = vpop.permute.xlu1 %3790  ;;  %v10260_v39 = vpop.permute.xlu0 %3788  ;;  %v10290_v29 = vsel %vm792_vm0, %v828_v31, %v829_v7  ;;  %v4228_v47 = vstv %s10252_s29  ;;  %v710_v34 = vadd.f32 %v8716_v20, %v665_v11  ;;  %v784_v14 = vmul.f32 %v10308_v13, %v10206_v18  ;;  %s10680_s29 = sld [smem:[#allocation9 + $0x45]] }
 0x3dc   : > { %v10271_v9 = vpop.permute.xlu2 %3858  ;;  %v4210_v15 = vrot.slane %v4194_v43, 1  ;;  %v4211_v16 = vrot.slane %v4197_v59, 1  ;;  %v641_v31 = vadd.f32 %v636_v30, %v596_v8  ;;  %v659_v7 = vsel %vm657_vm7, %v8730_v49, %v8680_v4 }
 0x3dd   : > { %v658_v11 = vsel %vm657_vm7, %v8732_v51, %v8730_v49  ;;  %v796_v35 = vrot.slane %v781_v6, 1  ;;  %v4209_v8 = vsel %vm792_vm0, %v4207_v25, %v4208_v62  ;;  %v4230_v28 = vmul.f32 %v9961_v1, %v4228_v47 }
 0x3de   : > { %v4206_v4 = vsel %vm792_vm0, %v4204_v27, %v4205_v5  ;;  %v4233_v49 = vmul.f32 %v10250_v46, %v4228_v47  ;;  %v4229_v51 = vmul.f32 %v9964_v61, %v4228_v47  ;;  %v4232_v33 = vmul.f32 %v10263_v38, %v4228_v47 }
 0x3df   : > { %v797_v43 = vrot.slane %v784_v14, 1  ;;  %v4212_v59 = vsel %vm792_vm0, %v4210_v15, %v4211_v16  ;;  %v4231_v30 = vmul.f32 %v9971_v44, %v4228_v47  ;;  %v640_v6 = vadd.f32 %v635_v52, %v595_v37 }
 0x3e0   : > { %v732_v25 = vadd.f32 %v8734_v55, %v687_v17  ;;  %v664_v62 = vadd.f32 %v659_v7, %v619_v21  ;;  %v811_v5 = vmul.f32 %v10128_v12, %v10214_v0  ;;  %v814_v14 = vmul.f32 %v10308_v13, %v10214_v0 }
 0x3e1   : > { %4120 = vrot.lane.b32.xlu1 %v4113_v58, %s8181_s4  ;;  %4118 = vrot.lane.b32.xlu0 %v4112_v42, %s8181_s4  ;;  %v780_v58 = vmul.f32 %v10132_v32, %v10206_v18  ;;  %v4244_v15 = vrot.slane %v4230_v28, 1  ;;  %v4245_v37 = vrot.slane %v4233_v49, 1  ;;  %v4241_v17 = vrot.slane %v4229_v51, 1  ;;  %v14096_v28 = vld [vmem:[#allocation30_spill] sm:$0xff]  ;;  %v14097_v49 = vld [vmem:[#allocation31_spill] sm:$0xff] }
 0x3e2   : > { %4122 = vrot.lane.b32.xlu2 %v4114_v3, %s8181_s4  ;;  %v783_v3 = vmul.f32 %v10327_v36, %v10206_v18  ;;  %v4234_v18 = vmul.f32 %v10274_v56, %v4228_v47  ;;  %v4242_v21 = vrot.slane %v4232_v33, 1  ;;  %v10354_v52 = vsel %vm792_vm0, %v796_v35, %v797_v43 }
 0x3e3   : > { %v10312_v63 = vpop.permute.xlu1 %3812  ;;  %v10314_v53 = vpop.permute.xlu0 %3810  ;;  %v793_v27 = vrot.slane %v780_v58, 1  ;;  %v680_v51 = vsel %vm657_vm7, %v14097_v49, %v14096_v28  ;;  %v10369_v35 = vmul.f32 %v10132_v32, %v10214_v0  ;;  %v825_v33 = vrot.slane %v811_v5, 1 }
 0x3e4   : > { %v10324_v42 = vpop.permute.xlu2 %3880  ;;  %v794_v47 = vrot.slane %v783_v3, 1  ;;  %v4248_v58 = vrot.slane %v4234_v18, 1  ;;  %v826_v43 = vrot.slane %v814_v14, 1  ;;  %v813_v49 = vmul.f32 %v10327_v36, %v10214_v0 }
 0x3e5   : > { %14093 = vst [vmem:[#allocation276_spill] sm:$0xff] %v10324_v42  ;;  %v10341_v42 = vadd.f32 %v658_v11, %v618_v60  ;;  %v4265_v60 = vstv %s10304_s15  ;;  %v4247_v11 = vrot.slane %v4231_v30, 1  ;;  %v4246_v30 = vsel %vm792_vm0, %v4244_v15, %v4245_v37  ;;  %s10727_s15 = sld [smem:[#allocation9 + $0xb1]] }
 0x3e6   : > { %v4266_v18 = vmul.f32 %v9964_v61, %v4265_v60  ;;  %v4268_v5 = vmul.f32 %v9971_v44, %v4265_v60  ;;  %v4271_v14 = vmul.f32 %v10274_v56, %v4265_v60  ;;  %v10385_v15 = vsel %vm792_vm0, %v793_v27, %v794_v47 }
 0x3e7   : > { %v822_v37 = vrot.slane %v10369_v35, 1  ;;  %v823_v47 = vrot.slane %v813_v49, 1 }
 0x3e8   : > { %v4285_v35 = vrot.slane %v4271_v14, 1 }
 0x3e9   : > { %4215 = vrot.lane.b32.xlu1 %v4209_v8, %s8174_s10  ;;  %4213 = vrot.lane.b32.xlu0 %v4206_v4, %s8174_s10  ;;  %v755_v8 = vadd.f32 %v8752_v45, %v710_v34  ;;  %v681_v4 = vsel %vm657_vm7, %v14096_v28, %v8698_v41  ;;  %v4270_v34 = vmul.f32 %v10250_v46, %v4265_v60 }
 0x3ea   : > { %4217 = vrot.lane.b32.xlu2 %v4212_v59, %s8174_s10  ;;  %v4267_v59 = vmul.f32 %v9961_v1, %v4265_v60  ;;  %v4243_v41 = vsel %vm792_vm0, %v4241_v17, %v4242_v21  ;;  %v4269_v28 = vmul.f32 %v10263_v38, %v4265_v60  ;;  %v14099_v21 = vld [vmem:[#allocation32_spill] sm:$0xff]  ;;  %v4302_v60 = vstv %s10351_s0  ;;  %s10778_s0 = sld [smem:[#allocation9 + $0x46]] }
 0x3eb   : > { %v10356_v16 = vpop.permute.xlu1 %3834  ;;  %v10358_v7 = vpop.permute.xlu0 %3832  ;;  %v807_v17 = vadd.f32 %v10284_v50, %v755_v8  ;;  %v704_v0 = vsel %vm702_vm8, %v14099_v21, %v8716_v20  ;;  %v14100_v50 = vld [vmem:[#allocation33_spill] sm:$0xff] }
 0x3ec   : > { %14094 = vst [vmem:[#allocation277_spill] sm:$0xff] %v10356_v16  ;;  %v10371_v3 = vpop.permute.xlu2 %3902  ;;  %v685_v16 = vadd.f32 %v680_v51, %v640_v6  ;;  %v4278_v6 = vrot.slane %v4266_v18, 1  ;;  %v4279_v27 = vrot.slane %v4269_v28, 1  ;;  %v703_v20 = vsel %vm702_vm8, %v14100_v50, %v14099_v21  ;;  %v14107_v28 = vld [vmem:[#allocation38_spill] sm:$0xff] }
 0x3ed   : > { %14095 = vst [vmem:[#allocation278_spill] sm:$0xff] %v10358_v7  ;;  %v4249_v7 = vsel %vm792_vm0, %v4247_v11, %v4248_v58  ;;  %v4281_v11 = vrot.slane %v4267_v59, 1  ;;  %v4282_v58 = vrot.slane %v4270_v34, 1  ;;  %v4284_v51 = vrot.slane %v4268_v5, 1  ;;  %v14108_v5 = vld [vmem:[#allocation39_spill] sm:$0xff] }
 0x3ee   : > { %14098 = vst [vmem:[#allocation30_spill] sm:$0xff] %v10371_v3  ;;  %v686_v3 = vadd.f32 %v681_v4, %v641_v31  ;;  %v10395_v31 = vsel %vm792_vm0, %v825_v33, %v826_v43  ;;  %v14103_v33 = vld [vmem:[#allocation34_spill] sm:$0xff]  ;;  %v709_v59 = vadd.f32 %v704_v0, %v664_v62  ;;  %v749_v49 = vsel %vm747_vm9, %v14107_v28, %v8752_v45 }
 0x3ef   : > { %v777_v43 = vadd.f32 %v14103_v33, %v732_v25  ;;  %v748_v14 = vsel %vm747_vm9, %v14108_v5, %v14107_v28  ;;  %v4283_v25 = vsel %vm792_vm0, %v4281_v11, %v4282_v58  ;;  %v4304_v62 = vmul.f32 %v9961_v1, %v4302_v60 }
 0x3f0   : > { %v4307_v21 = vmul.f32 %v10250_v46, %v4302_v60  ;;  %v4303_v0 = vmul.f32 %v9964_v61, %v4302_v60  ;;  %v4306_v50 = vmul.f32 %v10263_v38, %v4302_v60  ;;  %v4286_v45 = vsel %vm792_vm0, %v4284_v51, %v4285_v35  ;;  %v14111_v51 = vld [vmem:[#allocation37_spill] sm:$0xff] }
 0x3f1   : > { %4252 = vrot.lane.b32.xlu1 %v4246_v30, %s8174_s10  ;;  %4250 = vrot.lane.b32.xlu0 %v4243_v41, %s8174_s10  ;;  %v14105_v30 = vld [vmem:[#allocation36_spill] sm:$0xff]  ;;  %v4308_v28 = vmul.f32 %v10274_v56, %v4302_v60  ;;  %v836_v11 = vadd.f32 %v10290_v29, %v777_v43  ;;  %v873_v35 = vadd.f32 %v14111_v51, %v807_v17 }
 0x3f2   : > { %4254 = vrot.lane.b32.xlu2 %v4249_v7, %s8174_s10  ;;  %v14104_v7 = vld [vmem:[#allocation35_spill] sm:$0xff]  ;;  %v4319_v29 = vrot.slane %v4307_v21, 1 }
 0x3f3   : > { %v10404_v8 = vpop.permute.xlu1 %3856  ;;  %v10406_v4 = vpop.permute.xlu0 %3854  ;;  %v726_v34 = vsel %vm702_vm8, %v14104_v7, %v8734_v55  ;;  %v725_v41 = vsel %vm702_vm8, %v14105_v30, %v14104_v7  ;;  %v4280_v55 = vsel %vm792_vm0, %v4278_v6, %v4279_v27  ;;  %v708_v7 = vadd.f32 %v703_v20, %v10341_v42  ;;  %v14116_v21 = vld [vmem:[#allocation43_spill] sm:$0xff] }
 0x3f4   : > { %14101 = vst [vmem:[#allocation31_spill] sm:$0xff] %v10404_v8  ;;  %v10415_v18 = vpop.permute.xlu2 %3924  ;;  %v4305_v30 = vmul.f32 %v9971_v44, %v4302_v60  ;;  %v731_v58 = vadd.f32 %v726_v34, %v686_v3  ;;  %v730_v5 = vadd.f32 %v725_v41, %v685_v16  ;;  %v754_v6 = vadd.f32 %v749_v49, %v709_v59  ;;  %v14110_v8 = vld [vmem:[#allocation42_spill] sm:$0xff]  ;;  %v14114_v41 = vld [vmem:[#allocation40_spill] sm:$0xff] }
 0x3f5   : > { %14102 = vst [vmem:[#allocation32_spill] sm:$0xff] %v10406_v4  ;;  %v753_v27 = vadd.f32 %v748_v14, %v708_v7  ;;  %v4318_v20 = vrot.slane %v4304_v62, 1  ;;  %v4315_v3 = vrot.slane %v4303_v0, 1  ;;  %v4316_v16 = vrot.slane %v4306_v50, 1 }
 0x3f6   : > { %14106 = vst [vmem:[#allocation33_spill] sm:$0xff] %v10415_v18  ;;  %v14109_v18 = vld [vmem:[#allocation41_spill] sm:$0xff]  ;;  %v4339_v60 = vstv %s10399_s30  ;;  %v4321_v59 = vrot.slane %v4305_v30, 1  ;;  %v4322_v34 = vrot.slane %v4308_v28, 1  ;;  %v806_v49 = vadd.f32 %v10354_v52, %v754_v6  ;;  %s10815_s30 = sld [smem:[#allocation9 + $0xb2]] }
 0x3f7   : > { %v771_v4 = vsel %vm747_vm9, %v14109_v18, %v14103_v33  ;;  %v770_v42 = vsel %vm747_vm9, %v14110_v8, %v14109_v18  ;;  %v824_v33 = vsel %vm792_vm0, %v822_v37, %v823_v47  ;;  %v910_v18 = vadd.f32 %v14114_v41, %v836_v11 }
 0x3f8   : > { %v776_v14 = vadd.f32 %v771_v4, %v731_v58  ;;  %v947_v17 = vadd.f32 %v14116_v21, %v873_v35  ;;  %v4341_v37 = vmul.f32 %v9961_v1, %v4339_v60  ;;  %v4344_v47 = vmul.f32 %v10250_v46, %v4339_v60  ;;  %v14117_v4 = vld [vmem:[#allocation44_spill] sm:$0xff] }
 0x3f9   : > { %4289 = vrot.lane.b32.xlu1 %v4283_v25, %s8175_s19  ;;  %4287 = vrot.lane.b32.xlu0 %v4280_v55, %s8175_s19  ;;  %v775_v25 = vadd.f32 %v770_v42, %v730_v5  ;;  %v805_v55 = vadd.f32 %v10385_v15, %v753_v27  ;;  %v4320_v0 = vsel %vm792_vm0, %v4318_v20, %v4319_v29  ;;  %v14118_v5 = vld [vmem:[#allocation46_spill] sm:$0xff]  ;;  %v14119_v27 = vld [vmem:[#allocation45_spill] sm:$0xff]  ;;  %v14120_v20 = vld [vmem:[#allocation47_spill] sm:$0xff] }
 0x3fa   : > { %4291 = vrot.lane.b32.xlu2 %v4286_v45, %s8175_s19  ;;  %v4317_v50 = vsel %vm792_vm0, %v4315_v3, %v4316_v16  ;;  %v4340_v7 = vmul.f32 %v9964_v61, %v4339_v60  ;;  %v4343_v52 = vmul.f32 %v10263_v38, %v4339_v60  ;;  %v867_v45 = vsel %vm432_vm2, %v14117_v4, %v14111_v51  ;;  %v14121_v3 = vld [vmem:[#allocation48_spill] sm:$0xff] }
 0x3fb   : > { %v10448_v43 = vpop.permute.xlu1 %3878  ;;  %v10450_v8 = vpop.permute.xlu0 %3876  ;;  %v4323_v15 = vsel %vm792_vm0, %v4321_v59, %v4322_v34  ;;  %v4342_v30 = vmul.f32 %v9971_v44, %v4339_v60  ;;  %v4345_v28 = vmul.f32 %v10274_v56, %v4339_v60  ;;  %v835_v11 = vadd.f32 %v10395_v31, %v776_v14 }
 0x3fc   : > { %14112 = vst [vmem:[#allocation34_spill] sm:$0xff] %v10448_v43  ;;  %v10454_v62 = vpop.permute.xlu2 %3946  ;;  %v834_v58 = vadd.f32 %v824_v33, %v775_v25  ;;  %v984_v6 = vadd.f32 %v14118_v5, %v910_v18  ;;  %v866_v42 = vsel %vm432_vm2, %v14119_v27, %v14117_v4  ;;  %v904_v29 = vsel %vm432_vm2, %v14120_v20, %v14114_v41  ;;  %v14122_v41 = vld [vmem:[#allocation49_spill] sm:$0xff] }
 0x3fd   : > { %14113 = vst [vmem:[#allocation35_spill] sm:$0xff] %v10450_v8  ;;  %v903_v16 = vsel %vm432_vm2, %v14121_v3, %v14120_v20  ;;  %v4355_v31 = vrot.slane %v4341_v37, 1  ;;  %v4356_v60 = vrot.slane %v4344_v47, 1  ;;  %v872_v51 = vadd.f32 %v867_v45, %v806_v49  ;;  %v14125_v49 = vld [vmem:[#allocation50_spill] sm:$0xff] }
 0x3fe   : > { %14115 = vst [vmem:[#allocation36_spill] sm:$0xff] %v10454_v62  ;;  %v4352_v35 = vrot.slane %v4340_v7, 1  ;;  %v4353_v33 = vrot.slane %v4343_v52, 1  ;;  %v4376_v59 = vstv %s10444_s12  ;;  %v871_v34 = vadd.f32 %v866_v42, %v805_v55  ;;  %v14126_v7 = vld [vmem:[#allocation51_spill] sm:$0xff]  ;;  %v14128_v55 = vld [vmem:[#allocation52_spill] sm:$0xff]  ;;  %s10854_s12 = sld [smem:[#allocation9 + $0x1b]] }
 0x3ff   : > { %v1021_v18 = vadd.f32 %v14122_v41, %v947_v17  ;;  %v4359_v4 = vrot.slane %v4345_v28, 1  ;;  %v908_v37 = vadd.f32 %v903_v16, %v834_v58  ;;  %v941_v47 = vsel %vm477_vm3, %v14125_v49, %v14116_v21  ;;  %v14130_v16 = vld [vmem:[#allocation55_spill] sm:$0xff] }
 0x400   : > { %v940_v52 = vsel %vm477_vm3, %v14126_v7, %v14125_v49  ;;  %v1058_v17 = vadd.f32 %v14128_v55, %v984_v6  ;;  %v4378_v28 = vmul.f32 %v9961_v1, %v4376_v59  ;;  %v4354_v21 = vsel %vm792_vm0, %v4352_v35, %v4353_v33  ;;  %v14131_v35 = vld [vmem:[#allocation54_spill] sm:$0xff]  ;;  %v14132_v49 = vld [vmem:[#allocation56_spill] sm:$0xff] }
 0x401   : > { %4326 = vrot.lane.b32.xlu1 %v4320_v0, %s8175_s19  ;;  %4324 = vrot.lane.b32.xlu0 %v4317_v50, %s8175_s19  ;;  %v4358_v0 = vrot.slane %v4342_v30, 1  ;;  %v909_v50 = vadd.f32 %v904_v29, %v835_v11  ;;  %v4357_v30 = vsel %vm792_vm0, %v4355_v31, %v4356_v60  ;;  %v4381_v11 = vmul.f32 %v10250_v46, %v4376_v59 }
 0x402   : > { %4328 = vrot.lane.b32.xlu2 %v4323_v15, %s8175_s19  ;;  %v14129_v15 = vld [vmem:[#allocation53_spill] sm:$0xff]  ;;  %v4377_v58 = vmul.f32 %v9964_v61, %v4376_v59  ;;  %v4380_v42 = vmul.f32 %v10263_v38, %v4376_v59  ;;  %v946_v20 = vadd.f32 %v941_v47, %v872_v51  ;;  %v4379_v29 = vmul.f32 %v9971_v44, %v4376_v59 }
 0x403   : > { %v10488_v14 = vpop.permute.xlu1 %3900  ;;  %v10490_v25 = vpop.permute.xlu0 %3898  ;;  %v978_v27 = vsel %vm477_vm3, %v14129_v15, %v14118_v5  ;;  %v4360_v6 = vsel %vm792_vm0, %v4358_v0, %v4359_v4  ;;  %v4382_v5 = vmul.f32 %v10274_v56, %v4376_v59  ;;  %v945_v3 = vadd.f32 %v940_v52, %v871_v34  ;;  %v14133_v51 = vld [vmem:[#allocation57_spill] sm:$0xff]  ;;  %v14134_v4 = vld [vmem:[#allocation59_spill] sm:$0xff] }
 0x404   : > { %14123 = vst [vmem:[#allocation38_spill] sm:$0xff] %v10488_v14  ;;  %v10498_v45 = vpop.permute.xlu2 %3968  ;;  %v1095_v31 = vadd.f32 %v14130_v16, %v1021_v18  ;;  %v983_v60 = vadd.f32 %v978_v27, %v909_v50  ;;  %v977_v33 = vsel %vm477_vm3, %v14131_v35, %v14129_v15  ;;  %v1015_v7 = vsel %vm522_vm4, %v14132_v49, %v14122_v41  ;;  %v14135_v15 = vld [vmem:[#allocation58_spill] sm:$0xff] }
 0x405   : > { %14124 = vst [vmem:[#allocation39_spill] sm:$0xff] %v10490_v25  ;;  %v1014_v0 = vsel %vm522_vm4, %v14133_v51, %v14132_v49  ;;  %v1052_v59 = vsel %vm522_vm4, %v14134_v4, %v14128_v55  ;;  %v4392_v34 = vrot.slane %v4378_v28, 1  ;;  %v4393_v18 = vrot.slane %v4381_v11, 1  ;;  %v14138_v51 = vld [vmem:[#allocation61_spill] sm:$0xff]  ;;  %v14139_v11 = vld [vmem:[#allocation60_spill] sm:$0xff] }
 0x406   : > { %14127 = vst [vmem:[#allocation41_spill] sm:$0xff] %v10498_v45  ;;  %v4389_v50 = vrot.slane %v4377_v58, 1  ;;  %v4390_v41 = vrot.slane %v4380_v42, 1  ;;  %v4413_v47 = vstv %s10485_s16  ;;  %v982_v52 = vadd.f32 %v977_v33, %v908_v37  ;;  %s10860_s16 = sld [smem:[#allocation9 + $0x47]] }
 0x407   : > { %v1132_v27 = vadd.f32 %v14135_v15, %v1058_v17  ;;  %v4396_v49 = vrot.slane %v4382_v5, 1  ;;  %v1019_v28 = vadd.f32 %v1014_v0, %v945_v3  ;;  %v1051_v58 = vsel %vm522_vm4, %v14139_v11, %v14134_v4 }
 0x408   : > { %v1057_v25 = vadd.f32 %v1052_v59, %v983_v60  ;;  %v10548_v37 = vstv %s10504_s2  ;;  %v4415_v17 = vmul.f32 %v9961_v1, %v4413_v47  ;;  %v4418_v33 = vmul.f32 %v10250_v46, %v4413_v47  ;;  %v14142_v59 = vld [vmem:[#allocation64_spill] sm:$0xff]  ;;  %s10891_s2 = sld [smem:[#allocation9 + $0x87]] }
 0x409   : > { %4363 = vrot.lane.b32.xlu1 %v4357_v30, %s8176_s14  ;;  %4361 = vrot.lane.b32.xlu0 %v4354_v21, %s8176_s14  ;;  %v4395_v30 = vrot.slane %v4379_v29, 1  ;;  %v1020_v21 = vadd.f32 %v1015_v7, %v946_v20  ;;  %v4394_v29 = vsel %vm792_vm0, %v4392_v34, %v4393_v18  ;;  %v4391_v20 = vsel %vm792_vm0, %v4389_v50, %v4390_v41  ;;  %v14143_v18 = vld [vmem:[#allocation63_spill] sm:$0xff] }
 0x40a   : > { %4365 = vrot.lane.b32.xlu2 %v4360_v6, %s8176_s14  ;;  %v1169_v6 = vadd.f32 %v14138_v51, %v1095_v31  ;;  %v4414_v5 = vmul.f32 %v9964_v61, %v4413_v47  ;;  %v4417_v3 = vmul.f32 %v10263_v38, %v4413_v47  ;;  %v14141_v31 = vld [vmem:[#allocation62_spill] sm:$0xff]  ;;  %v4416_v0 = vmul.f32 %v9971_v44, %v4413_v47 }
 0x40b   : > { %v10537_v55 = vpop.permute.xlu1 %3922  ;;  %v10539_v35 = vpop.permute.xlu0 %3920  ;;  %v1089_v7 = vsel %vm567_vm5, %v14141_v31, %v14130_v16  ;;  %v4397_v60 = vsel %vm792_vm0, %v4395_v30, %v4396_v49  ;;  %v4419_v1 = vmul.f32 %v10274_v56, %v4413_v47  ;;  %v1056_v4 = vadd.f32 %v1051_v58, %v982_v52  ;;  %v14144_v58 = vld [vmem:[#allocation65_spill] sm:$0xff] }
 0x40c   : > { %14136 = vst [vmem:[#allocation42_spill] sm:$0xff] %v10537_v55  ;;  %v10545_v42 = vpop.permute.xlu2 %3990  ;;  %v1206_v34 = vadd.f32 %v14142_v59, %v1132_v27  ;;  %v1088_v61 = vsel %vm567_vm5, %v14143_v18, %v14141_v31  ;;  %v1433_v50 = vmul.f32 %v10114_v10, %v10548_v37  ;;  %v1436_v16 = vmul.f32 %v10231_v57, %v10548_v37 }
 0x40d   : > { %14137 = vst [vmem:[#allocation37_spill] sm:$0xff] %v10539_v35  ;;  %v10571_v41 = vstv %s10528_s24  ;;  %v4429_v44 = vrot.slane %v4415_v17, 1  ;;  %v4430_v47 = vrot.slane %v4418_v33, 1  ;;  %v1094_v52 = vadd.f32 %v1089_v7, %v1020_v21  ;;  %v14147_v33 = vld [vmem:[#allocation66_spill] sm:$0xff]  ;;  %v14149_v7 = vld [vmem:[#allocation67_spill] sm:$0xff]  ;;  %s10916_s24 = sld [smem:[#allocation9 + $0xb3]] }
 0x40e   : > { %14140 = vst [vmem:[#allocation40_spill] sm:$0xff] %v10545_v42  ;;  %v4426_v27 = vrot.slane %v4414_v5, 1  ;;  %v4427_v30 = vrot.slane %v4417_v3, 1  ;;  %v4450_v49 = vstv %s10534_s17  ;;  %v1093_v11 = vadd.f32 %v1088_v61, %v1019_v28  ;;  %v14151_v42 = vld [vmem:[#allocation69_spill] sm:$0xff]  ;;  %s10971_s17 = sld [smem:[#allocation9 + $0x49]] }
 0x40f   : > { %v1126_v31 = vsel %vm567_vm5, %v14144_v58, %v14135_v15  ;;  %v4432_v17 = vrot.slane %v4416_v0, 1  ;;  %v4433_v21 = vrot.slane %v4419_v1, 1  ;;  %v1450_v5 = vrot.slane %v1433_v50, 2  ;;  %v10598_v1 = vld [vmem:[%s8411_s21 + $0x38] sm:$0xff] }
 0x410   : > { %v1463_v28 = vmul.f32 %v10114_v10, %v10571_v41  ;;  %v1466_v3 = vmul.f32 %v10231_v57, %v10571_v41  ;;  %v1451_v61 = vrot.slane %v1436_v16, 2  ;;  %v4431_v0 = vsel %vm792_vm0, %v4429_v44, %v4430_v47  ;;  %v10610_v16 = vld [vmem:[%s8411_s21 + $0x40] sm:$0xff] }
 0x411   : > { %4400 = vrot.lane.b32.xlu1 %v4394_v29, %s8176_s14  ;;  %4398 = vrot.lane.b32.xlu0 %v4391_v20, %s8176_s14  ;;  %v1125_v20 = vsel %vm567_vm5, %v14147_v33, %v14144_v58  ;;  %v4428_v50 = vsel %vm792_vm0, %v4426_v27, %v4427_v30  ;;  %v4455_v58 = vmul.f32 %v10250_v46, %v4450_v49  ;;  %v10604_v33 = vld [vmem:[%s8411_s21 + $0x30] sm:$0xff]  ;;  %v4487_v62 = vstv %s10577_s20  ;;  %s11022_s20 = sld [smem:[#allocation9 + $0xb5]] }
 0x412   : > { %4402 = vrot.lane.b32.xlu2 %v4397_v60, %s8176_s14  ;;  %v1243_v60 = vadd.f32 %v14149_v7, %v1169_v6  ;;  %v4451_v10 = vmul.f32 %v10604_v33, %v4450_v49  ;;  %v4454_v57 = vmul.f32 %v10263_v38, %v4450_v49  ;;  %v4434_v6 = vsel %vm792_vm0, %v4432_v17, %v4433_v21  ;;  %v14150_v27 = vld [vmem:[#allocation68_spill] sm:$0xff] }
 0x413   : > { %v10582_v18 = vpop.permute.xlu1 %3944  ;;  %v10584_v29 = vpop.permute.xlu0 %3942  ;;  %v4453_v44 = vmul.f32 %v10610_v16, %v4450_v49  ;;  %v4456_v47 = vmul.f32 %v10274_v56, %v4450_v49  ;;  %v1163_v30 = vsel %vm612_vm6, %v14150_v27, %v14138_v51  ;;  %v1479_v35 = vrot.slane %v1463_v28, 2 }
 0x414   : > { %14145 = vst [vmem:[#allocation43_spill] sm:$0xff] %v10582_v18  ;;  %v10593_v15 = vpop.permute.xlu2 %4012  ;;  %v1162_v18 = vsel %vm612_vm6, %v14151_v42, %v14150_v27  ;;  %v1480_v55 = vrot.slane %v1466_v3, 2  ;;  %v10622_v21 = vsel %vm1443_vm1, %v1450_v5, %v1451_v61  ;;  %v4467_v51 = vrot.slane %v4455_v58, 1  ;;  %v14155_v3 = vld [vmem:[#allocation73_spill] sm:$0xff] }
 0x415   : > { %14146 = vst [vmem:[#allocation44_spill] sm:$0xff] %v10584_v29  ;;  %v4452_v29 = vmul.f32 %v10598_v1, %v4450_v49  ;;  %v4463_v45 = vrot.slane %v4451_v10, 1  ;;  %v4464_v14 = vrot.slane %v4454_v57, 1  ;;  %v1168_v42 = vadd.f32 %v1163_v30, %v1094_v52 }
 0x416   : > { %14148 = vst [vmem:[#allocation46_spill] sm:$0xff] %v10593_v15  ;;  %v1131_v15 = vadd.f32 %v1126_v31, %v1057_v25  ;;  %v1130_v25 = vadd.f32 %v1125_v20, %v1056_v4  ;;  %v14152_v31 = vld [vmem:[#allocation70_spill] sm:$0xff]  ;;  %v10630_v4 = vadd.f32 %v1162_v18, %v1093_v11  ;;  %v4469_v5 = vrot.slane %v4453_v44, 1 }
 0x417   : > { %v1280_v17 = vadd.f32 %v14152_v31, %v1206_v34  ;;  %v4466_v49 = vrot.slane %v4452_v29, 1  ;;  %v4470_v28 = vrot.slane %v4456_v47, 1  ;;  %v1317_v61 = vadd.f32 %v14155_v3, %v1243_v60  ;;  %v14156_v29 = vld [vmem:[#allocation71_spill] sm:$0xff] }
 0x418   : > { %v10644_v52 = vsel %vm1443_vm1, %v1479_v35, %v1480_v55  ;;  %v1432_v18 = vmul.f32 %v10128_v12, %v10548_v37  ;;  %v1435_v10 = vmul.f32 %v10308_v13, %v10548_v37  ;;  %v4489_v60 = vmul.f32 %v10598_v1, %v4487_v62  ;;  %v14159_v35 = vld [vmem:[#allocation74_spill] sm:$0xff] }
 0x419   : > { %4437 = vrot.lane.b32.xlu1 %v4431_v0, %s8177_s9  ;;  %4435 = vrot.lane.b32.xlu0 %v4428_v50, %s8177_s9  ;;  %v1200_v0 = vsel %vm612_vm6, %v14156_v29, %v14142_v59  ;;  %v14157_v50 = vld [vmem:[#allocation72_spill] sm:$0xff]  ;;  %v4492_v57 = vmul.f32 %v10250_v46, %v4487_v62  ;;  %v4468_v59 = vsel %vm792_vm0, %v4466_v49, %v4467_v51 }
 0x41a   : > { %4439 = vrot.lane.b32.xlu2 %v4434_v6, %s8177_s9  ;;  %v1199_v58 = vsel %vm612_vm6, %v14157_v50, %v14156_v29  ;;  %v4465_v6 = vsel %vm792_vm0, %v4463_v45, %v4464_v14  ;;  %v4488_v44 = vmul.f32 %v10604_v33, %v4487_v62  ;;  %v4491_v55 = vmul.f32 %v10263_v38, %v4487_v62  ;;  %v14160_v49 = vld [vmem:[#allocation76_spill] sm:$0xff] }
 0x41b   : > { %v10632_v34 = vpop.permute.xlu1 %3966  ;;  %v10634_v20 = vpop.permute.xlu0 %3964  ;;  %v1237_v47 = vsel %vm657_vm7, %v14159_v35, %v14149_v7  ;;  %v4471_v27 = vsel %vm792_vm0, %v4469_v5, %v4470_v28  ;;  %v4490_v30 = vmul.f32 %v10610_v16, %v4487_v62  ;;  %v4493_v29 = vmul.f32 %v10274_v56, %v4487_v62  ;;  %v14161_v7 = vld [vmem:[#allocation75_spill] sm:$0xff] }
 0x41c   : > { %14153 = vst [vmem:[#allocation45_spill] sm:$0xff] %v10632_v34  ;;  %v10646_v11 = vpop.permute.xlu2 %4034  ;;  %v1205_v50 = vadd.f32 %v1200_v0, %v1131_v15  ;;  %v1431_v14 = vmul.f32 %v10132_v32, %v10548_v37  ;;  %v1434_v45 = vmul.f32 %v10327_v36, %v10548_v37  ;;  %v10669_v51 = vadd.f32 %v14160_v49, %v1280_v17 }
 0x41d   : > { %14154 = vst [vmem:[#allocation47_spill] sm:$0xff] %v10634_v20  ;;  %v1236_v5 = vsel %vm657_vm7, %v14161_v7, %v14159_v35  ;;  %v4503_v62 = vrot.slane %v4489_v60, 1  ;;  %v4504_v15 = vrot.slane %v4492_v57, 1  ;;  %v4500_v28 = vrot.slane %v4488_v44, 1 }
 0x41e   : > { %14158 = vst [vmem:[#allocation48_spill] sm:$0xff] %v10646_v11  ;;  %v1204_v11 = vadd.f32 %v1199_v58, %v1130_v25  ;;  %v10676_v25 = vadd.f32 %v1237_v47, %v1168_v42  ;;  %v4501_v0 = vrot.slane %v4491_v55, 1  ;;  %v4524_v37 = vstv %s10628_s11  ;;  %v14165_v55 = vld [vmem:[#allocation77_spill] sm:$0xff]  ;;  %s11072_s11 = sld [smem:[#allocation9 + $0x4a]] }
 0x41f   : > { %v1447_v17 = vrot.slane %v1432_v18, 2  ;;  %v1448_v58 = vrot.slane %v1435_v10, 2  ;;  %v4507_v7 = vrot.slane %v4493_v29, 1  ;;  %v1445_v60 = vrot.slane %v1434_v45, 2  ;;  %v14166_v10 = vld [vmem:[#allocation78_spill] sm:$0xff] }
 0x420   : > { %v1462_v42 = vmul.f32 %v10128_v12, %v10571_v41  ;;  %v1465_v57 = vmul.f32 %v10308_v13, %v10571_v41  ;;  %v1274_v18 = vsel %vm657_vm7, %v14165_v55, %v14152_v31  ;;  %v1273_v47 = vsel %vm657_vm7, %v14166_v10, %v14165_v55 }
 0x421   : > { %4474 = vrot.lane.b32.xlu1 %v4468_v59, %s8177_s9  ;;  %4472 = vrot.lane.b32.xlu0 %v4465_v6, %s8177_s9  ;;  %v4506_v59 = vrot.slane %v4490_v30, 1  ;;  %v1444_v6 = vrot.slane %v1431_v14, 2  ;;  %v4526_v30 = vmul.f32 %v10598_v1, %v4524_v37  ;;  %v4502_v29 = vsel %vm792_vm0, %v4500_v28, %v4501_v0 }
 0x422   : > { %4476 = vrot.lane.b32.xlu2 %v4471_v27, %s8177_s9  ;;  %v4505_v27 = vsel %vm792_vm0, %v4503_v62, %v4504_v15  ;;  %v4529_v12 = vmul.f32 %v10250_v46, %v4524_v37  ;;  %v4525_v13 = vmul.f32 %v10604_v33, %v4524_v37  ;;  %v4528_v14 = vmul.f32 %v10263_v38, %v4524_v37  ;;  %v14167_v15 = vld [vmem:[#allocation79_spill] sm:$0xff] }
 0x423   : > { %v10682_v20 = vpop.permute.xlu1 %3988  ;;  %v10684_v35 = vpop.permute.xlu0 %3986  ;;  %v10706_v45 = vmul.f32 %v10132_v32, %v10571_v41  ;;  %v4508_v31 = vsel %vm792_vm0, %v4506_v59, %v4507_v7  ;;  %v4527_v55 = vmul.f32 %v10610_v16, %v4524_v37  ;;  %v4530_v62 = vmul.f32 %v10274_v56, %v4524_v37 }
 0x424   : > { %14162 = vst [vmem:[#allocation49_spill] sm:$0xff] %v10682_v20  ;;  %v10690_v44 = vpop.permute.xlu2 %4056  ;;  %v1391_v10 = vadd.f32 %v14167_v15, %v1317_v61  ;;  %v1476_v28 = vrot.slane %v1462_v42, 2  ;;  %v1477_v0 = vrot.slane %v1465_v57, 2  ;;  %v10718_v32 = vsel %vm1443_vm1, %v1447_v17, %v1448_v58 }
 0x425   : > { %14163 = vst [vmem:[#allocation50_spill] sm:$0xff] %v10684_v35  ;;  %v1241_v35 = vadd.f32 %v1236_v5, %v10630_v4  ;;  %v10721_v59 = vsel %vm1443_vm1, %v1444_v6, %v1445_v60  ;;  %v4540_v37 = vrot.slane %v4526_v30, 1  ;;  %v4541_v61 = vrot.slane %v4529_v12, 1 }
 0x426   : > { %14164 = vst [vmem:[#allocation51_spill] sm:$0xff] %v10690_v44  ;;  %v10714_v44 = vmul.f32 %v10327_v36, %v10571_v41  ;;  %v4537_v7 = vrot.slane %v4525_v13, 1  ;;  %v4538_v42 = vrot.slane %v4528_v14, 1  ;;  %v4561_v36 = vstv %s10680_s29  ;;  %s11111_s29 = sld [smem:[#allocation9 + $0xb6]] }
 0x427   : > { %v1279_v41 = vadd.f32 %v1274_v18, %v1205_v50  ;;  %v1278_v4 = vadd.f32 %v1273_v47, %v1204_v11  ;;  %v4543_v58 = vrot.slane %v4527_v55, 1  ;;  %v4544_v6 = vrot.slane %v4530_v62, 1  ;;  %v14171_v50 = vld [vmem:[#allocation80_spill] sm:$0xff]  ;;  %v14172_v18 = vld [vmem:[#allocation81_spill] sm:$0xff] }
 0x428   : > { %v1458_v60 = vadd.f32 %v10622_v21, %v1391_v10  ;;  %v10735_v57 = vsel %vm1443_vm1, %v1476_v28, %v1477_v0  ;;  %v1474_v30 = vrot.slane %v10714_v44, 2  ;;  %v1311_v11 = vsel %vm702_vm8, %v14171_v50, %v14155_v3 }
 0x429   : > { %4511 = vrot.lane.b32.xlu1 %v4505_v27, %s8178_s8  ;;  %4509 = vrot.lane.b32.xlu0 %v4502_v29, %s8178_s8  ;;  %v1473_v27 = vrot.slane %v10706_v45, 2  ;;  %v1310_v47 = vsel %vm702_vm8, %v14172_v18, %v14171_v50  ;;  %v4563_v12 = vmul.f32 %v10598_v1, %v4561_v36  ;;  %v4566_v21 = vmul.f32 %v10250_v46, %v4561_v36 }
 0x42a   : > { %4513 = vrot.lane.b32.xlu2 %v4508_v31, %s8178_s8  ;;  %v4542_v13 = vsel %vm792_vm0, %v4540_v37, %v4541_v61  ;;  %v4539_v14 = vsel %vm792_vm0, %v4537_v7, %v4538_v42  ;;  %v4562_v44 = vmul.f32 %v10604_v33, %v4561_v36  ;;  %v4565_v45 = vmul.f32 %v10263_v38, %v4561_v36  ;;  %v14173_v31 = vld [vmem:[#allocation82_spill] sm:$0xff]  ;;  %v14174_v37 = vld [vmem:[#allocation83_spill] sm:$0xff]  ;;  %v14175_v7 = vld [vmem:[#allocation84_spill] sm:$0xff] }
 0x42b   : > { %v10729_v5 = vpop.permute.xlu1 %4010  ;;  %v10731_v17 = vpop.permute.xlu0 %4008  ;;  %v1428_v55 = vadd.f32 %v14173_v31, %v10669_v51  ;;  %v4545_v3 = vsel %vm792_vm0, %v4543_v58, %v4544_v6  ;;  %v4564_v62 = vmul.f32 %v10610_v16, %v4561_v36  ;;  %v4567_v10 = vmul.f32 %v10274_v56, %v4561_v36  ;;  %v14176_v51 = vld [vmem:[#allocation86_spill] sm:$0xff]  ;;  %v14177_v6 = vld [vmem:[#allocation87_spill] sm:$0xff] }
 0x42c   : > { %14168 = vst [vmem:[#allocation52_spill] sm:$0xff] %v10729_v5  ;;  %v10739_v29 = vpop.permute.xlu2 %4078  ;;  %v1316_v28 = vadd.f32 %v1311_v11, %v10676_v25  ;;  %v1315_v0 = vadd.f32 %v1310_v47, %v1241_v35  ;;  %v1348_v61 = vsel %vm702_vm8, %v14174_v37, %v14160_v49  ;;  %v1347_v42 = vsel %vm702_vm8, %v14175_v7, %v14174_v37  ;;  %v14178_v49 = vld [vmem:[#allocation89_spill] sm:$0xff]  ;;  %v14250_v5 = vld [vmem:[#allocation136_spill] sm:$0xff] }
 0x42d   : > { %14169 = vst [vmem:[#allocation53_spill] sm:$0xff] %v10731_v17  ;;  %v1385_v58 = vsel %vm747_vm9, %v14176_v51, %v14167_v15  ;;  %v1384_v50 = vsel %vm747_vm9, %v14177_v6, %v14176_v51  ;;  %v4577_v25 = vrot.slane %v4563_v12, 1  ;;  %v4578_v35 = vrot.slane %v4566_v21, 1 }
 0x42e   : > { %14170 = vst [vmem:[#allocation55_spill] sm:$0xff] %v10739_v29  ;;  %v1422_v36 = vsel %vm747_vm9, %v14178_v49, %v14173_v31  ;;  %v4574_v11 = vrot.slane %v4562_v44, 1  ;;  %v4575_v18 = vrot.slane %v4565_v45, 1  ;;  %v4598_v47 = vstv %s10727_s15  ;;  %s11144_s15 = sld [smem:[#allocation9 + $0x24]] }
 0x42f   : > { %v1487_v15 = vadd.f32 %v10644_v52, %v1428_v55  ;;  %v1353_v37 = vadd.f32 %v1348_v61, %v1279_v41  ;;  %v4580_v12 = vrot.slane %v4564_v62, 1  ;;  %v4581_v21 = vrot.slane %v4567_v10, 1 }
 0x430   : > { %v1390_v6 = vadd.f32 %v1385_v58, %v1316_v28  ;;  %v1389_v31 = vadd.f32 %v1384_v50, %v1315_v0  ;;  %v1352_v29 = vadd.f32 %v1347_v42, %v1278_v4  ;;  %v4579_v52 = vsel %vm792_vm0, %v4577_v25, %v4578_v35  ;;  %v14184_v42 = vld [vmem:[#allocation88_spill] sm:$0xff] }
 0x431   : > { %4548 = vrot.lane.b32.xlu1 %v4542_v13, %s8178_s8  ;;  %4546 = vrot.lane.b32.xlu0 %v4539_v14, %s8178_s8  ;;  %v14181_v14 = vld [vmem:[#allocation85_spill] sm:$0xff]  ;;  %v1427_v17 = vadd.f32 %v1422_v36, %v1353_v37  ;;  %v4600_v41 = vmul.f32 %v10598_v1, %v4598_v47  ;;  %v4576_v55 = vsel %vm792_vm0, %v4574_v11, %v4575_v18  ;;  %v14186_v11 = vld [vmem:[#allocation92_spill] sm:$0xff] }
 0x432   : > { %4550 = vrot.lane.b32.xlu2 %v4545_v3, %s8178_s8  ;;  %v1524_v51 = vadd.f32 %v14181_v14, %v1458_v60  ;;  %v14182_v3 = vld [vmem:[#allocation90_spill] sm:$0xff]  ;;  %v4603_v62 = vmul.f32 %v10250_v46, %v4598_v47  ;;  %v4599_v60 = vmul.f32 %v10604_v33, %v4598_v47  ;;  %v4602_v10 = vmul.f32 %v10263_v38, %v4598_v47  ;;  %v14187_v18 = vld [vmem:[#allocation93_spill] sm:$0xff] }
 0x433   : > { %v10781_v7 = vpop.permute.xlu1 %4032  ;;  %v10783_v13 = vpop.permute.xlu0 %4030  ;;  %v1421_v44 = vsel %vm747_vm9, %v14182_v3, %v14178_v49  ;;  %v4582_v0 = vsel %vm792_vm0, %v4580_v12, %v4581_v21  ;;  %v4601_v61 = vmul.f32 %v10610_v16, %v4598_v47  ;;  %v4604_v4 = vmul.f32 %v10274_v56, %v4598_v47  ;;  %v14185_v49 = vld [vmem:[#allocation91_spill] sm:$0xff] }
 0x434   : > { %14179 = vst [vmem:[#allocation54_spill] sm:$0xff] %v10781_v7  ;;  %v10789_v45 = vpop.permute.xlu2 %4100  ;;  %v1426_v28 = vadd.f32 %v1421_v44, %v1352_v29  ;;  %v1561_v58 = vadd.f32 %v14184_v42, %v1487_v15  ;;  %v1457_v50 = vadd.f32 %v10718_v32, %v1390_v6  ;;  %v1456_v25 = vadd.f32 %v10721_v59, %v1389_v31  ;;  %v14190_v31 = vld [vmem:[#allocation94_spill] sm:$0xff]  ;;  %v14243_v7 = vld [vmem:[#allocation135_spill] sm:$0xff] }
 0x435   : > { %14180 = vst [vmem:[#allocation56_spill] sm:$0xff] %v10783_v13  ;;  %v1475_v35 = vsel %vm1443_vm1, %v1473_v27, %v1474_v30  ;;  %v1598_v36 = vadd.f32 %v14185_v49, %v1524_v51  ;;  %v1518_v29 = vsel %vm432_vm2, %v14186_v11, %v14181_v14  ;;  %v1517_v37 = vsel %vm432_vm2, %v14187_v18, %v14186_v11  ;;  %v14196_v18 = vld [vmem:[#allocation100_spill] sm:$0xff] }
 0x436   : > { %14183 = vst [vmem:[#allocation57_spill] sm:$0xff] %v10789_v45  ;;  %v4614_v47 = vrot.slane %v4600_v41, 1  ;;  %v4615_v32 = vrot.slane %v4603_v62, 1  ;;  %v4611_v59 = vrot.slane %v4599_v60, 1  ;;  %v4612_v27 = vrot.slane %v4602_v10, 1  ;;  %v14191_v41 = vld [vmem:[#allocation95_spill] sm:$0xff] }
 0x437   : > { %v4635_v30 = vstv %s10778_s0  ;;  %v1486_v15 = vadd.f32 %v10735_v57, %v1427_v17  ;;  %v1485_v12 = vadd.f32 %v1475_v35, %v1426_v28  ;;  %v4617_v51 = vrot.slane %v4601_v61, 1  ;;  %v14193_v60 = vld [vmem:[#allocation97_spill] sm:$0xff]  ;;  %v14194_v17 = vld [vmem:[#allocation96_spill] sm:$0xff]  ;;  %s11152_s0 = sld [smem:[#allocation9 + $0x90]] }
 0x438   : > { %v4618_v6 = vrot.slane %v4604_v4, 1  ;;  %v1635_v3 = vadd.f32 %v14190_v31, %v1561_v58  ;;  %v1523_v44 = vadd.f32 %v1518_v29, %v1457_v50  ;;  %v1672_v10 = vadd.f32 %v14193_v60, %v1598_v36  ;;  %v14195_v50 = vld [vmem:[#allocation98_spill] sm:$0xff] }
 0x439   : > { %4585 = vrot.lane.b32.xlu1 %v4579_v52, %s8179_s26  ;;  %4583 = vrot.lane.b32.xlu0 %v4576_v55, %s8179_s26  ;;  %v1522_v52 = vadd.f32 %v1517_v37, %v1456_v25  ;;  %v1555_v55 = vsel %vm432_vm2, %v14191_v41, %v14184_v42  ;;  %v1554_v57 = vsel %vm432_vm2, %v14194_v17, %v14191_v41 }
 0x43a   : > { %4587 = vrot.lane.b32.xlu2 %v4582_v0, %s8179_s26  ;;  %v4637_v28 = vmul.f32 %v10598_v1, %v4635_v30  ;;  %v4640_v0 = vmul.f32 %v10250_v46, %v4635_v30  ;;  %v4616_v61 = vsel %vm792_vm0, %v4614_v47, %v4615_v32  ;;  %v4613_v4 = vsel %vm792_vm0, %v4611_v59, %v4612_v27  ;;  %v14197_v47 = vld [vmem:[#allocation99_spill] sm:$0xff] }
 0x43b   : > { %v10818_v21 = vpop.permute.xlu1 %4054  ;;  %v10820_v14 = vpop.permute.xlu0 %4052  ;;  %v4636_v58 = vmul.f32 %v10604_v33, %v4635_v30  ;;  %v4639_v42 = vmul.f32 %v10263_v38, %v4635_v30  ;;  %v1592_v25 = vsel %vm477_vm3, %v14195_v50, %v14185_v49  ;;  %v4619_v35 = vsel %vm792_vm0, %v4617_v51, %v4618_v6  ;;  %v14198_v38 = vld [vmem:[#allocation101_spill] sm:$0xff]  ;;  %v14199_v49 = vld [vmem:[#allocation102_spill] sm:$0xff] }
 0x43c   : > { %14188 = vst [vmem:[#allocation59_spill] sm:$0xff] %v10818_v21  ;;  %v10826_v62 = vpop.permute.xlu2 %4122  ;;  %v4638_v36 = vmul.f32 %v10610_v16, %v4635_v30  ;;  %v4641_v11 = vmul.f32 %v10274_v56, %v4635_v30  ;;  %v1560_v46 = vadd.f32 %v1555_v55, %v1486_v15  ;;  %v1559_v29 = vadd.f32 %v1554_v57, %v1485_v12 }
 0x43d   : > { %14189 = vst [vmem:[#allocation58_spill] sm:$0xff] %v10820_v14  ;;  %v1709_v37 = vadd.f32 %v14196_v18, %v1635_v3  ;;  %v1591_v32 = vsel %vm477_vm3, %v14197_v47, %v14195_v50  ;;  %v1629_v59 = vsel %vm477_vm3, %v14198_v38, %v14190_v31  ;;  %v1628_v27 = vsel %vm477_vm3, %v14199_v49, %v14198_v38  ;;  %v14200_v3 = vld [vmem:[#allocation103_spill] sm:$0xff]  ;;  %v10896_v49 = vld [vmem:[%s8418_s18 + $0x40] sm:$0x3] }
 0x43e   : > { %14192 = vst [vmem:[#allocation61_spill] sm:$0xff] %v10826_v62  ;;  %v4651_v56 = vrot.slane %v4637_v28, 1  ;;  %v4652_v30 = vrot.slane %v4640_v0, 1  ;;  %v1597_v15 = vadd.f32 %v1592_v25, %v1523_v44  ;;  %v4648_v12 = vrot.slane %v4636_v58, 1  ;;  %v14204_v58 = vld [vmem:[#allocation105_spill] sm:$0xff]  ;;  %v14207_v25 = vld [vmem:[#allocation107_spill] sm:$0xff] }
 0x43f   : > { %v4649_v51 = vrot.slane %v4639_v42, 1  ;;  %v4672_v6 = vstv %s10815_s30  ;;  %v1596_v31 = vadd.f32 %v1591_v32, %v1522_v52  ;;  %v1746_v41 = vadd.f32 %v14200_v3, %v1672_v10  ;;  %v14206_v10 = vld [vmem:[#allocation106_spill] sm:$0xff]  ;;  %v10888_v32 = vld [vmem:[%s8418_s18 + $0x30] sm:$0x3]  ;;  %s11158_s30 = sld [smem:[#allocation9 + $0x4b]] }
 0x440   : > { %v4654_v57 = vrot.slane %v4638_v36, 1  ;;  %v4655_v28 = vrot.slane %v4641_v11, 1  ;;  %v1634_v0 = vadd.f32 %v1629_v59, %v1560_v46  ;;  %v1633_v44 = vadd.f32 %v1628_v27, %v1559_v29 }
 0x441   : > { %4622 = vrot.lane.b32.xlu1 %v4616_v61, %s8179_s26  ;;  %4620 = vrot.lane.b32.xlu0 %v4613_v4, %s8179_s26  ;;  %v14203_v61 = vld [vmem:[#allocation104_spill] sm:$0xff]  ;;  %v1783_v50 = vadd.f32 %v14206_v10, %v1709_v37  ;;  %v4653_v36 = vsel %vm792_vm0, %v4651_v56, %v4652_v30  ;;  %v4674_v11 = vmul.f32 %v10598_v1, %v4672_v6  ;;  %v14208_v30 = vld [vmem:[#allocation109_spill] sm:$0xff] }
 0x442   : > { %4624 = vrot.lane.b32.xlu2 %v4619_v35, %s8179_s26  ;;  %v1666_v4 = vsel %vm522_vm4, %v14203_v61, %v14193_v60  ;;  %v1665_v52 = vsel %vm522_vm4, %v14204_v58, %v14203_v61  ;;  %v1703_v35 = vsel %vm522_vm4, %v14207_v25, %v14196_v18  ;;  %v4650_v46 = vsel %vm792_vm0, %v4648_v12, %v4649_v51  ;;  %v10883_v60 = vld [vmem:[%s8418_s18 + $0x38] sm:$0x3]  ;;  %v14209_v61 = vld [vmem:[#allocation108_spill] sm:$0xff] }
 0x443   : > { %v10863_v55 = vpop.permute.xlu1 %4076  ;;  %v10865_v17 = vpop.permute.xlu0 %4074  ;;  %v4677_v29 = vmul.f32 %v10883_v60, %v4672_v6  ;;  %v4673_v47 = vmul.f32 %v10604_v33, %v4672_v6  ;;  %v4676_v37 = vmul.f32 %v10888_v32, %v4672_v6  ;;  %v1671_v38 = vadd.f32 %v1666_v4, %v1597_v15  ;;  %v14210_v15 = vld [vmem:[#allocation110_spill] sm:$0xff] }
 0x444   : > { %14201 = vst [vmem:[#allocation60_spill] sm:$0xff] %v10863_v55  ;;  %v10873_v42 = vpop.permute.xlu2 %4217  ;;  %v4656_v18 = vsel %vm792_vm0, %v4654_v57, %v4655_v28  ;;  %v4675_v59 = vmul.f32 %v10610_v16, %v4672_v6  ;;  %v4678_v27 = vmul.f32 %v10896_v49, %v4672_v6  ;;  %v1670_v56 = vadd.f32 %v1665_v52, %v1596_v31  ;;  %v14211_v57 = vld [vmem:[#allocation111_spill] sm:$0xff] }
 0x445   : > { %14202 = vst [vmem:[#allocation62_spill] sm:$0xff] %v10865_v17  ;;  %v1820_v12 = vadd.f32 %v14208_v30, %v1746_v41  ;;  %v1708_v51 = vadd.f32 %v1703_v35, %v1634_v0  ;;  %v1702_v58 = vsel %vm522_vm4, %v14209_v61, %v14207_v25  ;;  %v1740_v4 = vsel %vm567_vm5, %v14210_v15, %v14200_v3  ;;  %v14212_v25 = vld [vmem:[#allocation112_spill] sm:$0xff] }
 0x446   : > { %14205 = vst [vmem:[#allocation64_spill] sm:$0xff] %v10873_v42  ;;  %v1739_v28 = vsel %vm567_vm5, %v14211_v57, %v14210_v15  ;;  %v10910_v42 = vstv %s10854_s12  ;;  %v4688_v6 = vrot.slane %v4674_v11, 1  ;;  %v4689_v31 = vrot.slane %v4677_v29, 1  ;;  %s11203_s12 = sld [smem:[#allocation9 + $0xb7]] }
 0x447   : > { %v4685_v41 = vrot.slane %v4673_v47, 1  ;;  %v4686_v0 = vrot.slane %v4676_v37, 1  ;;  %v4709_v52 = vstv %s10860_s16  ;;  %v1707_v3 = vadd.f32 %v1702_v58, %v1633_v44  ;;  %v10927_v47 = vld [vmem:[%s8411_s21 + $0x28] sm:$0xff]  ;;  %s11249_s16 = sld [smem:[#allocation9 + $0x4c]] }
 0x448   : > { %v1857_v35 = vadd.f32 %v14212_v25, %v1783_v50  ;;  %v1745_v11 = vadd.f32 %v1740_v4, %v1671_v38  ;;  %v1744_v57 = vadd.f32 %v1739_v28, %v1670_v56  ;;  %v10931_v44 = vmul.f32 %v10927_v47, %v10910_v42  ;;  %v14217_v37 = vld [vmem:[#allocation115_spill] sm:$0xff] }
 0x449   : > { %4659 = vrot.lane.b32.xlu1 %v4653_v36, %s8180_s13  ;;  %4657 = vrot.lane.b32.xlu0 %v4650_v46, %s8180_s13  ;;  %v4691_v36 = vrot.slane %v4675_v59, 1  ;;  %v4692_v46 = vrot.slane %v4678_v27, 1  ;;  %v1894_v58 = vadd.f32 %v14217_v37, %v1820_v12  ;;  %v14218_v59 = vld [vmem:[#allocation114_spill] sm:$0xff]  ;;  %v4711_v38 = vmul.f32 %v10598_v1, %v4709_v52 }
 0x44a   : > { %4661 = vrot.lane.b32.xlu2 %v4656_v18, %s8180_s13  ;;  %v14215_v18 = vld [vmem:[#allocation113_spill] sm:$0xff]  ;;  %v4714_v56 = vmul.f32 %v10883_v60, %v4709_v52  ;;  %v4687_v4 = vsel %vm792_vm0, %v4685_v41, %v4686_v0  ;;  %v4710_v28 = vmul.f32 %v10604_v33, %v4709_v52  ;;  %v10946_v17 = vstv %s10891_s2  ;;  %v14221_v0 = vld [vmem:[#allocation119_spill] sm:$0xff]  ;;  %s11310_s2 = sld [smem:[#allocation9 + $0xb8]] }
 0x44b   : > { %v10919_v61 = vpop.permute.xlu1 %4098  ;;  %v10921_v15 = vpop.permute.xlu0 %4096  ;;  %v1777_v29 = vsel %vm567_vm5, %v14215_v18, %v14206_v10  ;;  %v1776_v27 = vsel %vm567_vm5, %v14218_v59, %v14215_v18  ;;  %v4690_v10 = vsel %vm792_vm0, %v4688_v6, %v4689_v31  ;;  %v4693_v12 = vsel %vm792_vm0, %v4691_v36, %v4692_v46  ;;  %v14220_v31 = vld [vmem:[#allocation117_spill] sm:$0xff]  ;;  %v14222_v36 = vld [vmem:[#allocation120_spill] sm:$0xff] }
 0x44c   : > { %14213 = vst [vmem:[#allocation63_spill] sm:$0xff] %v10919_v61  ;;  %v10933_v50 = vpop.permute.xlu2 %4254  ;;  %v4715_v18 = vmul.f32 %v10896_v49, %v4709_v52  ;;  %v1782_v59 = vadd.f32 %v1777_v29, %v1708_v51  ;;  %v1781_v62 = vadd.f32 %v1776_v27, %v1707_v3  ;;  %v14219_v61 = vld [vmem:[#allocation116_spill] sm:$0xff]  ;;  %v1851_v55 = vsel %vm612_vm6, %v14221_v0, %v14212_v25  ;;  %v14223_v25 = vld [vmem:[#allocation118_spill] sm:$0xff] }
 0x44d   : > { %14214 = vst [vmem:[#allocation65_spill] sm:$0xff] %v10921_v15  ;;  %v4713_v15 = vmul.f32 %v10888_v32, %v4709_v52  ;;  %v1814_v6 = vsel %vm612_vm6, %v14219_v61, %v14208_v30  ;;  %v1813_v41 = vsel %vm612_vm6, %v14220_v31, %v14219_v61  ;;  %v1850_v46 = vsel %vm612_vm6, %v14222_v36, %v14221_v0  ;;  %v14226_v36 = vld [vmem:[#allocation121_spill] sm:$0xff] }
 0x44e   : > { %14216 = vst [vmem:[#allocation66_spill] sm:$0xff] %v10933_v50  ;;  %v4712_v50 = vmul.f32 %v10610_v16, %v4709_v52  ;;  %v4725_v51 = vrot.slane %v4711_v38, 1  ;;  %v4726_v52 = vrot.slane %v4714_v56, 1  ;;  %v10967_v30 = vmul.f32 %v10927_v47, %v10946_v17 }
 0x44f   : > { %v4722_v3 = vrot.slane %v4710_v28, 1  ;;  %v4723_v61 = vrot.slane %v4713_v15, 1  ;;  %v4746_v29 = vstv %s10916_s24  ;;  %v1931_v27 = vadd.f32 %v14223_v25, %v1857_v35  ;;  %v14228_v15 = vld [vmem:[#allocation122_spill] sm:$0xff]  ;;  %v14229_v35 = vld [vmem:[#allocation123_spill] sm:$0xff]  ;;  %s11359_s24 = sld [smem:[#allocation9 + $0x4d]] }
 0x450   : > { %v1819_v31 = vadd.f32 %v1814_v6, %v1745_v11  ;;  %v4728_v38 = vrot.slane %v4712_v50, 1  ;;  %v4729_v56 = vrot.slane %v4715_v18, 1  ;;  %v1968_v14 = vadd.f32 %v14226_v36, %v1894_v58  ;;  %v14230_v18 = vld [vmem:[#allocation124_spill] sm:$0xff] }
 0x451   : > { %4696 = vrot.lane.b32.xlu1 %v4690_v10, %s8180_s13  ;;  %4694 = vrot.lane.b32.xlu0 %v4687_v4, %s8180_s13  ;;  %v1818_v4 = vadd.f32 %v1813_v41, %v1744_v57  ;;  %v1856_v21 = vadd.f32 %v1851_v55, %v1782_v59  ;;  %v1855_v45 = vadd.f32 %v1850_v46, %v1781_v62 }
 0x452   : > { %4698 = vrot.lane.b32.xlu2 %v4693_v12, %s8180_s13  ;;  %v1888_v28 = vsel %vm657_vm7, %v14228_v15, %v14217_v37  ;;  %v1887_v11 = vsel %vm657_vm7, %v14229_v35, %v14228_v15  ;;  %v4727_v6 = vsel %vm792_vm0, %v4725_v51, %v4726_v52  ;;  %v4748_v50 = vmul.f32 %v10598_v1, %v4746_v29  ;;  %v14231_v52 = vld [vmem:[#allocation127_spill] sm:$0xff]  ;;  %v14233_v35 = vld [vmem:[#allocation126_spill] sm:$0xff] }
 0x453   : > { %v10974_v0 = vpop.permute.xlu1 %4120  ;;  %v10976_v10 = vpop.permute.xlu0 %4118  ;;  %v4724_v57 = vsel %vm792_vm0, %v4722_v3, %v4723_v61  ;;  %v4751_v62 = vmul.f32 %v10883_v60, %v4746_v29  ;;  %v4747_v55 = vmul.f32 %v10604_v33, %v4746_v29  ;;  %v4750_v58 = vmul.f32 %v10888_v32, %v4746_v29  ;;  %v14232_v3 = vld [vmem:[#allocation125_spill] sm:$0xff] }
 0x454   : > { %14224 = vst [vmem:[#allocation67_spill] sm:$0xff] %v10974_v0  ;;  %v10979_v12 = vpop.permute.xlu2 %4291  ;;  %v2005_v37 = vadd.f32 %v14230_v18, %v1931_v27  ;;  %v4730_v59 = vsel %vm792_vm0, %v4728_v38, %v4729_v56  ;;  %v4749_v41 = vmul.f32 %v10610_v16, %v4746_v29  ;;  %v4752_v46 = vmul.f32 %v10896_v49, %v4746_v29  ;;  %v11005_v27 = vld [vmem:[%s8411_s21 + $0x20] sm:$0xff]  ;;  %v11012_v29 = vld [vmem:[%s8411_s21 + $0x18] sm:$0xff] }
 0x455   : > { %14225 = vst [vmem:[#allocation68_spill] sm:$0xff] %v10976_v10  ;;  %v1893_v51 = vadd.f32 %v1888_v28, %v1819_v31  ;;  %v2042_v15 = vadd.f32 %v14231_v52, %v1968_v14  ;;  %v1925_v61 = vsel %vm657_vm7, %v14232_v3, %v14223_v25  ;;  %v1892_v10 = vadd.f32 %v1887_v11, %v1818_v4 }
 0x456   : > { %14227 = vst [vmem:[#allocation69_spill] sm:$0xff] %v10979_v12  ;;  %v1924_v12 = vsel %vm657_vm7, %v14233_v35, %v14232_v3  ;;  %v11009_v38 = vmul.f32 %v11005_v27, %v10910_v42  ;;  %v11016_v14 = vmul.f32 %v11012_v29, %v10910_v42  ;;  %v4762_v25 = vrot.slane %v4748_v50, 1  ;;  %v14236_v50 = vld [vmem:[#allocation128_spill] sm:$0xff] }
 0x457   : > { %v4763_v31 = vrot.slane %v4751_v62, 1  ;;  %v4759_v56 = vrot.slane %v4747_v55, 1  ;;  %v4760_v4 = vrot.slane %v4750_v58, 1  ;;  %v4841_v28 = vstv %s10971_s17  ;;  %v14239_v58 = vld [vmem:[#allocation129_spill] sm:$0xff]  ;;  %s11403_s17 = sld [smem:[#allocation9 + $0xb9]] }
 0x458   : > { %v1930_v11 = vadd.f32 %v1925_v61, %v1856_v21  ;;  %v1929_v3 = vadd.f32 %v1924_v12, %v1855_v45  ;;  %v4765_v42 = vrot.slane %v4749_v41, 1  ;;  %v4766_v13 = vrot.slane %v4752_v46, 1  ;;  %v14238_v21 = vld [vmem:[#allocation130_spill] sm:$0xff]  ;;  %v14240_v61 = vld [vmem:[#allocation131_spill] sm:$0xff] }
 0x459   : > { %4733 = vrot.lane.b32.xlu1 %v4727_v6, %s8181_s4  ;;  %4731 = vrot.lane.b32.xlu0 %v4724_v57, %s8181_s4  ;;  %v2095_v6 = vadd.f32 %v10931_v44, %v2042_v15  ;;  %v1962_v57 = vsel %vm702_vm8, %v14236_v50, %v14226_v36  ;;  %v2099_v62 = vmul.f32 %v11005_v27, %v10946_v17 }
 0x45a   : > { %4735 = vrot.lane.b32.xlu2 %v4730_v59, %s8181_s4  ;;  %v11036_v55 = vmul.f32 %v11012_v29, %v10946_v17  ;;  %v2079_v12 = vadd.f32 %v14238_v21, %v2005_v37  ;;  %v1961_v59 = vsel %vm702_vm8, %v14239_v58, %v14236_v50  ;;  %v4843_v44 = vmul.f32 %v10598_v1, %v4841_v28 }
 0x45b   : > { %v11024_v35 = vpop.permute.xlu1 %4215  ;;  %v11026_v0 = vpop.permute.xlu0 %4213  ;;  %v4846_v41 = vmul.f32 %v10883_v60, %v4841_v28  ;;  %v4764_v36 = vsel %vm792_vm0, %v4762_v25, %v4763_v31  ;;  %v4761_v46 = vsel %vm792_vm0, %v4759_v56, %v4760_v4  ;;  %v4842_v15 = vmul.f32 %v10604_v33, %v4841_v28  ;;  %v14241_v25 = vld [vmem:[#allocation132_spill] sm:$0xff]  ;;  %v14242_v56 = vld [vmem:[#allocation134_spill] sm:$0xff] }
 0x45c   : > { %14234 = vst [vmem:[#allocation70_spill] sm:$0xff] %v11024_v35  ;;  %v11038_v45 = vpop.permute.xlu2 %4328  ;;  %v4845_v17 = vmul.f32 %v10888_v32, %v4841_v28  ;;  %v1999_v37 = vsel %vm702_vm8, %v14240_v61, %v14230_v18  ;;  %v4844_v50 = vmul.f32 %v10610_v16, %v4841_v28  ;;  %v4847_v58 = vmul.f32 %v10896_v49, %v4841_v28 }
 0x45d   : > { %14235 = vst [vmem:[#allocation73_spill] sm:$0xff] %v11026_v0  ;;  %v1967_v0 = vadd.f32 %v1962_v57, %v1893_v51  ;;  %v1966_v35 = vadd.f32 %v1961_v59, %v1892_v10  ;;  %v1998_v31 = vsel %vm702_vm8, %v14241_v25, %v14240_v61  ;;  %v2036_v4 = vsel %vm747_vm9, %v14242_v56, %v14231_v52  ;;  %v14245_v61 = vld [vmem:[#allocation133_spill] sm:$0xff] }
 0x45e   : > { %14237 = vst [vmem:[#allocation71_spill] sm:$0xff] %v11038_v45  ;;  %v4767_v45 = vsel %vm792_vm0, %v4765_v42, %v4766_v13  ;;  %v2035_v18 = vsel %vm747_vm9, %v14243_v7, %v14242_v56  ;;  %v14244_v13 = vld [vmem:[#allocation137_spill] sm:$0xff]  ;;  %v4857_v10 = vrot.slane %v4843_v44, 2  ;;  %v4858_v51 = vrot.slane %v4846_v41, 2 }
 0x45f   : > { %v2073_v42 = vsel %vm747_vm9, %v14244_v13, %v14238_v21  ;;  %v2004_v28 = vadd.f32 %v1999_v37, %v1930_v11  ;;  %v4854_v57 = vrot.slane %v4842_v15, 2  ;;  %v4855_v59 = vrot.slane %v4845_v17, 2 }
 0x460   : > { %v4878_v52 = vstv %s11022_s20  ;;  %v2103_v7 = vadd.f32 %v10967_v30, %v2079_v12  ;;  %v2125_v25 = vadd.f32 %v14245_v61, %v2095_v6  ;;  %v2041_v44 = vadd.f32 %v2036_v4, %v1967_v0  ;;  %s11439_s20 = sld [smem:[#allocation9 + $0x4e]] }
 0x461   : > { %4770 = vrot.lane.b32.xlu1 %v4764_v36, %s8181_s4  ;;  %4768 = vrot.lane.b32.xlu0 %v4761_v46, %s8181_s4  ;;  %v4860_v36 = vrot.slane %v4844_v50, 2  ;;  %v4861_v46 = vrot.slane %v4847_v58, 2  ;;  %v2040_v41 = vadd.f32 %v2035_v18, %v1966_v35  ;;  %v2078_v11 = vadd.f32 %v2073_v42, %v2004_v28  ;;  %v14251_v42 = vld [vmem:[#allocation139_spill] sm:$0xff]  ;;  %v14252_v28 = vld [vmem:[#allocation140_spill] sm:$0xff] }
 0x462   : > { %4772 = vrot.lane.b32.xlu2 %v4767_v45, %s8181_s4  ;;  %v14248_v45 = vld [vmem:[#allocation138_spill] sm:$0xff]  ;;  %v2003_v37 = vadd.f32 %v1998_v31, %v1929_v3  ;;  %v2147_v30 = vadd.f32 %v14250_v5, %v2103_v7  ;;  %v4859_v6 = vsel %vm1443_vm1, %v4857_v10, %v4858_v51  ;;  %v4880_v12 = vmul.f32 %v10598_v1, %v4878_v52 }
 0x463   : > { %v11076_v56 = vpop.permute.xlu1 %4252  ;;  %v11078_v21 = vpop.permute.xlu0 %4250  ;;  %v2072_v15 = vsel %vm747_vm9, %v14248_v45, %v14244_v13  ;;  %v4883_v50 = vmul.f32 %v10883_v60, %v4878_v52  ;;  %v4879_v0 = vmul.f32 %v10604_v33, %v4878_v52  ;;  %v4882_v35 = vmul.f32 %v10888_v32, %v4878_v52 }
 0x464   : > { %14246 = vst [vmem:[#allocation72_spill] sm:$0xff] %v11076_v56  ;;  %v11083_v17 = vpop.permute.xlu2 %4365  ;;  %v2077_v58 = vadd.f32 %v2072_v15, %v2003_v37  ;;  %v4862_v4 = vsel %vm1443_vm1, %v4860_v36, %v4861_v46  ;;  %v4881_v18 = vmul.f32 %v10610_v16, %v4878_v52  ;;  %v4884_v3 = vmul.f32 %v10896_v49, %v4878_v52  ;;  %v14254_v36 = vld [vmem:[#allocation143_spill] sm:$0xff] }
 0x465   : > { %14247 = vst [vmem:[#allocation74_spill] sm:$0xff] %v11078_v21  ;;  %v4856_v21 = vsel %vm1443_vm1, %v4854_v57, %v4855_v59  ;;  %v2094_v31 = vadd.f32 %v11009_v38, %v2041_v44  ;;  %v2093_v13 = vadd.f32 %v11016_v14, %v2040_v41  ;;  %v2169_v10 = vadd.f32 %v14251_v42, %v2125_v25  ;;  %v14253_v59 = vld [vmem:[#allocation141_spill] sm:$0xff]  ;;  %v14255_v44 = vld [vmem:[#allocation142_spill] sm:$0xff] }
 0x466   : > { %14249 = vst [vmem:[#allocation76_spill] sm:$0xff] %v11083_v17  ;;  %v2102_v51 = vadd.f32 %v2099_v62, %v2078_v11  ;;  %v2119_v57 = vsel %vm432_vm2, %v14252_v28, %v14245_v61  ;;  %v2118_v7 = vsel %vm432_vm2, %v14253_v59, %v14252_v28  ;;  %v2141_v46 = vsel %vm432_vm2, %v14254_v36, %v14250_v5  ;;  %v14262_v28 = vld [vmem:[#allocation147_spill] sm:$0xff]  ;;  %v14284_v17 = vld [vmem:[#allocation164_spill] sm:$0xff] }
 0x467   : > { %v4894_v38 = vrot.slane %v4880_v12, 2  ;;  %v4895_v14 = vrot.slane %v4883_v50, 2  ;;  %v4891_v62 = vrot.slane %v4879_v0, 2  ;;  %v4892_v52 = vrot.slane %v4882_v35, 2  ;;  %v14259_v50 = vld [vmem:[#allocation144_spill] sm:$0xff] }
 0x468   : > { %v4915_v25 = vstv %s11072_s11  ;;  %v2101_v61 = vadd.f32 %v11036_v55, %v2077_v58  ;;  %v2191_v41 = vadd.f32 %v14255_v44, %v2147_v30  ;;  %v4897_v45 = vrot.slane %v4881_v18, 2  ;;  %v14261_v55 = vld [vmem:[#allocation146_spill] sm:$0xff]  ;;  %s11478_s11 = sld [smem:[#allocation9 + $0x2d]] }
 0x469   : > { %4865 = vrot.lane.b32.xlu1 %v4859_v6, %s8174_s10  ;;  %4863 = vrot.lane.b32.xlu0 %v4856_v21, %s8174_s10  ;;  %v4898_v15 = vrot.slane %v4884_v3, 2  ;;  %v2124_v21 = vadd.f32 %v2119_v57, %v2094_v31  ;;  %v2123_v37 = vadd.f32 %v2118_v7, %v2093_v13  ;;  %v14258_v6 = vld [vmem:[#allocation145_spill] sm:$0xff]  ;;  %v2140_v0 = vsel %vm432_vm2, %v14259_v50, %v14254_v36  ;;  %v14263_v36 = vld [vmem:[#allocation148_spill] sm:$0xff] }
 0x46a   : > { %4867 = vrot.lane.b32.xlu2 %v4862_v4, %s8174_s10  ;;  %v2213_v12 = vadd.f32 %v14258_v6, %v2169_v10  ;;  %v2146_v4 = vadd.f32 %v2141_v46, %v2102_v51  ;;  %v2163_v30 = vsel %vm477_vm3, %v14261_v55, %v14251_v42  ;;  %v4917_v58 = vmul.f32 %v10598_v1, %v4915_v25 }
 0x46b   : > { %v11115_v11 = vpop.permute.xlu1 %4289  ;;  %v11117_v5 = vpop.permute.xlu0 %4287  ;;  %v4920_v18 = vmul.f32 %v10883_v60, %v4915_v25  ;;  %v4896_v3 = vsel %vm1443_vm1, %v4894_v38, %v4895_v14  ;;  %v4893_v31 = vsel %vm1443_vm1, %v4891_v62, %v4892_v52  ;;  %v4916_v13 = vmul.f32 %v10604_v33, %v4915_v25  ;;  %v14264_v14 = vld [vmem:[#allocation149_spill] sm:$0xff]  ;;  %v14265_v52 = vld [vmem:[#allocation150_spill] sm:$0xff] }
 0x46c   : > { %14256 = vst [vmem:[#allocation75_spill] sm:$0xff] %v11115_v11  ;;  %v11123_v35 = vpop.permute.xlu2 %4402  ;;  %v4919_v10 = vmul.f32 %v10888_v32, %v4915_v25  ;;  %v2162_v51 = vsel %vm477_vm3, %v14262_v28, %v14261_v55  ;;  %v4899_v57 = vsel %vm1443_vm1, %v4897_v45, %v4898_v15  ;;  %v4918_v42 = vmul.f32 %v10610_v16, %v4915_v25  ;;  %v14266_v45 = vld [vmem:[#allocation152_spill] sm:$0xff]  ;;  %v14267_v55 = vld [vmem:[#allocation151_spill] sm:$0xff] }
 0x46d   : > { %14257 = vst [vmem:[#allocation77_spill] sm:$0xff] %v11117_v5  ;;  %v4921_v59 = vmul.f32 %v10896_v49, %v4915_v25  ;;  %v2145_v7 = vadd.f32 %v2140_v0, %v2101_v61  ;;  %v2235_v46 = vadd.f32 %v14263_v36, %v2191_v41  ;;  %v2168_v38 = vadd.f32 %v2163_v30, %v2124_v21  ;;  %v14295_v11 = vld [vmem:[#allocation171_spill] sm:$0xff] }
 0x46e   : > { %14260 = vst [vmem:[#allocation78_spill] sm:$0xff] %v11123_v35  ;;  %v2185_v62 = vsel %vm477_vm3, %v14264_v14, %v14255_v44  ;;  %v2184_v50 = vsel %vm477_vm3, %v14265_v52, %v14264_v14  ;;  %v2207_v15 = vsel %vm522_vm4, %v14266_v45, %v14258_v6  ;;  %v4931_v25 = vrot.slane %v4917_v58, 2  ;;  %v14270_v58 = vld [vmem:[#allocation154_spill] sm:$0xff] }
 0x46f   : > { %v4932_v61 = vrot.slane %v4920_v18, 2  ;;  %v2167_v41 = vadd.f32 %v2162_v51, %v2123_v37  ;;  %v4928_v44 = vrot.slane %v4916_v13, 2  ;;  %v4929_v21 = vrot.slane %v4919_v10, 2  ;;  %v14271_v51 = vld [vmem:[#allocation153_spill] sm:$0xff] }
 0x470   : > { %v4952_v0 = vstv %s11111_s29  ;;  %v2257_v30 = vadd.f32 %v14267_v55, %v2213_v12  ;;  %v2190_v28 = vadd.f32 %v2185_v62, %v2146_v4  ;;  %v4935_v52 = vrot.slane %v4921_v59, 2  ;;  %v14274_v4 = vld [vmem:[#allocation156_spill] sm:$0xff]  ;;  %s11484_s29 = sld [smem:[#allocation9 + $0xba]] }
 0x471   : > { %4902 = vrot.lane.b32.xlu1 %v4896_v3, %s8174_s10  ;;  %4900 = vrot.lane.b32.xlu0 %v4893_v31, %s8174_s10  ;;  %v4934_v3 = vrot.slane %v4918_v42, 2  ;;  %v2189_v31 = vadd.f32 %v2184_v50, %v2145_v7  ;;  %v2279_v18 = vadd.f32 %v14270_v58, %v2235_v46  ;;  %v2212_v37 = vadd.f32 %v2207_v15, %v2168_v38 }
 0x472   : > { %4904 = vrot.lane.b32.xlu2 %v4899_v57, %s8174_s10  ;;  %v2206_v13 = vsel %vm522_vm4, %v14271_v51, %v14266_v45  ;;  %v14273_v57 = vld [vmem:[#allocation155_spill] sm:$0xff]  ;;  %v4933_v42 = vsel %vm1443_vm1, %v4931_v25, %v4932_v61  ;;  %v4954_v59 = vmul.f32 %v10598_v1, %v4952_v0  ;;  %v4930_v7 = vsel %vm1443_vm1, %v4928_v44, %v4929_v21  ;;  %v14275_v25 = vld [vmem:[#allocation157_spill] sm:$0xff]  ;;  %v14276_v44 = vld [vmem:[#allocation158_spill] sm:$0xff] }
 0x473   : > { %v11161_v6 = vpop.permute.xlu1 %4326  ;;  %v11163_v14 = vpop.permute.xlu0 %4324  ;;  %v2229_v12 = vsel %vm522_vm4, %v14273_v57, %v14263_v36  ;;  %v2228_v62 = vsel %vm522_vm4, %v14274_v4, %v14273_v57  ;;  %v4957_v46 = vmul.f32 %v10883_v60, %v4952_v0  ;;  %v4953_v38 = vmul.f32 %v10604_v33, %v4952_v0 }
 0x474   : > { %14268 = vst [vmem:[#allocation79_spill] sm:$0xff] %v11161_v6  ;;  %v11169_v10 = vpop.permute.xlu2 %4439  ;;  %v4956_v50 = vmul.f32 %v10888_v32, %v4952_v0  ;;  %v2211_v45 = vadd.f32 %v2206_v13, %v2167_v41  ;;  %v4936_v36 = vsel %vm1443_vm1, %v4934_v3, %v4935_v52  ;;  %v4955_v15 = vmul.f32 %v10610_v16, %v4952_v0 }
 0x475   : > { %14269 = vst [vmem:[#allocation80_spill] sm:$0xff] %v11163_v14  ;;  %v4958_v51 = vmul.f32 %v10896_v49, %v4952_v0  ;;  %v2301_v61 = vadd.f32 %v14275_v25, %v2257_v30  ;;  %v2234_v57 = vadd.f32 %v2229_v12, %v2190_v28  ;;  %v2233_v4 = vadd.f32 %v2228_v62, %v2189_v31  ;;  %v14277_v14 = vld [vmem:[#allocation159_spill] sm:$0xff]  ;;  %v14278_v31 = vld [vmem:[#allocation160_spill] sm:$0xff] }
 0x476   : > { %14272 = vst [vmem:[#allocation81_spill] sm:$0xff] %v11169_v10  ;;  %v2251_v21 = vsel %vm567_vm5, %v14276_v44, %v14267_v55  ;;  %v2250_v10 = vsel %vm567_vm5, %v14277_v14, %v14276_v44  ;;  %v11194_v41 = vstv %s11144_s15  ;;  %v11197_v3 = vstv %s11152_s0  ;;  %s11506_s15 = sld [smem:[#allocation9 + $0x99]] }
 0x477   : > { %v4968_v0 = vrot.slane %v4954_v59, 2  ;;  %v4969_v30 = vrot.slane %v4957_v46, 2  ;;  %v4965_v28 = vrot.slane %v4953_v38, 2  ;;  %v4966_v52 = vrot.slane %v4956_v50, 2  ;;  %v14281_v59 = vld [vmem:[#allocation161_spill] sm:$0xff]  ;;  %s11534_s0 = sld [smem:[#allocation9 + $0x4f]] }
 0x478   : > { %v4989_v55 = vstv %s11158_s30  ;;  %v2323_v14 = vadd.f32 %v14278_v31, %v2279_v18  ;;  %v2256_v13 = vadd.f32 %v2251_v21, %v2212_v37  ;;  %v4972_v44 = vrot.slane %v4958_v51, 2  ;;  %v11216_v38 = vld [vmem:[%s8418_s18 + $0x28] sm:$0x3]  ;;  %s11585_s30 = sld [smem:[#allocation9 + $0xbb]] }
 0x479   : > { %4939 = vrot.lane.b32.xlu1 %v4933_v42, %s8175_s19  ;;  %4937 = vrot.lane.b32.xlu0 %v4930_v7, %s8175_s19  ;;  %v4971_v42 = vrot.slane %v4955_v15, 2  ;;  %v2255_v7 = vadd.f32 %v2250_v10, %v2211_v45  ;;  %v2460_v46 = vmul.f32 %v10927_v47, %v11194_v41  ;;  %v2463_v18 = vmul.f32 %v11216_v38, %v11194_v41 }
 0x47a   : > { %4941 = vrot.lane.b32.xlu2 %v4936_v36, %s8175_s19  ;;  %v2273_v36 = vsel %vm567_vm5, %v14281_v59, %v14270_v58  ;;  %v2489_v50 = vmul.f32 %v10927_v47, %v11197_v3  ;;  %v2492_v10 = vmul.f32 %v11216_v38, %v11197_v3  ;;  %v4991_v45 = vmul.f32 %v10598_v1, %v4989_v55 }
 0x47b   : > { %v11206_v12 = vpop.permute.xlu1 %4363  ;;  %v11208_v62 = vpop.permute.xlu0 %4361  ;;  %v4994_v58 = vmul.f32 %v10883_v60, %v4989_v55  ;;  %v4970_v15 = vsel %vm1443_vm1, %v4968_v0, %v4969_v30  ;;  %v4967_v51 = vsel %vm1443_vm1, %v4965_v28, %v4966_v52  ;;  %v4990_v21 = vmul.f32 %v10604_v33, %v4989_v55  ;;  %v14285_v30 = vld [vmem:[#allocation165_spill] sm:$0xff] }
 0x47c   : > { %14279 = vst [vmem:[#allocation82_spill] sm:$0xff] %v11206_v12  ;;  %v11220_v37 = vpop.permute.xlu2 %4476  ;;  %v4973_v47 = vsel %vm1443_vm1, %v4971_v42, %v4972_v44  ;;  %v4992_v35 = vmul.f32 %v10610_v16, %v4989_v55  ;;  %v4995_v1 = vmul.f32 %v10896_v49, %v4989_v55  ;;  %v2295_v0 = vsel %vm612_vm6, %v14284_v17, %v14275_v25  ;;  %v14286_v44 = vld [vmem:[#allocation163_spill] sm:$0xff] }
 0x47d   : > { %14280 = vst [vmem:[#allocation83_spill] sm:$0xff] %v11208_v62  ;;  %v4993_v62 = vmul.f32 %v10888_v32, %v4989_v55  ;;  %v2294_v33 = vsel %vm612_vm6, %v14285_v30, %v14284_v17  ;;  %v2476_v28 = vrot.slane %v2460_v46, 1  ;;  %v2477_v52 = vrot.slane %v2463_v18, 1  ;;  %v11284_v30 = vld [vmem:[%s8411_s21 + $0x40] sm:$0xff] }
 0x47e   : > { %14282 = vst [vmem:[#allocation84_spill] sm:$0xff] %v11220_v37  ;;  %v14283_v37 = vld [vmem:[#allocation162_spill] sm:$0xff]  ;;  %v2505_v6 = vrot.slane %v2489_v50, 1  ;;  %v2506_v5 = vrot.slane %v2492_v10, 1  ;;  %v5005_v16 = vrot.slane %v4991_v45, 2  ;;  %v5006_v42 = vrot.slane %v4994_v58, 2 }
 0x47f   : > { %v2272_v12 = vsel %vm567_vm5, %v14283_v37, %v14281_v59  ;;  %v2345_v55 = vadd.f32 %v14286_v44, %v2301_v61  ;;  %v5002_v59 = vrot.slane %v4990_v21, 2  ;;  %v5003_v25 = vrot.slane %v4993_v62, 2  ;;  %v14289_v58 = vld [vmem:[#allocation166_spill] sm:$0xff] }
 0x480   : > { %v5026_v37 = vstv %s11203_s12  ;;  %v2278_v17 = vadd.f32 %v2273_v36, %v2234_v57  ;;  %v2277_v46 = vadd.f32 %v2272_v12, %v2233_v4  ;;  %v5008_v10 = vrot.slane %v4992_v35, 2  ;;  %v14291_v57 = vld [vmem:[#allocation167_spill] sm:$0xff]  ;;  %v11269_v36 = vld [vmem:[%s8411_s21 + $0x38] sm:$0xff]  ;;  %s11626_s12 = sld [smem:[#allocation9 + $0x50]] }
 0x481   : > { %4976 = vrot.lane.b32.xlu1 %v4970_v15, %s8175_s19  ;;  %4974 = vrot.lane.b32.xlu0 %v4967_v51, %s8175_s19  ;;  %v5009_v45 = vrot.slane %v4995_v1, 2  ;;  %v2367_v15 = vadd.f32 %v14289_v58, %v2323_v14  ;;  %v2300_v61 = vadd.f32 %v2295_v0, %v2256_v13  ;;  %v2299_v51 = vadd.f32 %v2294_v33, %v2255_v7 }
 0x482   : > { %4978 = vrot.lane.b32.xlu2 %v4973_v47, %s8175_s19  ;;  %v11257_v62 = vsel %vm792_vm0, %v2476_v28, %v2477_v52  ;;  %v2317_v4 = vsel %vm612_vm6, %v14291_v57, %v14278_v31  ;;  %v11265_v12 = vsel %vm792_vm0, %v2505_v6, %v2506_v5  ;;  %v5007_v35 = vsel %vm1443_vm1, %v5005_v16, %v5006_v42  ;;  %v11275_v47 = vld [vmem:[%s8411_s21 + $0x30] sm:$0xff]  ;;  %v14293_v52 = vld [vmem:[#allocation169_spill] sm:$0xff] }
 0x483   : > { %v11251_v18 = vpop.permute.xlu1 %4400  ;;  %v11253_v50 = vpop.permute.xlu0 %4398  ;;  %v5028_v14 = vmul.f32 %v11269_v36, %v5026_v37  ;;  %v5004_v13 = vsel %vm1443_vm1, %v5002_v59, %v5003_v25  ;;  %v5031_v7 = vmul.f32 %v10883_v60, %v5026_v37  ;;  %v5027_v1 = vmul.f32 %v11275_v47, %v5026_v37  ;;  %v14292_v5 = vld [vmem:[#allocation168_spill] sm:$0xff]  ;;  %v11292_v25 = vld [vmem:[%s8418_s18 + $0x20] sm:$0x3] }
 0x484   : > { %14287 = vst [vmem:[#allocation86_spill] sm:$0xff] %v11251_v18  ;;  %v11259_v21 = vpop.permute.xlu2 %4513  ;;  %v5030_v31 = vmul.f32 %v10888_v32, %v5026_v37  ;;  %v2316_v6 = vsel %vm612_vm6, %v14292_v5, %v14291_v57  ;;  %v5010_v0 = vsel %vm1443_vm1, %v5008_v10, %v5009_v45  ;;  %v5029_v33 = vmul.f32 %v11284_v30, %v5026_v37  ;;  %v14294_v10 = vld [vmem:[#allocation170_spill] sm:$0xff] }
 0x485   : > { %14288 = vst [vmem:[#allocation87_spill] sm:$0xff] %v11253_v50  ;;  %v5032_v28 = vmul.f32 %v10896_v49, %v5026_v37  ;;  %v2389_v16 = vadd.f32 %v14293_v52, %v2345_v55  ;;  %v2322_v42 = vadd.f32 %v2317_v4, %v2278_v17  ;;  %v2459_v59 = vmul.f32 %v11005_v27, %v11194_v41  ;;  %v11302_v37 = vld [vmem:[%s8418_s18 + $0x18] sm:$0x3] }
 0x486   : > { %14290 = vst [vmem:[#allocation89_spill] sm:$0xff] %v11259_v21  ;;  %v2462_v57 = vmul.f32 %v11292_v25, %v11194_v41  ;;  %v2339_v45 = vsel %vm657_vm7, %v14294_v10, %v14286_v44  ;;  %v2458_v5 = vmul.f32 %v11012_v29, %v11194_v41  ;;  %v2461_v55 = vmul.f32 %v11302_v37, %v11194_v41 }
 0x487   : > { %v5042_v17 = vrot.slane %v5028_v14, 2  ;;  %v5043_v4 = vrot.slane %v5031_v7, 2  ;;  %v5039_v21 = vrot.slane %v5027_v1, 2  ;;  %v5040_v50 = vrot.slane %v5030_v31, 2  ;;  %v14297_v14 = vld [vmem:[#allocation172_spill] sm:$0xff] }
 0x488   : > { %v5063_v18 = vstv %s11249_s16  ;;  %v2321_v44 = vadd.f32 %v2316_v6, %v2277_v46  ;;  %v2338_v56 = vsel %vm657_vm7, %v14295_v11, %v14294_v10  ;;  %v2411_v34 = vadd.f32 %v14297_v14, %v2367_v15  ;;  %s11677_s16 = sld [smem:[#allocation9 + $0xbc]] }
 0x489   : > { %5013 = vrot.lane.b32.xlu1 %v5007_v35, %s8176_s14  ;;  %5011 = vrot.lane.b32.xlu0 %v5004_v13, %s8176_s14  ;;  %v5045_v35 = vrot.slane %v5029_v33, 2  ;;  %v5046_v13 = vrot.slane %v5032_v28, 2  ;;  %v2473_v7 = vrot.slane %v2459_v59, 1  ;;  %v2474_v1 = vrot.slane %v2462_v57, 1 }
 0x48a   : > { %5015 = vrot.lane.b32.xlu2 %v5010_v0, %s8176_s14  ;;  %v2344_v0 = vadd.f32 %v2339_v45, %v2300_v61  ;;  %v2470_v8 = vrot.slane %v2458_v5, 1  ;;  %v2471_v43 = vrot.slane %v2461_v55, 1  ;;  %v5065_v46 = vmul.f32 %v11269_v36, %v5063_v18  ;;  %v14299_v45 = vld [vmem:[#allocation173_spill] sm:$0xff] }
 0x48b   : > { %v11315_v20 = vpop.permute.xlu1 %4437  ;;  %v11317_v41 = vpop.permute.xlu0 %4435  ;;  %v5068_v6 = vmul.f32 %v10883_v60, %v5063_v18  ;;  %v5044_v11 = vsel %vm1443_vm1, %v5042_v17, %v5043_v4  ;;  %v5041_v10 = vsel %vm1443_vm1, %v5039_v21, %v5040_v50  ;;  %v5064_v33 = vmul.f32 %v11275_v47, %v5063_v18 }
 0x48c   : > { %14296 = vst [vmem:[#allocation85_spill] sm:$0xff] %v11317_v41  ;;  %v11320_v31 = vpop.permute.xlu2 %4550  ;;  %v5067_v28 = vmul.f32 %v10888_v32, %v5063_v18  ;;  %v2343_v15 = vadd.f32 %v2338_v56, %v2299_v51  ;;  %v5047_v61 = vsel %vm1443_vm1, %v5045_v35, %v5046_v13  ;;  %v5066_v59 = vmul.f32 %v11284_v30, %v5063_v18  ;;  %v14300_v51 = vld [vmem:[#allocation174_spill] sm:$0xff] }
 0x48d   : > { %14298 = vst [vmem:[#allocation90_spill] sm:$0xff] %v11320_v31  ;;  %v5069_v57 = vmul.f32 %v10896_v49, %v5063_v18  ;;  %v2361_v5 = vsel %vm657_vm7, %v14299_v45, %v14289_v58  ;;  %v11335_v55 = vsel %vm792_vm0, %v2473_v7, %v2474_v1  ;;  %v11339_v50 = vmul.f32 %v11005_v27, %v11197_v3  ;;  %v14301_v1 = vld [vmem:[#allocation175_spill] sm:$0xff] }
 0x48e   : > { %v11343_v56 = vmul.f32 %v11292_v25, %v11197_v3  ;;  %v2360_v21 = vsel %vm657_vm7, %v14300_v51, %v14299_v45  ;;  %v11350_v18 = vmul.f32 %v11012_v29, %v11197_v3  ;;  %v5079_v58 = vrot.slane %v5065_v46, 2 }
 0x48f   : > { %v5080_v17 = vrot.slane %v5068_v6, 2  ;;  %v11355_v4 = vsel %vm792_vm0, %v2470_v8, %v2471_v43  ;;  %v5076_v35 = vrot.slane %v5064_v33, 2  ;;  %v5077_v13 = vrot.slane %v5067_v28, 2 }
 0x490   : > { %v5100_v7 = vstv %s11310_s2  ;;  %v2433_v45 = vadd.f32 %v14301_v1, %v2389_v16  ;;  %v2366_v51 = vadd.f32 %v2361_v5, %v2322_v42  ;;  %v5083_v46 = vrot.slane %v5069_v57, 2  ;;  %s11763_s2 = sld [smem:[#allocation9 + $0x52]] }
 0x491   : > { %5050 = vrot.lane.b32.xlu1 %v5044_v11, %s8176_s14  ;;  %5048 = vrot.lane.b32.xlu0 %v5041_v10, %s8176_s14  ;;  %v5082_v10 = vrot.slane %v5066_v59, 2  ;;  %v2365_v6 = vadd.f32 %v2360_v21, %v2321_v44  ;;  %v2502_v43 = vrot.slane %v11339_v50, 1  ;;  %v2503_v8 = vrot.slane %v11343_v56, 1  ;;  %v14306_v56 = vld [vmem:[#allocation178_spill] sm:$0xff] }
 0x492   : > { %5052 = vrot.lane.b32.xlu2 %v5047_v61, %s8176_s14  ;;  %v2490_v33 = vmul.f32 %v11302_v37, %v11197_v3  ;;  %v14305_v61 = vld [vmem:[#allocation176_spill] sm:$0xff]  ;;  %v2499_v42 = vrot.slane %v11350_v18, 1  ;;  %v5081_v5 = vsel %vm1443_vm1, %v5079_v58, %v5080_v17  ;;  %v5102_v59 = vmul.f32 %v11269_v36, %v5100_v7 }
 0x493   : > { %v11362_v31 = vpop.permute.xlu1 %4474  ;;  %v11364_v11 = vpop.permute.xlu0 %4472  ;;  %v2383_v16 = vsel %vm702_vm8, %v14305_v61, %v14293_v52  ;;  %v5078_v44 = vsel %vm1443_vm1, %v5076_v35, %v5077_v13  ;;  %v5105_v57 = vmul.f32 %v10883_v60, %v5100_v7  ;;  %v5101_v50 = vmul.f32 %v11275_v47, %v5100_v7  ;;  %v14307_v35 = vld [vmem:[#allocation177_spill] sm:$0xff] }
 0x494   : > { %14302 = vst [vmem:[#allocation88_spill] sm:$0xff] %v11362_v31  ;;  %v11370_v28 = vpop.permute.xlu2 %4587  ;;  %v5104_v3 = vmul.f32 %v10888_v32, %v5100_v7  ;;  %v2455_v21 = vadd.f32 %v14306_v56, %v2411_v34  ;;  %v5103_v52 = vmul.f32 %v11284_v30, %v5100_v7  ;;  %v5106_v18 = vmul.f32 %v10896_v49, %v5100_v7  ;;  %v14308_v31 = vld [vmem:[#allocation179_spill] sm:$0xff]  ;;  %v14309_v34 = vld [vmem:[#allocation180_spill] sm:$0xff] }
 0x495   : > { %14303 = vst [vmem:[#allocation91_spill] sm:$0xff] %v11364_v11  ;;  %v2484_v58 = vadd.f32 %v11257_v62, %v2433_v45  ;;  %v2388_v17 = vadd.f32 %v2383_v16, %v2344_v0  ;;  %v2382_v13 = vsel %vm702_vm8, %v14307_v35, %v14305_v61  ;;  %v2500_v11 = vrot.slane %v2490_v33, 1 }
 0x496   : > { %14304 = vst [vmem:[#allocation92_spill] sm:$0xff] %v11370_v28  ;;  %v5084_v28 = vsel %vm1443_vm1, %v5082_v10, %v5083_v46  ;;  %v2405_v41 = vsel %vm702_vm8, %v14308_v31, %v14297_v14  ;;  %v2404_v10 = vsel %vm702_vm8, %v14309_v34, %v14308_v31  ;;  %v14310_v46 = vld [vmem:[#allocation182_spill] sm:$0xff]  ;;  %v5116_v62 = vrot.slane %v5102_v59, 2 }
 0x497   : > { %v2427_v7 = vsel %vm747_vm9, %v14310_v46, %v14301_v1  ;;  %v5117_v0 = vrot.slane %v5105_v57, 2  ;;  %v5113_v45 = vrot.slane %v5101_v50, 2  ;;  %v5114_v33 = vrot.slane %v5104_v3, 2  ;;  %v14313_v3 = vld [vmem:[#allocation185_spill] sm:$0xff] }
 0x498   : > { %v5137_v61 = vstv %s11359_s24  ;;  %v2513_v14 = vadd.f32 %v11265_v12, %v2455_v21  ;;  %v2387_v31 = vadd.f32 %v2382_v13, %v2343_v15  ;;  %v5119_v1 = vrot.slane %v5103_v52, 2  ;;  %v14314_v15 = vld [vmem:[#allocation186_spill] sm:$0xff]  ;;  %s11788_s24 = sld [smem:[#allocation9 + $0x36]] }
 0x499   : > { %5087 = vrot.lane.b32.xlu1 %v5081_v5, %s8177_s9  ;;  %5085 = vrot.lane.b32.xlu0 %v5078_v44, %s8177_s9  ;;  %v5120_v5 = vrot.slane %v5106_v18, 2  ;;  %v2410_v34 = vadd.f32 %v2405_v41, %v2366_v51  ;;  %v2409_v44 = vadd.f32 %v2404_v10, %v2365_v6  ;;  %v2432_v59 = vadd.f32 %v2427_v7, %v2388_v17 }
 0x49a   : > { %5089 = vrot.lane.b32.xlu2 %v5084_v28, %s8177_s9  ;;  %v14311_v28 = vld [vmem:[#allocation183_spill] sm:$0xff]  ;;  %v2449_v12 = vsel %vm747_vm9, %v14313_v3, %v14306_v56  ;;  %v2448_v21 = vsel %vm747_vm9, %v14314_v15, %v14313_v3  ;;  %v5139_v52 = vmul.f32 %v11269_v36, %v5137_v61  ;;  %v5142_v41 = vmul.f32 %v10883_v60, %v5137_v61 }
 0x49b   : > { %v11406_v16 = vpop.permute.xlu1 %4511  ;;  %v11408_v35 = vpop.permute.xlu0 %4509  ;;  %v2426_v57 = vsel %vm747_vm9, %v14311_v28, %v14310_v46  ;;  %v5118_v51 = vsel %vm1443_vm1, %v5116_v62, %v5117_v0  ;;  %v5115_v6 = vsel %vm1443_vm1, %v5113_v45, %v5114_v33  ;;  %v5138_v18 = vmul.f32 %v11275_v47, %v5137_v61  ;;  %v14315_v0 = vld [vmem:[#allocation181_spill] sm:$0xff]  ;;  %v14316_v33 = vld [vmem:[#allocation184_spill] sm:$0xff] }
 0x49c   : > { %v11413_v50 = vpop.permute.xlu2 %4624  ;;  %v5141_v17 = vmul.f32 %v10888_v32, %v5137_v61  ;;  %v2431_v13 = vadd.f32 %v2426_v57, %v2387_v31  ;;  %v5121_v10 = vsel %vm1443_vm1, %v5119_v1, %v5120_v5  ;;  %v5140_v56 = vmul.f32 %v11284_v30, %v5137_v61 }
 0x49d   : > { %14312 = vst [vmem:[#allocation93_spill] sm:$0xff] %v11413_v50  ;;  %v5143_v46 = vmul.f32 %v10896_v49, %v5137_v61  ;;  %v2504_v7 = vsel %vm792_vm0, %v2502_v43, %v2503_v8  ;;  %v2454_v28 = vadd.f32 %v2449_v12, %v2410_v34  ;;  %v2501_v3 = vsel %vm792_vm0, %v2499_v42, %v2500_v11  ;;  %v14317_v42 = vld [vmem:[#allocation187_spill] sm:$0xff] }
 0x49e   : > { %v2453_v62 = vadd.f32 %v2448_v21, %v2409_v44  ;;  %v2550_v45 = vadd.f32 %v14315_v0, %v2484_v58  ;;  %v2587_v15 = vadd.f32 %v14316_v33, %v2513_v14  ;;  %v5153_v31 = vrot.slane %v5139_v52, 2  ;;  %v14321_v52 = vld [vmem:[#allocation189_spill] sm:$0xff] }
 0x49f   : > { %v5154_v1 = vrot.slane %v5142_v41, 2  ;;  %v2483_v5 = vadd.f32 %v11335_v55, %v2432_v59  ;;  %v5150_v61 = vrot.slane %v5138_v18, 2  ;;  %v5151_v43 = vrot.slane %v5141_v17, 2  ;;  %v14320_v55 = vld [vmem:[#allocation188_spill] sm:$0xff] }
 0x4a0   : > { %v5174_v8 = vstv %s11403_s17  ;;  %v2482_v11 = vadd.f32 %v11355_v4, %v2431_v13  ;;  %v2624_v58 = vadd.f32 %v14317_v42, %v2550_v45  ;;  %v5156_v44 = vrot.slane %v5140_v56, 2  ;;  %v14323_v4 = vld [vmem:[#allocation191_spill] sm:$0xff]  ;;  %v14324_v18 = vld [vmem:[#allocation192_spill] sm:$0xff]  ;;  %s11804_s17 = sld [smem:[#allocation9 + $0xa2]] }
 0x4a1   : > { %5124 = vrot.lane.b32.xlu1 %v5118_v51, %s8177_s9  ;;  %5122 = vrot.lane.b32.xlu0 %v5115_v6, %s8177_s9  ;;  %v5157_v57 = vrot.slane %v5143_v46, 2  ;;  %v2512_v12 = vadd.f32 %v2504_v7, %v2454_v28  ;;  %v2511_v21 = vadd.f32 %v2501_v3, %v2453_v62  ;;  %v2544_v59 = vsel %vm432_vm2, %v14320_v55, %v14315_v0  ;;  %v14325_v3 = vld [vmem:[#allocation190_spill] sm:$0xff] }
 0x4a2   : > { %5126 = vrot.lane.b32.xlu2 %v5121_v10, %s8177_s9  ;;  %v2543_v41 = vsel %vm432_vm2, %v14321_v52, %v14320_v55  ;;  %v2581_v6 = vsel %vm432_vm2, %v14323_v4, %v14316_v33  ;;  %v2580_v17 = vsel %vm432_vm2, %v14324_v18, %v14323_v4  ;;  %v5155_v13 = vsel %vm1443_vm1, %v5153_v31, %v5154_v1  ;;  %v14326_v55 = vld [vmem:[#allocation193_spill] sm:$0xff] }
 0x4a3   : > { %v11443_v14 = vpop.permute.xlu1 %4548  ;;  %v11445_v34 = vpop.permute.xlu0 %4546  ;;  %v5176_v10 = vmul.f32 %v11269_v36, %v5174_v8  ;;  %v5152_v56 = vsel %vm1443_vm1, %v5150_v61, %v5151_v43  ;;  %v5179_v46 = vmul.f32 %v10883_v60, %v5174_v8  ;;  %v5175_v7 = vmul.f32 %v11275_v47, %v5174_v8  ;;  %v14327_v61 = vld [vmem:[#allocation194_spill] sm:$0xff] }
 0x4a4   : > { %14318 = vst [vmem:[#allocation94_spill] sm:$0xff] %v11443_v14  ;;  %v11453_v51 = vpop.permute.xlu2 %4661  ;;  %v5178_v28 = vmul.f32 %v10888_v32, %v5174_v8  ;;  %v2661_v62 = vadd.f32 %v14325_v3, %v2587_v15  ;;  %v5158_v0 = vsel %vm1443_vm1, %v5156_v44, %v5157_v57  ;;  %v5177_v45 = vmul.f32 %v11284_v30, %v5174_v8  ;;  %v14328_v32 = vld [vmem:[#allocation195_spill] sm:$0xff] }
 0x4a5   : > { %14319 = vst [vmem:[#allocation95_spill] sm:$0xff] %v11445_v34  ;;  %v5180_v33 = vmul.f32 %v10896_v49, %v5174_v8  ;;  %v2549_v31 = vadd.f32 %v2544_v59, %v2483_v5  ;;  %v2548_v1 = vadd.f32 %v2543_v41, %v2482_v11  ;;  %v2698_v52 = vadd.f32 %v14326_v55, %v2624_v58 }
 0x4a6   : > { %14322 = vst [vmem:[#allocation97_spill] sm:$0xff] %v11453_v51  ;;  %v2618_v43 = vsel %vm477_vm3, %v14327_v61, %v14317_v42  ;;  %v2586_v4 = vadd.f32 %v2581_v6, %v2512_v12  ;;  %v2585_v18 = vadd.f32 %v2580_v17, %v2511_v21  ;;  %v2617_v15 = vsel %vm477_vm3, %v14328_v32, %v14327_v61  ;;  %v14329_v42 = vld [vmem:[#allocation196_spill] sm:$0xff]  ;;  %v14349_v51 = vld [vmem:[#allocation210_spill] sm:$0xff] }
 0x4a7   : > { %v5190_v5 = vrot.slane %v5176_v10, 2  ;;  %v5191_v8 = vrot.slane %v5179_v46, 2  ;;  %v5187_v11 = vrot.slane %v5175_v7, 2  ;;  %v5188_v58 = vrot.slane %v5178_v28, 2  ;;  %v14334_v7 = vld [vmem:[#allocation198_spill] sm:$0xff] }
 0x4a8   : > { %v5211_v44 = vstv %s11439_s20  ;;  %v2735_v57 = vadd.f32 %v14329_v42, %v2661_v62  ;;  %v2623_v12 = vadd.f32 %v2618_v43, %v2549_v31  ;;  %v5193_v41 = vrot.slane %v5177_v45, 2  ;;  %v14337_v45 = vld [vmem:[#allocation201_spill] sm:$0xff]  ;;  %v11514_v32 = vld [vmem:[%s8418_s18 + $0x30] sm:$0x3]  ;;  %s11820_s20 = sld [smem:[#allocation9 + $0xbe]] }
 0x4a9   : > { %5161 = vrot.lane.b32.xlu1 %v5155_v13, %s8178_s8  ;;  %5159 = vrot.lane.b32.xlu0 %v5152_v56, %s8178_s8  ;;  %v5194_v6 = vrot.slane %v5180_v33, 2  ;;  %v2622_v17 = vadd.f32 %v2617_v15, %v2548_v1  ;;  %v14332_v13 = vld [vmem:[#allocation199_spill] sm:$0xff]  ;;  %v14333_v56 = vld [vmem:[#allocation197_spill] sm:$0xff]  ;;  %v5213_v1 = vmul.f32 %v11269_v36, %v5211_v44  ;;  %v5189_v61 = vsel %vm1443_vm1, %v5187_v11, %v5188_v58 }
 0x4aa   : > { %5163 = vrot.lane.b32.xlu2 %v5158_v0, %s8178_s8  ;;  %v2772_v10 = vadd.f32 %v14332_v13, %v2698_v52  ;;  %v2655_v46 = vsel %vm477_vm3, %v14333_v56, %v14325_v3  ;;  %v2654_v28 = vsel %vm477_vm3, %v14334_v7, %v14333_v56  ;;  %v14336_v0 = vld [vmem:[#allocation200_spill] sm:$0xff]  ;;  %v5216_v3 = vmul.f32 %v10883_v60, %v5211_v44  ;;  %v14339_v11 = vld [vmem:[#allocation203_spill] sm:$0xff] }
 0x4ab   : > { %v11487_v21 = vpop.permute.xlu1 %4585  ;;  %v11489_v59 = vpop.permute.xlu0 %4583  ;;  %v2692_v31 = vsel %vm522_vm4, %v14336_v0, %v14326_v55  ;;  %v2691_v33 = vsel %vm522_vm4, %v14337_v45, %v14336_v0  ;;  %v5192_v52 = vsel %vm1443_vm1, %v5190_v5, %v5191_v8  ;;  %v5212_v43 = vmul.f32 %v11275_v47, %v5211_v44  ;;  %v14338_v45 = vld [vmem:[#allocation202_spill] sm:$0xff] }
 0x4ac   : > { %14330 = vst [vmem:[#allocation96_spill] sm:$0xff] %v11487_v21  ;;  %v11498_v62 = vpop.permute.xlu2 %4698  ;;  %v5215_v55 = vmul.f32 %v11514_v32, %v5211_v44  ;;  %v2660_v15 = vadd.f32 %v2655_v46, %v2586_v4  ;;  %v5195_v56 = vsel %vm1443_vm1, %v5193_v41, %v5194_v6  ;;  %v5214_v7 = vmul.f32 %v11284_v30, %v5211_v44 }
 0x4ad   : > { %14331 = vst [vmem:[#allocation98_spill] sm:$0xff] %v11489_v59  ;;  %v5217_v0 = vmul.f32 %v10896_v49, %v5211_v44  ;;  %v2659_v60 = vadd.f32 %v2654_v28, %v2585_v18  ;;  %v2809_v5 = vadd.f32 %v14338_v45, %v2735_v57  ;;  %v2697_v8 = vadd.f32 %v2692_v31, %v2623_v12  ;;  %v14341_v57 = vld [vmem:[#allocation205_spill] sm:$0xff] }
 0x4ae   : > { %14335 = vst [vmem:[#allocation100_spill] sm:$0xff] %v11498_v62  ;;  %v2729_v58 = vsel %vm522_vm4, %v14339_v11, %v14329_v42  ;;  %v2696_v59 = vadd.f32 %v2691_v33, %v2622_v17  ;;  %v14340_v62 = vld [vmem:[#allocation204_spill] sm:$0xff]  ;;  %v5227_v41 = vrot.slane %v5213_v1, 2  ;;  %v5228_v6 = vrot.slane %v5216_v3, 2 }
 0x4af   : > { %v2728_v4 = vsel %vm522_vm4, %v14340_v62, %v14339_v11  ;;  %v11530_v49 = vstv %s11478_s11  ;;  %v5224_v18 = vrot.slane %v5212_v43, 2  ;;  %v5225_v44 = vrot.slane %v5215_v55, 2  ;;  %v14344_v1 = vld [vmem:[#allocation208_spill] sm:$0xff]  ;;  %v14346_v43 = vld [vmem:[#allocation207_spill] sm:$0xff]  ;;  %s11875_s11 = sld [smem:[#allocation9 + $0x53]] }
 0x4b0   : > { %v5248_v42 = vstv %s11484_s29  ;;  %v2846_v12 = vadd.f32 %v14341_v57, %v2772_v10  ;;  %v2734_v17 = vadd.f32 %v2729_v58, %v2660_v15  ;;  %v5230_v62 = vrot.slane %v5214_v7, 2  ;;  %v7887_v15 = vld [vmem:[%s8411_s21 + $0x28] sm:$0xff]  ;;  %s11937_s29 = sld [smem:[#allocation9 + $0xbf]] }
 0x4b1   : > { %5198 = vrot.lane.b32.xlu1 %v5192_v52, %s8178_s8  ;;  %5196 = vrot.lane.b32.xlu0 %v5189_v61, %s8178_s8  ;;  %v5231_v31 = vrot.slane %v5217_v0, 2  ;;  %v2733_v33 = vadd.f32 %v2728_v4, %v2659_v60  ;;  %v2883_v3 = vadd.f32 %v14344_v1, %v2809_v5  ;;  %v14345_v52 = vld [vmem:[#allocation206_spill] sm:$0xff]  ;;  %v11553_v11 = vstv %s11506_s15  ;;  %v11559_v5 = vld [vmem:[%s8418_s18 + $0x38] sm:$0x3]  ;;  %s11969_s15 = sld [smem:[#allocation9 + $0x3f]] }
 0x4b2   : > { %5200 = vrot.lane.b32.xlu2 %v5195_v56, %s8178_s8  ;;  %v2766_v61 = vsel %vm567_vm5, %v14345_v52, %v14332_v13  ;;  %v2765_v10 = vsel %vm567_vm5, %v14346_v43, %v14345_v52  ;;  %v3110_v56 = vmul.f32 %v7887_v15, %v11530_v49  ;;  %v5229_v7 = vsel %vm1443_vm1, %v5227_v41, %v5228_v6  ;;  %v11569_v41 = vld [vmem:[%s8418_s18 + $0x40] sm:$0x3] }
 0x4b3   : > { %v11537_v46 = vpop.permute.xlu1 %4622  ;;  %v11539_v28 = vpop.permute.xlu0 %4620  ;;  %v5250_v0 = vmul.f32 %v11269_v36, %v5248_v42  ;;  %v5226_v60 = vsel %vm1443_vm1, %v5224_v18, %v5225_v44  ;;  %v5253_v13 = vmul.f32 %v11559_v5, %v5248_v42  ;;  %v5249_v58 = vmul.f32 %v11275_v47, %v5248_v42 }
 0x4b4   : > { %14342 = vst [vmem:[#allocation99_spill] sm:$0xff] %v11537_v46  ;;  %v11548_v55 = vpop.permute.xlu2 %4735  ;;  %v5252_v4 = vmul.f32 %v11514_v32, %v5248_v42  ;;  %v3113_v52 = vmul.f32 %v11216_v38, %v11530_v49  ;;  %v5232_v43 = vsel %vm1443_vm1, %v5230_v62, %v5231_v31  ;;  %v5254_v6 = vmul.f32 %v11569_v41, %v5248_v42 }
 0x4b5   : > { %14343 = vst [vmem:[#allocation101_spill] sm:$0xff] %v11539_v28  ;;  %v2771_v18 = vadd.f32 %v2766_v61, %v2697_v8  ;;  %v2770_v44 = vadd.f32 %v2765_v10, %v2696_v59  ;;  %v14348_v28 = vld [vmem:[#allocation209_spill] sm:$0xff]  ;;  %v3126_v34 = vrot.slane %v3110_v56, 2  ;;  %v3139_v62 = vmul.f32 %v7887_v15, %v11553_v11 }
 0x4b6   : > { %14347 = vst [vmem:[#allocation102_spill] sm:$0xff] %v11548_v55  ;;  %v5251_v55 = vmul.f32 %v11284_v30, %v5248_v42  ;;  %v2803_v46 = vsel %vm567_vm5, %v14348_v28, %v14338_v45  ;;  %v2802_v21 = vsel %vm567_vm5, %v14349_v51, %v14348_v28  ;;  %v3142_v31 = vmul.f32 %v11216_v38, %v11553_v11  ;;  %v14350_v51 = vld [vmem:[#allocation211_spill] sm:$0xff] }
 0x4b7   : > { %v5264_v8 = vrot.slane %v5250_v0, 2  ;;  %v5265_v59 = vrot.slane %v5253_v13, 2  ;;  %v5261_v42 = vrot.slane %v5249_v58, 2  ;;  %v5262_v45 = vrot.slane %v5252_v4, 2  ;;  %v14353_v0 = vld [vmem:[#allocation212_spill] sm:$0xff]  ;;  %v14354_v58 = vld [vmem:[#allocation213_spill] sm:$0xff] }
 0x4b8   : > { %v5285_v61 = vstv %s11534_s0  ;;  %v2920_v28 = vadd.f32 %v14350_v51, %v2846_v12  ;;  %v3127_v10 = vrot.slane %v3113_v52, 2  ;;  %v5267_v38 = vrot.slane %v5251_v55, 2  ;;  %s11977_s0 = sld [smem:[#allocation9 + $0x54]] }
 0x4b9   : > { %5235 = vrot.lane.b32.xlu1 %v5229_v7, %s8179_s26  ;;  %5233 = vrot.lane.b32.xlu0 %v5226_v60, %s8179_s26  ;;  %v5268_v7 = vrot.slane %v5254_v6, 2  ;;  %v2808_v14 = vadd.f32 %v2803_v46, %v2734_v17  ;;  %v2807_v60 = vadd.f32 %v2802_v21, %v2733_v33  ;;  %v2840_v13 = vsel %vm612_vm6, %v14353_v0, %v14341_v57 }
 0x4ba   : > { %5237 = vrot.lane.b32.xlu2 %v5232_v43, %s8179_s26  ;;  %v2839_v4 = vsel %vm612_vm6, %v14354_v58, %v14353_v0  ;;  %v3155_v12 = vrot.slane %v3139_v62, 2  ;;  %v3156_v52 = vrot.slane %v3142_v31, 2  ;;  %v5266_v55 = vsel %vm1443_vm1, %v5264_v8, %v5265_v59  ;;  %v14356_v31 = vld [vmem:[#allocation214_spill] sm:$0xff] }
 0x4bb   : > { %v11588_v15 = vpop.permute.xlu1 %4659  ;;  %v11590_v56 = vpop.permute.xlu0 %4657  ;;  %v5263_v21 = vsel %vm1443_vm1, %v5261_v42, %v5262_v45  ;;  %v5286_v17 = vmul.f32 %v11275_v47, %v5285_v61  ;;  %v5289_v57 = vmul.f32 %v11514_v32, %v5285_v61  ;;  %v11607_v46 = vsel %vm1443_vm1, %v3126_v34, %v3127_v10 }
 0x4bc   : > { %14351 = vst [vmem:[#allocation103_spill] sm:$0xff] %v11588_v15  ;;  %v11598_v43 = vpop.permute.xlu2 %4772  ;;  %v5287_v15 = vmul.f32 %v11269_v36, %v5285_v61  ;;  %v5269_v33 = vsel %vm1443_vm1, %v5267_v38, %v5268_v7  ;;  %v5288_v6 = vmul.f32 %v11284_v30, %v5285_v61  ;;  %v5291_v62 = vmul.f32 %v11569_v41, %v5285_v61 }
 0x4bd   : > { %14352 = vst [vmem:[#allocation104_spill] sm:$0xff] %v11590_v56  ;;  %v5290_v56 = vmul.f32 %v11559_v5, %v5285_v61  ;;  %v2957_v0 = vadd.f32 %v14356_v31, %v2883_v3  ;;  %v2845_v58 = vadd.f32 %v2840_v13, %v2771_v18  ;;  %v2844_v8 = vadd.f32 %v2839_v4, %v2770_v44  ;;  %v14357_v44 = vld [vmem:[#allocation215_spill] sm:$0xff]  ;;  %v14360_v4 = vld [vmem:[#allocation216_spill] sm:$0xff] }
 0x4be   : > { %14355 = vst [vmem:[#allocation105_spill] sm:$0xff] %v11598_v43  ;;  %v3109_v59 = vmul.f32 %v11005_v27, %v11530_v49  ;;  %v3112_v42 = vmul.f32 %v11292_v25, %v11530_v49  ;;  %v3108_v34 = vmul.f32 %v11012_v29, %v11530_v49  ;;  %v5301_v45 = vrot.slane %v5287_v15, 2 }
 0x4bf   : > { %v5302_v10 = vrot.slane %v5290_v56, 2  ;;  %v11622_v61 = vsel %vm1443_vm1, %v3155_v12, %v3156_v52  ;;  %v5298_v3 = vrot.slane %v5286_v17, 2  ;;  %v5299_v18 = vrot.slane %v5289_v57, 2  ;;  %v14361_v52 = vld [vmem:[#allocation218_spill] sm:$0xff] }
 0x4c0   : > { %v5322_v27 = vstv %s11585_s30  ;;  %v2877_v29 = vsel %vm612_vm6, %v14357_v44, %v14344_v1  ;;  %v3111_v38 = vmul.f32 %v11302_v37, %v11530_v49  ;;  %v5304_v56 = vrot.slane %v5288_v6, 2  ;;  %s11986_s30 = sld [smem:[#allocation9 + $0xab]] }
 0x4c1   : > { %5272 = vrot.lane.b32.xlu1 %v5266_v55, %s8179_s26  ;;  %5270 = vrot.lane.b32.xlu0 %v5263_v21, %s8179_s26  ;;  %v5305_v13 = vrot.slane %v5291_v62, 2  ;;  %v2876_v12 = vsel %vm612_vm6, %v14360_v4, %v14357_v44  ;;  %v2914_v55 = vsel %vm657_vm7, %v14361_v52, %v14350_v51  ;;  %v14362_v21 = vld [vmem:[#allocation219_spill] sm:$0xff]  ;;  %v3123_v17 = vrot.slane %v3109_v59, 2 }
 0x4c2   : > { %5274 = vrot.lane.b32.xlu2 %v5269_v33, %s8179_s26  ;;  %v2913_v1 = vsel %vm657_vm7, %v14362_v21, %v14361_v52  ;;  %v3124_v57 = vrot.slane %v3112_v42, 2  ;;  %v3120_v33 = vrot.slane %v3108_v34, 2  ;;  %v5303_v6 = vsel %vm1443_vm1, %v5301_v45, %v5302_v10  ;;  %v14364_v34 = vld [vmem:[#allocation217_spill] sm:$0xff] }
 0x4c3   : > { %v11633_v7 = vpop.permute.xlu1 %4696  ;;  %v11635_v15 = vpop.permute.xlu0 %4694  ;;  %v5324_v62 = vmul.f32 %v11269_v36, %v5322_v27  ;;  %v5327_v44 = vmul.f32 %v11559_v5, %v5322_v27  ;;  %v5323_v4 = vmul.f32 %v11275_v47, %v5322_v27  ;;  %v5326_v51 = vmul.f32 %v11514_v32, %v5322_v27 }
 0x4c4   : > { %14358 = vst [vmem:[#allocation106_spill] sm:$0xff] %v11633_v7  ;;  %v11646_v49 = vpop.permute.xlu2 %4867  ;;  %v3121_v7 = vrot.slane %v3111_v38, 2  ;;  %v5306_v52 = vsel %vm1443_vm1, %v5304_v56, %v5305_v13  ;;  %v5325_v59 = vmul.f32 %v11284_v30, %v5322_v27  ;;  %v5328_v42 = vmul.f32 %v11569_v41, %v5322_v27 }
 0x4c5   : > { %14359 = vst [vmem:[#allocation107_spill] sm:$0xff] %v11635_v15  ;;  %v5300_v15 = vsel %vm1443_vm1, %v5298_v3, %v5299_v18  ;;  %v2994_v45 = vadd.f32 %v14364_v34, %v2920_v28  ;;  %v2882_v10 = vadd.f32 %v2877_v29, %v2808_v14  ;;  %v2881_v21 = vadd.f32 %v2876_v12, %v2807_v60  ;;  %v14365_v3 = vld [vmem:[#allocation220_spill] sm:$0xff]  ;;  %v14368_v12 = vld [vmem:[#allocation221_spill] sm:$0xff] }
 0x4c6   : > { %14363 = vst [vmem:[#allocation109_spill] sm:$0xff] %v11646_v49  ;;  %v3031_v18 = vadd.f32 %v14365_v3, %v2957_v0  ;;  %v2919_v49 = vadd.f32 %v2914_v55, %v2845_v58  ;;  %v2918_v43 = vadd.f32 %v2913_v1, %v2844_v8  ;;  %v11660_v50 = vsel %vm1443_vm1, %v3123_v17, %v3124_v57  ;;  %v7890_v0 = vld [vmem:[%s8411_s21 + $0x20] sm:$0xff]  ;;  %v7891_v57 = vld [vmem:[%s8411_s21 + $0x18] sm:$0xff] }
 0x4c7   : > { %v5338_v38 = vrot.slane %v5324_v62, 2  ;;  %v5339_v27 = vrot.slane %v5327_v44, 2  ;;  %v5335_v28 = vrot.slane %v5323_v4, 2  ;;  %v5336_v56 = vrot.slane %v5326_v51, 2  ;;  %v14369_v1 = vld [vmem:[#allocation222_spill] sm:$0xff]  ;;  %v14371_v51 = vld [vmem:[#allocation223_spill] sm:$0xff] }
 0x4c8   : > { %v5359_v14 = vstv %s11626_s12  ;;  %v11667_v60 = vsel %vm1443_vm1, %v3120_v33, %v3121_v7  ;;  %v11671_v58 = vmul.f32 %v7890_v0, %v11553_v11  ;;  %v5342_v13 = vrot.slane %v5328_v42, 2  ;;  %s12033_s12 = sld [smem:[#allocation9 + $0xc0]] }
 0x4c9   : > { %5309 = vrot.lane.b32.xlu1 %v5303_v6, %s8180_s13  ;;  %5307 = vrot.lane.b32.xlu0 %v5300_v15, %s8180_s13  ;;  %v5341_v15 = vrot.slane %v5325_v59, 2  ;;  %v2951_v55 = vsel %vm657_vm7, %v14368_v12, %v14356_v31  ;;  %v2950_v7 = vsel %vm657_vm7, %v14369_v1, %v14368_v12  ;;  %v11687_v17 = vmul.f32 %v11292_v25, %v11553_v11 }
 0x4ca   : > { %5311 = vrot.lane.b32.xlu2 %v5306_v52, %s8180_s13  ;;  %v11691_v33 = vmul.f32 %v7891_v57, %v11553_v11  ;;  %v5361_v62 = vmul.f32 %v11269_v36, %v5359_v14  ;;  %v5364_v44 = vmul.f32 %v11559_v5, %v5359_v14  ;;  %v5360_v31 = vmul.f32 %v11275_v47, %v5359_v14 }
 0x4cb   : > { %v11673_v8 = vpop.permute.xlu1 %4733  ;;  %v11675_v29 = vpop.permute.xlu0 %4731  ;;  %v5363_v4 = vmul.f32 %v11514_v32, %v5359_v14  ;;  %v3068_v52 = vadd.f32 %v14371_v51, %v2994_v45  ;;  %v11702_v25 = vmul.f32 %v11302_v37, %v11553_v11  ;;  %v5340_v59 = vsel %vm1443_vm1, %v5338_v38, %v5339_v27 }
 0x4cc   : > { %14366 = vst [vmem:[#allocation108_spill] sm:$0xff] %v11673_v8  ;;  %v11693_v6 = vpop.permute.xlu2 %4904  ;;  %v5337_v42 = vsel %vm1443_vm1, %v5335_v28, %v5336_v56  ;;  %v2956_v0 = vadd.f32 %v2951_v55, %v2882_v10  ;;  %v5343_v12 = vsel %vm1443_vm1, %v5341_v15, %v5342_v13  ;;  %v5362_v1 = vmul.f32 %v11284_v30, %v5359_v14  ;;  %v14372_v8 = vld [vmem:[#allocation224_spill] sm:$0xff] }
 0x4cd   : > { %14367 = vst [vmem:[#allocation110_spill] sm:$0xff] %v11675_v29  ;;  %v5365_v57 = vmul.f32 %v11569_v41, %v5359_v14  ;;  %v2955_v29 = vadd.f32 %v2950_v7, %v2881_v21  ;;  %v2988_v45 = vsel %vm702_vm8, %v14372_v8, %v14364_v34  ;;  %v3152_v11 = vrot.slane %v11671_v58, 2  ;;  %v14374_v58 = vld [vmem:[#allocation226_spill] sm:$0xff] }
 0x4ce   : > { %14370 = vst [vmem:[#allocation111_spill] sm:$0xff] %v11693_v6  ;;  %v14373_v6 = vld [vmem:[#allocation225_spill] sm:$0xff]  ;;  %v5375_v10 = vrot.slane %v5361_v62, 2  ;;  %v5376_v38 = vrot.slane %v5364_v44, 2  ;;  %v5372_v27 = vrot.slane %v5360_v31, 2  ;;  %v5373_v28 = vrot.slane %v5363_v4, 2 }
 0x4cf   : > { %v2987_v37 = vsel %vm702_vm8, %v14373_v6, %v14372_v8  ;;  %v3134_v21 = vadd.f32 %v11607_v46, %v3068_v52  ;;  %v3153_v56 = vrot.slane %v11687_v17, 2  ;;  %v3149_v34 = vrot.slane %v11691_v33, 2  ;;  %v14375_v46 = vld [vmem:[#allocation227_spill] sm:$0xff]  ;;  %v14376_v33 = vld [vmem:[#allocation228_spill] sm:$0xff] }
 0x4d0   : > { %v3150_v14 = vrot.slane %v11702_v25, 2  ;;  %v3105_v8 = vadd.f32 %v14374_v58, %v3031_v18  ;;  %v5378_v55 = vrot.slane %v5362_v1, 2  ;;  %v5379_v7 = vrot.slane %v5365_v57, 2  ;;  %v14377_v18 = vld [vmem:[#allocation230_spill] sm:$0xff]  ;;  %v14378_v25 = vld [vmem:[#allocation231_spill] sm:$0xff] }
 0x4d1   : > { %5346 = vrot.lane.b32.xlu1 %v5340_v59, %s8180_s13  ;;  %5344 = vrot.lane.b32.xlu0 %v5337_v42, %s8180_s13  ;;  %v5396_v6 = vstv %s11677_s16  ;;  %v2993_v62 = vadd.f32 %v2988_v45, %v2919_v49  ;;  %v2992_v44 = vadd.f32 %v2987_v37, %v2918_v43  ;;  %v3025_v17 = vsel %vm702_vm8, %v14375_v46, %v14365_v3  ;;  %s12089_s16 = sld [smem:[#allocation9 + $0x55]] }
 0x4d2   : > { %5348 = vrot.lane.b32.xlu2 %v5343_v12, %s8180_s13  ;;  %v3024_v31 = vsel %vm702_vm8, %v14376_v33, %v14375_v46  ;;  %v3062_v52 = vsel %vm747_vm9, %v14377_v18, %v14371_v51  ;;  %v3061_v59 = vsel %vm747_vm9, %v14378_v25, %v14377_v18  ;;  %v5377_v43 = vsel %vm1443_vm1, %v5375_v10, %v5376_v38  ;;  %v14379_v46 = vld [vmem:[#allocation229_spill] sm:$0xff]  ;;  %v14380_v33 = vld [vmem:[#allocation232_spill] sm:$0xff] }
 0x4d3   : > { %v11724_v15 = vpop.permute.xlu1 %4770  ;;  %v11726_v13 = vpop.permute.xlu0 %4768  ;;  %v5374_v49 = vsel %vm1443_vm1, %v5372_v27, %v5373_v28  ;;  %v5398_v3 = vmul.f32 %v11269_v36, %v5396_v6  ;;  %v5401_v42 = vmul.f32 %v11559_v5, %v5396_v6  ;;  %v5397_v12 = vmul.f32 %v11275_v47, %v5396_v6  ;;  %v14381_v25 = vld [vmem:[#allocation233_spill] sm:$0xff] }
 0x4d4   : > { %v11735_v4 = vpop.permute.xlu2 %4941  ;;  %v5400_v1 = vmul.f32 %v11514_v32, %v5396_v6  ;;  %v3163_v57 = vadd.f32 %v11622_v61, %v3105_v8  ;;  %v5380_v51 = vsel %vm1443_vm1, %v5378_v55, %v5379_v7  ;;  %v5399_v45 = vmul.f32 %v11284_v30, %v5396_v6 }
 0x4d5   : > { %v5402_v37 = vmul.f32 %v11569_v41, %v5396_v6  ;;  %v3200_v10 = vadd.f32 %v14379_v46, %v3134_v21  ;;  %v3030_v38 = vadd.f32 %v3025_v17, %v2956_v0  ;;  %v3099_v36 = vsel %vm747_vm9, %v9930_v40, %v14374_v58 }
 0x4d6   : > { %v3098_v47 = vsel %vm747_vm9, %v9932_v48, %v9930_v40  ;;  %v3029_v27 = vadd.f32 %v3024_v31, %v2955_v29  ;;  %v3067_v28 = vadd.f32 %v3062_v52, %v2993_v62  ;;  %v3066_v61 = vadd.f32 %v3061_v59, %v2992_v44 }
 0x4d7   : > { %v5412_v8 = vrot.slane %v5398_v3, 2  ;;  %v5413_v21 = vrot.slane %v5401_v42, 2  ;;  %v5409_v0 = vrot.slane %v5397_v12, 2  ;;  %v5410_v55 = vrot.slane %v5400_v1, 2  ;;  %v14383_v3 = vld [vmem:[#allocation235_spill] sm:$0xff]  ;;  %v14385_v1 = vld [vmem:[#allocation236_spill] sm:$0xff] }
 0x4d8   : > { %v3104_v58 = vadd.f32 %v3099_v36, %v3030_v38  ;;  %v3103_v7 = vadd.f32 %v3098_v47, %v3029_v27  ;;  %v5415_v48 = vrot.slane %v5399_v45, 2  ;;  %v5416_v29 = vrot.slane %v5402_v37, 2  ;;  %v14387_v37 = vld [vmem:[#allocation240_spill] sm:$0xff]  ;;  %v14389_v27 = vld [vmem:[#allocation243_spill] sm:$0xff] }
 0x4d9   : > { %5383 = vrot.lane.b32.xlu1 %v5377_v43, %s8181_s4  ;;  %5381 = vrot.lane.b32.xlu0 %v5374_v49, %s8181_s4  ;;  %v3154_v62 = vsel %vm1443_vm1, %v3152_v11, %v3153_v56  ;;  %v3151_v44 = vsel %vm1443_vm1, %v3149_v34, %v3150_v14  ;;  %v3237_v31 = vadd.f32 %v14380_v33, %v3163_v57  ;;  %v14382_v43 = vld [vmem:[#allocation234_spill] sm:$0xff] }
 0x4da   : > { %5385 = vrot.lane.b32.xlu2 %v5380_v51, %s8181_s4  ;;  %v3133_v18 = vadd.f32 %v11660_v50, %v3067_v28  ;;  %v3132_v52 = vadd.f32 %v11667_v60, %v3066_v61  ;;  %v3274_v59 = vadd.f32 %v14381_v25, %v3200_v10  ;;  %v3194_v49 = vsel %vm432_vm2, %v14382_v43, %v14379_v46  ;;  %v14384_v50 = vld [vmem:[#allocation237_spill] sm:$0xff]  ;;  %v14386_v51 = vld [vmem:[#allocation238_spill] sm:$0xff]  ;;  %v14390_v61 = vld [vmem:[#allocation239_spill] sm:$0xff] }
 0x4db   : > { %v11765_v6 = vpop.permute.xlu1 %4865  ;;  %v11767_v40 = vpop.permute.xlu0 %4863  ;;  %v3193_v11 = vsel %vm432_vm2, %v14383_v3, %v14382_v43  ;;  %v5414_v56 = vsel %vm1443_vm1, %v5412_v8, %v5413_v21  ;;  %v5411_v34 = vsel %vm1443_vm1, %v5409_v0, %v5410_v55  ;;  %v3162_v14 = vadd.f32 %v3154_v62, %v3104_v58  ;;  %v14388_v10 = vld [vmem:[#allocation241_spill] sm:$0xff]  ;;  %v14391_v0 = vld [vmem:[#allocation244_spill] sm:$0xff]  ;;  %v14392_v62 = vld [vmem:[#allocation242_spill] sm:$0xff] }
 0x4dc   : > { %v11771_v17 = vpop.permute.xlu2 %4978  ;;  %v3161_v42 = vadd.f32 %v3151_v44, %v3103_v7  ;;  %v3231_v60 = vsel %vm432_vm2, %v14384_v50, %v14380_v33  ;;  %v5417_v12 = vsel %vm1443_vm1, %v5415_v48, %v5416_v29  ;;  %v3311_v57 = vadd.f32 %v14385_v1, %v3237_v31  ;;  %v11815_v7 = vld [vmem:[%s8411_s21 + $0x50] sm:$0xff]  ;;  %v11818_v48 = vld [vmem:[%s8411_s21 + $0x48] sm:$0xff]  ;;  %v14394_v3 = vld [vmem:[#allocation246_spill] sm:$0xff] }
 0x4dd   : > { %v3230_v45 = vsel %vm432_vm2, %v14386_v51, %v14384_v50  ;;  %v3268_v46 = vsel %vm477_vm3, %v14387_v37, %v14381_v25  ;;  %v3267_v38 = vsel %vm477_vm3, %v14388_v10, %v14387_v37  ;;  %v3199_v36 = vadd.f32 %v3194_v49, %v3133_v18  ;;  %v11828_v25 = vld [vmem:[%s8411_s21 + $0x58] sm:$0xff] }
 0x4de   : > { %v3198_v47 = vadd.f32 %v3193_v11, %v3132_v52  ;;  %v3305_v28 = vsel %vm477_vm3, %v14389_v27, %v14385_v1  ;;  %v3348_v8 = vadd.f32 %v14390_v61, %v3274_v59  ;;  %v3236_v21 = vadd.f32 %v3231_v60, %v3162_v14  ;;  %v14393_v59 = vld [vmem:[#allocation245_spill] sm:$0xff] }
 0x4df   : > { %v3304_v55 = vsel %vm477_vm3, %v14391_v0, %v14389_v27  ;;  %v5457_v58 = vstv %s11763_s2  ;;  %v3235_v29 = vadd.f32 %v3230_v45, %v3161_v42  ;;  %v3385_v44 = vadd.f32 %v14392_v62, %v3311_v57  ;;  %v14396_v50 = vld [vmem:[#allocation249_spill] sm:$0xff]  ;;  %v14397_v57 = vld [vmem:[#allocation248_spill] sm:$0xff]  ;;  %v14398_v45 = vld [vmem:[#allocation250_spill] sm:$0xff]  ;;  %s12141_s2 = sld [smem:[#allocation9 + $0xc1]] }
 0x4e0   : > { %v3273_v33 = vadd.f32 %v3268_v46, %v3199_v36  ;;  %v3272_v31 = vadd.f32 %v3267_v38, %v3198_v47  ;;  %v3422_v43 = vadd.f32 %v14393_v59, %v3348_v8  ;;  %v3310_v49 = vadd.f32 %v3305_v28, %v3236_v21  ;;  %v14399_v46 = vld [vmem:[#allocation252_spill] sm:$0xff]  ;;  %v14400_v27 = vld [vmem:[#allocation253_spill] sm:$0xff]  ;;  %v14401_v8 = vld [vmem:[#allocation251_spill] sm:$0xff] }
 0x4e1   : > { %5420 = vrot.lane.b32.xlu1 %v5414_v56, %s8181_s4  ;;  %5418 = vrot.lane.b32.xlu0 %v5411_v34, %s8181_s4  ;;  %v3342_v11 = vsel %vm522_vm4, %v14394_v3, %v14390_v61  ;;  %v14395_v56 = vld [vmem:[#allocation247_spill] sm:$0xff]  ;;  %v3309_v42 = vadd.f32 %v3304_v55, %v3235_v29  ;;  %v3379_v60 = vsel %vm522_vm4, %v14396_v50, %v14392_v62  ;;  %v3765_v61 = vstv %s11788_s24  ;;  %v14403_v62 = vld [vmem:[#allocation256_spill] sm:$0xff]  ;;  %s12188_s24 = sld [smem:[#allocation9 + $0x56]] }
 0x4e2   : > { %5422 = vrot.lane.b32.xlu2 %v5417_v12, %s8181_s4  ;;  %v3341_v34 = vsel %vm522_vm4, %v14395_v56, %v14394_v3  ;;  %v5459_v12 = vmul.f32 %v11815_v7, %v5457_v58  ;;  %v5458_v1 = vmul.f32 %v11818_v48, %v5457_v58  ;;  %v3459_v51 = vadd.f32 %v14397_v57, %v3385_v44  ;;  %v14402_v55 = vld [vmem:[#allocation255_spill] sm:$0xff] }
 0x4e3   : > { %v11823_v18 = vpop.permute.xlu1 %4902  ;;  %v11825_v52 = vpop.permute.xlu0 %4900  ;;  %v3378_v37 = vsel %vm522_vm4, %v14398_v45, %v14396_v50  ;;  %v3416_v10 = vsel %vm567_vm5, %v14399_v46, %v14393_v59  ;;  %v5460_v38 = vmul.f32 %v11828_v25, %v5457_v58  ;;  %v3347_v36 = vadd.f32 %v3342_v11, %v3273_v33  ;;  %v14404_v33 = vld [vmem:[#allocation254_spill] sm:$0xff] }
 0x4e4   : > { %v11837_v14 = vpop.permute.xlu2 %5015  ;;  %v3346_v47 = vadd.f32 %v3341_v34, %v3272_v31  ;;  %v3415_v28 = vsel %vm567_vm5, %v14400_v27, %v14399_v46  ;;  %v3496_v21 = vadd.f32 %v14401_v8, %v3422_v43  ;;  %v3384_v0 = vadd.f32 %v3379_v60, %v3310_v49  ;;  %v14405_v49 = vld [vmem:[#allocation257_spill] sm:$0xff]  ;;  %v14406_v60 = vld [vmem:[#allocation258_spill] sm:$0xff] }
 0x4e5   : > { %v3453_v29 = vsel %vm567_vm5, %v14402_v55, %v14397_v57  ;;  %v3452_v44 = vsel %vm567_vm5, %v14403_v62, %v14402_v55  ;;  %v3383_v58 = vadd.f32 %v3378_v37, %v3309_v42  ;;  %v3533_v31 = vadd.f32 %v14404_v33, %v3459_v51  ;;  %v14410_v37 = vld [vmem:[#allocation260_spill] sm:$0xff] }
 0x4e6   : > { %v3421_v59 = vadd.f32 %v3416_v10, %v3347_v36  ;;  %v11865_v3 = vstv %s11804_s17  ;;  %v3420_v43 = vadd.f32 %v3415_v28, %v3346_v47  ;;  %v3570_v11 = vadd.f32 %v14405_v49, %v3496_v21  ;;  %v14411_v10 = vld [vmem:[#allocation261_spill] sm:$0xff]  ;;  %v14412_v36 = vld [vmem:[#allocation262_spill] sm:$0xff]  ;;  %s12191_s17 = sld [smem:[#allocation9 + $0x48]] }
 0x4e7   : > { %v11871_v56 = vmul.f32 %v11284_v30, %v3765_v61  ;;  %v5479_v34 = vstv %s11820_s20  ;;  %v3458_v42 = vadd.f32 %v3453_v29, %v3384_v0  ;;  %v3457_v50 = vadd.f32 %v3452_v44, %v3383_v58  ;;  %v14414_v0 = vld [vmem:[#allocation265_spill] sm:$0xff]  ;;  %s12203_s20 = sld [smem:[#allocation9 + $0xb4]] }
 0x4e8   : > { %v3490_v57 = vsel %vm612_vm6, %v14406_v60, %v14401_v8  ;;  %v3607_v46 = vadd.f32 %v14410_v37, %v3533_v31  ;;  %v3526_v47 = vsel %vm612_vm6, %v14412_v36, %v14411_v10  ;;  %v3776_v27 = vmul.f32 %v11284_v30, %v11865_v3  ;;  %v14413_v8 = vld [vmem:[#allocation264_spill] sm:$0xff] }
 0x4e9   : > { %5466 = vrot.lane.b32.xlu1 %v5459_v12, %s8174_s10  ;;  %5464 = vrot.lane.b32.xlu0 %v5458_v1, %s8174_s10  ;;  %v14407_v12 = vld [vmem:[#allocation259_spill] sm:$0xff]  ;;  %v3564_v21 = vsel %vm657_vm7, %v14413_v8, %v14405_v49  ;;  %v3563_v55 = vsel %vm657_vm7, %v14414_v0, %v14413_v8  ;;  %v5481_v29 = vmul.f32 %v11815_v7, %v5479_v34 }
 0x4ea   : > { %5468 = vrot.lane.b32.xlu2 %v5460_v38, %s8174_s10  ;;  %v3489_v1 = vsel %vm612_vm6, %v14407_v12, %v14406_v60  ;;  %v3527_v38 = vsel %vm612_vm6, %v14411_v10, %v14404_v33  ;;  %v5480_v62 = vmul.f32 %v11818_v48, %v5479_v34  ;;  %v3495_v44 = vadd.f32 %v3490_v57, %v3421_v59  ;;  %v14415_v33 = vld [vmem:[#allocation263_spill] sm:$0xff]  ;;  %v14416_v10 = vld [vmem:[#allocation266_spill] sm:$0xff] }
 0x4eb   : > { %v11883_v51 = vpop.permute.xlu1 %4939  ;;  %v11885_v45 = vpop.permute.xlu0 %4937  ;;  %v3494_v58 = vadd.f32 %v3489_v1, %v3420_v43  ;;  %v3644_v30 = vadd.f32 %v14415_v33, %v3570_v11  ;;  %v5482_v31 = vmul.f32 %v11828_v25, %v5479_v34  ;;  %v3532_v60 = vadd.f32 %v3527_v38, %v3458_v42  ;;  %v14417_v49 = vld [vmem:[#allocation267_spill] sm:$0xff]  ;;  %v11916_v43 = vld [vmem:[%s8411_s21 + $0x38] sm:$0xff]  ;;  %v14419_v34 = vld [vmem:[#allocation270_spill] sm:$0xff] }
 0x4ec   : > { %14408 = vst [vmem:[#allocation112_spill] sm:$0xff] %v11883_v51  ;;  %v11896_v28 = vpop.permute.xlu2 %5052  ;;  %v3531_v12 = vadd.f32 %v3526_v47, %v3457_v50  ;;  %v3681_v36 = vadd.f32 %v14416_v10, %v3607_v46  ;;  %v3569_v8 = vadd.f32 %v3564_v21, %v3495_v44  ;;  %v14418_v51 = vld [vmem:[#allocation268_spill] sm:$0xff]  ;;  %v3767_v11 = vmul.f32 %v11916_v43, %v3765_v61  ;;  %v14420_v50 = vld [vmem:[#allocation271_spill] sm:$0xff]  ;;  %v14422_v47 = vld [vmem:[#allocation273_spill] sm:$0xff] }
 0x4ed   : > { %14409 = vst [vmem:[#allocation113_spill] sm:$0xff] %v11885_v45  ;;  %v3601_v45 = vsel %vm657_vm7, %v14417_v49, %v14410_v37  ;;  %v3568_v0 = vadd.f32 %v3563_v55, %v3494_v58  ;;  %v3600_v59 = vsel %vm657_vm7, %v14418_v51, %v14417_v49  ;;  %v3638_v42 = vsel %vm702_vm8, %v14419_v34, %v14415_v33  ;;  %v11926_v1 = vld [vmem:[%s8411_s21 + $0x30] sm:$0xff]  ;;  %v14421_v51 = vld [vmem:[#allocation269_spill] sm:$0xff]  ;;  %v14423_v58 = vld [vmem:[#allocation274_spill] sm:$0xff] }
 0x4ee   : > { %v3637_v57 = vsel %vm702_vm8, %v14420_v50, %v14419_v34  ;;  %v3766_v37 = vmul.f32 %v11926_v1, %v3765_v61  ;;  %v3718_v46 = vadd.f32 %v14421_v51, %v3644_v30  ;;  %v3606_v38 = vadd.f32 %v3601_v45, %v3532_v60  ;;  %v14424_v30 = vld [vmem:[#allocation272_spill] sm:$0xff] }
 0x4ef   : > { %v3675_v21 = vsel %vm702_vm8, %v14422_v47, %v14416_v10  ;;  %v5501_v55 = vstv %s11875_s11  ;;  %v3605_v44 = vadd.f32 %v3600_v59, %v3531_v12  ;;  %v3674_v61 = vsel %vm702_vm8, %v14423_v58, %v14422_v47  ;;  %v14425_v47 = vld [vmem:[#allocation275_spill] sm:$0xff]  ;;  %s12236_s11 = sld [smem:[#allocation9 + $0xc2]] }
 0x4f0   : > { %v3711_v45 = vsel %vm747_vm9, %v10146_v19, %v10144_v22  ;;  %v3643_v60 = vadd.f32 %v3638_v42, %v3569_v8  ;;  %v3642_v12 = vadd.f32 %v3637_v57, %v3568_v0  ;;  %v3749_v10 = vsel %vm747_vm9, %v10197_v24, %v14424_v30 }
 0x4f1   : > { %5488 = vrot.lane.b32.xlu1 %v5481_v29, %s8174_s10  ;;  %5486 = vrot.lane.b32.xlu0 %v5480_v62, %s8174_s10  ;;  %v3712_v29 = vsel %vm747_vm9, %v10144_v22, %v14421_v51  ;;  %v3680_v59 = vadd.f32 %v3675_v21, %v3606_v38  ;;  %v3748_v34 = vsel %vm747_vm9, %v10199_v26, %v10197_v24 }
 0x4f2   : > { %5490 = vrot.lane.b32.xlu2 %v5482_v31, %s8174_s10  ;;  %v3755_v31 = vadd.f32 %v14424_v30, %v3681_v36  ;;  %v5503_v19 = vmul.f32 %v11815_v7, %v5501_v55  ;;  %v5502_v22 = vmul.f32 %v11818_v48, %v5501_v55  ;;  %v3679_v50 = vadd.f32 %v3674_v61, %v3605_v44 }
 0x4f3   : > { %v11948_v62 = vpop.permute.xlu1 %4976  ;;  %v11950_v33 = vpop.permute.xlu0 %4974  ;;  %v3717_v51 = vadd.f32 %v3712_v29, %v3643_v60  ;;  %v3716_v36 = vadd.f32 %v3711_v45, %v3642_v12  ;;  %v5504_v8 = vmul.f32 %v11828_v25, %v5501_v55  ;;  %v3771_v0 = vadd.f32 %v11871_v56, %v3718_v46  ;;  %v14429_v12 = vld [vmem:[#allocation278_spill] sm:$0xff] }
 0x4f4   : > { %v11956_v49 = vpop.permute.xlu2 %5089  ;;  %v3775_v42 = vmul.f32 %v11916_v43, %v11865_v3  ;;  %v3754_v57 = vadd.f32 %v3749_v10, %v3680_v59  ;;  %v3779_v38 = vadd.f32 %v3776_v27, %v3755_v31  ;;  %v3774_v24 = vmul.f32 %v11926_v1, %v11865_v3 }
 0x4f5   : > { %v3753_v26 = vadd.f32 %v3748_v34, %v3679_v50  ;;  %v3801_v21 = vadd.f32 %v14425_v47, %v3771_v0  ;;  %v3770_v56 = vadd.f32 %v3767_v11, %v3717_v51  ;;  %v3769_v46 = vadd.f32 %v3766_v37, %v3716_v36  ;;  %v14431_v36 = vld [vmem:[#allocation31_spill] sm:$0xff] }
 0x4f6   : > { %v3823_v55 = vadd.f32 %v10150_v2, %v3779_v38  ;;  %v5523_v44 = vstv %s11937_s29  ;;  %v3778_v27 = vadd.f32 %v3775_v42, %v3754_v57  ;;  %v3795_v58 = vsel %vm432_vm2, %v10258_v54, %v14425_v47  ;;  %v14433_v42 = vld [vmem:[#allocation30_spill] sm:$0xff]  ;;  %v14434_v47 = vld [vmem:[#allocation33_spill] sm:$0xff]  ;;  %s12289_s29 = sld [smem:[#allocation9 + $0x57]] }
 0x4f7   : > { %v3845_v3 = vadd.f32 %v10208_v23, %v3801_v21  ;;  %v3794_v61 = vsel %vm432_vm2, %v10260_v39, %v10258_v54  ;;  %v3777_v29 = vadd.f32 %v3774_v24, %v3753_v26  ;;  %v3817_v30 = vsel %vm432_vm2, %v10312_v63, %v10150_v2  ;;  %v14428_v54 = vld [vmem:[#allocation277_spill] sm:$0xff] }
 0x4f8   : > { %v3867_v45 = vadd.f32 %v10271_v9, %v3823_v55  ;;  %v3816_v31 = vsel %vm432_vm2, %v10314_v53, %v10312_v63  ;;  %v3839_v39 = vsel %vm477_vm3, %v14428_v54, %v10208_v23  ;;  %v3838_v10 = vsel %vm477_vm3, %v14429_v12, %v14428_v54  ;;  %v14435_v55 = vld [vmem:[#allocation34_spill] sm:$0xff] }
 0x4f9   : > { %5510 = vrot.lane.b32.xlu1 %v5503_v19, %s8175_s19  ;;  %5508 = vrot.lane.b32.xlu0 %v5502_v22, %s8175_s19  ;;  %v5525_v59 = vmul.f32 %v11815_v7, %v5523_v44  ;;  %v5524_v34 = vmul.f32 %v11818_v48, %v5523_v44  ;;  %v3800_v2 = vadd.f32 %v3795_v58, %v3770_v56  ;;  %v14430_v22 = vld [vmem:[#allocation276_spill] sm:$0xff]  ;;  %v12019_v26 = vstv %s11969_s15  ;;  %s12343_s15 = sld [smem:[#allocation9 + $0xc3]] }
 0x4fa   : > { %5512 = vrot.lane.b32.xlu2 %v5504_v8, %s8175_s19  ;;  %v3799_v19 = vadd.f32 %v3794_v61, %v3769_v46  ;;  %v3889_v50 = vadd.f32 %v14430_v22, %v3845_v3  ;;  %v5526_v63 = vmul.f32 %v11828_v25, %v5523_v44  ;;  %v3822_v53 = vadd.f32 %v3817_v30, %v3778_v27  ;;  %v14432_v8 = vld [vmem:[#allocation32_spill] sm:$0xff]  ;;  %v12039_v30 = vld [vmem:[%s8411_s21 + $0x40] sm:$0xff] }
 0x4fb   : > { %v11988_v11 = vpop.permute.xlu1 %5013  ;;  %v11990_v37 = vpop.permute.xlu0 %5011  ;;  %v3821_v51 = vadd.f32 %v3816_v31, %v3777_v29  ;;  %v3861_v23 = vsel %vm477_vm3, %v14431_v36, %v10271_v9  ;;  %v3860_v0 = vsel %vm477_vm3, %v14432_v8, %v14431_v36  ;;  %v3911_v57 = vadd.f32 %v14433_v42, %v3867_v45  ;;  %v14436_v9 = vld [vmem:[#allocation35_spill] sm:$0xff]  ;;  %v14437_v27 = vld [vmem:[#allocation36_spill] sm:$0xff]  ;;  %v14438_v29 = vld [vmem:[#allocation38_spill] sm:$0xff] }
 0x4fc   : > { %14426 = vst [vmem:[#allocation115_spill] sm:$0xff] %v11988_v11  ;;  %v11999_v60 = vpop.permute.xlu2 %5126  ;;  %v3844_v38 = vadd.f32 %v3839_v39, %v3800_v2  ;;  %v3843_v24 = vadd.f32 %v3838_v10, %v3799_v19  ;;  %v3933_v21 = vadd.f32 %v14434_v47, %v3889_v50  ;;  %v3883_v56 = vsel %vm522_vm4, %v14435_v55, %v14430_v22  ;;  %v14441_v2 = vld [vmem:[#allocation41_spill] sm:$0xff]  ;;  %v14442_v22 = vld [vmem:[#allocation39_spill] sm:$0xff] }
 0x4fd   : > { %14427 = vst [vmem:[#allocation114_spill] sm:$0xff] %v11990_v37  ;;  %v3882_v46 = vsel %vm522_vm4, %v14436_v9, %v14435_v55  ;;  %v3866_v44 = vadd.f32 %v3861_v23, %v3822_v53  ;;  %v3865_v3 = vadd.f32 %v3860_v0, %v3821_v51  ;;  %v3955_v58 = vadd.f32 %v14437_v27, %v3911_v57  ;;  %v14443_v53 = vld [vmem:[#allocation42_spill] sm:$0xff]  ;;  %v14444_v36 = vld [vmem:[#allocation37_spill] sm:$0xff] }
 0x4fe   : > { %v5545_v61 = vstv %s11977_s0  ;;  %v3905_v45 = vsel %vm522_vm4, %v14438_v29, %v14433_v42  ;;  %v4136_v31 = vmul.f32 %v12039_v30, %v12019_v26  ;;  %v4139_v54 = vmul.f32 %v11569_v41, %v12019_v26  ;;  %s12391_s0 = sld [smem:[#allocation9 + $0x58]] }
 0x4ff   : > { %v12046_v39 = vstv %s11986_s30  ;;  %v3977_v19 = vadd.f32 %v14441_v2, %v3933_v21  ;;  %v3904_v50 = vsel %vm522_vm4, %v14442_v22, %v14438_v29  ;;  %v3927_v51 = vsel %vm567_vm5, %v14443_v53, %v14434_v47  ;;  %v14445_v47 = vld [vmem:[#allocation43_spill] sm:$0xff]  ;;  %s12412_s30 = sld [smem:[#allocation9 + $0xbd]] }
 0x500   : > { %v3926_v23 = vsel %vm567_vm5, %v14444_v36, %v14443_v53  ;;  %v5547_v8 = vmul.f32 %v11815_v7, %v5545_v61  ;;  %v5546_v0 = vmul.f32 %v11818_v48, %v5545_v61  ;;  %v3910_v42 = vadd.f32 %v3905_v45, %v3866_v44  ;;  %v14447_v45 = vld [vmem:[#allocation44_spill] sm:$0xff]  ;;  %v14448_v36 = vld [vmem:[#allocation46_spill] sm:$0xff] }
 0x501   : > { %5532 = vrot.lane.b32.xlu1 %v5525_v59, %s8175_s19  ;;  %5530 = vrot.lane.b32.xlu0 %v5524_v34, %s8175_s19  ;;  %v3888_v59 = vadd.f32 %v3883_v56, %v3844_v38  ;;  %v3887_v34 = vadd.f32 %v3882_v46, %v3843_v24  ;;  %v4165_v57 = vmul.f32 %v12039_v30, %v12046_v39  ;;  %v4152_v56 = vrot.slane %v4136_v31, 1  ;;  %v14446_v46 = vld [vmem:[#allocation40_spill] sm:$0xff] }
 0x502   : > { %5534 = vrot.lane.b32.xlu2 %v5526_v63, %s8175_s19  ;;  %v4168_v38 = vmul.f32 %v11569_v41, %v12046_v39  ;;  %v5548_v24 = vmul.f32 %v11828_v25, %v5545_v61  ;;  %v3909_v21 = vadd.f32 %v3904_v50, %v3865_v3  ;;  %v3949_v55 = vsel %vm567_vm5, %v14445_v47, %v14437_v27  ;;  %v14449_v61 = vld [vmem:[#allocation45_spill] sm:$0xff]  ;;  %v14450_v50 = vld [vmem:[#allocation47_spill] sm:$0xff] }
 0x503   : > { %v12048_v12 = vpop.permute.xlu1 %5050  ;;  %v12050_v10 = vpop.permute.xlu0 %5048  ;;  %v4153_v9 = vrot.slane %v4139_v54, 1  ;;  %v3999_v29 = vadd.f32 %v14446_v46, %v3955_v58  ;;  %v3932_v22 = vadd.f32 %v3927_v51, %v3888_v59  ;;  %v3931_v44 = vadd.f32 %v3926_v23, %v3887_v34 }
 0x504   : > { %14439 = vst [vmem:[#allocation116_spill] sm:$0xff] %v12048_v12  ;;  %v12056_v63 = vpop.permute.xlu2 %5163  ;;  %v3948_v53 = vsel %vm567_vm5, %v14447_v45, %v14445_v47  ;;  %v4021_v41 = vadd.f32 %v14448_v36, %v3977_v19  ;;  %v3971_v3 = vsel %vm612_vm6, %v14449_v61, %v14441_v2  ;;  %v3970_v27 = vsel %vm612_vm6, %v14450_v50, %v14449_v61  ;;  %v14458_v50 = vld [vmem:[#allocation53_spill] sm:$0xff] }
 0x505   : > { %14440 = vst [vmem:[#allocation117_spill] sm:$0xff] %v12050_v10  ;;  %v3954_v58 = vadd.f32 %v3949_v55, %v3910_v42  ;;  %v4181_v31 = vrot.slane %v4165_v57, 1  ;;  %v4182_v54 = vrot.slane %v4168_v38, 1  ;;  %v5567_v59 = vstv %s12033_s12  ;;  %v14455_v55 = vld [vmem:[#allocation50_spill] sm:$0xff]  ;;  %s12431_s12 = sld [smem:[#allocation9 + $0x51]] }
 0x506   : > { %v3953_v34 = vadd.f32 %v3948_v53, %v3909_v21  ;;  %v12092_v19 = vsel %vm792_vm0, %v4152_v56, %v4153_v9  ;;  %v4135_v2 = vmul.f32 %v11916_v43, %v12019_v26  ;;  %v4138_v51 = vmul.f32 %v11559_v5, %v12019_v26  ;;  %v14456_v9 = vld [vmem:[#allocation52_spill] sm:$0xff] }
 0x507   : > { %v3976_v57 = vadd.f32 %v3971_v3, %v3932_v22  ;;  %v3975_v38 = vadd.f32 %v3970_v27, %v3931_v44  ;;  %v4015_v45 = vsel %vm657_vm7, %v14456_v9, %v14448_v36  ;;  %v5569_v53 = vmul.f32 %v11815_v7, %v5567_v59  ;;  %v14457_v22 = vld [vmem:[#allocation51_spill] sm:$0xff] }
 0x508   : > { %v4065_v44 = vadd.f32 %v14457_v22, %v4021_v41  ;;  %v4183_v61 = vsel %vm792_vm0, %v4181_v31, %v4182_v54  ;;  %v5570_v3 = vmul.f32 %v11828_v25, %v5567_v59  ;;  %v4014_v27 = vsel %vm657_vm7, %v14458_v50, %v14456_v9  ;;  %v14459_v41 = vld [vmem:[#allocation55_spill] sm:$0xff]  ;;  %v14460_v54 = vld [vmem:[#allocation54_spill] sm:$0xff] }
 0x509   : > { %5554 = vrot.lane.b32.xlu1 %v5547_v8, %s8176_s14  ;;  %5552 = vrot.lane.b32.xlu0 %v5546_v0, %s8176_s14  ;;  %v14453_v0 = vld [vmem:[#allocation48_spill] sm:$0xff]  ;;  %v4150_v36 = vrot.slane %v4138_v51, 1  ;;  %v4020_v31 = vadd.f32 %v4015_v45, %v3976_v57  ;;  %v5589_v51 = vstv %s12089_s16  ;;  %s12435_s16 = sld [smem:[#allocation9 + $0xc4]] }
 0x50a   : > { %5556 = vrot.lane.b32.xlu2 %v5548_v24, %s8176_s14  ;;  %v4043_v42 = vadd.f32 %v14453_v0, %v3999_v29  ;;  %v14454_v24 = vld [vmem:[#allocation49_spill] sm:$0xff]  ;;  %v5568_v29 = vmul.f32 %v11818_v48, %v5567_v59  ;;  %v4037_v12 = vsel %vm657_vm7, %v14460_v54, %v14453_v0  ;;  %v14461_v59 = vld [vmem:[#allocation56_spill] sm:$0xff] }
 0x50b   : > { %v12098_v23 = vpop.permute.xlu1 %5087  ;;  %v12100_v8 = vpop.permute.xlu0 %5085  ;;  %v3993_v21 = vsel %vm612_vm6, %v14454_v24, %v14446_v46  ;;  %v3992_v56 = vsel %vm612_vm6, %v14455_v55, %v14454_v24  ;;  %v4134_v46 = vmul.f32 %v11926_v1, %v12019_v26  ;;  %v4149_v24 = vrot.slane %v4135_v2, 1  ;;  %v14462_v0 = vld [vmem:[#allocation57_spill] sm:$0xff] }
 0x50c   : > { %14451 = vst [vmem:[#allocation119_spill] sm:$0xff] %v12098_v23  ;;  %v12106_v47 = vpop.permute.xlu2 %5200  ;;  %v4137_v55 = vmul.f32 %v11514_v32, %v12019_v26  ;;  %v3997_v23 = vadd.f32 %v3992_v56, %v3953_v34  ;;  %v4087_v10 = vadd.f32 %v14459_v41, %v4043_v42  ;;  %v4036_v37 = vsel %vm657_vm7, %v14461_v59, %v14460_v54  ;;  %v14470_v59 = vld [vmem:[#allocation62_spill] sm:$0xff] }
 0x50d   : > { %14452 = vst [vmem:[#allocation120_spill] sm:$0xff] %v12100_v8  ;;  %v3998_v8 = vadd.f32 %v3993_v21, %v3954_v58  ;;  %v4164_v2 = vmul.f32 %v11916_v43, %v12046_v39  ;;  %v4019_v26 = vadd.f32 %v4014_v27, %v3975_v38  ;;  %v4146_v58 = vrot.slane %v4134_v46, 1 }
 0x50e   : > { %v4167_v34 = vmul.f32 %v11559_v5, %v12046_v39  ;;  %v4109_v42 = vadd.f32 %v14462_v0, %v4065_v44  ;;  %v4151_v57 = vsel %vm792_vm0, %v4149_v24, %v4150_v36  ;;  %v4147_v21 = vrot.slane %v4137_v55, 1  ;;  %v14465_v5 = vld [vmem:[#allocation59_spill] sm:$0xff] }
 0x50f   : > { %v4163_v56 = vmul.f32 %v11926_v1, %v12046_v39  ;;  %v4042_v45 = vadd.f32 %v4037_v12, %v3998_v8  ;;  %v4166_v46 = vmul.f32 %v11514_v32, %v12046_v39  ;;  %v4178_v27 = vrot.slane %v4164_v2, 1 }
 0x510   : > { %v5591_v24 = vmul.f32 %v11815_v7, %v5589_v51  ;;  %v5590_v36 = vmul.f32 %v11818_v48, %v5589_v51  ;;  %v4179_v32 = vrot.slane %v4167_v34, 1  ;;  %v5592_v39 = vmul.f32 %v11828_v25, %v5589_v51 }
 0x511   : > { %5576 = vrot.lane.b32.xlu1 %v5569_v53, %s8176_s14  ;;  %5574 = vrot.lane.b32.xlu0 %v5568_v29, %s8176_s14  ;;  %v4041_v53 = vadd.f32 %v4036_v37, %v3997_v23  ;;  %v4059_v29 = vsel %vm702_vm8, %v14465_v5, %v14457_v22  ;;  %v14467_v37 = vld [vmem:[#allocation60_spill] sm:$0xff]  ;;  %v14468_v23 = vld [vmem:[#allocation63_spill] sm:$0xff]  ;;  %v14469_v22 = vld [vmem:[#allocation61_spill] sm:$0xff]  ;;  %v4175_v34 = vrot.slane %v4163_v56, 1 }
 0x512   : > { %5578 = vrot.lane.b32.xlu2 %v5570_v3, %s8176_s14  ;;  %v14466_v3 = vld [vmem:[#allocation58_spill] sm:$0xff]  ;;  %v4081_v12 = vsel %vm702_vm8, %v14467_v37, %v14459_v41  ;;  %v4103_v8 = vsel %vm747_vm9, %v14468_v23, %v14462_v0  ;;  %v4131_v55 = vadd.f32 %v14469_v22, %v4087_v10  ;;  %v4064_v54 = vadd.f32 %v4059_v29, %v4020_v31  ;;  %v14473_v10 = vld [vmem:[#allocation68_spill] sm:$0xff] }
 0x513   : > { %v12147_v9 = vpop.permute.xlu1 %5124  ;;  %v12149_v38 = vpop.permute.xlu0 %5122  ;;  %v4058_v50 = vsel %vm702_vm8, %v14466_v3, %v14465_v5  ;;  %v4080_v2 = vsel %vm702_vm8, %v14470_v59, %v14467_v37  ;;  %v14471_v5 = vld [vmem:[#allocation65_spill] sm:$0xff]  ;;  %v4086_v51 = vadd.f32 %v4081_v12, %v4042_v45  ;;  %v4160_v29 = vadd.f32 %v12092_v19, %v4109_v42 }
 0x514   : > { %14463 = vst [vmem:[#allocation118_spill] sm:$0xff] %v12147_v9  ;;  %v12156_v44 = vpop.permute.xlu2 %5237  ;;  %v4102_v3 = vsel %vm747_vm9, %v14471_v5, %v14468_v23  ;;  %v4063_v41 = vadd.f32 %v4058_v50, %v4019_v26  ;;  %v4176_v9 = vrot.slane %v4166_v46, 1  ;;  %v4108_v11 = vadd.f32 %v4103_v8, %v4064_v54  ;;  %v14475_v8 = vld [vmem:[#allocation66_spill] sm:$0xff]  ;;  %v14478_v59 = vld [vmem:[#allocation69_spill] sm:$0xff] }
 0x515   : > { %14464 = vst [vmem:[#allocation121_spill] sm:$0xff] %v12149_v38  ;;  %v14472_v38 = vld [vmem:[#allocation67_spill] sm:$0xff]  ;;  %v4085_v37 = vadd.f32 %v4080_v2, %v4041_v53  ;;  %v5611_v50 = vstv %s12141_s2  ;;  %v4189_v56 = vadd.f32 %v4183_v61, %v4131_v55  ;;  %v4148_v45 = vsel %vm792_vm0, %v4146_v58, %v4147_v21  ;;  %v14476_v55 = vld [vmem:[#allocation70_spill] sm:$0xff]  ;;  %s12486_s2 = sld [smem:[#allocation9 + $0x59]] }
 0x516   : > { %v4125_v0 = vsel %vm747_vm9, %v14472_v38, %v14469_v22  ;;  %v4124_v31 = vsel %vm747_vm9, %v14473_v10, %v14472_v38  ;;  %v4107_v26 = vadd.f32 %v4102_v3, %v4063_v41  ;;  %v4180_v19 = vsel %vm792_vm0, %v4178_v27, %v4179_v32  ;;  %v14477_v27 = vld [vmem:[#allocation73_spill] sm:$0xff]  ;;  %v14480_v3 = vld [vmem:[#allocation74_spill] sm:$0xff]  ;;  %v14482_v10 = vld [vmem:[#allocation75_spill] sm:$0xff] }
 0x517   : > { %v4130_v46 = vadd.f32 %v4125_v0, %v4086_v51  ;;  %v4177_v42 = vsel %vm792_vm0, %v4175_v34, %v4176_v9  ;;  %v4129_v53 = vadd.f32 %v4124_v31, %v4085_v37  ;;  %v4263_v61 = vadd.f32 %v14475_v8, %v4189_v56  ;;  %v14481_v34 = vld [vmem:[#allocation71_spill] sm:$0xff] }
 0x518   : > { %v5613_v58 = vmul.f32 %v11815_v7, %v5611_v50  ;;  %v5612_v21 = vmul.f32 %v11818_v48, %v5611_v50  ;;  %v4158_v22 = vadd.f32 %v4148_v45, %v4107_v26  ;;  %v4219_v9 = vsel %vm432_vm2, %v14477_v27, %v14476_v55  ;;  %v14484_v56 = vld [vmem:[#allocation79_spill] sm:$0xff] }
 0x519   : > { %5598 = vrot.lane.b32.xlu1 %v5591_v24, %s8177_s9  ;;  %5596 = vrot.lane.b32.xlu0 %v5590_v36, %s8177_s9  ;;  %v14474_v36 = vld [vmem:[#allocation64_spill] sm:$0xff]  ;;  %v5614_v32 = vmul.f32 %v11828_v25, %v5611_v50  ;;  %v4187_v0 = vadd.f32 %v4177_v42, %v4129_v53  ;;  %v4337_v51 = vadd.f32 %v14481_v34, %v4263_v61  ;;  %v5633_v42 = vstv %s12188_s24  ;;  %v14486_v53 = vld [vmem:[#allocation78_spill] sm:$0xff]  ;;  %s12531_s24 = sld [smem:[#allocation9 + $0x5b]] }
 0x51a   : > { %5600 = vrot.lane.b32.xlu2 %v5592_v39, %s8177_s9  ;;  %v4226_v12 = vadd.f32 %v14474_v36, %v4160_v29  ;;  %v4159_v39 = vadd.f32 %v4151_v57, %v4108_v11  ;;  %v4220_v54 = vsel %vm432_vm2, %v14476_v55, %v14474_v36  ;;  %v4188_v11 = vadd.f32 %v4180_v19, %v4130_v46  ;;  %v14479_v57 = vld [vmem:[#allocation72_spill] sm:$0xff]  ;;  %v14483_v29 = vld [vmem:[#allocation77_spill] sm:$0xff] }
 0x51b   : > { %v12193_v38 = vpop.permute.xlu1 %5161  ;;  %v12195_v24 = vpop.permute.xlu0 %5159  ;;  %v4257_v5 = vsel %vm432_vm2, %v14479_v57, %v14475_v8  ;;  %v4256_v41 = vsel %vm432_vm2, %v14480_v3, %v14479_v57  ;;  %v4294_v31 = vsel %vm477_vm3, %v14482_v10, %v14478_v59  ;;  %v4293_v37 = vsel %vm477_vm3, %v14483_v29, %v14482_v10  ;;  %v14485_v46 = vld [vmem:[#allocation76_spill] sm:$0xff]  ;;  %v14489_v55 = vld [vmem:[#allocation81_spill] sm:$0xff]  ;;  %v14492_v57 = vld [vmem:[#allocation83_spill] sm:$0xff] }
 0x51c   : > { %v12200_v23 = vpop.permute.xlu2 %5274  ;;  %v4300_v2 = vadd.f32 %v14478_v59, %v4226_v12  ;;  %v4225_v26 = vadd.f32 %v4220_v54, %v4159_v39  ;;  %v4224_v50 = vadd.f32 %v4219_v9, %v4158_v22  ;;  %v4331_v45 = vsel %vm477_vm3, %v14484_v56, %v14481_v34  ;;  %v14490_v9 = vld [vmem:[#allocation80_spill] sm:$0xff]  ;;  %v14491_v59 = vld [vmem:[#allocation82_spill] sm:$0xff] }
 0x51d   : > { %v4262_v12 = vadd.f32 %v4257_v5, %v4188_v11  ;;  %v4261_v19 = vadd.f32 %v4256_v41, %v4187_v0  ;;  %v4411_v8 = vadd.f32 %v14486_v53, %v4337_v51  ;;  %v12240_v22 = vstv %s12191_s17  ;;  %v14493_v34 = vld [vmem:[#allocation86_spill] sm:$0xff]  ;;  %s12535_s17 = sld [smem:[#allocation9 + $0xc5]] }
 0x51e   : > { %v4374_v36 = vadd.f32 %v14485_v46, %v4300_v2  ;;  %v4299_v61 = vadd.f32 %v4294_v31, %v4225_v26  ;;  %v4298_v39 = vadd.f32 %v4293_v37, %v4224_v50  ;;  %v4368_v2 = vsel %vm522_vm4, %v14491_v59, %v14485_v46  ;;  %v7895_v31 = vld [vmem:[%s8418_s18 + $0x40] sm:$0x3]  ;;  %v14494_v50 = vld [vmem:[#allocation84_spill] sm:$0xff]  ;;  %v14495_v46 = vld [vmem:[#allocation87_spill] sm:$0xff] }
 0x51f   : > { %v4336_v27 = vadd.f32 %v4331_v45, %v4262_v12  ;;  %v4367_v5 = vsel %vm522_vm4, %v14492_v57, %v14491_v59  ;;  %v12259_v3 = vstv %s12203_s20  ;;  %v5635_v41 = vmul.f32 %v11815_v7, %v5633_v42  ;;  %s12607_s20 = sld [smem:[#allocation9 + $0xc7]] }
 0x520   : > { %v4448_v54 = vadd.f32 %v14489_v55, %v4374_v36  ;;  %v5634_v0 = vmul.f32 %v11818_v48, %v5633_v42  ;;  %v4405_v51 = vsel %vm522_vm4, %v14493_v34, %v14486_v53  ;;  %v4786_v10 = vmul.f32 %v12039_v30, %v12240_v22 }
 0x521   : > { %5620 = vrot.lane.b32.xlu1 %v5613_v58, %s8177_s9  ;;  %5618 = vrot.lane.b32.xlu0 %v5612_v21, %s8177_s9  ;;  %v4789_v29 = vmul.f32 %v7895_v31, %v12240_v22  ;;  %v5636_v37 = vmul.f32 %v11828_v25, %v5633_v42  ;;  %v4373_v45 = vadd.f32 %v4368_v2, %v4299_v61  ;;  %v14496_v42 = vld [vmem:[#allocation89_spill] sm:$0xff] }
 0x522   : > { %5622 = vrot.lane.b32.xlu2 %v5614_v32, %s8177_s9  ;;  %v4330_v32 = vsel %vm477_vm3, %v14490_v9, %v14484_v56  ;;  %v4485_v56 = vadd.f32 %v14494_v50, %v4411_v8  ;;  %v4404_v36 = vsel %vm522_vm4, %v14495_v46, %v14493_v34  ;;  %v4372_v12 = vadd.f32 %v4367_v5, %v4298_v39  ;;  %v14497_v8 = vld [vmem:[#allocation85_spill] sm:$0xff] }
 0x523   : > { %v12242_v58 = vpop.permute.xlu1 %5198  ;;  %v12244_v21 = vpop.permute.xlu0 %5196  ;;  %v4335_v26 = vadd.f32 %v4330_v32, %v4261_v19  ;;  %v4442_v53 = vsel %vm567_vm5, %v11315_v20, %v14489_v55  ;;  %v4815_v9 = vmul.f32 %v12039_v30, %v12259_v3  ;;  %v4818_v59 = vmul.f32 %v7895_v31, %v12259_v3  ;;  %v14498_v30 = vld [vmem:[#allocation90_spill] sm:$0xff] }
 0x524   : > { %14487 = vst [vmem:[#allocation122_spill] sm:$0xff] %v12242_v58  ;;  %v12253_v11 = vpop.permute.xlu2 %5311  ;;  %v4522_v19 = vadd.f32 %v14496_v42, %v4448_v54  ;;  %v4410_v32 = vadd.f32 %v4405_v51, %v4336_v27  ;;  %v4441_v61 = vsel %vm567_vm5, %v14497_v8, %v11315_v20  ;;  %v4802_v2 = vrot.slane %v4786_v10, 2  ;;  %v14499_v27 = vld [vmem:[#allocation88_spill] sm:$0xff]  ;;  %v14500_v20 = vld [vmem:[#allocation91_spill] sm:$0xff] }
 0x525   : > { %14488 = vst [vmem:[#allocation123_spill] sm:$0xff] %v12244_v21  ;;  %v4409_v39 = vadd.f32 %v4404_v36, %v4335_v26  ;;  %v4803_v57 = vrot.slane %v4789_v29, 2  ;;  %v5655_v55 = vstv %s12236_s11  ;;  %v4559_v5 = vadd.f32 %v14498_v30, %v4485_v56  ;;  %v14503_v56 = vld [vmem:[#allocation92_spill] sm:$0xff]  ;;  %v14517_v21 = vld [vmem:[#allocation103_spill] sm:$0xff]  ;;  %s12638_s11 = sld [smem:[#allocation9 + $0x5c]] }
 0x526   : > { %v4447_v54 = vadd.f32 %v4442_v53, %v4373_v45  ;;  %v4479_v34 = vsel %vm567_vm5, %v14499_v27, %v14494_v50  ;;  %v4446_v10 = vadd.f32 %v4441_v61, %v4372_v12  ;;  %v4516_v31 = vsel %vm612_vm6, %v11406_v16, %v14496_v42 }
 0x527   : > { %v4831_v29 = vrot.slane %v4815_v9, 2  ;;  %v4596_v45 = vadd.f32 %v14503_v56, %v4522_v19  ;;  %v4515_v50 = vsel %vm612_vm6, %v11408_v35, %v11406_v16  ;;  %v5657_v46 = vmul.f32 %v11815_v7, %v5655_v55  ;;  %v14504_v9 = vld [vmem:[#allocation93_spill] sm:$0xff]  ;;  %v14505_v19 = vld [vmem:[#allocation94_spill] sm:$0xff]  ;;  %v14506_v16 = vld [vmem:[#allocation95_spill] sm:$0xff] }
 0x528   : > { %v5656_v36 = vmul.f32 %v11818_v48, %v5655_v55  ;;  %v4484_v53 = vadd.f32 %v4479_v34, %v4410_v32  ;;  %v4804_v8 = vsel %vm1443_vm1, %v4802_v2, %v4803_v57  ;;  %v5658_v42 = vmul.f32 %v11828_v25, %v5655_v55  ;;  %v14507_v32 = vld [vmem:[#allocation96_spill] sm:$0xff]  ;;  %v14508_v55 = vld [vmem:[#allocation97_spill] sm:$0xff]  ;;  %v14510_v34 = vld [vmem:[#allocation98_spill] sm:$0xff] }
 0x529   : > { %5642 = vrot.lane.b32.xlu1 %v5635_v41, %s8178_s8  ;;  %5640 = vrot.lane.b32.xlu0 %v5634_v0, %s8178_s8  ;;  %v4478_v41 = vsel %vm567_vm5, %v14500_v20, %v14499_v27  ;;  %v4521_v61 = vadd.f32 %v4516_v31, %v4447_v54  ;;  %v4553_v27 = vsel %vm612_vm6, %v14505_v19, %v14498_v30  ;;  %v14509_v30 = vld [vmem:[#allocation100_spill] sm:$0xff] }
 0x52a   : > { %5644 = vrot.lane.b32.xlu2 %v5636_v37, %s8178_s8  ;;  %v4832_v37 = vrot.slane %v4818_v59, 2  ;;  %v4483_v12 = vadd.f32 %v4478_v41, %v4409_v39  ;;  %v4633_v59 = vadd.f32 %v14504_v9, %v4559_v5  ;;  %v4552_v35 = vsel %vm612_vm6, %v14506_v16, %v14505_v19 }
 0x52b   : > { %v12298_v0 = vpop.permute.xlu1 %5235  ;;  %v12300_v51 = vpop.permute.xlu0 %5233  ;;  %v4520_v20 = vadd.f32 %v4515_v50, %v4446_v10  ;;  %v4590_v39 = vsel %vm657_vm7, %v14507_v32, %v14503_v56  ;;  %v12328_v57 = vmul.f32 %v11916_v43, %v12240_v22  ;;  %v4670_v5 = vadd.f32 %v14508_v55, %v4596_v45  ;;  %v14511_v50 = vld [vmem:[#allocation105_spill] sm:$0xff] }
 0x52c   : > { %14501 = vst [vmem:[#allocation124_spill] sm:$0xff] %v12298_v0  ;;  %v12305_v26 = vpop.permute.xlu2 %5348  ;;  %v4833_v2 = vsel %vm1443_vm1, %v4831_v29, %v4832_v37  ;;  %v4707_v54 = vadd.f32 %v14509_v30, %v4633_v59  ;;  %v4589_v41 = vsel %vm657_vm7, %v14510_v34, %v14507_v32  ;;  %v4558_v10 = vadd.f32 %v4553_v27, %v4484_v53  ;;  %v7896_v29 = vld [vmem:[%s8418_s18 + $0x38] sm:$0x3]  ;;  %v14514_v32 = vld [vmem:[#allocation99_spill] sm:$0xff] }
 0x52d   : > { %14502 = vst [vmem:[#allocation127_spill] sm:$0xff] %v12300_v51  ;;  %v4557_v31 = vadd.f32 %v4552_v35, %v4483_v12  ;;  %v12339_v37 = vmul.f32 %v7896_v29, %v12240_v22  ;;  %v5677_v56 = vstv %s12289_s29  ;;  %v4595_v45 = vadd.f32 %v4590_v39, %v4521_v61  ;;  %s7623_s29 = sld [smem:[#allocation9 + $0xc8]] }
 0x52e   : > { %v4781_v59 = vadd.f32 %v14511_v50, %v4707_v54  ;;  %v12348_v19 = vmul.f32 %v11926_v1, %v12240_v22  ;;  %v4594_v27 = vadd.f32 %v4589_v41, %v4520_v20  ;;  %v4814_v16 = vmul.f32 %v11916_v43, %v12259_v3 }
 0x52f   : > { %v4817_v61 = vmul.f32 %v7896_v29, %v12259_v3  ;;  %v4627_v39 = vsel %vm657_vm7, %v14514_v32, %v14504_v9  ;;  %v5679_v34 = vmul.f32 %v11815_v7, %v5677_v56  ;;  %v5678_v20 = vmul.f32 %v11818_v48, %v5677_v56 }
 0x530   : > { %v4813_v43 = vmul.f32 %v11926_v1, %v12259_v3  ;;  %v5680_v51 = vmul.f32 %v11828_v25, %v5677_v56  ;;  %v4800_v9 = vrot.slane %v12339_v37, 2  ;;  %v4828_v58 = vrot.slane %v4814_v16, 2  ;;  %v14518_v1 = vld [vmem:[#allocation104_spill] sm:$0xff]  ;;  %v14519_v56 = vld [vmem:[#allocation106_spill] sm:$0xff]  ;;  %v14520_v37 = vld [vmem:[#allocation111_spill] sm:$0xff] }
 0x531   : > { %5664 = vrot.lane.b32.xlu1 %v5657_v46, %s8178_s8  ;;  %5662 = vrot.lane.b32.xlu0 %v5656_v36, %s8178_s8  ;;  %v7897_v46 = vld [vmem:[%s8418_s18 + $0x30] sm:$0x3] }
 0x532   : > { %5666 = vrot.lane.b32.xlu2 %v5658_v42, %s8178_s8  ;;  %v4787_v36 = vmul.f32 %v7897_v46, %v12240_v22  ;;  %v4799_v42 = vrot.slane %v12328_v57, 2  ;;  %v14515_v22 = vld [vmem:[#allocation101_spill] sm:$0xff]  ;;  %v14516_v57 = vld [vmem:[#allocation102_spill] sm:$0xff]  ;;  %v4816_v29 = vmul.f32 %v7897_v46, %v12259_v3  ;;  %v4663_v3 = vsel %vm702_vm8, %v14518_v1, %v14517_v21 }
 0x533   : > { %v12352_v53 = vpop.permute.xlu1 %5272  ;;  %v12354_v12 = vpop.permute.xlu0 %5270  ;;  %v4626_v54 = vsel %vm657_vm7, %v14515_v22, %v14514_v32  ;;  %v4744_v41 = vadd.f32 %v14516_v57, %v4670_v5  ;;  %v4632_v22 = vadd.f32 %v4627_v39, %v4558_v10  ;;  %v4664_v5 = vsel %vm702_vm8, %v14517_v21, %v14508_v55 }
 0x534   : > { %14512 = vst [vmem:[#allocation125_spill] sm:$0xff] %v12352_v53  ;;  %v12360_v35 = vpop.permute.xlu2 %5385  ;;  %v4796_v53 = vrot.slane %v12348_v19, 2  ;;  %v4797_v32 = vrot.slane %v4787_v36, 2  ;;  %v4631_v0 = vadd.f32 %v4626_v54, %v4557_v31  ;;  %v4829_v19 = vrot.slane %v4817_v61, 2  ;;  %v14521_v36 = vld [vmem:[#allocation107_spill] sm:$0xff] }
 0x535   : > { %14513 = vst [vmem:[#allocation126_spill] sm:$0xff] %v12354_v12  ;;  %v4839_v12 = vadd.f32 %v4833_v2, %v4781_v59  ;;  %v4701_v2 = vsel %vm702_vm8, %v14519_v56, %v14509_v30  ;;  %v4810_v10 = vadd.f32 %v4804_v8, %v4744_v41  ;;  %v4825_v31 = vrot.slane %v4813_v43, 2 }
 0x536   : > { %v4826_v46 = vrot.slane %v4816_v29, 2  ;;  %v5699_v55 = vstv %s12343_s15  ;;  %v4669_v21 = vadd.f32 %v4664_v5, %v4595_v45  ;;  %v4700_v30 = vsel %vm702_vm8, %v14521_v36, %v14519_v56  ;;  %s7624_s15 = sld [smem:[#allocation9 + $0x5d]] }
 0x537   : > { %v4913_v59 = vadd.f32 %v14520_v37, %v4839_v12  ;;  %v14522_v12 = vld [vmem:[#allocation108_spill] sm:$0xff]  ;;  %v4668_v54 = vadd.f32 %v4663_v3, %v4594_v27  ;;  %v5701_v27 = vmul.f32 %v11815_v7, %v5699_v55  ;;  %v5700_v29 = vmul.f32 %v11818_v48, %v5699_v55  ;;  %v14524_v3 = vld [vmem:[#allocation109_spill] sm:$0xff] }
 0x538   : > { %v4738_v16 = vsel %vm747_vm9, %v14522_v12, %v14516_v57  ;;  %v4774_v57 = vsel %vm747_vm9, %v11726_v13, %v11724_v15  ;;  %v4801_v5 = vsel %vm1443_vm1, %v4799_v42, %v4800_v9  ;;  %v4876_v56 = vadd.f32 %v14524_v3, %v4810_v10 }
 0x539   : > { %5686 = vrot.lane.b32.xlu1 %v5679_v34, %s8179_s26  ;;  %5684 = vrot.lane.b32.xlu0 %v5678_v20, %s8179_s26  ;;  %v4987_v61 = vadd.f32 %v11771_v17, %v4913_v59  ;;  %v14523_v34 = vld [vmem:[#allocation110_spill] sm:$0xff]  ;;  %v4775_v20 = vsel %vm747_vm9, %v11724_v15, %v14511_v50  ;;  %v4743_v1 = vadd.f32 %v4738_v16, %v4669_v21 }
 0x53a   : > { %5688 = vrot.lane.b32.xlu2 %v5680_v51, %s8179_s26  ;;  %v4706_v51 = vadd.f32 %v4701_v2, %v4632_v22  ;;  %v4737_v45 = vsel %vm747_vm9, %v14523_v34, %v14522_v12  ;;  %v4705_v22 = vadd.f32 %v4700_v30, %v4631_v0  ;;  %v5702_v50 = vmul.f32 %v11828_v25, %v5699_v55 }
 0x53b   : > { %v12400_v39 = vpop.permute.xlu1 %5309  ;;  %v12402_v8 = vpop.permute.xlu0 %5307  ;;  %v5061_v43 = vadd.f32 %v11896_v28, %v4987_v61  ;;  %v4742_v2 = vadd.f32 %v4737_v45, %v4668_v54  ;;  %v4798_v15 = vsel %vm1443_vm1, %v4796_v53, %v4797_v32  ;;  %v4830_v13 = vsel %vm1443_vm1, %v4828_v58, %v4829_v19 }
 0x53c   : > { %v12410_v41 = vpop.permute.xlu2 %5422  ;;  %v4780_v59 = vadd.f32 %v4775_v20, %v4706_v51  ;;  %v4779_v12 = vadd.f32 %v4774_v57, %v4705_v22  ;;  %v4950_v61 = vadd.f32 %v11735_v4, %v4876_v56  ;;  %v4827_v0 = vsel %vm1443_vm1, %v4825_v31, %v4826_v46 }
 0x53d   : > { %v5135_v36 = vadd.f32 %v11999_v60, %v5061_v43  ;;  %v4809_v9 = vadd.f32 %v4801_v5, %v4743_v1  ;;  %v5721_v53 = vstv %s12391_s0  ;;  %v4808_v58 = vadd.f32 %v4798_v15, %v4742_v2  ;;  %s7625_s0 = sld [smem:[#allocation9 + $0xc9]] }
 0x53e   : > { %v4838_v32 = vadd.f32 %v4830_v13, %v4780_v59  ;;  %v5024_v19 = vadd.f32 %v11837_v14, %v4950_v61  ;;  %v4837_v55 = vadd.f32 %v4827_v0, %v4779_v12  ;;  %v4870_v21 = vsel %vm432_vm2, %v11765_v6, %v14524_v3  ;;  %v14527_v12 = vld [vmem:[#allocation115_spill] sm:$0xff] }
 0x53f   : > { %v5209_v42 = vadd.f32 %v12106_v47, %v5135_v36  ;;  %v4869_v30 = vsel %vm432_vm2, %v11767_v40, %v11765_v6  ;;  %v12452_v54 = vstv %s12412_s30  ;;  %v5723_v45 = vmul.f32 %v11815_v7, %v5721_v53  ;;  %v14525_v40 = vld [vmem:[#allocation112_spill] sm:$0xff]  ;;  %s7626_s30 = sld [smem:[#allocation9 + $0x5e]] }
 0x540   : > { %v5098_v51 = vadd.f32 %v11956_v49, %v5024_v19  ;;  %v5722_v20 = vmul.f32 %v11818_v48, %v5721_v53  ;;  %v4907_v57 = vsel %vm432_vm2, %v11823_v18, %v14520_v37  ;;  %v4906_v6 = vsel %vm432_vm2, %v11825_v52, %v11823_v18 }
 0x541   : > { %5708 = vrot.lane.b32.xlu1 %v5701_v27, %s8179_s26  ;;  %5706 = vrot.lane.b32.xlu0 %v5700_v29, %s8179_s26  ;;  %v5283_v10 = vadd.f32 %v12200_v23, %v5209_v42  ;;  %v4944_v43 = vsel %vm477_vm3, %v14525_v40, %v11735_v4  ;;  %v5724_v27 = vmul.f32 %v11828_v25, %v5721_v53  ;;  %v14526_v29 = vld [vmem:[#allocation113_spill] sm:$0xff]  ;;  %v12477_v56 = vstv %s12431_s12  ;;  %s7627_s12 = sld [smem:[#allocation9 + $0xca]] }
 0x542   : > { %5710 = vrot.lane.b32.xlu2 %v5702_v50, %s8179_s26  ;;  %v4943_v22 = vsel %vm477_vm3, %v14526_v29, %v14525_v40  ;;  %v5172_v5 = vadd.f32 %v12056_v63, %v5098_v51  ;;  %v5452_v37 = vmul.f32 %v11828_v25, %v12452_v54  ;;  %v4875_v50 = vadd.f32 %v4870_v21, %v4809_v9  ;;  %v14532_v40 = vld [vmem:[#allocation120_spill] sm:$0xff] }
 0x543   : > { %v12439_v31 = vpop.permute.xlu1 %5346  ;;  %v12441_v46 = vpop.permute.xlu0 %5344  ;;  %v5357_v34 = vadd.f32 %v12305_v26, %v5283_v10  ;;  %v4874_v18 = vadd.f32 %v4869_v30, %v4808_v58  ;;  %v4912_v52 = vadd.f32 %v4907_v57, %v4838_v32  ;;  %v4911_v3 = vadd.f32 %v4906_v6, %v4837_v55  ;;  %v14529_v32 = vld [vmem:[#allocation116_spill] sm:$0xff] }
 0x544   : > { %v12449_v16 = vpop.permute.xlu2 %5468  ;;  %v5246_v4 = vadd.f32 %v12156_v44, %v5172_v5  ;;  %v4949_v2 = vadd.f32 %v4944_v43, %v4875_v50  ;;  %v4981_v36 = vsel %vm477_vm3, %v11948_v62, %v11771_v17  ;;  %v5743_v15 = vstv %s12435_s16  ;;  %v14528_v17 = vld [vmem:[#allocation114_spill] sm:$0xff]  ;;  %s7628_s16 = sld [smem:[#allocation9 + $0x5f]] }
 0x545   : > { %v5431_v1 = vadd.f32 %v12410_v41, %v5357_v34  ;;  %v4948_v59 = vadd.f32 %v4943_v22, %v4874_v18  ;;  %v4980_v13 = vsel %vm477_vm3, %v11950_v33, %v11948_v62  ;;  %v5018_v61 = vsel %vm522_vm4, %v14527_v12, %v11837_v14  ;;  %v14530_v62 = vld [vmem:[#allocation117_spill] sm:$0xff] }
 0x546   : > { %v5320_v0 = vadd.f32 %v12253_v11, %v5246_v4  ;;  %v5017_v58 = vsel %vm522_vm4, %v14528_v17, %v14527_v12  ;;  %v5055_v19 = vsel %vm522_vm4, %v14529_v32, %v11896_v28  ;;  %v5054_v33 = vsel %vm522_vm4, %v14530_v62, %v14529_v32  ;;  %v14535_v4 = vld [vmem:[#allocation122_spill] sm:$0xff]  ;;  %v12571_v32 = vld [vmem:[%s8411_s21 + $0x48] sm:$0xff] }
 0x547   : > { %v5455_v42 = vadd.f32 %v5452_v37, %v5431_v1  ;;  %v5444_v14 = vmul.f32 %v11828_v25, %v12477_v56  ;;  %v5745_v30 = vmul.f32 %v11815_v7, %v5743_v15  ;;  %v5744_v51 = vmul.f32 %v11818_v48, %v5743_v15  ;;  %v14534_v48 = vld [vmem:[#allocation121_spill] sm:$0xff] }
 0x548   : > { %v5394_v55 = vadd.f32 %v12360_v35, %v5320_v0  ;;  %v4986_v34 = vadd.f32 %v4981_v36, %v4912_v52  ;;  %v4985_v28 = vadd.f32 %v4980_v13, %v4911_v3  ;;  %v5746_v57 = vmul.f32 %v11828_v25, %v5743_v15  ;;  %v14536_v13 = vld [vmem:[#allocation123_spill] sm:$0xff] }
 0x549   : > { %5730 = vrot.lane.b32.xlu1 %v5723_v45, %s8180_s13  ;;  %5728 = vrot.lane.b32.xlu0 %v5722_v20, %s8180_s13  ;;  %v14531_v45 = vld [vmem:[#allocation119_spill] sm:$0xff]  ;;  %v5023_v6 = vadd.f32 %v5018_v61, %v4949_v2  ;;  %v5022_v22 = vadd.f32 %v5017_v58, %v4948_v59  ;;  %v5765_v18 = vstv %s12486_s2  ;;  %v5166_v52 = vsel %vm612_vm6, %v12193_v38, %v12056_v63  ;;  %v14537_v61 = vld [vmem:[#allocation124_spill] sm:$0xff]  ;;  %s7629_s2 = sld [smem:[#allocation9 + $0xcb]] }
 0x54a   : > { %5732 = vrot.lane.b32.xlu2 %v5724_v27, %s8180_s13  ;;  %v5092_v20 = vsel %vm567_vm5, %v14531_v45, %v11956_v49  ;;  %v5091_v43 = vsel %vm567_vm5, %v14532_v40, %v14531_v45  ;;  %v14533_v27 = vld [vmem:[#allocation118_spill] sm:$0xff]  ;;  %v5060_v49 = vadd.f32 %v5055_v19, %v4986_v34  ;;  %v5059_v5 = vadd.f32 %v5054_v33, %v4985_v28  ;;  %v12567_v58 = vld [vmem:[%s8411_s21 + $0x50] sm:$0xff]  ;;  %v12589_v40 = vld [vmem:[%s8418_s18 + $0x48] sm:$0x3] }
 0x54b   : > { %v12495_v9 = vpop.permute.xlu1 %5383  ;;  %v12497_v53 = vpop.permute.xlu0 %5381  ;;  %v5129_v7 = vsel %vm567_vm5, %v14533_v27, %v11999_v60  ;;  %v5128_v29 = vsel %vm567_vm5, %v14534_v48, %v14533_v27  ;;  %v5097_v25 = vadd.f32 %v5092_v20, %v5023_v6  ;;  %v5447_v1 = vadd.f32 %v5444_v14, %v5394_v55  ;;  %v14539_v33 = vld [vmem:[#allocation126_spill] sm:$0xff]  ;;  %v12583_v34 = vld [vmem:[%s8418_s18 + $0x50] sm:$0x3]  ;;  %v14540_v20 = vld [vmem:[#allocation127_spill] sm:$0xff] }
 0x54c   : > { %v12510_v10 = vpop.permute.xlu2 %5490  ;;  %v5096_v37 = vadd.f32 %v5091_v43, %v5022_v22  ;;  %v5134_v50 = vadd.f32 %v5129_v7, %v5060_v49  ;;  %v5133_v60 = vadd.f32 %v5128_v29, %v5059_v5  ;;  %v5165_v3 = vsel %vm612_vm6, %v12195_v24, %v12193_v38  ;;  %v14538_v24 = vld [vmem:[#allocation125_spill] sm:$0xff] }
 0x54d   : > { %v12514_v21 = vadd.f32 %v12510_v10, %v5455_v42  ;;  %v5203_v2 = vsel %vm612_vm6, %v14535_v4, %v12106_v47  ;;  %v5477_v59 = vadd.f32 %v12449_v16, %v5447_v1  ;;  %v5202_v12 = vsel %vm612_vm6, %v14536_v13, %v14535_v4 }
 0x54e   : > { %v5240_v63 = vsel %vm657_vm7, %v14537_v61, %v12156_v44  ;;  %v5277_v42 = vsel %vm657_vm7, %v14538_v24, %v12200_v23  ;;  %v5767_v44 = vmul.f32 %v12567_v58, %v5765_v18  ;;  %v5766_v19 = vmul.f32 %v12571_v32, %v5765_v18  ;;  %v12578_v23 = vld [vmem:[%s8411_s21 + $0x58] sm:$0xff] }
 0x54f   : > { %v5171_v62 = vadd.f32 %v5166_v52, %v5097_v25  ;;  %v5276_v14 = vsel %vm657_vm7, %v14539_v33, %v14538_v24  ;;  %v5768_v55 = vmul.f32 %v12578_v23, %v5765_v18  ;;  %v5170_v28 = vadd.f32 %v5165_v3, %v5096_v37  ;;  %v12616_v37 = vld [vmem:[%s8418_s18 + $0x58] sm:$0x3] }
 0x550   : > { %v5787_v27 = vstv %s12535_s17  ;;  %v5451_v7 = vmul.f32 %v12567_v58, %v12452_v54  ;;  %v5450_v48 = vmul.f32 %v12571_v32, %v12452_v54  ;;  %v5351_v29 = vsel %vm702_vm8, %v12439_v31, %v12305_v26  ;;  %s7618_s17 = sld [smem:[#allocation9 + $0x5a]] }
 0x551   : > { %5752 = vrot.lane.b32.xlu1 %v5745_v30, %s8180_s13  ;;  %5750 = vrot.lane.b32.xlu0 %v5744_v51, %s8180_s13  ;;  %v5207_v30 = vadd.f32 %v5202_v12, %v5133_v60  ;;  %v5867_v51 = vstv %s12531_s24  ;;  %v5245_v45 = vadd.f32 %v5240_v63, %v5171_v62  ;;  %v5350_v22 = vsel %vm702_vm8, %v12441_v46, %v12439_v31  ;;  %s7630_s24 = sld [smem:[#allocation9 + $0x60]] }
 0x552   : > { %5754 = vrot.lane.b32.xlu2 %v5746_v57, %s8180_s13  ;;  %v5239_v57 = vsel %vm657_vm7, %v14540_v20, %v14537_v61  ;;  %v5869_v49 = vmul.f32 %v12567_v58, %v5867_v51  ;;  %v5872_v5 = vmul.f32 %v12583_v34, %v5867_v51  ;;  %v5314_v54 = vsel %vm702_vm8, %v12400_v39, %v12253_v11 }
 0x553   : > { %v5421_v36 = vpop.permute.xlu1 %5420  ;;  %v5419_v15 = vpop.permute.xlu0 %5418  ;;  %v5281_v43 = vadd.f32 %v5276_v14, %v5207_v30  ;;  %v5313_v26 = vsel %vm702_vm8, %v12402_v8, %v12400_v39  ;;  %v5868_v31 = vmul.f32 %v12571_v32, %v5867_v51  ;;  %v5871_v46 = vmul.f32 %v12589_v40, %v5867_v51 }
 0x554   : > { %v12555_v0 = vpop.permute.xlu2 %5512  ;;  %v5425_v47 = vsel %vm747_vm9, %v5421_v36, %v12410_v41  ;;  %v5424_v38 = vsel %vm747_vm9, %v5419_v15, %v5421_v36  ;;  %v5208_v41 = vadd.f32 %v5203_v2, %v5134_v50  ;;  %v5790_v11 = vmul.f32 %v12578_v23, %v5787_v27 }
 0x555   : > { %v12564_v17 = vadd.f32 %v12555_v0, %v5477_v59  ;;  %v5789_v52 = vmul.f32 %v12567_v58, %v5787_v27  ;;  %v5355_v8 = vadd.f32 %v5350_v22, %v5281_v43  ;;  %v5788_v4 = vmul.f32 %v12571_v32, %v5787_v27 }
 0x556   : > { %v5282_v6 = vadd.f32 %v5277_v42, %v5208_v41  ;;  %v5870_v2 = vmul.f32 %v12578_v23, %v5867_v51  ;;  %v5873_v59 = vmul.f32 %v12616_v37, %v5867_v51  ;;  %v5883_v36 = vrot.slane %v5869_v49, 1 }
 0x557   : > { %v5429_v13 = vadd.f32 %v5424_v38, %v5355_v8  ;;  %v5880_v12 = vrot.slane %v5868_v31, 1  ;;  %v5881_v61 = vrot.slane %v5871_v46, 1  ;;  %v5244_v63 = vadd.f32 %v5239_v57, %v5170_v28 }
 0x558   : > { %v5356_v39 = vadd.f32 %v5351_v29, %v5282_v6  ;;  %v5443_v24 = vmul.f32 %v12567_v58, %v12477_v56  ;;  %v5319_v42 = vadd.f32 %v5314_v54, %v5245_v45  ;;  %v5904_v62 = vstv %s12607_s20  ;;  %s7631_s20 = sld [smem:[#allocation9 + $0xcc]] }
 0x559   : > { %5774 = vrot.lane.b32.xlu1 %v5767_v44, %s8181_s4  ;;  %5772 = vrot.lane.b32.xlu0 %v5766_v19, %s8181_s4  ;;  %v5388_v44 = vsel %vm747_vm9, %v12495_v9, %v12360_v35  ;;  %v5318_v38 = vadd.f32 %v5313_v26, %v5244_v63  ;;  %v5886_v19 = vrot.slane %v5870_v2, 1  ;;  %v5882_v30 = vsel %vm792_vm0, %v5880_v12, %v5881_v61 }
 0x55a   : > { %5776 = vrot.lane.b32.xlu2 %v5768_v55, %s8181_s4  ;;  %v5430_v15 = vadd.f32 %v5425_v47, %v5356_v39  ;;  %v5387_v47 = vsel %vm747_vm9, %v12497_v53, %v12495_v9  ;;  %v5453_v55 = vadd.f32 %v5450_v48, %v5429_v13  ;;  %v5393_v9 = vadd.f32 %v5388_v44, %v5319_v42 }
 0x55b   : > { %v5467_v25 = vpop.permute.xlu1 %5466  ;;  %v5465_v1 = vpop.permute.xlu0 %5464  ;;  %v5392_v53 = vadd.f32 %v5387_v47, %v5318_v38  ;;  %v5907_v43 = vmul.f32 %v12578_v23, %v5904_v62  ;;  %v5906_v27 = vmul.f32 %v12567_v58, %v5904_v62  ;;  %v5905_v48 = vmul.f32 %v12571_v32, %v5904_v62 }
 0x55c   : > { %v12620_v50 = vpop.permute.xlu2 %5534  ;;  %v5471_v60 = vsel %vm432_vm2, %v5467_v25, %v12449_v16  ;;  %v5470_v18 = vsel %vm432_vm2, %v5465_v1, %v5467_v25  ;;  %v5884_v16 = vrot.slane %v5872_v5, 1  ;;  %v5454_v33 = vadd.f32 %v5451_v7, %v5430_v15 }
 0x55d   : > { %v12629_v3 = vadd.f32 %v12620_v50, %v12514_v21  ;;  %v5442_v21 = vmul.f32 %v12571_v32, %v12477_v56  ;;  %v5887_v56 = vrot.slane %v5873_v59, 1  ;;  %v5909_v7 = vmul.f32 %v12583_v34, %v5904_v62 }
 0x55e   : > { %v5885_v35 = vsel %vm792_vm0, %v5883_v36, %v5884_v16  ;;  %v5908_v29 = vmul.f32 %v12589_v40, %v5904_v62  ;;  %v5941_v49 = vstv %s12638_s11  ;;  %v5446_v5 = vadd.f32 %v5443_v24, %v5393_v9  ;;  %s7632_s11 = sld [smem:[#allocation9 + $0x61]] }
 0x55f   : > { %v5888_v22 = vsel %vm792_vm0, %v5886_v19, %v5887_v56  ;;  %v5445_v54 = vadd.f32 %v5442_v21, %v5392_v53  ;;  %v5920_v26 = vrot.slane %v5906_v27, 1  ;;  %v5921_v25 = vrot.slane %v5909_v7, 1 }
 0x560   : > { %v5917_v1 = vrot.slane %v5905_v48, 1  ;;  %v5918_v31 = vrot.slane %v5908_v29, 1  ;;  %v5476_v46 = vadd.f32 %v5471_v60, %v5446_v5  ;;  %v5946_v16 = vmul.f32 %v12583_v34, %v5941_v49 }
 0x561   : > { %5796 = vrot.lane.b32.xlu1 %v5789_v52, %s8181_s4  ;;  %5794 = vrot.lane.b32.xlu0 %v5788_v4, %s8181_s4  ;;  %v5943_v4 = vmul.f32 %v12567_v58, %v5941_v49  ;;  %v5942_v15 = vmul.f32 %v12571_v32, %v5941_v49  ;;  %v5945_v12 = vmul.f32 %v12589_v40, %v5941_v49 }
 0x562   : > { %5798 = vrot.lane.b32.xlu2 %v5790_v11, %s8181_s4  ;;  %v5475_v11 = vadd.f32 %v5470_v18, %v5445_v54  ;;  %v5922_v61 = vsel %vm792_vm0, %v5920_v26, %v5921_v25  ;;  %v5919_v63 = vsel %vm792_vm0, %v5917_v1, %v5918_v31  ;;  %v5947_v21 = vmul.f32 %v12616_v37, %v5941_v49 }
 0x563   : > { %v5489_v41 = vpop.permute.xlu1 %5488  ;;  %v5487_v14 = vpop.permute.xlu0 %5486  ;;  %v5957_v42 = vrot.slane %v5943_v4, 1  ;;  %v5958_v44 = vrot.slane %v5946_v16, 1  ;;  %v5955_v47 = vrot.slane %v5945_v12, 1 }
 0x564   : > { %v12652_v51 = vpop.permute.xlu2 %5556  ;;  %v5493_v28 = vsel %vm432_vm2, %v5489_v41, %v12510_v10  ;;  %v5492_v45 = vsel %vm432_vm2, %v5487_v14, %v5489_v41  ;;  %v5910_v10 = vmul.f32 %v12616_v37, %v5904_v62  ;;  %v5961_v62 = vrot.slane %v5947_v21, 1 }
 0x565   : > { %v5565_v20 = vadd.f32 %v12652_v51, %v12564_v17  ;;  %v5498_v57 = vadd.f32 %v5493_v28, %v5454_v33  ;;  %v5497_v6 = vadd.f32 %v5492_v45, %v5453_v55  ;;  %v5923_v17 = vrot.slane %v5907_v43, 1 }
 0x566   : > { %v5924_v8 = vrot.slane %v5910_v10, 1  ;;  %v5978_v41 = vstv %s7623_s29  ;;  %v6052_v21 = vstv %s7625_s0  ;;  %s7619_s29 = sld [smem:[#allocation9 + $0xc6]] }
 0x567   : > { %v5980_v45 = vmul.f32 %v12567_v58, %v5978_v41  ;;  %v5983_v43 = vmul.f32 %v12583_v34, %v5978_v41  ;;  %v5979_v27 = vmul.f32 %v12571_v32, %v5978_v41  ;;  %v5982_v7 = vmul.f32 %v12589_v40, %v5978_v41  ;;  %s7634_s0 = sld [smem:[#allocation9 + $0x62]] }
 0x568   : > { %v5925_v24 = vsel %vm792_vm0, %v5923_v17, %v5924_v8  ;;  %v5981_v48 = vmul.f32 %v12578_v23, %v5978_v41  ;;  %v5984_v29 = vmul.f32 %v12616_v37, %v5978_v41  ;;  %v6054_v41 = vmul.f32 %v12567_v58, %v6052_v21 }
 0x569   : > { %5891 = vrot.lane.b32.xlu1 %v5885_v35, %s8174_s10  ;;  %5889 = vrot.lane.b32.xlu0 %v5882_v30, %s8174_s10  ;;  %v5959_v35 = vsel %vm792_vm0, %v5957_v42, %v5958_v44  ;;  %v5992_v10 = vrot.slane %v5982_v7, 1 }
 0x56a   : > { %5893 = vrot.lane.b32.xlu2 %v5888_v22, %s8174_s10  ;;  %v6015_v22 = vstv %s7624_s15  ;;  %v5997_v54 = vrot.slane %v5981_v48, 1  ;;  %v5998_v17 = vrot.slane %v5984_v29, 1  ;;  %s12869_s15 = sld [smem:[#allocation9 + $0xcd]] }
 0x56b   : > { %v5511_v52 = vpop.permute.xlu1 %5510  ;;  %v5509_v39 = vpop.permute.xlu0 %5508  ;;  %v6017_v26 = vmul.f32 %v12567_v58, %v6015_v22  ;;  %v6019_v4 = vmul.f32 %v12589_v40, %v6015_v22 }
 0x56c   : > { %v12671_v2 = vpop.permute.xlu2 %5578  ;;  %v5515_v59 = vsel %vm477_vm3, %v5511_v52, %v12555_v0  ;;  %v5514_v36 = vsel %vm477_vm3, %v5509_v39, %v5511_v52  ;;  %v5944_v0 = vmul.f32 %v12578_v23, %v5941_v49  ;;  %v5999_v16 = vsel %vm792_vm0, %v5997_v54, %v5998_v17 }
 0x56d   : > { %v5587_v60 = vadd.f32 %v12671_v2, %v12629_v3  ;;  %v5520_v18 = vadd.f32 %v5515_v59, %v5476_v46  ;;  %v5519_v13 = vadd.f32 %v5514_v36, %v5475_v11  ;;  %v5954_v3 = vrot.slane %v5942_v15, 1 }
 0x56e   : > { %v5960_v56 = vrot.slane %v5944_v0, 1  ;;  %v6020_v46 = vmul.f32 %v12583_v34, %v6015_v22  ;;  %v6016_v11 = vmul.f32 %v12571_v32, %v6015_v22  ;;  %v6021_v15 = vmul.f32 %v12616_v37, %v6015_v22 }
 0x56f   : > { %v5956_v28 = vsel %vm792_vm0, %v5954_v3, %v5955_v47  ;;  %v6031_v12 = vrot.slane %v6017_v26, 1 }
 0x570   : > { %v6035_v0 = vrot.slane %v6021_v15, 1  ;;  %v6126_v15 = vstv %s7627_s12  ;;  %s12962_s12 = sld [smem:[#allocation9 + $0x64]] }
 0x571   : > { %5928 = vrot.lane.b32.xlu1 %v5922_v61, %s8174_s10  ;;  %5926 = vrot.lane.b32.xlu0 %v5919_v63, %s8174_s10  ;;  %v6032_v61 = vrot.slane %v6020_v46, 1 }
 0x572   : > { %5930 = vrot.lane.b32.xlu2 %v5925_v24, %s8174_s10 }
 0x573   : > { %v5533_v38 = vpop.permute.xlu1 %5532  ;;  %v5531_v19 = vpop.permute.xlu0 %5530  ;;  %v6033_v47 = vsel %vm792_vm0, %v6031_v12, %v6032_v61 }
 0x574   : > { %v12689_v33 = vpop.permute.xlu2 %5600  ;;  %v5537_v14 = vsel %vm477_vm3, %v5533_v38, %v12620_v50  ;;  %v5536_v55 = vsel %vm477_vm3, %v5531_v19, %v5533_v38  ;;  %v5962_v50 = vsel %vm792_vm0, %v5960_v56, %v5961_v62 }
 0x575   : > { %v5609_v30 = vadd.f32 %v12689_v33, %v5565_v20  ;;  %v5542_v9 = vadd.f32 %v5537_v14, %v5498_v57  ;;  %v5541_v53 = vadd.f32 %v5536_v55, %v5497_v6  ;;  %v5994_v20 = vrot.slane %v5980_v45, 1 }
 0x576   : > { %v5995_v57 = vrot.slane %v5983_v43, 1  ;;  %v5991_v6 = vrot.slane %v5979_v27, 1  ;;  %v6057_v14 = vmul.f32 %v12583_v34, %v6052_v21  ;;  %v6053_v55 = vmul.f32 %v12571_v32, %v6052_v21 }
 0x577   : > { %v6058_v45 = vmul.f32 %v12616_v37, %v6052_v21  ;;  %v6089_v43 = vstv %s7626_s30  ;;  %s12937_s30 = sld [smem:[#allocation9 + $0xce]] }
 0x578   : > { %v5996_v59 = vsel %vm792_vm0, %v5994_v20, %v5995_v57  ;;  %v5993_v36 = vsel %vm792_vm0, %v5991_v6, %v5992_v10  ;;  %v6094_v10 = vmul.f32 %v12583_v34, %v6089_v43  ;;  %v6093_v26 = vmul.f32 %v12589_v40, %v6089_v43 }
 0x579   : > { %5965 = vrot.lane.b32.xlu1 %v5959_v35, %s8175_s19  ;;  %5963 = vrot.lane.b32.xlu0 %v5956_v28, %s8175_s19  ;;  %v6056_v35 = vmul.f32 %v12589_v40, %v6052_v21  ;;  %v6055_v28 = vmul.f32 %v12578_v23, %v6052_v21  ;;  %v6072_v29 = vrot.slane %v6058_v45, 1  ;;  %v6128_v21 = vmul.f32 %v12567_v58, %v6126_v15 }
 0x57a   : > { %5967 = vrot.lane.b32.xlu2 %v5962_v50, %s8175_s19 }
 0x57b   : > { %v5555_v49 = vpop.permute.xlu1 %5554  ;;  %v5553_v5 = vpop.permute.xlu0 %5552  ;;  %v6066_v27 = vrot.slane %v6056_v35, 1  ;;  %v6071_v48 = vrot.slane %v6055_v28, 1 }
 0x57c   : > { %v12708_v25 = vpop.permute.xlu2 %5622  ;;  %v5559_v1 = vsel %vm522_vm4, %v5555_v49, %v12652_v51  ;;  %v5558_v31 = vsel %vm522_vm4, %v5553_v5, %v5555_v49  ;;  %v6018_v51 = vmul.f32 %v12578_v23, %v6015_v22  ;;  %v6091_v22 = vmul.f32 %v12567_v58, %v6089_v43 }
 0x57d   : > { %v5631_v52 = vadd.f32 %v12708_v25, %v5587_v60  ;;  %v5564_v39 = vadd.f32 %v5559_v1, %v5520_v18  ;;  %v5563_v8 = vadd.f32 %v5558_v31, %v5519_v13  ;;  %v6028_v60 = vrot.slane %v6016_v11, 1 }
 0x57e   : > { %v6029_v18 = vrot.slane %v6019_v4, 1  ;;  %v6034_v24 = vrot.slane %v6018_v51, 1  ;;  %v6090_v49 = vmul.f32 %v12571_v32, %v6089_v43  ;;  %v6073_v46 = vsel %vm792_vm0, %v6071_v48, %v6072_v29 }
 0x57f   : > { %v6095_v11 = vmul.f32 %v12616_v37, %v6089_v43  ;;  %v6105_v4 = vrot.slane %v6091_v22, 1 }
 0x580   : > { %v6030_v62 = vsel %vm792_vm0, %v6028_v60, %v6029_v18 }
 0x581   : > { %6002 = vrot.lane.b32.xlu1 %v5996_v59, %s8175_s19  ;;  %6000 = vrot.lane.b32.xlu0 %v5993_v36, %s8175_s19  ;;  %v6106_v59 = vrot.slane %v6094_v10, 1  ;;  %v6109_v51 = vrot.slane %v6095_v11, 1  ;;  %v6200_v11 = vstv %s7629_s2  ;;  %s7640_s2 = sld [smem:[#allocation9 + $0x65]] }
 0x582   : > { %6004 = vrot.lane.b32.xlu2 %v5999_v16, %s8175_s19 }
 0x583   : > { %v5577_v13 = vpop.permute.xlu1 %5576  ;;  %v5575_v63 = vpop.permute.xlu0 %5574  ;;  %v6107_v18 = vsel %vm792_vm0, %v6105_v4, %v6106_v59 }
 0x584   : > { %v12725_v42 = vpop.permute.xlu2 %5644  ;;  %v5581_v44 = vsel %vm522_vm4, %v5577_v13, %v12671_v2  ;;  %v5580_v3 = vsel %vm522_vm4, %v5575_v63, %v5577_v13  ;;  %v6036_v2 = vsel %vm792_vm0, %v6034_v24, %v6035_v0 }
 0x585   : > { %v5653_v38 = vadd.f32 %v12725_v42, %v5609_v30  ;;  %v5586_v19 = vadd.f32 %v5581_v44, %v5542_v9  ;;  %v5585_v56 = vadd.f32 %v5580_v3, %v5541_v53  ;;  %v6068_v30 = vrot.slane %v6054_v41, 1 }
 0x586   : > { %v6069_v9 = vrot.slane %v6057_v14, 1  ;;  %v6065_v53 = vrot.slane %v6053_v55, 1  ;;  %v6131_v44 = vmul.f32 %v12583_v34, %v6126_v15  ;;  %v6127_v3 = vmul.f32 %v12571_v32, %v6126_v15 }
 0x587   : > { %v6132_v41 = vmul.f32 %v12616_v37, %v6126_v15  ;;  %v6163_v14 = vstv %s7628_s16  ;;  %s13018_s16 = sld [smem:[#allocation9 + $0xd0]] }
 0x588   : > { %v6070_v1 = vsel %vm792_vm0, %v6068_v30, %v6069_v9  ;;  %v6067_v31 = vsel %vm792_vm0, %v6065_v53, %v6066_v27  ;;  %v6168_v27 = vmul.f32 %v12583_v34, %v6163_v14  ;;  %v6167_v22 = vmul.f32 %v12589_v40, %v6163_v14 }
 0x589   : > { %6039 = vrot.lane.b32.xlu1 %v6033_v47, %s8176_s14  ;;  %6037 = vrot.lane.b32.xlu0 %v6030_v62, %s8176_s14  ;;  %v6130_v47 = vmul.f32 %v12589_v40, %v6126_v15  ;;  %v6129_v62 = vmul.f32 %v12578_v23, %v6126_v15  ;;  %v6146_v45 = vrot.slane %v6132_v41, 1  ;;  %v6202_v15 = vmul.f32 %v12567_v58, %v6200_v11 }
 0x58a   : > { %6041 = vrot.lane.b32.xlu2 %v6036_v2, %s8176_s14 }
 0x58b   : > { %v5599_v7 = vpop.permute.xlu1 %5598  ;;  %v5597_v50 = vpop.permute.xlu0 %5596  ;;  %v6140_v55 = vrot.slane %v6130_v47, 1  ;;  %v6145_v28 = vrot.slane %v6129_v62, 1 }
 0x58c   : > { %v12744_v20 = vpop.permute.xlu2 %5666  ;;  %v5603_v57 = vsel %vm567_vm5, %v5599_v7, %v12689_v33  ;;  %v5602_v6 = vsel %vm567_vm5, %v5597_v50, %v5599_v7  ;;  %v6092_v33 = vmul.f32 %v12578_v23, %v6089_v43  ;;  %v6165_v43 = vmul.f32 %v12567_v58, %v6163_v14 }
 0x58d   : > { %v5675_v5 = vadd.f32 %v12744_v20, %v5631_v52  ;;  %v5608_v54 = vadd.f32 %v5603_v57, %v5564_v39  ;;  %v5607_v17 = vadd.f32 %v5602_v6, %v5563_v8  ;;  %v6102_v52 = vrot.slane %v6090_v49, 1 }
 0x58e   : > { %v6103_v39 = vrot.slane %v6093_v26, 1  ;;  %v6108_v16 = vrot.slane %v6092_v33, 1  ;;  %v6164_v7 = vmul.f32 %v12571_v32, %v6163_v14  ;;  %v6147_v10 = vsel %vm792_vm0, %v6145_v28, %v6146_v45 }
 0x58f   : > { %v6169_v49 = vmul.f32 %v12616_v37, %v6163_v14  ;;  %v6179_v26 = vrot.slane %v6165_v43, 1 }
 0x590   : > { %v6104_v0 = vsel %vm792_vm0, %v6102_v52, %v6103_v39 }
 0x591   : > { %6076 = vrot.lane.b32.xlu1 %v6070_v1, %s8176_s14  ;;  %6074 = vrot.lane.b32.xlu0 %v6067_v31, %s8176_s14  ;;  %v6180_v1 = vrot.slane %v6168_v27, 1  ;;  %v6183_v33 = vrot.slane %v6169_v49, 1 }
 0x592   : > { %6078 = vrot.lane.b32.xlu2 %v6073_v46, %s8176_s14 }
 0x593   : > { %v5621_v8 = vpop.permute.xlu1 %5620  ;;  %v5619_v36 = vpop.permute.xlu0 %5618  ;;  %v6181_v39 = vsel %vm792_vm0, %v6179_v26, %v6180_v1  ;;  %v6274_v26 = vstv %s7631_s20  ;;  %s7648_s20 = sld [smem:[#allocation9 + $0x69]] }
 0x594   : > { %v12761_v12 = vpop.permute.xlu2 %5688  ;;  %v5625_v61 = vsel %vm567_vm5, %v5621_v8, %v12708_v25  ;;  %v5624_v60 = vsel %vm567_vm5, %v5619_v36, %v5621_v8  ;;  %v6110_v25 = vsel %vm792_vm0, %v6108_v16, %v6109_v51 }
 0x595   : > { %v5697_v13 = vadd.f32 %v12761_v12, %v5653_v38  ;;  %v5630_v63 = vadd.f32 %v5625_v61, %v5586_v19  ;;  %v5629_v24 = vadd.f32 %v5624_v60, %v5585_v56  ;;  %v6142_v38 = vrot.slane %v6128_v21, 1 }
 0x596   : > { %v6143_v19 = vrot.slane %v6131_v44, 1  ;;  %v6139_v56 = vrot.slane %v6127_v3, 1  ;;  %v6205_v61 = vmul.f32 %v12583_v34, %v6200_v11  ;;  %v6201_v60 = vmul.f32 %v12571_v32, %v6200_v11 }
 0x597   : > { %v6206_v21 = vmul.f32 %v12616_v37, %v6200_v11  ;;  %v6237_v44 = vstv %s7630_s24  ;;  %s7644_s24 = sld [smem:[#allocation9 + $0x67]] }
 0x598   : > { %v6144_v57 = vsel %vm792_vm0, %v6142_v38, %v6143_v19  ;;  %v6141_v6 = vsel %vm792_vm0, %v6139_v56, %v6140_v55  ;;  %v6242_v55 = vmul.f32 %v12583_v34, %v6237_v44  ;;  %v6241_v43 = vmul.f32 %v12589_v40, %v6237_v44 }
 0x599   : > { %6113 = vrot.lane.b32.xlu1 %v6107_v18, %s8177_s9  ;;  %6111 = vrot.lane.b32.xlu0 %v6104_v0, %s8177_s9  ;;  %v6204_v18 = vmul.f32 %v12589_v40, %v6200_v11  ;;  %v6203_v0 = vmul.f32 %v12578_v23, %v6200_v11  ;;  %v6220_v41 = vrot.slane %v6206_v21, 1  ;;  %v6240_v27 = vmul.f32 %v12578_v23, %v6237_v44 }
 0x59a   : > { %6115 = vrot.lane.b32.xlu2 %v6110_v25, %s8177_s9 }
 0x59b   : > { %v5643_v35 = vpop.permute.xlu1 %5642  ;;  %v5641_v2 = vpop.permute.xlu0 %5640  ;;  %v6214_v3 = vrot.slane %v6204_v18, 1  ;;  %v6219_v62 = vrot.slane %v6203_v0, 1 }
 0x59c   : > { %v12780_v30 = vpop.permute.xlu2 %5710  ;;  %v5647_v9 = vsel %vm612_vm6, %v5643_v35, %v12725_v42  ;;  %v5646_v53 = vsel %vm612_vm6, %v5641_v2, %v5643_v35  ;;  %v6166_v42 = vmul.f32 %v12578_v23, %v6163_v14  ;;  %v6239_v14 = vmul.f32 %v12567_v58, %v6237_v44 }
 0x59d   : > { %v5719_v50 = vadd.f32 %v12780_v30, %v5675_v5  ;;  %v5652_v48 = vadd.f32 %v5647_v9, %v5608_v54  ;;  %v5651_v29 = vadd.f32 %v5646_v53, %v5607_v17  ;;  %v6176_v5 = vrot.slane %v6164_v7, 1 }
 0x59e   : > { %v6177_v54 = vrot.slane %v6167_v22, 1  ;;  %v6182_v46 = vrot.slane %v6166_v42, 1  ;;  %v6238_v35 = vmul.f32 %v12571_v32, %v6237_v44  ;;  %v6243_v7 = vmul.f32 %v12616_v37, %v6237_v44 }
 0x59f   : > { %v6253_v22 = vrot.slane %v6239_v14, 1  ;;  %v6256_v42 = vrot.slane %v6240_v27, 1 }
 0x5a0   : > { %v6178_v51 = vsel %vm792_vm0, %v6176_v5, %v6177_v54  ;;  %v6257_v49 = vrot.slane %v6243_v7, 1 }
 0x5a1   : > { %6150 = vrot.lane.b32.xlu1 %v6144_v57, %s8177_s9  ;;  %6148 = vrot.lane.b32.xlu0 %v6141_v6, %s8177_s9  ;;  %v6254_v57 = vrot.slane %v6242_v55, 1 }
 0x5a2   : > { %6152 = vrot.lane.b32.xlu2 %v6147_v10, %s8177_s9 }
 0x5a3   : > { %v5665_v17 = vpop.permute.xlu1 %5664  ;;  %v5663_v31 = vpop.permute.xlu0 %5662 }
 0x5a4   : > { %v12797_v4 = vpop.permute.xlu2 %5732  ;;  %v5669_v59 = vsel %vm612_vm6, %v5665_v17, %v12744_v20  ;;  %v5668_v52 = vsel %vm612_vm6, %v5663_v31, %v5665_v17  ;;  %v6184_v20 = vsel %vm792_vm0, %v6182_v46, %v6183_v33  ;;  %v6255_v31 = vsel %vm792_vm0, %v6253_v22, %v6254_v57 }
 0x5a5   : > { %v5741_v8 = vadd.f32 %v12797_v4, %v5697_v13  ;;  %v5674_v36 = vadd.f32 %v5669_v59, %v5630_v63  ;;  %v5673_v16 = vadd.f32 %v5668_v52, %v5629_v24  ;;  %v6216_v13 = vrot.slane %v6202_v15, 1 }
 0x5a6   : > { %v6217_v63 = vrot.slane %v6205_v61, 1  ;;  %v6213_v24 = vrot.slane %v6201_v60, 1  ;;  %v6278_v15 = vmul.f32 %v12589_v40, %v6274_v26  ;;  %v6258_v61 = vsel %vm792_vm0, %v6256_v42, %v6257_v49 }
 0x5a7   : > { %v6277_v60 = vmul.f32 %v12578_v23, %v6274_v26 }
 0x5a8   : > { %v6218_v9 = vsel %vm792_vm0, %v6216_v13, %v6217_v63  ;;  %v6215_v53 = vsel %vm792_vm0, %v6213_v24, %v6214_v3  ;;  %v6288_v13 = vrot.slane %v6278_v15, 1 }
 0x5a9   : > { %6187 = vrot.lane.b32.xlu1 %v6181_v39, %s8178_s8  ;;  %6185 = vrot.lane.b32.xlu0 %v6178_v51, %s8178_s8  ;;  %v6276_v39 = vmul.f32 %v12567_v58, %v6274_v26  ;;  %v6279_v51 = vmul.f32 %v12583_v34, %v6274_v26  ;;  %v6293_v3 = vrot.slane %v6277_v60, 1 }
 0x5aa   : > { %6189 = vrot.lane.b32.xlu2 %v6184_v20, %s8178_s8  ;;  %v12866_v20 = vstv %s7619_s29  ;;  %s7650_s29 = sld [smem:[#allocation9 + $0x6a]] }
 0x5ab   : > { %v5687_v47 = vpop.permute.xlu1 %5686  ;;  %v5685_v25 = vpop.permute.xlu0 %5684  ;;  %v6290_v0 = vrot.slane %v6276_v39, 1  ;;  %v6291_v21 = vrot.slane %v6279_v51, 1  ;;  %v5841_v27 = vmul.f32 %v12578_v23, %v12866_v20 }
 0x5ac   : > { %v12816_v38 = vpop.permute.xlu2 %5754  ;;  %v5691_v19 = vsel %vm657_vm7, %v5687_v47, %v12761_v12  ;;  %v5690_v56 = vsel %vm657_vm7, %v5685_v25, %v5687_v47  ;;  %v6221_v12 = vsel %vm792_vm0, %v6219_v62, %v6220_v41 }
 0x5ad   : > { %v12824_v2 = vadd.f32 %v12816_v38, %v5719_v50  ;;  %v12826_v28 = vadd.f32 %v5691_v19, %v5652_v48  ;;  %v12828_v45 = vadd.f32 %v5690_v56, %v5651_v29  ;;  %v12836_v50 = vstv %s7618_s17  ;;  %s7646_s17 = sld [smem:[#allocation9 + $0x68]] }
 0x5ae   : > { %v6250_v48 = vrot.slane %v6238_v35, 1  ;;  %v6251_v29 = vrot.slane %v6241_v43, 1  ;;  %v5812_v1 = vmul.f32 %v12578_v23, %v12836_v50  ;;  %v5815_v46 = vmul.f32 %v12616_v37, %v12836_v50 }
 0x5b0   : > { %v6252_v52 = vsel %vm792_vm0, %v6250_v48, %v6251_v29  ;;  %v5829_v18 = vrot.slane %v5815_v46, 1 }
 0x5b1   : > { %6224 = vrot.lane.b32.xlu1 %v6218_v9, %s8178_s8  ;;  %6222 = vrot.lane.b32.xlu0 %v6215_v53, %s8178_s8  ;;  %v6292_v53 = vsel %vm792_vm0, %v6290_v0, %v6291_v21  ;;  %v6385_v0 = vstv %s7634_s0  ;;  %v12930_v21 = vmul.f32 %v12567_v58, %v12836_v50  ;;  %s7652_s0 = sld [smem:[#allocation9 + $0x6b]] }
 0x5b2   : > { %6226 = vrot.lane.b32.xlu2 %v6221_v12, %s8178_s8 }
 0x5b3   : > { %v5709_v6 = vpop.permute.xlu1 %5708  ;;  %v5707_v10 = vpop.permute.xlu0 %5706 }
 0x5b4   : > { %v12843_v5 = vpop.permute.xlu2 %5776  ;;  %v5713_v54 = vsel %vm657_vm7, %v5709_v6, %v12780_v30  ;;  %v5712_v17 = vsel %vm657_vm7, %v5707_v10, %v5709_v6  ;;  %v6275_v30 = vmul.f32 %v12571_v32, %v6274_v26  ;;  %v5857_v6 = vrot.slane %v5841_v27, 1 }
 0x5b5   : > { %v5785_v33 = vadd.f32 %v12843_v5, %v5741_v8  ;;  %v12852_v11 = vadd.f32 %v5713_v54, %v5674_v36  ;;  %v12854_v59 = vadd.f32 %v5712_v17, %v5673_v16  ;;  %v6280_v8 = vmul.f32 %v12616_v37, %v6274_v26 }
 0x5b6   : > { %v6311_v36 = vstv %s7632_s11  ;;  %v5828_v16 = vrot.slane %v5812_v1, 1  ;;  %v6287_v44 = vrot.slane %v6275_v30, 1  ;;  %v6348_v10 = vstv %s12869_s15  ;;  %s7649_s11 = sld [smem:[#allocation9 + $0xd5]] }
 0x5b7   : > { %v6294_v47 = vrot.slane %v6280_v8, 1  ;;  %v6313_v25 = vmul.f32 %v12567_v58, %v6311_v36  ;;  %v6316_v62 = vmul.f32 %v12583_v34, %v6311_v36  ;;  %v6312_v56 = vmul.f32 %v12571_v32, %v6311_v36  ;;  %s13258_s15 = sld [smem:[#allocation9 + $0xcf]] }
 0x5b8   : > { %v6315_v55 = vmul.f32 %v12589_v40, %v6311_v36  ;;  %v6289_v12 = vsel %vm792_vm0, %v6287_v44, %v6288_v13  ;;  %v6350_v60 = vmul.f32 %v12567_v58, %v6348_v10  ;;  %v6349_v8 = vmul.f32 %v12571_v32, %v6348_v10 }
 0x5b9   : > { %6261 = vrot.lane.b32.xlu1 %v6255_v31, %s8179_s26  ;;  %6259 = vrot.lane.b32.xlu0 %v6252_v52, %s8179_s26  ;;  %v6295_v7 = vsel %vm792_vm0, %v6293_v3, %v6294_v47  ;;  %v6327_v22 = vrot.slane %v6313_v25, 1  ;;  %v6328_v57 = vrot.slane %v6316_v62, 1  ;;  %v6324_v48 = vrot.slane %v6312_v56, 1 }
 0x5ba   : > { %6263 = vrot.lane.b32.xlu2 %v6258_v61, %s8179_s26  ;;  %v6325_v29 = vrot.slane %v6315_v55, 1  ;;  %v6351_v61 = vmul.f32 %v12578_v23, %v6348_v10  ;;  %v12934_v44 = vmul.f32 %v12583_v34, %v12836_v50  ;;  %v6364_v13 = vrot.slane %v6350_v60, 1 }
 0x5bb   : > { %v5731_v63 = vpop.permute.xlu1 %5730  ;;  %v5729_v24 = vpop.permute.xlu0 %5728  ;;  %v6329_v39 = vsel %vm792_vm0, %v6327_v22, %v6328_v57  ;;  %v6390_v56 = vmul.f32 %v12583_v34, %v6385_v0  ;;  %v6389_v27 = vmul.f32 %v12589_v40, %v6385_v0  ;;  %v5813_v22 = vmul.f32 %v12589_v40, %v12836_v50 }
 0x5bc   : > { %v12873_v41 = vpop.permute.xlu2 %5798  ;;  %v5735_v14 = vsel %vm702_vm8, %v5731_v63, %v12797_v4  ;;  %v5734_v19 = vsel %vm702_vm8, %v5729_v24, %v5731_v63  ;;  %v5830_v4 = vsel %vm792_vm0, %v5828_v16, %v5829_v18  ;;  %v6326_v51 = vsel %vm792_vm0, %v6324_v48, %v6325_v29 }
 0x5bd   : > { %v5807_v35 = vadd.f32 %v12873_v41, %v12824_v2  ;;  %v12883_v43 = vadd.f32 %v5735_v14, %v12826_v28  ;;  %v12886_v9 = vadd.f32 %v5734_v19, %v12828_v45  ;;  %v6314_v2 = vmul.f32 %v12578_v23, %v6311_v36 }
 0x5be   : > { %v6317_v28 = vmul.f32 %v12616_v37, %v6311_v36  ;;  %v5844_v45 = vmul.f32 %v12616_v37, %v12866_v20  ;;  %v5836_v42 = vadd.f32 %v5830_v4, %v5785_v33  ;;  %v6352_v36 = vmul.f32 %v12589_v40, %v6348_v10 }
 0x5bf   : > { %v6330_v1 = vrot.slane %v6314_v2, 1  ;;  %v6354_v18 = vmul.f32 %v12616_v37, %v6348_v10  ;;  %v6361_v24 = vrot.slane %v6349_v8, 1  ;;  %v6387_v19 = vmul.f32 %v12567_v58, %v6385_v0 }
 0x5c0   : > { %v6331_v54 = vrot.slane %v6317_v28, 1  ;;  %v5858_v17 = vrot.slane %v5844_v45, 1  ;;  %v6362_v3 = vrot.slane %v6352_v36, 1  ;;  %v6386_v4 = vmul.f32 %v12571_v32, %v6385_v0 }
 0x5c1   : > { %6298 = vrot.lane.b32.xlu1 %v6292_v53, %s8179_s26  ;;  %6296 = vrot.lane.b32.xlu0 %v6289_v12, %s8179_s26  ;;  %v6368_v14 = vrot.slane %v6354_v18, 1  ;;  %v5810_v28 = vmul.f32 %v12571_v32, %v12836_v50  ;;  %v6388_v48 = vmul.f32 %v12578_v23, %v6385_v0  ;;  %v6391_v29 = vmul.f32 %v12616_v37, %v6385_v0 }
 0x5c2   : > { %6300 = vrot.lane.b32.xlu2 %v6295_v7, %s8179_s26  ;;  %v6332_v16 = vsel %vm792_vm0, %v6330_v1, %v6331_v54  ;;  %v5826_v50 = vrot.slane %v12934_v44, 1  ;;  %v6422_v1 = vstv %s12937_s30  ;;  %v12972_v54 = vmul.f32 %v12567_v58, %v12866_v20  ;;  %s7108_s30 = sld [smem:[#allocation13]] }
 0x5c3   : > { %v5753_v49 = vpop.permute.xlu1 %5752  ;;  %v5751_v26 = vpop.permute.xlu0 %5750  ;;  %v5842_v60 = vmul.f32 %v12589_v40, %v12866_v20  ;;  %v6423_v44 = vmul.f32 %v12571_v32, %v6422_v1 }
 0x5c4   : > { %v12902_v31 = vpop.permute.xlu2 %5893  ;;  %v5757_v46 = vsel %vm702_vm8, %v5753_v49, %v12816_v38  ;;  %v5756_v52 = vsel %vm702_vm8, %v5751_v26, %v5753_v49  ;;  %v6353_v38 = vmul.f32 %v12583_v34, %v6348_v10  ;;  %v6399_v10 = vrot.slane %v6389_v27, 1 }
 0x5c5   : > { %v12910_v30 = vadd.f32 %v12902_v31, %v5836_v42  ;;  %v12913_v33 = vadd.f32 %v5757_v46, %v12852_v11  ;;  %v12916_v15 = vadd.f32 %v5756_v52, %v12854_v59  ;;  %v5859_v11 = vsel %vm792_vm0, %v5857_v6, %v5858_v17 }
 0x5c6   : > { %v6367_v59 = vrot.slane %v6351_v61, 1  ;;  %v6365_v63 = vrot.slane %v6353_v38, 1  ;;  %v5865_v47 = vadd.f32 %v5859_v11, %v5807_v35  ;;  %v6402_v6 = vrot.slane %v6390_v56, 1 }
 0x5c7   : > { %v5825_v42 = vrot.slane %v12930_v21, 1  ;;  %v5822_v49 = vrot.slane %v5810_v28, 1  ;;  %v5823_v26 = vrot.slane %v5813_v22, 1  ;;  %v12976_v17 = vmul.f32 %v12583_v34, %v12866_v20 }
 0x5c8   : > { %v6366_v45 = vsel %vm792_vm0, %v6364_v13, %v6365_v63  ;;  %v6369_v57 = vsel %vm792_vm0, %v6367_v59, %v6368_v14  ;;  %v5839_v61 = vmul.f32 %v12571_v32, %v12866_v20  ;;  %v6425_v59 = vmul.f32 %v12578_v23, %v6422_v1 }
 0x5c9   : > { %6335 = vrot.lane.b32.xlu1 %v6329_v39, %s8180_s13  ;;  %6333 = vrot.lane.b32.xlu0 %v6326_v51, %s8180_s13  ;;  %v6404_v39 = vrot.slane %v6388_v48, 1  ;;  %v6405_v51 = vrot.slane %v6391_v29, 1  ;;  %v6427_v21 = vmul.f32 %v12583_v34, %v6422_v1  ;;  %v6426_v13 = vmul.f32 %v12589_v40, %v6422_v1 }
 0x5ca   : > { %6337 = vrot.lane.b32.xlu2 %v6332_v16, %s8180_s13  ;;  %v5855_v32 = vrot.slane %v12976_v17, 1  ;;  %v5851_v23 = vrot.slane %v5839_v61, 1  ;;  %v5852_v34 = vrot.slane %v5842_v60, 1 }
 0x5cb   : > { %v5775_v25 = vpop.permute.xlu1 %5774  ;;  %v5773_v62 = vpop.permute.xlu0 %5772  ;;  %v6406_v63 = vsel %vm792_vm0, %v6404_v39, %v6405_v51 }
 0x5cc   : > { %v12941_v55 = vpop.permute.xlu2 %5930  ;;  %v5779_v53 = vsel %vm747_vm9, %v5775_v25, %v12843_v5  ;;  %v5778_v12 = vsel %vm747_vm9, %v5773_v62, %v5775_v25  ;;  %v6363_v5 = vsel %vm792_vm0, %v6361_v24, %v6362_v3  ;;  %v5824_v24 = vsel %vm792_vm0, %v5822_v49, %v5823_v26 }
 0x5cd   : > { %v12949_v35 = vadd.f32 %v12941_v55, %v5865_v47  ;;  %v5784_v7 = vadd.f32 %v5779_v53, %v12883_v43  ;;  %v5783_v2 = vadd.f32 %v5778_v12, %v12886_v9  ;;  %v6401_v43 = vrot.slane %v6387_v19, 1  ;;  %v13015_v12 = vld [vmem:[%s8411_s21 + $0x50] sm:$0xff] }
 0x5ce   : > { %v6398_v9 = vrot.slane %v6386_v4, 1  ;;  %v6517_v3 = vstv %s12962_s12  ;;  %v6435_v47 = vrot.slane %v6423_v44, 1  ;;  %v6436_v25 = vrot.slane %v6426_v13, 1  ;;  %s7655_s12 = sld [smem:[#allocation13 + $0x1]] }
 0x5cf   : > { %v6403_v16 = vsel %vm792_vm0, %v6401_v43, %v6402_v6  ;;  %v5834_v56 = vadd.f32 %v5824_v24, %v5783_v2  ;;  %v6519_v4 = vmul.f32 %v13015_v12, %v6517_v3 }
 0x5d0   : > { %v6400_v18 = vsel %vm792_vm0, %v6398_v9, %v6399_v10  ;;  %v6437_v9 = vsel %vm792_vm0, %v6435_v47, %v6436_v25  ;;  %v13048_v10 = vld [vmem:[%s8411_s21 + $0x58] sm:$0xff] }
 0x5d1   : > { %6372 = vrot.lane.b32.xlu1 %v6366_v45, %s8180_s13  ;;  %6370 = vrot.lane.b32.xlu0 %v6363_v5, %s8180_s13  ;;  %v13030_v5 = vld [vmem:[%s8411_s21 + $0x48] sm:$0xff]  ;;  %s7641_s21 = sld [smem:[#allocation9 + $0xd1]] }
 0x5d2   : > { %6374 = vrot.lane.b32.xlu2 %v6369_v57, %s8180_s13  ;;  %v6518_v22 = vmul.f32 %v13030_v5, %v6517_v3 }
 0x5d3   : > { %v5797_v46 = vpop.permute.xlu1 %5796  ;;  %v5795_v52 = vpop.permute.xlu0 %5794 }
 0x5d4   : > { %v12982_v38 = vpop.permute.xlu2 %5967  ;;  %v5801_v8 = vsel %vm747_vm9, %v5797_v46, %v12873_v41  ;;  %v5800_v36 = vsel %vm747_vm9, %v5795_v52, %v5797_v46  ;;  %v6424_v41 = vmul.f32 %v12567_v58, %v6422_v1  ;;  %v6441_v58 = vrot.slane %v6425_v59, 1 }
 0x5d5   : > { %v12991_v11 = vadd.f32 %v12982_v38, %v12910_v30  ;;  %v12994_v0 = vadd.f32 %v5801_v8, %v12913_v33  ;;  %v12997_v20 = vadd.f32 %v5800_v36, %v12916_v15  ;;  %v6428_v30 = vmul.f32 %v12616_v37, %v6422_v1 }
 0x5d6   : > { %v5827_v33 = vsel %vm792_vm0, %v5825_v42, %v5826_v50  ;;  %v5854_v15 = vrot.slane %v12972_v54, 1  ;;  %v6438_v40 = vrot.slane %v6424_v41, 1  ;;  %v6439_v37 = vrot.slane %v6427_v21, 1 }
 0x5d7   : > { %v5835_v14 = vadd.f32 %v5827_v33, %v5784_v7  ;;  %v6442_v53 = vrot.slane %v6428_v30, 1  ;;  %v13026_v7 = vld [vmem:[%s8418_s18 + $0x50] sm:$0x3]  ;;  %v6520_v42 = vmul.f32 %v13048_v10, %v6517_v3  ;;  %v5853_v1 = vsel %vm792_vm0, %v5851_v23, %v5852_v34 }
 0x5d8   : > { %v6522_v2 = vmul.f32 %v13026_v7, %v6517_v3  ;;  %v6440_v6 = vsel %vm792_vm0, %v6438_v40, %v6439_v37  ;;  %v5856_v26 = vsel %vm792_vm0, %v5854_v15, %v5855_v32  ;;  %v6533_v54 = vrot.slane %v6519_v4, 2 }
 0x5d9   : > { %6409 = vrot.lane.b32.xlu1 %v6403_v16, %s8181_s4  ;;  %6407 = vrot.lane.b32.xlu0 %v6400_v18, %s8181_s4  ;;  %v6443_v50 = vsel %vm792_vm0, %v6441_v58, %v6442_v53  ;;  %v6530_v46 = vrot.slane %v6518_v22, 2  ;;  %v6536_v39 = vrot.slane %v6520_v42, 2  ;;  %v5864_v61 = vadd.f32 %v5856_v26, %v12994_v0 }
 0x5da   : > { %6411 = vrot.lane.b32.xlu2 %v6406_v63, %s8181_s4  ;;  %v6534_v17 = vrot.slane %v6522_v2, 2  ;;  %v5863_v8 = vadd.f32 %v5853_v1, %v12997_v20  ;;  %v6554_v16 = vstv %s13018_s16  ;;  %v6591_v58 = vstv %s7640_s2  ;;  %s7654_s16 = sld [smem:[#allocation11 + $0x1]] }
 0x5db   : > { %v5892_v62 = vpop.permute.xlu1 %5891  ;;  %v5890_v19 = vpop.permute.xlu0 %5889  ;;  %v6556_v20 = vmul.f32 %v13015_v12, %v6554_v16  ;;  %v6559_v30 = vmul.f32 %v13026_v7, %v6554_v16  ;;  %v6555_v33 = vmul.f32 %v13030_v5, %v6554_v16  ;;  %v6557_v15 = vmul.f32 %v13048_v10, %v6554_v16  ;;  %s7657_s2 = sld [smem:[#allocation11 + $0x3]] }
 0x5dc   : > { %v13020_v27 = vpop.permute.xlu2 %6004  ;;  %v5896_v28 = vsel %vm432_vm2, %v5892_v62, %v12902_v31  ;;  %v5895_v45 = vsel %vm432_vm2, %v5890_v19, %v5892_v62  ;;  %v13042_v31 = vld [vmem:[%s8418_s18 + $0x48] sm:$0x3]  ;;  %v6535_v21 = vsel %vm1443_vm1, %v6533_v54, %v6534_v17  ;;  %v6593_v62 = vmul.f32 %v13015_v12, %v6591_v58 }
 0x5dd   : > { %v13035_v57 = vadd.f32 %v13020_v27, %v12949_v35  ;;  %v13037_v48 = vadd.f32 %v5896_v28, %v5835_v14  ;;  %v13039_v29 = vadd.f32 %v5895_v45, %v5834_v56  ;;  %v6521_v43 = vmul.f32 %v13042_v31, %v6517_v3  ;;  %v13053_v35 = vld [vmem:[%s8418_s18 + $0x58] sm:$0x3]  ;;  %s7642_s18 = sld [smem:[#allocation9 + $0x66]] }
 0x5de   : > { %v6523_v49 = vmul.f32 %v13053_v35, %v6517_v3  ;;  %v6558_v24 = vmul.f32 %v13042_v31, %v6554_v16  ;;  %v6560_v3 = vmul.f32 %v13053_v35, %v6554_v16  ;;  %v6571_v32 = vrot.slane %v6559_v30, 2 }
 0x5df   : > { %v6531_v52 = vrot.slane %v6521_v43, 2  ;;  %v6567_v23 = vrot.slane %v6555_v33, 2  ;;  %v6573_v47 = vrot.slane %v6557_v15, 2  ;;  %v6596_v53 = vmul.f32 %v13026_v7, %v6591_v58 }
 0x5e0   : > { %v6537_v36 = vrot.slane %v6523_v49, 2  ;;  %v6568_v34 = vrot.slane %v6558_v24, 2  ;;  %v6574_v25 = vrot.slane %v6560_v3, 2  ;;  %v6592_v4 = vmul.f32 %v13030_v5, %v6591_v58 }
 0x5e1   : > { %6446 = vrot.lane.b32.xlu1 %v6440_v6, %s8181_s4  ;;  %6444 = vrot.lane.b32.xlu0 %v6437_v9, %s8181_s4  ;;  %v6532_v0 = vsel %vm1443_vm1, %v6530_v46, %v6531_v52  ;;  %v6595_v22 = vmul.f32 %v13042_v31, %v6591_v58  ;;  %v6594_v9 = vmul.f32 %v13048_v10, %v6591_v58  ;;  %v6608_v49 = vrot.slane %v6596_v53, 2 }
 0x5e2   : > { %6448 = vrot.lane.b32.xlu2 %v6443_v50, %s8181_s4  ;;  %v6569_v6 = vsel %vm1443_vm1, %v6567_v23, %v6568_v34  ;;  %v6597_v42 = vmul.f32 %v13053_v35, %v6591_v58  ;;  %v6607_v50 = vrot.slane %v6593_v62, 2  ;;  %v6628_v17 = vstv %s7641_s21  ;;  %s7670_s21 = smul.u32 48, %s8407_s5 }
 0x5e3   : > { %v5929_v51 = vpop.permute.xlu1 %5928  ;;  %v5927_v60 = vpop.permute.xlu0 %5926  ;;  %v6610_v1 = vrot.slane %v6594_v9, 2  ;;  %v6630_v16 = vmul.f32 %v13015_v12, %v6628_v17  ;;  %v6665_v30 = vstv %s7642_s18 }
 0x5e4   : > { %v13064_v18 = vpop.permute.xlu2 %6041  ;;  %v5933_v59 = vsel %vm432_vm2, %v5929_v51, %v12941_v55  ;;  %v5932_v41 = vsel %vm432_vm2, %v5927_v60, %v5929_v51  ;;  %v6538_v55 = vsel %vm1443_vm1, %v6536_v39, %v6537_v36  ;;  %v6611_v54 = vrot.slane %v6597_v42, 2  ;;  %s13510_s18 = scalar_lea.vmem [#allocation14], %s7670_s21 }
 0x5e5   : > { %v6050_v44 = vadd.f32 %v13064_v18, %v12991_v11  ;;  %v5938_v13 = vadd.f32 %v5933_v59, %v5864_v61  ;;  %v5937_v63 = vadd.f32 %v5932_v41, %v5863_v8  ;;  %v6570_v11 = vrot.slane %v6556_v20, 2 }
 0x5e6   : > { %v6609_v51 = vsel %vm1443_vm1, %v6607_v50, %v6608_v49  ;;  %v6633_v59 = vmul.f32 %v13026_v7, %v6628_v17  ;;  %v6629_v41 = vmul.f32 %v13030_v5, %v6628_v17  ;;  %v6634_v20 = vmul.f32 %v13053_v35, %v6628_v17 }
 0x5e7   : > { %v6572_v43 = vsel %vm1443_vm1, %v6570_v11, %v6571_v32  ;;  %v6667_v58 = vmul.f32 %v13015_v12, %v6665_v30  ;;  %v6670_v34 = vmul.f32 %v13026_v7, %v6665_v30  ;;  %v6669_v62 = vmul.f32 %v13042_v31, %v6665_v30 }
 0x5e8   : > { %v6648_v3 = vrot.slane %v6634_v20, 2 }
 0x5e9   : > { %6541 = vrot.lane.b32.xlu1 %v6535_v21, %s8174_s10  ;;  %6539 = vrot.lane.b32.xlu0 %v6532_v0, %s8174_s10  ;;  %v6632_v21 = vmul.f32 %v13042_v31, %v6628_v17  ;;  %v6631_v0 = vmul.f32 %v13048_v10, %v6628_v17 }
 0x5ea   : > { %6543 = vrot.lane.b32.xlu2 %v6538_v55, %s8174_s10 }
 0x5eb   : > { %v5966_v40 = vpop.permute.xlu1 %5965  ;;  %v5964_v37 = vpop.permute.xlu0 %5963  ;;  %v6642_v33 = vrot.slane %v6632_v21, 2  ;;  %v6647_v15 = vrot.slane %v6631_v0, 2 }
 0x5ec   : > { %v13084_v14 = vpop.permute.xlu2 %6078  ;;  %v5970_v19 = vsel %vm477_vm3, %v5966_v40, %v12982_v38  ;;  %v5969_v56 = vsel %vm477_vm3, %v5964_v37, %v5966_v40  ;;  %v6575_v38 = vsel %vm1443_vm1, %v6573_v47, %v6574_v25  ;;  %v6666_v40 = vmul.f32 %v13030_v5, %v6665_v30 }
 0x5ed   : > { %v6087_v28 = vadd.f32 %v13084_v14, %v13035_v57  ;;  %v5975_v45 = vadd.f32 %v5970_v19, %v13037_v48  ;;  %v5974_v2 = vadd.f32 %v5969_v56, %v13039_v29  ;;  %v6604_v57 = vrot.slane %v6592_v4, 2 }
 0x5ee   : > { %v6605_v48 = vrot.slane %v6595_v22, 2  ;;  %v6649_v53 = vsel %vm1443_vm1, %v6647_v15, %v6648_v3  ;;  %v6671_v4 = vmul.f32 %v13053_v35, %v6665_v30  ;;  %v6681_v22 = vrot.slane %v6667_v58, 2 }
 0x5f0   : > { %v6606_v36 = vsel %vm1443_vm1, %v6604_v57, %v6605_v48  ;;  %v6685_v9 = vrot.slane %v6671_v4, 2 }
 0x5f1   : > { %6578 = vrot.lane.b32.xlu1 %v6572_v43, %s8174_s10  ;;  %6576 = vrot.lane.b32.xlu0 %v6569_v6, %s8174_s10  ;;  %v6682_v43 = vrot.slane %v6670_v34, 2 }
 0x5f2   : > { %6580 = vrot.lane.b32.xlu2 %v6575_v38, %s8174_s10  ;;  %s7643_s10 = sld [smem:[#allocation9 + $0xd2]] }
 0x5f3   : > { %v6003_v29 = vpop.permute.xlu1 %6002  ;;  %v6001_v26 = vpop.permute.xlu0 %6000  ;;  %v6683_v48 = vsel %vm1443_vm1, %v6681_v22, %v6682_v43 }
 0x5f4   : > { %v13104_v46 = vpop.permute.xlu2 %6115  ;;  %v6007_v52 = vsel %vm477_vm3, %v6003_v29, %v13020_v27  ;;  %v6006_v39 = vsel %vm477_vm3, %v6001_v26, %v6003_v29  ;;  %v6612_v27 = vsel %vm1443_vm1, %v6610_v1, %v6611_v54 }
 0x5f5   : > { %v6124_v61 = vadd.f32 %v13104_v46, %v6050_v44  ;;  %v6012_v60 = vadd.f32 %v6007_v52, %v5938_v13  ;;  %v6011_v8 = vadd.f32 %v6006_v39, %v5937_v63  ;;  %v6644_v44 = vrot.slane %v6630_v16, 2 }
 0x5f6   : > { %v6645_v13 = vrot.slane %v6633_v59, 2  ;;  %v6641_v63 = vrot.slane %v6629_v41, 2  ;;  %v6739_v59 = vstv %s7644_s24  ;;  %s7672_s24 = smul.u32 12, %s8153_s28 }
 0x5f7   : > { %v6743_v58 = vmul.f32 %v13042_v31, %v6739_v59 }
 0x5f8   : > { %v6646_v19 = vsel %vm1443_vm1, %v6644_v44, %v6645_v13  ;;  %v6643_v56 = vsel %vm1443_vm1, %v6641_v63, %v6642_v33  ;;  %v6702_v42 = vstv %s7643_s10  ;;  %v6744_v33 = vmul.f32 %v13026_v7, %v6739_v59  ;;  %s7671_s10 = smul.u32 3, %s8149_s27 }
 0x5f9   : > { %6615 = vrot.lane.b32.xlu1 %v6609_v51, %s8175_s19  ;;  %6613 = vrot.lane.b32.xlu0 %v6606_v36, %s8175_s19  ;;  %v6704_v17 = vmul.f32 %v13015_v12, %v6702_v42  ;;  %v6707_v52 = vmul.f32 %v13026_v7, %v6702_v42  ;;  %v6703_v39 = vmul.f32 %v13030_v5, %v6702_v42 }
 0x5fa   : > { %6617 = vrot.lane.b32.xlu2 %v6612_v27, %s8175_s19  ;;  %v6706_v51 = vmul.f32 %v13042_v31, %v6702_v42  ;;  %v6705_v36 = vmul.f32 %v13048_v10, %v6702_v42  ;;  %v6708_v16 = vmul.f32 %v13053_v35, %v6702_v42 }
 0x5fb   : > { %v6040_v24 = vpop.permute.xlu1 %6039  ;;  %v6038_v55 = vpop.permute.xlu0 %6037 }
 0x5fc   : > { %v13123_v11 = vpop.permute.xlu2 %6152  ;;  %v6044_v32 = vsel %vm522_vm4, %v6040_v24, %v13064_v18  ;;  %v6043_v23 = vsel %vm522_vm4, %v6038_v55, %v6040_v24  ;;  %v6668_v18 = vmul.f32 %v13048_v10, %v6665_v30  ;;  %v6716_v41 = vrot.slane %v6706_v51, 2 }
 0x5fd   : > { %v6161_v37 = vadd.f32 %v13123_v11, %v6087_v28  ;;  %v6049_v47 = vadd.f32 %v6044_v32, %v5975_v45  ;;  %v6048_v25 = vadd.f32 %v6043_v23, %v5974_v2  ;;  %v6678_v28 = vrot.slane %v6666_v40, 2 }
 0x5fe   : > { %v6679_v45 = vrot.slane %v6669_v62, 2  ;;  %v6684_v38 = vrot.slane %v6668_v18, 2  ;;  %v6721_v0 = vrot.slane %v6705_v36, 2  ;;  %v6722_v20 = vrot.slane %v6708_v16, 2 }
 0x5ff   : > { %v6741_v30 = vmul.f32 %v13015_v12, %v6739_v59  ;;  %v6740_v24 = vmul.f32 %v13030_v5, %v6739_v59  ;;  %v6745_v40 = vmul.f32 %v13053_v35, %v6739_v59 }
 0x600   : > { %v6680_v54 = vsel %vm1443_vm1, %v6678_v28, %v6679_v45  ;;  %v6723_v34 = vsel %vm1443_vm1, %v6721_v0, %v6722_v20 }
 0x601   : > { %6652 = vrot.lane.b32.xlu1 %v6646_v19, %s8175_s19  ;;  %6650 = vrot.lane.b32.xlu0 %v6643_v56, %s8175_s19  ;;  %v6755_v62 = vrot.slane %v6741_v30, 2  ;;  %v6756_v19 = vrot.slane %v6744_v33, 2  ;;  %v6759_v18 = vrot.slane %v6745_v40, 2 }
 0x602   : > { %6654 = vrot.lane.b32.xlu2 %v6649_v53, %s8175_s19  ;;  %s7645_s19 = sld [smem:[#allocation9 + $0xd3]] }
 0x603   : > { %v6077_v2 = vpop.permute.xlu1 %6076  ;;  %v6075_v6 = vpop.permute.xlu0 %6074  ;;  %v6757_v45 = vsel %vm1443_vm1, %v6755_v62, %v6756_v19 }
 0x604   : > { %v13140_v50 = vpop.permute.xlu2 %6189  ;;  %v6081_v49 = vsel %vm522_vm4, %v6077_v2, %v13084_v14  ;;  %v6080_v57 = vsel %vm522_vm4, %v6075_v6, %v6077_v2  ;;  %v6686_v14 = vsel %vm1443_vm1, %v6684_v38, %v6685_v9 }
 0x605   : > { %v6198_v29 = vadd.f32 %v13140_v50, %v6124_v61  ;;  %v6086_v26 = vadd.f32 %v6081_v49, %v6012_v60  ;;  %v6085_v1 = vadd.f32 %v6080_v57, %v6011_v8  ;;  %v6718_v61 = vrot.slane %v6704_v17, 2 }
 0x606   : > { %v6719_v60 = vrot.slane %v6707_v52, 2  ;;  %v6715_v8 = vrot.slane %v6703_v39, 2  ;;  %v6813_v52 = vstv %s7646_s17 }
 0x607   : > { %v6817_v30 = vmul.f32 %v13042_v31, %v6813_v52 }
 0x608   : > { %v6720_v32 = vsel %vm1443_vm1, %v6718_v61, %v6719_v60  ;;  %v6717_v23 = vsel %vm1443_vm1, %v6715_v8, %v6716_v41  ;;  %v6776_v4 = vstv %s7645_s19  ;;  %v6818_v41 = vmul.f32 %v13026_v7, %v6813_v52  ;;  %s7239_s19 = sadd.s32 %s7672_s24, %s7671_s10 }
 0x609   : > { %6689 = vrot.lane.b32.xlu1 %v6683_v48, %s8176_s14  ;;  %6687 = vrot.lane.b32.xlu0 %v6680_v54, %s8176_s14  ;;  %v6778_v42 = vmul.f32 %v13015_v12, %v6776_v4  ;;  %v6781_v49 = vmul.f32 %v13026_v7, %v6776_v4  ;;  %v6777_v57 = vmul.f32 %v13030_v5, %v6776_v4  ;;  %s7661_s17 = sshll.u32 %s7239_s19, 3 }
 0x60a   : > { %6691 = vrot.lane.b32.xlu2 %v6686_v14, %s8176_s14  ;;  %v6780_v48 = vmul.f32 %v13042_v31, %v6776_v4  ;;  %v6779_v54 = vmul.f32 %v13048_v10, %v6776_v4  ;;  %v6782_v17 = vmul.f32 %v13053_v35, %v6776_v4 }
 0x60b   : > { %v6114_v21 = vpop.permute.xlu1 %6113  ;;  %v6112_v27 = vpop.permute.xlu0 %6111 }
 0x60c   : > { %v13159_v44 = vpop.permute.xlu2 %6226  ;;  %v6118_v13 = vsel %vm567_vm5, %v6114_v21, %v13104_v46  ;;  %v6117_v63 = vsel %vm567_vm5, %v6112_v27, %v6114_v21  ;;  %v6742_v46 = vmul.f32 %v13048_v10, %v6739_v59  ;;  %v6790_v39 = vrot.slane %v6780_v48, 2 }
 0x60d   : > { %v6235_v55 = vadd.f32 %v13159_v44, %v6161_v37  ;;  %v6123_v15 = vadd.f32 %v6118_v13, %v6049_v47  ;;  %v6122_v3 = vadd.f32 %v6117_v63, %v6048_v25  ;;  %v6752_v37 = vrot.slane %v6740_v24, 2 }
 0x60e   : > { %v6753_v47 = vrot.slane %v6743_v58, 2  ;;  %v6758_v53 = vrot.slane %v6742_v46, 2  ;;  %v6795_v36 = vrot.slane %v6779_v54, 2  ;;  %v6796_v16 = vrot.slane %v6782_v17, 2 }
 0x60f   : > { %v6815_v59 = vmul.f32 %v13015_v12, %v6813_v52  ;;  %v6814_v21 = vmul.f32 %v13030_v5, %v6813_v52  ;;  %v6819_v24 = vmul.f32 %v13053_v35, %v6813_v52 }
 0x610   : > { %v6754_v9 = vsel %vm1443_vm1, %v6752_v37, %v6753_v47  ;;  %v6797_v33 = vsel %vm1443_vm1, %v6795_v36, %v6796_v16 }
 0x611   : > { %6726 = vrot.lane.b32.xlu1 %v6720_v32, %s8176_s14  ;;  %6724 = vrot.lane.b32.xlu0 %v6717_v23, %s8176_s14  ;;  %v6829_v58 = vrot.slane %v6815_v59, 2  ;;  %v6830_v32 = vrot.slane %v6818_v41, 2  ;;  %v6833_v46 = vrot.slane %v6819_v24, 2 }
 0x612   : > { %6728 = vrot.lane.b32.xlu2 %v6723_v34, %s8176_s14  ;;  %s7647_s14 = sld [smem:[#allocation9 + $0xd4]] }
 0x613   : > { %v6151_v25 = vpop.permute.xlu1 %6150  ;;  %v6149_v56 = vpop.permute.xlu0 %6148  ;;  %v6831_v47 = vsel %vm1443_vm1, %v6829_v58, %v6830_v32  ;;  %v6924_v58 = vstv %s7649_s11 }
 0x614   : > { %v13176_v22 = vpop.permute.xlu2 %6263  ;;  %v6155_v43 = vsel %vm567_vm5, %v6151_v25, %v13123_v11  ;;  %v6154_v28 = vsel %vm567_vm5, %v6149_v56, %v6151_v25  ;;  %v6760_v11 = vsel %vm1443_vm1, %v6758_v53, %v6759_v18 }
 0x615   : > { %v6272_v2 = vadd.f32 %v13176_v22, %v6198_v29  ;;  %v6160_v6 = vadd.f32 %v6155_v43, %v6086_v26  ;;  %v6159_v38 = vadd.f32 %v6154_v28, %v6085_v1  ;;  %v6792_v29 = vrot.slane %v6778_v42, 2 }
 0x616   : > { %v6793_v26 = vrot.slane %v6781_v49, 2  ;;  %v6789_v1 = vrot.slane %v6777_v57, 2  ;;  %v6887_v49 = vstv %s7648_s20  ;;  %s7242_s20 = sshll.u32 %s13510_s18, 4  ;;  %s7243_s20 = int_to_ptr.vmem [resolvable:$true] %s7242_s20 }
 0x617   : > { %v6891_v59 = vmul.f32 %v13042_v31, %v6887_v49  ;;  %v6890_v41 = vmul.f32 %v13048_v10, %v6887_v49 }
 0x618   : > { %v6794_v13 = vsel %vm1443_vm1, %v6792_v29, %v6793_v26  ;;  %v6791_v63 = vsel %vm1443_vm1, %v6789_v1, %v6790_v39  ;;  %v6850_v40 = vstv %s7647_s14  ;;  %v6892_v39 = vmul.f32 %v13026_v7, %v6887_v49  ;;  %s7241_s14 = scalar_lea.hbm %s13578_s6, %s7661_s17 }
 0x619   : > { %6763 = vrot.lane.b32.xlu1 %v6757_v45, %s8177_s9  ;;  %6761 = vrot.lane.b32.xlu0 %v6754_v9, %s8177_s9  ;;  %v6852_v4 = vmul.f32 %v13015_v12, %v6850_v40  ;;  %v6855_v43 = vmul.f32 %v13026_v7, %v6850_v40  ;;  %v6851_v28 = vmul.f32 %v13030_v5, %v6850_v40 }
 0x61a   : > { %6765 = vrot.lane.b32.xlu2 %v6760_v11, %s8177_s9  ;;  %v6854_v45 = vmul.f32 %v13042_v31, %v6850_v40  ;;  %v6853_v9 = vmul.f32 %v13048_v10, %v6850_v40  ;;  %v6856_v42 = vmul.f32 %v13053_v35, %v6850_v40 }
 0x61b   : > { %v6188_v51 = vpop.permute.xlu1 %6187  ;;  %v6186_v14 = vpop.permute.xlu0 %6185 }
 0x61c   : > { %v13195_v61 = vpop.permute.xlu2 %6300  ;;  %v6192_v60 = vsel %vm612_vm6, %v6188_v51, %v13140_v50  ;;  %v6191_v8 = vsel %vm612_vm6, %v6186_v14, %v6188_v51  ;;  %v6816_v50 = vmul.f32 %v13048_v10, %v6813_v52  ;;  %v6864_v57 = vrot.slane %v6854_v45, 2 }
 0x61d   : > { %v6309_v27 = vadd.f32 %v13195_v61, %v6235_v55  ;;  %v6197_v0 = vadd.f32 %v6192_v60, %v6123_v15  ;;  %v6196_v20 = vadd.f32 %v6191_v8, %v6122_v3  ;;  %v6826_v55 = vrot.slane %v6814_v21, 2 }
 0x61e   : > { %v6827_v15 = vrot.slane %v6817_v30, 2  ;;  %v6832_v34 = vrot.slane %v6816_v50, 2  ;;  %v6869_v54 = vrot.slane %v6853_v9, 2  ;;  %v6870_v17 = vrot.slane %v6856_v42, 2 }
 0x61f   : > { %v6889_v52 = vmul.f32 %v13015_v12, %v6887_v49  ;;  %v6888_v51 = vmul.f32 %v13030_v5, %v6887_v49  ;;  %v6893_v21 = vmul.f32 %v13053_v35, %v6887_v49  ;;  %v6906_v50 = vrot.slane %v6890_v41, 2 }
 0x620   : > { %v6828_v18 = vsel %vm1443_vm1, %v6826_v55, %v6827_v15 }
 0x621   : > { %6800 = vrot.lane.b32.xlu1 %v6794_v13, %s8177_s9  ;;  %6798 = vrot.lane.b32.xlu0 %v6791_v63, %s8177_s9  ;;  %v6903_v30 = vrot.slane %v6889_v52, 2  ;;  %v6904_v13 = vrot.slane %v6892_v39, 2  ;;  %v6907_v24 = vrot.slane %v6893_v21, 2 }
 0x622   : > { %6802 = vrot.lane.b32.xlu2 %v6797_v33, %s8177_s9  ;;  %s7636_s9 = sld [smem:[#allocation9 + $0x63]] }
 0x623   : > { %v6225_v3 = vpop.permute.xlu1 %6224  ;;  %v6223_v23 = vpop.permute.xlu0 %6222 }
 0x624   : > { %v13212_v62 = vpop.permute.xlu2 %6337  ;;  %v6229_v19 = vsel %vm612_vm6, %v6225_v3, %v13159_v44  ;;  %v6228_v37 = vsel %vm612_vm6, %v6223_v23, %v6225_v3  ;;  %v6834_v44 = vsel %vm1443_vm1, %v6832_v34, %v6833_v46  ;;  %v6905_v23 = vsel %vm1443_vm1, %v6903_v30, %v6904_v13 }
 0x625   : > { %v6346_v25 = vadd.f32 %v13212_v62, %v6272_v2  ;;  %v6234_v56 = vadd.f32 %v6229_v19, %v6160_v6  ;;  %v6233_v53 = vadd.f32 %v6228_v37, %v6159_v38  ;;  %v6866_v2 = vrot.slane %v6852_v4, 2 }
 0x626   : > { %v6867_v6 = vrot.slane %v6855_v43, 2  ;;  %v6863_v38 = vrot.slane %v6851_v28, 2  ;;  %v6928_v4 = vmul.f32 %v13042_v31, %v6924_v58  ;;  %v6908_v43 = vsel %vm1443_vm1, %v6906_v50, %v6907_v24 }
 0x627   : > { %v6927_v28 = vmul.f32 %v13048_v10, %v6924_v58 }
 0x628   : > { %v6868_v60 = vsel %vm1443_vm1, %v6866_v2, %v6867_v6  ;;  %v6865_v8 = vsel %vm1443_vm1, %v6863_v38, %v6864_v57  ;;  %v6938_v49 = vrot.slane %v6928_v4, 2 }
 0x629   : > { %6837 = vrot.lane.b32.xlu1 %v6831_v47, %s8178_s8  ;;  %6835 = vrot.lane.b32.xlu0 %v6828_v18, %s8178_s8  ;;  %v6926_v47 = vmul.f32 %v13015_v12, %v6924_v58  ;;  %v6929_v18 = vmul.f32 %v13026_v7, %v6924_v58  ;;  %v6943_v38 = vrot.slane %v6927_v28, 2 }
 0x62a   : > { %6839 = vrot.lane.b32.xlu2 %v6834_v44, %s8178_s8 }
 0x62b   : > { %v6262_v48 = vpop.permute.xlu1 %6261  ;;  %v6260_v11 = vpop.permute.xlu0 %6259  ;;  %v6940_v44 = vrot.slane %v6926_v47, 2  ;;  %v6941_v9 = vrot.slane %v6929_v18, 2 }
 0x62c   : > { %v13231_v29 = vpop.permute.xlu2 %6374  ;;  %v6266_v26 = vsel %vm657_vm7, %v6262_v48, %v13176_v22  ;;  %v6265_v1 = vsel %vm657_vm7, %v6260_v11, %v6262_v48  ;;  %v6871_v22 = vsel %vm1443_vm1, %v6869_v54, %v6870_v17  ;;  %v13286_v11 = vstv %s13258_s15 }
 0x62d   : > { %v13239_v14 = vadd.f32 %v13231_v29, %v6309_v27  ;;  %v13241_v36 = vadd.f32 %v6266_v26, %v6197_v0  ;;  %v13243_v16 = vadd.f32 %v6265_v1, %v6196_v20  ;;  %v13251_v27 = vstv %s7636_s9  ;;  %s7244_s9 = sshll.u32 %s7241_s14, 4  ;;  %s7245_s9 = int_to_ptr.hbm [resolvable:$true] %s7244_s9 }
 0x62e   : > { %v6900_v0 = vrot.slane %v6888_v51, 2  ;;  %v6901_v20 = vrot.slane %v6891_v59, 2  ;;  %v6462_v32 = vmul.f32 %v13048_v10, %v13251_v27  ;;  %v6465_v34 = vmul.f32 %v13053_v35, %v13251_v27  ;;  %s8041_s15 = sshra.s32 %s7245_s9, 4  ;;  %s8042_s15 = int_to_ptr.hbm [resolvable:$true] %s8041_s15 }
 0x62f   : > { %v6494_v13 = vmul.f32 %v13053_v35, %v13286_v11  ;;  %p8048_p10 = scmp.lt.s32.totalorder %s8042_s15, %s13578_s6 }
 0x630   : > { %v6902_v37 = vsel %vm1443_vm1, %v6900_v0, %v6901_v20  ;;  %v6479_v45 = vrot.slane %v6465_v34, 2 }
 0x631   : > { %6874 = vrot.lane.b32.xlu1 %v6868_v60, %s8178_s8  ;;  %6872 = vrot.lane.b32.xlu0 %v6865_v8, %s8178_s8  ;;  %v6942_v8 = vsel %vm1443_vm1, %v6940_v44, %v6941_v9  ;;  %v6508_v47 = vrot.slane %v6494_v13, 2  ;;  %v13348_v44 = vmul.f32 %v13015_v12, %v13251_v27  ;;  %v13352_v9 = vmul.f32 %v13026_v7, %v13251_v27 }
 0x632   : > { %6876 = vrot.lane.b32.xlu2 %v6871_v22, %s8178_s8  ;;  %s13288_s8 = sld [smem:[#allocation9 + $0xd6]]  ;;  %v6491_v22 = vmul.f32 %v13048_v10, %v13286_v11 }
 0x633   : > { %v6299_v63 = vpop.permute.xlu1 %6298  ;;  %v6297_v33 = vpop.permute.xlu0 %6296 }
 0x634   : > { %v13260_v55 = vpop.permute.xlu2 %6411  ;;  %v6303_v15 = vsel %vm657_vm7, %v6299_v63, %v13195_v61  ;;  %v6302_v3 = vsel %vm657_vm7, %v6297_v33, %v6299_v63  ;;  %v6925_v61 = vmul.f32 %v13030_v5, %v6924_v58  ;;  %v6507_v63 = vrot.slane %v6491_v22, 2 }
 0x635   : > { %v6420_v46 = vadd.f32 %v13260_v55, %v6346_v25  ;;  %v13269_v40 = vadd.f32 %v6303_v15, %v6234_v56  ;;  %v13271_v19 = vadd.f32 %v6302_v3, %v6233_v53  ;;  %v6930_v25 = vmul.f32 %v13053_v35, %v6924_v58 }
 0x636   : > { %v6961_v56 = vstv %s7650_s29  ;;  %v6478_v53 = vrot.slane %v6462_v32, 2  ;;  %v6937_v42 = vrot.slane %v6925_v61, 2  ;;  %s7228_s29 = scalar_lea.sflag [#allocation4], %s8407_s5 }
 0x637   : > { %v6944_v57 = vrot.slane %v6930_v25, 2  ;;  %v6963_v48 = vmul.f32 %v13015_v12, %v6961_v56  ;;  %v6966_v26 = vmul.f32 %v13026_v7, %v6961_v56  ;;  %v6962_v1 = vmul.f32 %v13030_v5, %v6961_v56 }
 0x638   : > { %v6965_v60 = vmul.f32 %v13042_v31, %v6961_v56  ;;  %v6964_v21 = vmul.f32 %v13048_v10, %v6961_v56  ;;  %v6998_v15 = vstv %s13288_s8  ;;  %s8043_s8 = scalar_lea.hbm %s8042_s15, 48 }
 0x639   : > { %6911 = vrot.lane.b32.xlu1 %v6905_v23, %s8179_s26  ;;  %6909 = vrot.lane.b32.xlu0 %v6902_v37, %s8179_s26  ;;  %v6945_v41 = vsel %vm1443_vm1, %v6943_v38, %v6944_v57  ;;  %v6978_v30 = vrot.slane %v6966_v26, 2  ;;  %v6974_v0 = vrot.slane %v6962_v1, 2  ;;  %v6999_v28 = vmul.f32 %v13030_v5, %v6998_v15  ;;  %p8044_p1 = scmp.ne.s32.totalorder %s8042_s15, %s8043_s8 }
 0x63a   : > { %6913 = vrot.lane.b32.xlu2 %v6908_v43, %s8179_s26  ;;  %v6975_v20 = vrot.slane %v6965_v60, 2  ;;  %v6980_v58 = vrot.slane %v6964_v21, 2  ;;  %v7000_v43 = vmul.f32 %v13015_v12, %v6998_v15  ;;  %v7002_v25 = vmul.f32 %v13042_v31, %v6998_v15 }
 0x63b   : > { %v6336_v2 = vpop.permute.xlu1 %6335  ;;  %v6334_v6 = vpop.permute.xlu0 %6333  ;;  %p8045_p4 = pnand %p8044_p1, %p8356_p9 }
 0x63c   : > { %v13290_v54 = vpop.permute.xlu2 %6448  ;;  %v6340_v17 = vsel %vm702_vm8, %v6336_v2, %v13212_v62  ;;  %v6339_v52 = vsel %vm702_vm8, %v6334_v6, %v6336_v2  ;;  %v6939_v62 = vsel %vm1443_vm1, %v6937_v42, %v6938_v49  ;;  %v6976_v4 = vsel %vm1443_vm1, %v6974_v0, %v6975_v20 }
 0x63d   : > { %v6457_v39 = vadd.f32 %v13290_v54, %v13239_v14  ;;  %v13300_v51 = vadd.f32 %v6340_v17, %v13241_v36  ;;  %v13303_v59 = vadd.f32 %v6339_v52, %v13243_v16  ;;  %v6967_v14 = vmul.f32 %v13053_v35, %v6961_v56  ;;  %p8046_p6 = pneg %p8045_p4 }
 0x63e   : > { %v6480_v36 = vsel %vm1443_vm1, %v6478_v53, %v6479_v45  ;;  %v6977_v16 = vrot.slane %v6963_v48, 2  ;;  %v7001_v53 = vmul.f32 %v13048_v10, %v6998_v15  ;;  %v6509_v45 = vsel %vm1443_vm1, %v6507_v63, %v6508_v47 }
 0x63f   : > { %v6486_v33 = vadd.f32 %v6480_v36, %v6420_v46  ;;  %v6981_v32 = vrot.slane %v6967_v14, 2  ;;  %v7014_v42 = vrot.slane %v7000_v43, 2  ;;  %v7011_v2 = vrot.slane %v6999_v28, 2 }
 0x640   : > { %v6979_v37 = vsel %vm1443_vm1, %v6977_v16, %v6978_v30  ;;  %v7012_v6 = vrot.slane %v7002_v25, 2  ;;  %v6515_v38 = vadd.f32 %v6509_v45, %v6457_v39  ;;  %v7017_v17 = vrot.slane %v7001_v53, 2 }
 0x641   : > { %6948 = vrot.lane.b32.xlu1 %v6942_v8, %s8179_s26  ;;  %6946 = vrot.lane.b32.xlu0 %v6939_v62, %s8179_s26  ;;  %v6982_v56 = vsel %vm1443_vm1, %v6980_v58, %v6981_v32  ;;  %v6463_v30 = vmul.f32 %v13042_v31, %v13251_v27  ;;  %v6490_v47 = vmul.f32 %v13015_v12, %v13286_v11 }
 0x642   : > { %6950 = vrot.lane.b32.xlu2 %v6945_v41, %s8179_s26  ;;  %s13356_s26 = sld [smem:[#allocation9 + $0xd7]]  ;;  %v7013_v16 = vsel %vm1443_vm1, %v7011_v2, %v7012_v6  ;;  %v6493_v25 = vmul.f32 %v13026_v7, %v13286_v11  ;;  %v6489_v2 = vmul.f32 %v13030_v5, %v13286_v11 }
 0x643   : > { %v6373_v50 = vpop.permute.xlu1 %6372  ;;  %v6371_v24 = vpop.permute.xlu0 %6370  ;;  %v6473_v58 = vrot.slane %v6463_v30, 2 }
 0x644   : > { %v13320_v3 = vpop.permute.xlu2 %6543  ;;  %v6377_v23 = vsel %vm702_vm8, %v6373_v50, %v13231_v29  ;;  %v6376_v34 = vsel %vm702_vm8, %v6371_v24, %v6373_v50  ;;  %v7003_v29 = vmul.f32 %v13026_v7, %v6998_v15  ;;  %v6475_v50 = vrot.slane %v13348_v44, 2 }
 0x645   : > { %v13327_v18 = vadd.f32 %v13320_v3, %v6486_v33  ;;  %v13330_v46 = vadd.f32 %v6377_v23, %v13269_v40  ;;  %v13333_v61 = vadd.f32 %v6376_v34, %v13271_v19  ;;  %v7004_v40 = vmul.f32 %v13053_v35, %v6998_v15 }
 0x646   : > { %v7035_v19 = vstv %s7652_s0  ;;  %v7015_v49 = vrot.slane %v7003_v29, 2  ;;  %v6505_v6 = vrot.slane %v6493_v25, 2 }
 0x647   : > { %v7018_v52 = vrot.slane %v7004_v40, 2  ;;  %v7037_v26 = vmul.f32 %v13015_v12, %v7035_v19  ;;  %v7040_v62 = vmul.f32 %v13026_v7, %v7035_v19  ;;  %v7036_v22 = vmul.f32 %v13030_v5, %v7035_v19 }
 0x648   : > { %v7039_v14 = vmul.f32 %v13042_v31, %v7035_v19  ;;  %v7016_v36 = vsel %vm1443_vm1, %v7014_v42, %v7015_v49  ;;  %v7038_v0 = vmul.f32 %v13048_v10, %v7035_v19 }
 0x649   : > { %6985 = vrot.lane.b32.xlu1 %v6979_v37, %s8180_s13  ;;  %6983 = vrot.lane.b32.xlu0 %v6976_v4, %s8180_s13  ;;  %v7019_v13 = vsel %vm1443_vm1, %v7017_v17, %v7018_v52  ;;  %v7052_v20 = vrot.slane %v7040_v62, 2  ;;  %v7048_v63 = vrot.slane %v7036_v22, 2  ;;  %v7072_v37 = vstv %s13356_s26 }
 0x64a   : > { %6987 = vrot.lane.b32.xlu2 %v6982_v56, %s8180_s13  ;;  %v7049_v33 = vrot.slane %v7039_v14, 2  ;;  %v7054_v23 = vrot.slane %v7038_v0, 2  ;;  %v7073_v44 = vmul.f32 %v13030_v5, %v7072_v37  ;;  %v7075_v49 = vmul.f32 %v13048_v10, %v7072_v37 }
 0x64b   : > { %v6410_v57 = vpop.permute.xlu1 %6409  ;;  %v6408_v48 = vpop.permute.xlu0 %6407  ;;  %v6501_v62 = vrot.slane %v6489_v2, 2 }
 0x64c   : > { %v13358_v1 = vpop.permute.xlu2 %6580  ;;  %v6414_v60 = vsel %vm747_vm9, %v6410_v57, %v13260_v55  ;;  %v6413_v8 = vsel %vm747_vm9, %v6408_v48, %v6410_v57  ;;  %v6460_v55 = vmul.f32 %v13030_v5, %v13251_v27  ;;  %v6476_v27 = vrot.slane %v13352_v9, 2 }
 0x64d   : > { %v13366_v39 = vadd.f32 %v13358_v1, %v6515_v38  ;;  %v6419_v41 = vadd.f32 %v6414_v60, %v13300_v51  ;;  %v6418_v21 = vadd.f32 %v6413_v8, %v13303_v59  ;;  %v7041_v51 = vmul.f32 %v13053_v35, %v7035_v19 }
 0x64e   : > { %v7051_v59 = vrot.slane %v7037_v26, 2  ;;  %v6472_v24 = vrot.slane %v6460_v55, 2  ;;  %v7050_v45 = vsel %vm1443_vm1, %v7048_v63, %v7049_v33  ;;  %v7074_v19 = vmul.f32 %v13015_v12, %v7072_v37 }
 0x64f   : > { %v7055_v34 = vrot.slane %v7041_v51, 2  ;;  %v7076_v9 = vmul.f32 %v13042_v31, %v7072_v37  ;;  %v6492_v12 = vmul.f32 %v13042_v31, %v13286_v11  ;;  %v7085_v38 = vrot.slane %v7073_v44, 2 }
 0x650   : > { %v7053_v28 = vsel %vm1443_vm1, %v7051_v59, %v7052_v20  ;;  %v7088_v10 = vrot.slane %v7074_v19, 2  ;;  %v7091_v5 = vrot.slane %v7075_v49, 2 }
 0x651   : > { %7022 = vrot.lane.b32.xlu1 %v7016_v36, %s8180_s13  ;;  %7020 = vrot.lane.b32.xlu0 %v7013_v16, %s8180_s13  ;;  %v7056_v42 = vsel %vm1443_vm1, %v7054_v23, %v7055_v34  ;;  %v7086_v57 = vrot.slane %v7076_v9, 2  ;;  %v6502_v22 = vrot.slane %v6492_v12, 2 }
 0x652   : > { %7024 = vrot.lane.b32.xlu2 %v7019_v13, %s8180_s13  ;;  %s7110_s13 = sld [smem:[#allocation11]] }
 0x653   : > { %v6447_v32 = vpop.permute.xlu1 %6446  ;;  %v6445_v15 = vpop.permute.xlu0 %6444  ;;  %v6503_v13 = vsel %vm1443_vm1, %v6501_v62, %v6502_v22 }
 0x654   : > { %v13388_v4 = vpop.permute.xlu2 %6617  ;;  %v6451_v43 = vsel %vm747_vm9, %v6447_v32, %v13290_v54  ;;  %v6450_v29 = vsel %vm747_vm9, %v6445_v15, %v6447_v32  ;;  %v7077_v54 = vmul.f32 %v13026_v7, %v7072_v37  ;;  %v6504_v7 = vrot.slane %v6490_v47, 2 }
 0x655   : > { %v6626_v56 = vadd.f32 %v13388_v4, %v13327_v18  ;;  %v6456_v53 = vadd.f32 %v6451_v43, %v13330_v46  ;;  %v6455_v40 = vadd.f32 %v6450_v29, %v13333_v61  ;;  %v7078_v18 = vmul.f32 %v13053_v35, %v7072_v37 }
 0x656   : > { %v6477_v46 = vsel %vm1443_vm1, %v6475_v50, %v6476_v27  ;;  %v6474_v61 = vsel %vm1443_vm1, %v6472_v24, %v6473_v58  ;;  %v7089_v35 = vrot.slane %v7077_v54, 2  ;;  %v6506_v30 = vsel %vm1443_vm1, %v6504_v7, %v6505_v6 }
 0x657   : > { %v6485_v17 = vadd.f32 %v6477_v46, %v6419_v41  ;;  %v6484_v26 = vadd.f32 %v6474_v61, %v6418_v21  ;;  %v7092_v60 = vrot.slane %v7078_v18, 2  ;;  %v7087_v41 = vsel %vm1443_vm1, %v7085_v38, %v7086_v57 }
 0x658   : > { %v7090_v55 = vsel %vm1443_vm1, %v7088_v10, %v7089_v35  ;;  %v6513_v51 = vadd.f32 %v6503_v13, %v6455_v40 }
 0x659   : > { %7059 = vrot.lane.b32.xlu1 %v7053_v28, %s8181_s4  ;;  %7057 = vrot.lane.b32.xlu0 %v7050_v45, %s8181_s4  ;;  %v7093_v21 = vsel %vm1443_vm1, %v7091_v5, %v7092_v60 }
 0x65a   : > { %7061 = vrot.lane.b32.xlu2 %v7056_v42, %s8181_s4 }
 0x65b   : > { %v6542_v48 = vpop.permute.xlu1 %6541  ;;  %v6540_v52 = vpop.permute.xlu0 %6539 }
 0x65c   : > { %v6655_v8 = vpop.permute.xlu2 %6654  ;;  %v6546_v31 = vsel %vm432_vm2, %v6542_v48, %v13320_v3  ;;  %v6545_v11 = vsel %vm432_vm2, %v6540_v52, %v6542_v48 }
 0x65d   : > { %v6663_v14 = vadd.f32 %v6655_v8, %v13366_v39  ;;  %v6551_v36 = vadd.f32 %v6546_v31, %v6485_v17  ;;  %v6550_v16 = vadd.f32 %v6545_v11, %v6484_v26  ;;  %v6514_v39 = vadd.f32 %v6506_v30, %v6456_v53 }
 0x661   : > { %7096 = vrot.lane.b32.xlu1 %v7090_v55, %s8181_s4  ;;  %7094 = vrot.lane.b32.xlu0 %v7087_v41, %s8181_s4 }
 0x662   : > { %7098 = vrot.lane.b32.xlu2 %v7093_v21, %s8181_s4  ;;  %s7656_s4 = sld [smem:[#allocation11 + $0x2]] }
 0x663   : > { %v6579_v3 = vpop.permute.xlu1 %6578  ;;  %v6577_v0 = vpop.permute.xlu0 %6576 }
 0x664   : > { %v6692_v59 = vpop.permute.xlu2 %6691  ;;  %v6583_v20 = vsel %vm432_vm2, %v6579_v3, %v13358_v1  ;;  %v6582_v63 = vsel %vm432_vm2, %v6577_v0, %v6579_v3 }
 0x665   : > { %v6700_v33 = vadd.f32 %v6692_v59, %v6626_v56  ;;  %v6588_v50 = vadd.f32 %v6583_v20, %v6514_v39  ;;  %v6587_v27 = vadd.f32 %v6582_v63, %v6513_v51 }
 0x66b   : > { %v6616_v24 = vpop.permute.xlu1 %6615  ;;  %v6614_v58 = vpop.permute.xlu0 %6613 }
 0x66c   : > { %v6729_v32 = vpop.permute.xlu2 %6728  ;;  %v6620_v15 = vsel %vm477_vm3, %v6616_v24, %v13388_v4  ;;  %v6619_v23 = vsel %vm477_vm3, %v6614_v58, %v6616_v24  ;;  %v7111_v58 = vstv %s7110_s13  ;;  %s8047_s13 = scalar_lea.hbm %s13578_s6, 192 }
 0x66d   : > { %v6737_v34 = vadd.f32 %v6729_v32, %v6663_v14  ;;  %v6625_v37 = vadd.f32 %v6620_v15, %v6551_v36  ;;  %v6624_v47 = vadd.f32 %v6619_v23, %v6550_v16  ;;  %p8049_p2 = scmp.lt.s32.totalorder %s8047_s13, %s8043_s8 }
 0x66f   : > { %p8050_p11 = por %p8049_p2, %p8048_p10 }
 0x671   : > { %p8051_p12 = pnand %p8050_p11, %p8046_p6 }
 0x673   : > { %v6653_v43 = vpop.permute.xlu1 %6652  ;;  %v6651_v29 = vpop.permute.xlu0 %6650 }
 0x674   : > { %v6766_v28 = vpop.permute.xlu2 %6765  ;;  %v6657_v1 = vsel %vm477_vm3, %v6653_v43, %v6655_v8  ;;  %v6656_v25 = vsel %vm477_vm3, %v6651_v29, %v6653_v43  ;;  %v13466_v29 = vstv %s7108_s30 }
 0x675   : > { %v6662_v56 = vadd.f32 %v6657_v1, %v6588_v50  ;;  %v6661_v53 = vadd.f32 %v6656_v25, %v6587_v27  ;;  %v6774_v3 = vadd.f32 %v6766_v28, %v6700_v33  ;;  %v13470_v1 = vstv %s7654_s16 }
 0x67b   : > { %v6690_v40 = vpop.permute.xlu1 %6689  ;;  %v6688_v45 = vpop.permute.xlu0 %6687 }
 0x67c   : > { %v6803_v19 = vpop.permute.xlu2 %6802  ;;  %v6694_v54 = vsel %vm522_vm4, %v6690_v40, %v6692_v59  ;;  %v6693_v4 = vsel %vm522_vm4, %v6688_v45, %v6690_v40 }
 0x67d   : > { %v6699_v44 = vadd.f32 %v6694_v54, %v6625_v37  ;;  %v6698_v9 = vadd.f32 %v6693_v4, %v6624_v47  ;;  %v6811_v63 = vadd.f32 %v6803_v19, %v6737_v34  ;;  %v13472_v34 = vstv %s7657_s2 }
 0x683   : > { %v6727_v42 = vpop.permute.xlu1 %6726  ;;  %v6725_v49 = vpop.permute.xlu0 %6724 }
 0x684   : > { %v6840_v18 = vpop.permute.xlu2 %6839  ;;  %v6731_v46 = vsel %vm522_vm4, %v6727_v42, %v6729_v32  ;;  %v6730_v61 = vsel %vm522_vm4, %v6725_v49, %v6727_v42  ;;  %v7129_v32 = vstv %s7656_s4 }
 0x685   : > { %v6736_v2 = vadd.f32 %v6731_v46, %v6662_v56  ;;  %v13441_v12 = vadd.f32 %v6730_v61, %v6661_v53  ;;  %v6848_v39 = vadd.f32 %v6840_v18, %v6774_v3 }
 0x68b   : > { %v6764_v7 = vpop.permute.xlu1 %6763  ;;  %v6762_v6 = vpop.permute.xlu0 %6761 }
 0x68c   : > { %v6877_v10 = vpop.permute.xlu2 %6876  ;;  %v6768_v35 = vsel %vm567_vm5, %v6764_v7, %v6766_v28  ;;  %v6767_v38 = vsel %vm567_vm5, %v6762_v6, %v6764_v7  ;;  %v13468_v28 = vstv %s7655_s12 }
 0x68d   : > { %v6773_v57 = vadd.f32 %v6768_v35, %v6699_v44  ;;  %v13445_v48 = vadd.f32 %v6767_v38, %v6698_v9  ;;  %v6885_v27 = vadd.f32 %v6877_v10, %v6811_v63 }
 0x693   : > { %v13447_v17 = vpop.permute.xlu1 %6800  ;;  %v13449_v52 = vpop.permute.xlu0 %6798 }
 0x694   : > { %v6914_v26 = vpop.permute.xlu2 %6913  ;;  %v6805_v5 = vsel %vm567_vm5, %v13447_v17, %v6803_v19 }
 0x695   : > { %v6810_v60 = vadd.f32 %v6805_v5, %v6736_v2  ;;  %v6922_v0 = vadd.f32 %v6914_v26, %v6848_v39 }
 0x69b   : > { %v6838_v8 = vpop.permute.xlu1 %6837  ;;  %v6836_v31 = vpop.permute.xlu0 %6835 }
 0x69c   : > { %v13453_v11 = vpop.permute.xlu2 %6950  ;;  %v6842_v62 = vsel %vm612_vm6, %v6838_v8, %v6840_v18  ;;  %v6841_v49 = vsel %vm612_vm6, %v6836_v31, %v6838_v8 }
 0x69d   : > { %v6847_v22 = vadd.f32 %v6842_v62, %v6773_v57  ;;  %v6959_v15 = vadd.f32 %v13453_v11, %v6885_v27  ;;  %v6804_v57 = vsel %vm567_vm5, %v13449_v52, %v13447_v17 }
 0x6a3   : > { %v13456_v14 = vpop.permute.xlu1 %6874  ;;  %v6873_v36 = vpop.permute.xlu0 %6872 }
 0x6a4   : > { %v6988_v16 = vpop.permute.xlu2 %6987  ;;  %v6879_v55 = vsel %vm612_vm6, %v13456_v14, %v6877_v10  ;;  %v6846_v10 = vadd.f32 %v6841_v49, %v13445_v48 }
 0x6a5   : > { %v13460_v41 = vadd.f32 %v6879_v55, %v6810_v60  ;;  %v6996_v50 = vadd.f32 %v6988_v16, %v6922_v0 }
 0x6ab   : > { %v6912_v21 = vpop.permute.xlu1 %6911  ;;  %v6910_v30 = vpop.permute.xlu0 %6909 }
 0x6ac   : > { %v13462_v13 = vpop.permute.xlu2 %7024  ;;  %v6916_v61 = vsel %vm657_vm7, %v6912_v21, %v6914_v26  ;;  %v6915_v2 = vsel %vm657_vm7, %v6910_v30, %v6912_v21  ;;  %v6878_v26 = vsel %vm612_vm6, %v6873_v36, %v13456_v14  ;;  %v6809_v21 = vadd.f32 %v6804_v57, %v13441_v12 }
 0x6ad   : > { %v7033_v33 = vadd.f32 %v13462_v13, %v6959_v15  ;;  %v6921_v5 = vadd.f32 %v6916_v61, %v6847_v22  ;;  %v6920_v60 = vadd.f32 %v6915_v2, %v6846_v10 }
 0x6ae   : > { %v6883_v39 = vadd.f32 %v6878_v26, %v6809_v21 }
 0x6b3   : > { %v6949_v51 = vpop.permute.xlu1 %6948  ;;  %v6947_v59 = vpop.permute.xlu0 %6946 }
 0x6b4   : > { %v7062_v20 = vpop.permute.xlu2 %7061  ;;  %v6953_v30 = vsel %vm657_vm7, %v6949_v51, %v13453_v11  ;;  %v6952_v17 = vsel %vm657_vm7, %v6947_v59, %v6949_v51 }
 0x6b5   : > { %v7070_v24 = vadd.f32 %v7062_v20, %v6996_v50  ;;  %v6957_v63 = vadd.f32 %v6952_v17, %v6883_v39 }
 0x6b7   : > { %v7114_v23 = vmul.f32 %v7111_v58, %v7070_v24  ;;  %v7132_v37 = vmul.f32 %v7129_v32, %v7070_v24 }
 0x6b9   : > { %v7117_v53 = vadd.f32 %v7114_v23, %v13466_v29  ;;  %v7135_v40 = vadd.f32 %v7132_v37, %v13468_v28 }
 0x6bb   : > { %v6986_v47 = vpop.permute.xlu1 %6985  ;;  %v6984_v43 = vpop.permute.xlu0 %6983 }
 0x6bc   : > { %v7099_v25 = vpop.permute.xlu2 %7098  ;;  %v6990_v35 = vsel %vm702_vm8, %v6986_v47, %v6988_v16  ;;  %v6989_v38 = vsel %vm702_vm8, %v6984_v43, %v6986_v47 }
 0x6bd   : > { %v7107_v56 = vadd.f32 %v7099_v25, %v7033_v33  ;;  %v6995_v62 = vadd.f32 %v6990_v35, %v6921_v5  ;;  %v6994_v55 = vadd.f32 %v6989_v38, %v6920_v60 }
 0x6bf   : > { %v7122_v45 = vmul.f32 %v13470_v1, %v7107_v56  ;;  %v7140_v19 = vmul.f32 %v13472_v34, %v7107_v56 }
 0x6c1   : > { %v7125_v54 = vadd.f32 %v7122_v45, %v7117_v53  ;;  %v7143_v4 = vadd.f32 %v7140_v19, %v7135_v40 }
 0x6c3   : > { %v7146_v44 = vmax.f32 %v7125_v54, %v7143_v4  ;;  %v7023_v9 = vpop.permute.xlu1 %7022  ;;  %v7021_v42 = vpop.permute.xlu0 %7020 }
 0x6c4   : > { %v7027_v36 = vsel %vm702_vm8, %v7023_v9, %v13462_v13  ;;  %v7026_v0 = vsel %vm702_vm8, %v7021_v42, %v7023_v9 }
 0x6c5   : > { %v7149_v18 = vsub.f32 %v7125_v54, %v7146_v44  ;;  %v7152_v46 = vsub.f32 %v7143_v4, %v7146_v44  ;;  %v7031_v59 = vadd.f32 %v7026_v0, %v6957_v63 }
 0x6c7   : > { %v7157_v7 = vmul.f32 1.442695, %v7149_v18  ;;  %v7163_v6 = vmul.f32 1.442695, %v7152_v46 }
 0x6c9   : > { %7835 = vpow2.f32 %v7157_v7 }
 0x6ca   : > { %7837 = vpow2.f32 %v7163_v6 }
 0x6cb   : > { %v7060_v8 = vpop.permute.xlu1 %7059  ;;  %v7058_v31 = vpop.permute.xlu0 %7057 }
 0x6cc   : > { %v7064_v48 = vsel %vm747_vm9, %v7060_v8, %v7062_v20  ;;  %v7063_v16 = vsel %vm747_vm9, %v7058_v31, %v7060_v8  ;;  %v6958_v20 = vadd.f32 %v6953_v30, %v13460_v41 }
 0x6cd   : > { %v7069_v52 = vadd.f32 %v7064_v48, %v6995_v62  ;;  %v7068_v22 = vadd.f32 %v7063_v16, %v6994_v55 }
 0x6ce   : > { %v7032_v51 = vadd.f32 %v7027_v36, %v6958_v20 }
 0x6cf   : > { %v7836_v3 = vpop.eup %7835  ;;  %v7113_v12 = vmul.f32 %v7111_v58, %v7069_v52  ;;  %v7131_v27 = vmul.f32 %v7129_v32, %v7069_v52  ;;  %v7112_v24 = vmul.f32 %v7111_v58, %v7068_v22  ;;  %v7130_v11 = vmul.f32 %v7129_v32, %v7068_v22 }
 0x6d0   : > { %v7838_v14 = vpop.eup %7837 }
 0x6d1   : > { %v7167_v50 = vadd.f32 %v7838_v14, %v7836_v3  ;;  %v7116_v43 = vadd.f32 %v7113_v12, %v13466_v29  ;;  %v7134_v41 = vadd.f32 %v7131_v27, %v13468_v28  ;;  %v7115_v56 = vadd.f32 %v7112_v24, %v13466_v29 }
 0x6d2   : > { %v7133_v58 = vadd.f32 %v7130_v11, %v13468_v28 }
 0x6d3   : > { %7839 = vrcp.f32 %v7167_v50  ;;  %v7097_v15 = vpop.permute.xlu1 %7096  ;;  %v7095_v33 = vpop.permute.xlu0 %7094  ;;  %v7209_v18 = vand.u32 2147483648, %v7167_v50  ;;  %vm7203_vm11 = vweird.f32 %v7167_v50 }
 0x6d4   : > { %v7101_v23 = vsel %vm747_vm9, %v7097_v15, %v7099_v25  ;;  %v7100_v37 = vsel %vm747_vm9, %v7095_v33, %v7097_v15 }
 0x6d5   : > { %v7106_v13 = vadd.f32 %v7101_v23, %v7032_v51  ;;  %v7105_v47 = vadd.f32 %v7100_v37, %v7031_v59  ;;  %v7210_v57 = vor.u32 1.1754944e-38, %v7209_v18 }
 0x6d7   : > { %v7121_v32 = vmul.f32 %v13470_v1, %v7106_v13  ;;  %v7139_v53 = vmul.f32 %v13472_v34, %v7106_v13  ;;  %v7120_v40 = vmul.f32 %v13470_v1, %v7105_v47  ;;  %v7138_v25 = vmul.f32 %v13472_v34, %v7105_v47 }
 0x6d8   : > { %v7207_v1 = vand.u32 2147483647, %v7167_v50 }
 0x6d9   : > { %v7840_v45 = vpop.eup %7839  ;;  %v7124_v19 = vadd.f32 %v7121_v32, %v7116_v43  ;;  %v7142_v54 = vadd.f32 %v7139_v53, %v7134_v41  ;;  %v7123_v4 = vadd.f32 %v7120_v40, %v7115_v56  ;;  %v7141_v44 = vadd.f32 %v7138_v25, %v7133_v58 }
 0x6da   : > { %v7199_v9 = vmul.f32 %v7840_v45, %v7167_v50  ;;  %vm7204_vm10 = vweird.f32 %v7840_v45  ;;  %vm7208_vm13 = vcmp.eq.f32.partialorder %v7207_v1, 8.507059e+37 }
 0x6db   : > { %v7145_v42 = vmax.f32 %v7124_v19, %v7142_v54  ;;  %v7144_v49 = vmax.f32 %v7123_v4, %v7141_v44  ;;  %vm7205_vm12 = vmor %vm7203_vm11, %vm7204_vm10 }
 0x6dc   : > { %v7200_v29 = vsub.f32 1.0, %v7199_v9 }
 0x6dd   : > { %v7148_v28 = vsub.f32 %v7124_v19, %v7145_v42  ;;  %v7151_v46 = vsub.f32 %v7142_v54, %v7145_v42  ;;  %v7147_v61 = vsub.f32 %v7123_v4, %v7144_v49  ;;  %v7150_v2 = vsub.f32 %v7141_v44, %v7144_v49 }
 0x6de   : > { %v7201_v7 = vmul.f32 %v7840_v45, %v7200_v29 }
 0x6df   : > { %v7155_v6 = vmul.f32 1.442695, %v7148_v28  ;;  %v7161_v34 = vmul.f32 1.442695, %v7151_v46  ;;  %v7153_v10 = vmul.f32 1.442695, %v7147_v61 }
 0x6e0   : > { %v7202_v35 = vadd.f32 %v7840_v45, %v7201_v7  ;;  %v7159_v38 = vmul.f32 1.442695, %v7150_v2 }
 0x6e1   : > { %7841 = vpow2.f32 %v7155_v6 }
 0x6e2   : > { %v7206_v5 = vsel %vm7205_vm12, %v7840_v45, %v7202_v35  ;;  %7843 = vpow2.f32 %v7161_v34 }
 0x6e3   : > { %v7211_v60 = vsel %vm7208_vm13, %v7210_v57, %v7206_v5  ;;  %7845 = vpow2.f32 %v7153_v10 }
 0x6e4   : > { %v7215_v26 = vmul.f32 %v7836_v3, %v7211_v60  ;;  %v7218_v8 = vmul.f32 %v7838_v14, %v7211_v60  ;;  %7847 = vpow2.f32 %v7159_v38 }
 0x6e6   : > { %7222 = vst.msk [vmem:[%s13510_s18 + $0x10] sm:$0xff] %vm7221_vm14, %v7215_v26 }
 0x6e7   : > { %v7842_v31 = vpop.eup %7841  ;;  %7660 = vst.msk [vmem:[%s13510_s18 + $0x28] sm:$0xff] %vm7221_vm14, %v7218_v8 }
 0x6e8   : > { %v7844_v62 = vpop.eup %7843 }
 0x6e9   : > { %v7846_v55 = vpop.eup %7845  ;;  %v7166_v48 = vadd.f32 %v7844_v62, %v7842_v31 }
 0x6ea   : > { %v7848_v16 = vpop.eup %7847 }
 0x6eb   : > { %7849 = vrcp.f32 %v7166_v48  ;;  %v7165_v21 = vadd.f32 %v7848_v16, %v7846_v55  ;;  %v7194_v3 = vand.u32 2147483648, %v7166_v48  ;;  %v7192_v36 = vand.u32 2147483647, %v7166_v48 }
 0x6ec   : > { %vm7188_vm0 = vweird.f32 %v7166_v48 }
 0x6ed   : > { %7851 = vrcp.f32 %v7165_v21  ;;  %v7179_v63 = vand.u32 2147483648, %v7165_v21  ;;  %v7195_v50 = vor.u32 1.1754944e-38, %v7194_v3  ;;  %v7177_v27 = vand.u32 2147483647, %v7165_v21 }
 0x6ee   : > { %vm7193_vm3 = vcmp.eq.f32.partialorder %v7192_v36, 8.507059e+37  ;;  %vm7173_vm4 = vweird.f32 %v7165_v21 }
 0x6ef   : > { %v7180_v33 = vor.u32 1.1754944e-38, %v7179_v63  ;;  %vm7178_vm6 = vcmp.eq.f32.partialorder %v7177_v27, 8.507059e+37 }
 0x6f1   : > { %v7850_v30 = vpop.eup %7849 }
 0x6f2   : > { %v7184_v17 = vmul.f32 %v7850_v30, %v7166_v48  ;;  %vm7189_vm15 = vweird.f32 %v7850_v30 }
 0x6f3   : > { %v7852_v52 = vpop.eup %7851  ;;  %vm7190_vm1 = vmor %vm7188_vm0, %vm7189_vm15 }
 0x6f4   : > { %v7185_v22 = vsub.f32 1.0, %v7184_v17  ;;  %v7169_v39 = vmul.f32 %v7852_v52, %v7165_v21  ;;  %vm7174_vm2 = vweird.f32 %v7852_v52 }
 0x6f5   : > { %vm7175_vm5 = vmor %vm7173_vm4, %vm7174_vm2 }
 0x6f6   : > { %v7186_v14 = vmul.f32 %v7850_v30, %v7185_v22  ;;  %v7170_v0 = vsub.f32 1.0, %v7169_v39 }
 0x6f8   : > { %v7187_v20 = vadd.f32 %v7850_v30, %v7186_v14  ;;  %v7171_v12 = vmul.f32 %v7852_v52, %v7170_v0 }
 0x6fa   : > { %v7191_v24 = vsel %vm7190_vm1, %v7850_v30, %v7187_v20  ;;  %v7172_v51 = vadd.f32 %v7852_v52, %v7171_v12 }
 0x6fb   : > { %v7196_v11 = vsel %vm7193_vm3, %v7195_v50, %v7191_v24 }
 0x6fc   : > { %v7214_v59 = vmul.f32 %v7842_v31, %v7196_v11  ;;  %v7217_v15 = vmul.f32 %v7844_v62, %v7196_v11  ;;  %v7176_v23 = vsel %vm7175_vm5, %v7852_v52, %v7172_v51 }
 0x6fd   : > { %v7181_v37 = vsel %vm7178_vm6, %v7180_v33, %v7176_v23 }
 0x6fe   : > { %7220 = vst [vmem:[%s13510_s18 + $0x8] sm:$0xff] %v7214_v59  ;;  %v7213_v13 = vmul.f32 %v7846_v55, %v7181_v37  ;;  %v7216_v47 = vmul.f32 %v7848_v16, %v7181_v37 }
 0x6ff   : > { %7659 = vst [vmem:[%s13510_s18 + $0x20] sm:$0xff] %v7217_v15 }
 0x700   : > { %7219 = vst [vmem:[%s13510_s18] sm:$0xff] %v7213_v13 }
 0x701   : > { %7658 = vst [vmem:[%s13510_s18 + $0x18] sm:$0xff] %v7216_v47 }
 0x702   : > { %8054 = shalt.err (!%p8051_p12)
}
 0x703   : > { %s8182_s5 = smov 384   ;;  %s8183_s12 = smov 768  }
 0x704   : > { %s8184_s16 = smov 24  }
 0x705   : > { %7693 = dma.vmem_to_hbm [thread:$0]  (%p8356_p9), %s7243_s20, 768, %s7245_s9, %s7228_s29, %s8182_s5, %s8183_s12, %s8184_s16  }
 0x706 PF: > { %s14542_s2 = sld [smem:[#allocation21_spill]]  ;;  %p7728_p13 = scmp.ge.s32.totalorder %s8165_s7, 2 }
 0x708   : > { %p7716_p3 = pnand %p7728_p13, %p8299_p8 }
 0x70a   : > { %p7717_p0 = pneg %p7716_p3 }
 0x70c   : > { %s7259_s18 = sand.u32 1, %s14542_s2  }
 0x70d   : > { %s7260_s10 = scalar_lea.sflag [#allocation4], %s7259_s18 }
 0x70e   : > { %8120 = dma.done.wait (%p7717_p0), %s7260_s10, 768  }
 0x70f   : > { %8122 = vsyncadd (%p7717_p0), %s7260_s10, 4294966528  ;;  %s28_s7 = sadd.s32 1, %s8165_s7   ;;  %s14544_s19 = sld [smem:[#allocation22_spill]] }
 0x710   : > { %p25_p5 = scmp.ge.s32.totalorder %s28_s7, 6   ;;  %s14545_s26 = sld [smem:[#allocation29_spill]] }
 0x711   : > { %s14546_s27 = sld [smem:[#allocation23_spill]]  ;;  %s14550_s21 = smov %s8129_s22 }
 0x712   : > { %s14547_s28 = sld [smem:[#allocation24_spill]]  ;;  %s14551_s22 = smov %s8133_s23 }
 0x713   : > { %s14548_s29 = sld [smem:[#allocation26_spill]]  ;;  %s14552_s23 = smov %s8394_s3 }
 0x714   : > { %s14549_s30 = sld [smem:[#allocation28_spill]]  ;;  %s14553_s24 = smov %s8141_s25 }
 0x715   : > { %s14554_s25 = smov %s14544_s19  ;;  %27 = sbr.rel (!%p25_p5) target bundleno = 20 (0x14), region = 127 }
 0x71a   :  { %7266 = vsyncpa [#allocation3], 1 }
 0x71b   :  { %7268 = vsyncpa [#allocation3 + $0x1], 1 }
 0x71c   :  { %7269 = vsyncpa [#allocation8], 1 }
 0x71d   :  { %7271 = vsyncpa [#allocation8 + $0x1], 1 }
 0x71e   :  { %7272 = vsyncpa [#allocation4], 1 }
 0x71f   :  { %7274 = vsyncpa [#allocation4 + $0x1], 1 }
 0x720   :  { %7275 = vsyncpa [#allocation5], 1 }
 0x721   :  { %7277 = vsyncpa [#allocation5 + $0x1], 1 }
 0x722   :  { %7278 = vsyncpa [#allocation6], 1 }
 0x723   :  { %7280 = vsyncpa [#allocation6 + $0x1], 1 }
 0x724   :  { %7281 = vsyncpa [#allocation12], 1 }

</bundles_post_ra>
